<compile_context>
chip_gen: v6e
topology: v6e:2x2x1
jax: 0.10.0
libtpu: 0.0.40
codegen_flags: <defaults>
</compile_context>

<pallas_src>
import numpy as np
import jax
import jax.numpy as jnp
from jax.experimental import pallas as pl
from jax.experimental.pallas import tpu as pltpu

# ------------------------------------------------------------- dimensions ----
C1, C2 = 20, 50          # real conv output channels
K1 = 25                  # conv patch size (5*5, IC=1 for conv1)
F1, NCLS = 500, 10       # fc1 width, number of classes
C1P = C2P = 128          # lane-padded channel dims
K1P = 128                # lane-padded conv1 patch dim
F1P = 512                # lane-padded fc1 width
F2P = 128                # lane-padded logits width
P1R = 144                # pool1 rows = 12*12 (spatial-major)
H2R = 64                 # phase-stacked conv2 rows = 4 phases * (4*4)


# ------------------------------------------------------------------ kernel ---

def _net_kernel(a1_ref, w1_ref, b1_ref, s2_ref, w2_ref, b2_ref,
                wf1_ref, bf1_ref, wf2_ref, bf2_ref, out_ref):
    f32, bf16 = jnp.float32, jnp.bfloat16

    # ---- conv1: 4 pool-phase matmuls; elementwise max == fused 2x2 max-pool -
    h1 = jnp.dot(a1_ref[0, 0], w1_ref[...], preferred_element_type=f32)
    for q in range(1, 4):
        h1 = jnp.maximum(
            h1, jnp.dot(a1_ref[0, q], w1_ref[...], preferred_element_type=f32))
    p1 = jnp.maximum(h1 + b1_ref[...], 0.0)            # [144, 128] f32 (pool1)
    p1_bf = p1.astype(bf16)

    # ---- conv2: in-kernel im2col via matmul-gather (s2 is 0/1), 25 shifts ---
    h2 = None
    for s in range(25):
        g = jnp.dot(s2_ref[s], p1_bf, preferred_element_type=f32)  # [64, 128]
        t = jnp.dot(g.astype(bf16), w2_ref[s], preferred_element_type=f32)
        h2 = t if h2 is None else h2 + t
    # rows are phase-stacked (q*16 + v*4+u); max over phases == 2x2 max-pool
    h2 = jnp.maximum(jnp.maximum(h2[0:16], h2[16:32]),
                     jnp.maximum(h2[32:48], h2[48:64]))
    p2 = jnp.maximum(h2 + b2_ref[...], 0.0)            # [16, 128] f32 (pool2)

    # ---- fc1 + relu: contract (spatial, channel) as 16 accumulating matmuls -
    acc = bf1_ref[...]                                  # [1, 512] f32
    for p in range(16):
        acc = acc + jnp.dot(p2[p:p + 1, :].astype(bf16), wf1_ref[p],
                            preferred_element_type=f32)
    h3 = jnp.maximum(acc, 0.0).astype(bf16)             # [1, 512]

    # ---- fc2 + log_softmax over the 10 real classes -------------------------
    z = jnp.dot(h3, wf2_ref[...], preferred_element_type=f32) + bf2_ref[...]
    lane = jax.lax.broadcasted_iota(jnp.int32, (1, F2P), 1)
    z = jnp.where(lane < NCLS, z, -1e30)
    m = jnp.max(z, axis=-1, keepdims=True)
    lse = jnp.log(jnp.sum(jnp.exp(z - m), axis=-1, keepdims=True)) + m
    out_ref[0] = jnp.broadcast_to(z - lse, (8, F2P))    # lane-dense store


# ---------------------------------------------------- one-time weight prep ---

def _conv2_gather_matrix():
    """[25, 64, 144] 0/1 matrix: for shift s=ki*5+kj, output row q*16 + v*4+u
    (q = dy*2+dx pool phase) selects pool1 row (2v+dy+ki)*12 + (2u+dx+kj)."""
    s2 = np.zeros((25, H2R, P1R), np.float32)
    for s in range(25):
        ki, kj = divmod(s, 5)
        for q in range(4):
            dy, dx = divmod(q, 2)
            for v in range(4):
                for u in range(4):
                    r = (2 * v + dy + ki) * 12 + (2 * u + dx + kj)
                    s2[s, q * 16 + v * 4 + u, r] = 1.0
    return jnp.asarray(s2, dtype=jnp.bfloat16)


def init_params(key):
    # Deterministic init mirroring PyTorch's default U(-1/sqrt(fan_in), +...)
    def uniform(k, shape, fan_in):
        bound = 1.0 / float(fan_in) ** 0.5
        return jax.random.uniform(k, shape, jnp.float32, -bound, bound)

    ks = jax.random.split(key, 8)
    return {
        "conv1_w": uniform(ks[0], (C1, 1, 5, 5), 1 * 5 * 5),
        "conv1_b": uniform(ks[1], (C1,), 1 * 5 * 5),
        "conv2_w": uniform(ks[2], (C2, C1, 5, 5), C1 * 5 * 5),
        "conv2_b": uniform(ks[3], (C2,), C1 * 5 * 5),
        "fc1_w":   uniform(ks[4], (F1, 16 * C2), 16 * C2),
        "fc1_b":   uniform(ks[5], (F1,), 16 * C2),
        "fc2_w":   uniform(ks[6], (NCLS, F1), F1),
        "fc2_b":   uniform(ks[7], (NCLS,), F1),
    }


def prepare_params(params):
    """One-time layout: pad lanes to 128/512, cast weights to bf16, and
    pre-permute so the kernel consumes them with zero per-call transposes."""
    w1 = params["conv1_w"].transpose(2, 3, 1, 0).reshape(K1, C1)
    w1 = jnp.pad(w1, ((0, K1P - K1), (0, C1P - C1))).astype(jnp.bfloat16)
    b1 = jnp.pad(params["conv1_b"], (0, C1P - C1)).reshape(1, C1P)

    w2 = params["conv2_w"].transpose(2, 3, 1, 0).reshape(K1, C1, C2)
    w2 = jnp.pad(w2, ((0, 0), (0, C1P - C1), (0, C2P - C2))).astype(jnp.bfloat16)
    b2 = jnp.pad(params["conv2_b"], (0, C2P - C2)).reshape(1, C2P)

    # PyTorch flatten index is c*16 + (v*4+u); pool2 in-kernel is [v*4+u, c].
    wf1 = params["fc1_w"].reshape(F1, C2, 16).transpose(2, 1, 0)   # [16,50,500]
    wf1 = jnp.pad(wf1, ((0, 0), (0, C2P - C2), (0, F1P - F1))).astype(jnp.bfloat16)
    bf1 = jnp.pad(params["fc1_b"], (0, F1P - F1)).reshape(1, F1P)

    wf2 = jnp.pad(params["fc2_w"].T,
                  ((0, F1P - F1), (0, F2P - NCLS))).astype(jnp.bfloat16)
    bf2 = jnp.pad(params["fc2_b"], (0, F2P - NCLS)).reshape(1, F2P)

    return dict(w1=w1, b1=b1.astype(jnp.float32), s2=_conv2_gather_matrix(),
                w2=w2, b2=b2.astype(jnp.float32),
                wf1=wf1, bf1=bf1.astype(jnp.float32),
                wf2=wf2, bf2=bf2.astype(jnp.float32))


# -------------------------------------------------------------- forward ------

def _conv1_patches(x):
    """x: [B, 28, 28] f32 -> [B, 4, 144, K1P] bf16 pool-phase-grouped patches.
    # TODO(synk): at training-scale batches, build these patches inside the
    # kernel (shifted-matmul accumulation) to avoid the im2col HBM blowup.
    """
    b = x.shape[0]
    phases = []
    for dy in range(2):
        for dx in range(2):
            cols = [x[:, dy + ki: dy + ki + 24: 2, dx + kj: dx + kj + 24: 2]
                    for ki in range(5) for kj in range(5)]     # 25 x [B,12,12]
            phases.append(jnp.stack(cols, axis=-1).reshape(b, P1R, K1))
    a1 = jnp.stack(phases, axis=1)                             # [B,4,144,25]
    a1 = jnp.pad(a1, ((0, 0), (0, 0), (0, 0), (0, K1P - K1)))
    return a1.astype(jnp.bfloat16)


def net_forward(prepped, x_nchw):
    x = x_nchw[:, 0].astype(jnp.float32)                       # [B, 28, 28]
    b = x.shape[0]
    a1 = _conv1_patches(x)

    out = pl.pallas_call(
        _net_kernel,
        out_shape=jax.ShapeDtypeStruct((b, 8, F2P), jnp.float32),
        grid=(b,),
        in_specs=[
            pl.BlockSpec((1, 4, P1R, K1P), lambda i: (i, 0, 0, 0)),  # a1
            pl.BlockSpec((K1P, C1P), lambda i: (0, 0)),              # w1
            pl.BlockSpec((1, C1P), lambda i: (0, 0)),                # b1
            pl.BlockSpec((25, H2R, P1R), lambda i: (0, 0, 0)),       # s2 gather
            pl.BlockSpec((25, C1P, C2P), lambda i: (0, 0, 0)),       # w2
            pl.BlockSpec((1, C2P), lambda i: (0, 0)),                # b2
            pl.BlockSpec((16, C2P, F1P), lambda i: (0, 0, 0)),       # wf1
            pl.BlockSpec((1, F1P), lambda i: (0, 0)),                # bf1
            pl.BlockSpec((F1P, F2P), lambda i: (0, 0)),              # wf2
            pl.BlockSpec((1, F2P), lambda i: (0, 0)),                # bf2
        ],
        out_specs=pl.BlockSpec((1, 8, F2P), lambda i: (i, 0, 0)),
        compiler_params=pltpu.CompilerParams(
            dimension_semantics=("parallel",),
            vmem_limit_bytes=32 * 1024 * 1024,
        ),
    )(a1, prepped["w1"], prepped["b1"], prepped["s2"], prepped["w2"],
      prepped["b2"], prepped["wf1"], prepped["bf1"], prepped["wf2"],
      prepped["bf2"])
    return out[:, 0, :NCLS]


# ------------------------------------------------ pure-JAX reference (f32) ---

def _ref_pool(y):  # [B,C,H,W] -> [B,C,H//2,W//2]
    b, c, h, w = y.shape
    return y.reshape(b, c, h // 2, 2, w // 2, 2).max(axis=(3, 5))


def net_forward_reference(params, x_nchw):
    dn = ("NCHW", "OIHW", "NCHW")
    y = jax.lax.conv_general_dilated(x_nchw.astype(jnp.float32),
                                     params["conv1_w"], (1, 1), "VALID",
                                     dimension_numbers=dn)
    y = _ref_pool(jax.nn.relu(y + params["conv1_b"][None, :, None, None]))
    y = jax.lax.conv_general_dilated(y, params["conv2_w"], (1, 1), "VALID",
                                     dimension_numbers=dn)
    y = _ref_pool(jax.nn.relu(y + params["conv2_b"][None, :, None, None]))
    y = y.reshape(y.shape[0], -1)                      # NCHW flatten: [B, 800]
    y = jax.nn.relu(y @ params["fc1_w"].T + params["fc1_b"])
    y = y @ params["fc2_w"].T + params["fc2_b"]
    return jax.nn.log_softmax(y, axis=-1)


# ----------------------------------------------------------------- main ------

if __name__ == "__main__":
    key = jax.random.PRNGKey(0)
    k_params, k_x = jax.random.split(key)
    params = init_params(k_params)
    prepped = prepare_params(params)                   # one-time layout work
    x = jax.random.normal(k_x, (2, 1, 28, 28), dtype=jnp.float32)

    fwd = jax.jit(net_forward)
    out = jax.block_until_ready(fwd(prepped, x))

    assert out.shape == (2, NCLS), out.shape
    # log_softmax rows exponentiate to ~1
    assert bool(jnp.all(jnp.abs(jnp.sum(jnp.exp(out), axis=1) - 1.0) < 1e-3))
    # match the f32 pure-JAX reference within bf16 tolerance
    ref = jax.block_until_ready(net_forward_reference(params, x))
    max_err = float(jnp.max(jnp.abs(out - ref)))
    assert max_err < 5e-2, f"max |kernel - ref| = {max_err}"
    print("KERNEL_OK")
</pallas_src>

<mosaic_0001>
module attributes {stable_mosaic.version = 11 : i64} {
  func.func @_net_kernel(%arg0: i32, %arg1: memref<1x4x144x128xbf16, #tpu.memory_space<vmem>>, %arg2: memref<128x128xbf16, #tpu.memory_space<vmem>>, %arg3: memref<1x128xf32, #tpu.memory_space<vmem>>, %arg4: memref<25x64x144xbf16, #tpu.memory_space<vmem>>, %arg5: memref<25x128x128xbf16, #tpu.memory_space<vmem>>, %arg6: memref<1x128xf32, #tpu.memory_space<vmem>>, %arg7: memref<16x128x512xbf16, #tpu.memory_space<vmem>>, %arg8: memref<1x512xf32, #tpu.memory_space<vmem>>, %arg9: memref<512x128xbf16, #tpu.memory_space<vmem>>, %arg10: memref<1x128xf32, #tpu.memory_space<vmem>>, %arg11: memref<1x8x128xf32, #tpu.memory_space<vmem>>) attributes {dimension_semantics = [#tpu.dimension_semantics<parallel>], iteration_bounds = array<i64: 2>, scalar_prefetch = 0 : i64, scratch_operands = 0 : i64, tpu.core_type = #tpu.core_type<tc>, window_params = [{transform_indices = @transform_0, window_bounds = array<i64: 1, 4, 144, 128>}, {pipeline_mode = #tpu.pipeline_mode<synchronous>, transform_indices = @transform_1, window_bounds = array<i64: 128, 128>}, {pipeline_mode = #tpu.pipeline_mode<synchronous>, transform_indices = @transform_2, window_bounds = array<i64: 1, 128>}, {pipeline_mode = #tpu.pipeline_mode<synchronous>, transform_indices = @transform_3, window_bounds = array<i64: 25, 64, 144>}, {pipeline_mode = #tpu.pipeline_mode<synchronous>, transform_indices = @transform_4, window_bounds = array<i64: 25, 128, 128>}, {pipeline_mode = #tpu.pipeline_mode<synchronous>, transform_indices = @transform_5, window_bounds = array<i64: 1, 128>}, {pipeline_mode = #tpu.pipeline_mode<synchronous>, transform_indices = @transform_6, window_bounds = array<i64: 16, 128, 512>}, {pipeline_mode = #tpu.pipeline_mode<synchronous>, transform_indices = @transform_7, window_bounds = array<i64: 1, 512>}, {pipeline_mode = #tpu.pipeline_mode<synchronous>, transform_indices = @transform_8, window_bounds = array<i64: 512, 128>}, {pipeline_mode = #tpu.pipeline_mode<synchronous>, transform_indices = @transform_9, window_bounds = array<i64: 1, 128>}, {transform_indices = @transform_10, window_bounds = array<i64: 1, 8, 128>}]} {
    %c0 = arith.constant 0 : index
    %c0_0 = arith.constant 0 : index
    %c0_1 = arith.constant 0 : index
    %c0_2 = arith.constant 0 : index
    %0 = vector.load %arg1[%c0, %c0_0, %c0_1, %c0_2] : memref<1x4x144x128xbf16, #tpu.memory_space<vmem>>, vector<1x1x144x128xbf16>
    %1 = vector.shape_cast %0 : vector<1x1x144x128xbf16> to vector<144x128xbf16>
    %c0_3 = arith.constant 0 : index
    %c0_4 = arith.constant 0 : index
    %2 = vector.load %arg2[%c0_3, %c0_4] : memref<128x128xbf16, #tpu.memory_space<vmem>>, vector<128x128xbf16>
    %cst = arith.constant dense<0.000000e+00> : vector<144x128xf32>
    %3 = tpu.matmul %1, %2, %cst {dimension_numbers = #tpu.dot_dimension_numbers<[1], [0], [0], [1], [0, 0, 1, 1], [], []>} : vector<144x128xbf16>, vector<128x128xbf16>, vector<144x128xf32> -> vector<144x128xf32>
    %c0_5 = arith.constant 0 : index
    %c1 = arith.constant 1 : index
    %c0_6 = arith.constant 0 : index
    %c0_7 = arith.constant 0 : index
    %4 = vector.load %arg1[%c0_5, %c1, %c0_6, %c0_7] : memref<1x4x144x128xbf16, #tpu.memory_space<vmem>>, vector<1x1x144x128xbf16>
    %5 = vector.shape_cast %4 : vector<1x1x144x128xbf16> to vector<144x128xbf16>
    %c0_8 = arith.constant 0 : index
    %c0_9 = arith.constant 0 : index
    %6 = vector.load %arg2[%c0_8, %c0_9] : memref<128x128xbf16, #tpu.memory_space<vmem>>, vector<128x128xbf16>
    %cst_10 = arith.constant dense<0.000000e+00> : vector<144x128xf32>
    %7 = tpu.matmul %5, %6, %cst_10 {dimension_numbers = #tpu.dot_dimension_numbers<[1], [0], [0], [1], [0, 0, 1, 1], [], []>} : vector<144x128xbf16>, vector<128x128xbf16>, vector<144x128xf32> -> vector<144x128xf32>
    %8 = arith.maximumf %3, %7 : vector<144x128xf32>
    %c0_11 = arith.constant 0 : index
    %c2 = arith.constant 2 : index
    %c0_12 = arith.constant 0 : index
    %c0_13 = arith.constant 0 : index
    %9 = vector.load %arg1[%c0_11, %c2, %c0_12, %c0_13] : memref<1x4x144x128xbf16, #tpu.memory_space<vmem>>, vector<1x1x144x128xbf16>
    %10 = vector.shape_cast %9 : vector<1x1x144x128xbf16> to vector<144x128xbf16>
    %c0_14 = arith.constant 0 : index
    %c0_15 = arith.constant 0 : index
    %11 = vector.load %arg2[%c0_14, %c0_15] : memref<128x128xbf16, #tpu.memory_space<vmem>>, vector<128x128xbf16>
    %cst_16 = arith.constant dense<0.000000e+00> : vector<144x128xf32>
    %12 = tpu.matmul %10, %11, %cst_16 {dimension_numbers = #tpu.dot_dimension_numbers<[1], [0], [0], [1], [0, 0, 1, 1], [], []>} : vector<144x128xbf16>, vector<128x128xbf16>, vector<144x128xf32> -> vector<144x128xf32>
    %13 = arith.maximumf %8, %12 : vector<144x128xf32>
    %c0_17 = arith.constant 0 : index
    %c3 = arith.constant 3 : index
    %c0_18 = arith.constant 0 : index
    %c0_19 = arith.constant 0 : index
    %14 = vector.load %arg1[%c0_17, %c3, %c0_18, %c0_19] : memref<1x4x144x128xbf16, #tpu.memory_space<vmem>>, vector<1x1x144x128xbf16>
    %15 = vector.shape_cast %14 : vector<1x1x144x128xbf16> to vector<144x128xbf16>
    %c0_20 = arith.constant 0 : index
    %c0_21 = arith.constant 0 : index
    %16 = vector.load %arg2[%c0_20, %c0_21] : memref<128x128xbf16, #tpu.memory_space<vmem>>, vector<128x128xbf16>
    %cst_22 = arith.constant dense<0.000000e+00> : vector<144x128xf32>
    %17 = tpu.matmul %15, %16, %cst_22 {dimension_numbers = #tpu.dot_dimension_numbers<[1], [0], [0], [1], [0, 0, 1, 1], [], []>} : vector<144x128xbf16>, vector<128x128xbf16>, vector<144x128xf32> -> vector<144x128xf32>
    %18 = arith.maximumf %13, %17 : vector<144x128xf32>
    %c0_23 = arith.constant 0 : index
    %c0_24 = arith.constant 0 : index
    %19 = vector.load %arg3[%c0_23, %c0_24] : memref<1x128xf32, #tpu.memory_space<vmem>>, vector<1x128xf32>
    %20 = vector.broadcast %19 : vector<1x128xf32> to vector<144x128xf32>
    %21 = arith.addf %18, %20 : vector<144x128xf32>
    %cst_25 = arith.constant 0.000000e+00 : f32
    %22 = vector.broadcast %cst_25 : f32 to vector<144x128xf32>
    %23 = arith.maximumf %21, %22 : vector<144x128xf32>
    %24 = arith.truncf %23 : vector<144x128xf32> to vector<144x128xbf16>
    %c0_26 = arith.constant 0 : index
    %c0_27 = arith.constant 0 : index
    %c0_28 = arith.constant 0 : index
    %25 = vector.load %arg4[%c0_26, %c0_27, %c0_28] : memref<25x64x144xbf16, #tpu.memory_space<vmem>>, vector<1x64x144xbf16>
    %26 = vector.shape_cast %25 : vector<1x64x144xbf16> to vector<64x144xbf16>
    %cst_29 = arith.constant dense<0.000000e+00> : vector<64x128xf32>
    %27 = tpu.matmul %26, %24, %cst_29 {dimension_numbers = #tpu.dot_dimension_numbers<[1], [0], [0], [1], [0, 0, 1, 1], [], []>} : vector<64x144xbf16>, vector<144x128xbf16>, vector<64x128xf32> -> vector<64x128xf32>
    %28 = arith.truncf %27 : vector<64x128xf32> to vector<64x128xbf16>
    %c0_30 = arith.constant 0 : index
    %c0_31 = arith.constant 0 : index
    %c0_32 = arith.constant 0 : index
    %29 = vector.load %arg5[%c0_30, %c0_31, %c0_32] : memref<25x128x128xbf16, #tpu.memory_space<vmem>>, vector<1x128x128xbf16>
    %30 = vector.shape_cast %29 : vector<1x128x128xbf16> to vector<128x128xbf16>
    %cst_33 = arith.constant dense<0.000000e+00> : vector<64x128xf32>
    %31 = tpu.matmul %28, %30, %cst_33 {dimension_numbers = #tpu.dot_dimension_numbers<[1], [0], [0], [1], [0, 0, 1, 1], [], []>} : vector<64x128xbf16>, vector<128x128xbf16>, vector<64x128xf32> -> vector<64x128xf32>
    %c1_34 = arith.constant 1 : index
    %c0_35 = arith.constant 0 : index
    %c0_36 = arith.constant 0 : index
    %32 = vector.load %arg4[%c1_34, %c0_35, %c0_36] : memref<25x64x144xbf16, #tpu.memory_space<vmem>>, vector<1x64x144xbf16>
    %33 = vector.shape_cast %32 : vector<1x64x144xbf16> to vector<64x144xbf16>
    %cst_37 = arith.constant dense<0.000000e+00> : vector<64x128xf32>
    %34 = tpu.matmul %33, %24, %cst_37 {dimension_numbers = #tpu.dot_dimension_numbers<[1], [0], [0], [1], [0, 0, 1, 1], [], []>} : vector<64x144xbf16>, vector<144x128xbf16>, vector<64x128xf32> -> vector<64x128xf32>
    %35 = arith.truncf %34 : vector<64x128xf32> to vector<64x128xbf16>
    %c1_38 = arith.constant 1 : index
    %c0_39 = arith.constant 0 : index
    %c0_40 = arith.constant 0 : index
    %36 = vector.load %arg5[%c1_38, %c0_39, %c0_40] : memref<25x128x128xbf16, #tpu.memory_space<vmem>>, vector<1x128x128xbf16>
    %37 = vector.shape_cast %36 : vector<1x128x128xbf16> to vector<128x128xbf16>
    %cst_41 = arith.constant dense<0.000000e+00> : vector<64x128xf32>
    %38 = tpu.matmul %35, %37, %cst_41 {dimension_numbers = #tpu.dot_dimension_numbers<[1], [0], [0], [1], [0, 0, 1, 1], [], []>} : vector<64x128xbf16>, vector<128x128xbf16>, vector<64x128xf32> -> vector<64x128xf32>
    %39 = arith.addf %31, %38 : vector<64x128xf32>
    %c2_42 = arith.constant 2 : index
    %c0_43 = arith.constant 0 : index
    %c0_44 = arith.constant 0 : index
    %40 = vector.load %arg4[%c2_42, %c0_43, %c0_44] : memref<25x64x144xbf16, #tpu.memory_space<vmem>>, vector<1x64x144xbf16>
    %41 = vector.shape_cast %40 : vector<1x64x144xbf16> to vector<64x144xbf16>
    %cst_45 = arith.constant dense<0.000000e+00> : vector<64x128xf32>
    %42 = tpu.matmul %41, %24, %cst_45 {dimension_numbers = #tpu.dot_dimension_numbers<[1], [0], [0], [1], [0, 0, 1, 1], [], []>} : vector<64x144xbf16>, vector<144x128xbf16>, vector<64x128xf32> -> vector<64x128xf32>
    %43 = arith.truncf %42 : vector<64x128xf32> to vector<64x128xbf16>
    %c2_46 = arith.constant 2 : index
    %c0_47 = arith.constant 0 : index
    %c0_48 = arith.constant 0 : index
    %44 = vector.load %arg5[%c2_46, %c0_47, %c0_48] : memref<25x128x128xbf16, #tpu.memory_space<vmem>>, vector<1x128x128xbf16>
    %45 = vector.shape_cast %44 : vector<1x128x128xbf16> to vector<128x128xbf16>
    %cst_49 = arith.constant dense<0.000000e+00> : vector<64x128xf32>
    %46 = tpu.matmul %43, %45, %cst_49 {dimension_numbers = #tpu.dot_dimension_numbers<[1], [0], [0], [1], [0, 0, 1, 1], [], []>} : vector<64x128xbf16>, vector<128x128xbf16>, vector<64x128xf32> -> vector<64x128xf32>
    %47 = arith.addf %39, %46 : vector<64x128xf32>
    %c3_50 = arith.constant 3 : index
    %c0_51 = arith.constant 0 : index
    %c0_52 = arith.constant 0 : index
    %48 = vector.load %arg4[%c3_50, %c0_51, %c0_52] : memref<25x64x144xbf16, #tpu.memory_space<vmem>>, vector<1x64x144xbf16>
    %49 = vector.shape_cast %48 : vector<1x64x144xbf16> to vector<64x144xbf16>
    %cst_53 = arith.constant dense<0.000000e+00> : vector<64x128xf32>
    %50 = tpu.matmul %49, %24, %cst_53 {dimension_numbers = #tpu.dot_dimension_numbers<[1], [0], [0], [1], [0, 0, 1, 1], [], []>} : vector<64x144xbf16>, vector<144x128xbf16>, vector<64x128xf32> -> vector<64x128xf32>
    %51 = arith.truncf %50 : vector<64x128xf32> to vector<64x128xbf16>
    %c3_54 = arith.constant 3 : index
    %c0_55 = arith.constant 0 : index
    %c0_56 = arith.constant 0 : index
    %52 = vector.load %arg5[%c3_54, %c0_55, %c0_56] : memref<25x128x128xbf16, #tpu.memory_space<vmem>>, vector<1x128x128xbf16>
    %53 = vector.shape_cast %52 : vector<1x128x128xbf16> to vector<128x128xbf16>
    %cst_57 = arith.constant dense<0.000000e+00> : vector<64x128xf32>
    %54 = tpu.matmul %51, %53, %cst_57 {dimension_numbers = #tpu.dot_dimension_numbers<[1], [0], [0], [1], [0, 0, 1, 1], [], []>} : vector<64x128xbf16>, vector<128x128xbf16>, vector<64x128xf32> -> vector<64x128xf32>
    %55 = arith.addf %47, %54 : vector<64x128xf32>
    %c4 = arith.constant 4 : index
    %c0_58 = arith.constant 0 : index
    %c0_59 = arith.constant 0 : index
    %56 = vector.load %arg4[%c4, %c0_58, %c0_59] : memref<25x64x144xbf16, #tpu.memory_space<vmem>>, vector<1x64x144xbf16>
    %57 = vector.shape_cast %56 : vector<1x64x144xbf16> to vector<64x144xbf16>
    %cst_60 = arith.constant dense<0.000000e+00> : vector<64x128xf32>
    %58 = tpu.matmul %57, %24, %cst_60 {dimension_numbers = #tpu.dot_dimension_numbers<[1], [0], [0], [1], [0, 0, 1, 1], [], []>} : vector<64x144xbf16>, vector<144x128xbf16>, vector<64x128xf32> -> vector<64x128xf32>
    %59 = arith.truncf %58 : vector<64x128xf32> to vector<64x128xbf16>
    %c4_61 = arith.constant 4 : index
    %c0_62 = arith.constant 0 : index
    %c0_63 = arith.constant 0 : index
    %60 = vector.load %arg5[%c4_61, %c0_62, %c0_63] : memref<25x128x128xbf16, #tpu.memory_space<vmem>>, vector<1x128x128xbf16>
    %61 = vector.shape_cast %60 : vector<1x128x128xbf16> to vector<128x128xbf16>
    %cst_64 = arith.constant dense<0.000000e+00> : vector<64x128xf32>
    %62 = tpu.matmul %59, %61, %cst_64 {dimension_numbers = #tpu.dot_dimension_numbers<[1], [0], [0], [1], [0, 0, 1, 1], [], []>} : vector<64x128xbf16>, vector<128x128xbf16>, vector<64x128xf32> -> vector<64x128xf32>
    %63 = arith.addf %55, %62 : vector<64x128xf32>
    %c5 = arith.constant 5 : index
    %c0_65 = arith.constant 0 : index
    %c0_66 = arith.constant 0 : index
    %64 = vector.load %arg4[%c5, %c0_65, %c0_66] : memref<25x64x144xbf16, #tpu.memory_space<vmem>>, vector<1x64x144xbf16>
    %65 = vector.shape_cast %64 : vector<1x64x144xbf16> to vector<64x144xbf16>
    %cst_67 = arith.constant dense<0.000000e+00> : vector<64x128xf32>
    %66 = tpu.matmul %65, %24, %cst_67 {dimension_numbers = #tpu.dot_dimension_numbers<[1], [0], [0], [1], [0, 0, 1, 1], [], []>} : vector<64x144xbf16>, vector<144x128xbf16>, vector<64x128xf32> -> vector<64x128xf32>
    %67 = arith.truncf %66 : vector<64x128xf32> to vector<64x128xbf16>
    %c5_68 = arith.constant 5 : index
    %c0_69 = arith.constant 0 : index
    %c0_70 = arith.constant 0 : index
    %68 = vector.load %arg5[%c5_68, %c0_69, %c0_70] : memref<25x128x128xbf16, #tpu.memory_space<vmem>>, vector<1x128x128xbf16>
    %69 = vector.shape_cast %68 : vector<1x128x128xbf16> to vector<128x128xbf16>
    %cst_71 = arith.constant dense<0.000000e+00> : vector<64x128xf32>
    %70 = tpu.matmul %67, %69, %cst_71 {dimension_numbers = #tpu.dot_dimension_numbers<[1], [0], [0], [1], [0, 0, 1, 1], [], []>} : vector<64x128xbf16>, vector<128x128xbf16>, vector<64x128xf32> -> vector<64x128xf32>
    %71 = arith.addf %63, %70 : vector<64x128xf32>
    %c6 = arith.constant 6 : index
    %c0_72 = arith.constant 0 : index
    %c0_73 = arith.constant 0 : index
    %72 = vector.load %arg4[%c6, %c0_72, %c0_73] : memref<25x64x144xbf16, #tpu.memory_space<vmem>>, vector<1x64x144xbf16>
    %73 = vector.shape_cast %72 : vector<1x64x144xbf16> to vector<64x144xbf16>
    %cst_74 = arith.constant dense<0.000000e+00> : vector<64x128xf32>
    %74 = tpu.matmul %73, %24, %cst_74 {dimension_numbers = #tpu.dot_dimension_numbers<[1], [0], [0], [1], [0, 0, 1, 1], [], []>} : vector<64x144xbf16>, vector<144x128xbf16>, vector<64x128xf32> -> vector<64x128xf32>
    %75 = arith.truncf %74 : vector<64x128xf32> to vector<64x128xbf16>
    %c6_75 = arith.constant 6 : index
    %c0_76 = arith.constant 0 : index
    %c0_77 = arith.constant 0 : index
    %76 = vector.load %arg5[%c6_75, %c0_76, %c0_77] : memref<25x128x128xbf16, #tpu.memory_space<vmem>>, vector<1x128x128xbf16>
    %77 = vector.shape_cast %76 : vector<1x128x128xbf16> to vector<128x128xbf16>
    %cst_78 = arith.constant dense<0.000000e+00> : vector<64x128xf32>
    %78 = tpu.matmul %75, %77, %cst_78 {dimension_numbers = #tpu.dot_dimension_numbers<[1], [0], [0], [1], [0, 0, 1, 1], [], []>} : vector<64x128xbf16>, vector<128x128xbf16>, vector<64x128xf32> -> vector<64x128xf32>
    %79 = arith.addf %71, %78 : vector<64x128xf32>
    %c7 = arith.constant 7 : index
    %c0_79 = arith.constant 0 : index
    %c0_80 = arith.constant 0 : index
    %80 = vector.load %arg4[%c7, %c0_79, %c0_80] : memref<25x64x144xbf16, #tpu.memory_space<vmem>>, vector<1x64x144xbf16>
    %81 = vector.shape_cast %80 : vector<1x64x144xbf16> to vector<64x144xbf16>
    %cst_81 = arith.constant dense<0.000000e+00> : vector<64x128xf32>
    %82 = tpu.matmul %81, %24, %cst_81 {dimension_numbers = #tpu.dot_dimension_numbers<[1], [0], [0], [1], [0, 0, 1, 1], [], []>} : vector<64x144xbf16>, vector<144x128xbf16>, vector<64x128xf32> -> vector<64x128xf32>
    %83 = arith.truncf %82 : vector<64x128xf32> to vector<64x128xbf16>
    %c7_82 = arith.constant 7 : index
    %c0_83 = arith.constant 0 : index
    %c0_84 = arith.constant 0 : index
    %84 = vector.load %arg5[%c7_82, %c0_83, %c0_84] : memref<25x128x128xbf16, #tpu.memory_space<vmem>>, vector<1x128x128xbf16>
    %85 = vector.shape_cast %84 : vector<1x128x128xbf16> to vector<128x128xbf16>
    %cst_85 = arith.constant dense<0.000000e+00> : vector<64x128xf32>
    %86 = tpu.matmul %83, %85, %cst_85 {dimension_numbers = #tpu.dot_dimension_numbers<[1], [0], [0], [1], [0, 0, 1, 1], [], []>} : vector<64x128xbf16>, vector<128x128xbf16>, vector<64x128xf32> -> vector<64x128xf32>
    %87 = arith.addf %79, %86 : vector<64x128xf32>
    %c8 = arith.constant 8 : index
    %c0_86 = arith.constant 0 : index
    %c0_87 = arith.constant 0 : index
    %88 = vector.load %arg4[%c8, %c0_86, %c0_87] : memref<25x64x144xbf16, #tpu.memory_space<vmem>>, vector<1x64x144xbf16>
    %89 = vector.shape_cast %88 : vector<1x64x144xbf16> to vector<64x144xbf16>
    %cst_88 = arith.constant dense<0.000000e+00> : vector<64x128xf32>
    %90 = tpu.matmul %89, %24, %cst_88 {dimension_numbers = #tpu.dot_dimension_numbers<[1], [0], [0], [1], [0, 0, 1, 1], [], []>} : vector<64x144xbf16>, vector<144x128xbf16>, vector<64x128xf32> -> vector<64x128xf32>
    %91 = arith.truncf %90 : vector<64x128xf32> to vector<64x128xbf16>
    %c8_89 = arith.constant 8 : index
    %c0_90 = arith.constant 0 : index
    %c0_91 = arith.constant 0 : index
    %92 = vector.load %arg5[%c8_89, %c0_90, %c0_91] : memref<25x128x128xbf16, #tpu.memory_space<vmem>>, vector<1x128x128xbf16>
    %93 = vector.shape_cast %92 : vector<1x128x128xbf16> to vector<128x128xbf16>
    %cst_92 = arith.constant dense<0.000000e+00> : vector<64x128xf32>
    %94 = tpu.matmul %91, %93, %cst_92 {dimension_numbers = #tpu.dot_dimension_numbers<[1], [0], [0], [1], [0, 0, 1, 1], [], []>} : vector<64x128xbf16>, vector<128x128xbf16>, vector<64x128xf32> -> vector<64x128xf32>
    %95 = arith.addf %87, %94 : vector<64x128xf32>
    %c9 = arith.constant 9 : index
    %c0_93 = arith.constant 0 : index
    %c0_94 = arith.constant 0 : index
    %96 = vector.load %arg4[%c9, %c0_93, %c0_94] : memref<25x64x144xbf16, #tpu.memory_space<vmem>>, vector<1x64x144xbf16>
    %97 = vector.shape_cast %96 : vector<1x64x144xbf16> to vector<64x144xbf16>
    %cst_95 = arith.constant dense<0.000000e+00> : vector<64x128xf32>
    %98 = tpu.matmul %97, %24, %cst_95 {dimension_numbers = #tpu.dot_dimension_numbers<[1], [0], [0], [1], [0, 0, 1, 1], [], []>} : vector<64x144xbf16>, vector<144x128xbf16>, vector<64x128xf32> -> vector<64x128xf32>
    %99 = arith.truncf %98 : vector<64x128xf32> to vector<64x128xbf16>
    %c9_96 = arith.constant 9 : index
    %c0_97 = arith.constant 0 : index
    %c0_98 = arith.constant 0 : index
    %100 = vector.load %arg5[%c9_96, %c0_97, %c0_98] : memref<25x128x128xbf16, #tpu.memory_space<vmem>>, vector<1x128x128xbf16>
    %101 = vector.shape_cast %100 : vector<1x128x128xbf16> to vector<128x128xbf16>
    %cst_99 = arith.constant dense<0.000000e+00> : vector<64x128xf32>
    %102 = tpu.matmul %99, %101, %cst_99 {dimension_numbers = #tpu.dot_dimension_numbers<[1], [0], [0], [1], [0, 0, 1, 1], [], []>} : vector<64x128xbf16>, vector<128x128xbf16>, vector<64x128xf32> -> vector<64x128xf32>
    %103 = arith.addf %95, %102 : vector<64x128xf32>
    %c10 = arith.constant 10 : index
    %c0_100 = arith.constant 0 : index
    %c0_101 = arith.constant 0 : index
    %104 = vector.load %arg4[%c10, %c0_100, %c0_101] : memref<25x64x144xbf16, #tpu.memory_space<vmem>>, vector<1x64x144xbf16>
    %105 = vector.shape_cast %104 : vector<1x64x144xbf16> to vector<64x144xbf16>
    %cst_102 = arith.constant dense<0.000000e+00> : vector<64x128xf32>
    %106 = tpu.matmul %105, %24, %cst_102 {dimension_numbers = #tpu.dot_dimension_numbers<[1], [0], [0], [1], [0, 0, 1, 1], [], []>} : vector<64x144xbf16>, vector<144x128xbf16>, vector<64x128xf32> -> vector<64x128xf32>
    %107 = arith.truncf %106 : vector<64x128xf32> to vector<64x128xbf16>
    %c10_103 = arith.constant 10 : index
    %c0_104 = arith.constant 0 : index
    %c0_105 = arith.constant 0 : index
    %108 = vector.load %arg5[%c10_103, %c0_104, %c0_105] : memref<25x128x128xbf16, #tpu.memory_space<vmem>>, vector<1x128x128xbf16>
    %109 = vector.shape_cast %108 : vector<1x128x128xbf16> to vector<128x128xbf16>
    %cst_106 = arith.constant dense<0.000000e+00> : vector<64x128xf32>
    %110 = tpu.matmul %107, %109, %cst_106 {dimension_numbers = #tpu.dot_dimension_numbers<[1], [0], [0], [1], [0, 0, 1, 1], [], []>} : vector<64x128xbf16>, vector<128x128xbf16>, vector<64x128xf32> -> vector<64x128xf32>
    %111 = arith.addf %103, %110 : vector<64x128xf32>
    %c11 = arith.constant 11 : index
    %c0_107 = arith.constant 0 : index
    %c0_108 = arith.constant 0 : index
    %112 = vector.load %arg4[%c11, %c0_107, %c0_108] : memref<25x64x144xbf16, #tpu.memory_space<vmem>>, vector<1x64x144xbf16>
    %113 = vector.shape_cast %112 : vector<1x64x144xbf16> to vector<64x144xbf16>
    %cst_109 = arith.constant dense<0.000000e+00> : vector<64x128xf32>
    %114 = tpu.matmul %113, %24, %cst_109 {dimension_numbers = #tpu.dot_dimension_numbers<[1], [0], [0], [1], [0, 0, 1, 1], [], []>} : vector<64x144xbf16>, vector<144x128xbf16>, vector<64x128xf32> -> vector<64x128xf32>
    %115 = arith.truncf %114 : vector<64x128xf32> to vector<64x128xbf16>
    %c11_110 = arith.constant 11 : index
    %c0_111 = arith.constant 0 : index
    %c0_112 = arith.constant 0 : index
    %116 = vector.load %arg5[%c11_110, %c0_111, %c0_112] : memref<25x128x128xbf16, #tpu.memory_space<vmem>>, vector<1x128x128xbf16>
    %117 = vector.shape_cast %116 : vector<1x128x128xbf16> to vector<128x128xbf16>
    %cst_113 = arith.constant dense<0.000000e+00> : vector<64x128xf32>
    %118 = tpu.matmul %115, %117, %cst_113 {dimension_numbers = #tpu.dot_dimension_numbers<[1], [0], [0], [1], [0, 0, 1, 1], [], []>} : vector<64x128xbf16>, vector<128x128xbf16>, vector<64x128xf32> -> vector<64x128xf32>
    %119 = arith.addf %111, %118 : vector<64x128xf32>
    %c12 = arith.constant 12 : index
    %c0_114 = arith.constant 0 : index
    %c0_115 = arith.constant 0 : index
    %120 = vector.load %arg4[%c12, %c0_114, %c0_115] : memref<25x64x144xbf16, #tpu.memory_space<vmem>>, vector<1x64x144xbf16>
    %121 = vector.shape_cast %120 : vector<1x64x144xbf16> to vector<64x144xbf16>
    %cst_116 = arith.constant dense<0.000000e+00> : vector<64x128xf32>
    %122 = tpu.matmul %121, %24, %cst_116 {dimension_numbers = #tpu.dot_dimension_numbers<[1], [0], [0], [1], [0, 0, 1, 1], [], []>} : vector<64x144xbf16>, vector<144x128xbf16>, vector<64x128xf32> -> vector<64x128xf32>
    %123 = arith.truncf %122 : vector<64x128xf32> to vector<64x128xbf16>
    %c12_117 = arith.constant 12 : index
    %c0_118 = arith.constant 0 : index
    %c0_119 = arith.constant 0 : index
    %124 = vector.load %arg5[%c12_117, %c0_118, %c0_119] : memref<25x128x128xbf16, #tpu.memory_space<vmem>>, vector<1x128x128xbf16>
    %125 = vector.shape_cast %124 : vector<1x128x128xbf16> to vector<128x128xbf16>
    %cst_120 = arith.constant dense<0.000000e+00> : vector<64x128xf32>
    %126 = tpu.matmul %123, %125, %cst_120 {dimension_numbers = #tpu.dot_dimension_numbers<[1], [0], [0], [1], [0, 0, 1, 1], [], []>} : vector<64x128xbf16>, vector<128x128xbf16>, vector<64x128xf32> -> vector<64x128xf32>
    %127 = arith.addf %119, %126 : vector<64x128xf32>
    %c13 = arith.constant 13 : index
    %c0_121 = arith.constant 0 : index
    %c0_122 = arith.constant 0 : index
    %128 = vector.load %arg4[%c13, %c0_121, %c0_122] : memref<25x64x144xbf16, #tpu.memory_space<vmem>>, vector<1x64x144xbf16>
    %129 = vector.shape_cast %128 : vector<1x64x144xbf16> to vector<64x144xbf16>
    %cst_123 = arith.constant dense<0.000000e+00> : vector<64x128xf32>
    %130 = tpu.matmul %129, %24, %cst_123 {dimension_numbers = #tpu.dot_dimension_numbers<[1], [0], [0], [1], [0, 0, 1, 1], [], []>} : vector<64x144xbf16>, vector<144x128xbf16>, vector<64x128xf32> -> vector<64x128xf32>
    %131 = arith.truncf %130 : vector<64x128xf32> to vector<64x128xbf16>
    %c13_124 = arith.constant 13 : index
    %c0_125 = arith.constant 0 : index
    %c0_126 = arith.constant 0 : index
    %132 = vector.load %arg5[%c13_124, %c0_125, %c0_126] : memref<25x128x128xbf16, #tpu.memory_space<vmem>>, vector<1x128x128xbf16>
    %133 = vector.shape_cast %132 : vector<1x128x128xbf16> to vector<128x128xbf16>
    %cst_127 = arith.constant dense<0.000000e+00> : vector<64x128xf32>
    %134 = tpu.matmul %131, %133, %cst_127 {dimension_numbers = #tpu.dot_dimension_numbers<[1], [0], [0], [1], [0, 0, 1, 1], [], []>} : vector<64x128xbf16>, vector<128x128xbf16>, vector<64x128xf32> -> vector<64x128xf32>
    %135 = arith.addf %127, %134 : vector<64x128xf32>
    %c14 = arith.constant 14 : index
    %c0_128 = arith.constant 0 : index
    %c0_129 = arith.constant 0 : index
    %136 = vector.load %arg4[%c14, %c0_128, %c0_129] : memref<25x64x144xbf16, #tpu.memory_space<vmem>>, vector<1x64x144xbf16>
    %137 = vector.shape_cast %136 : vector<1x64x144xbf16> to vector<64x144xbf16>
    %cst_130 = arith.constant dense<0.000000e+00> : vector<64x128xf32>
    %138 = tpu.matmul %137, %24, %cst_130 {dimension_numbers = #tpu.dot_dimension_numbers<[1], [0], [0], [1], [0, 0, 1, 1], [], []>} : vector<64x144xbf16>, vector<144x128xbf16>, vector<64x128xf32> -> vector<64x128xf32>
    %139 = arith.truncf %138 : vector<64x128xf32> to vector<64x128xbf16>
    %c14_131 = arith.constant 14 : index
    %c0_132 = arith.constant 0 : index
    %c0_133 = arith.constant 0 : index
    %140 = vector.load %arg5[%c14_131, %c0_132, %c0_133] : memref<25x128x128xbf16, #tpu.memory_space<vmem>>, vector<1x128x128xbf16>
    %141 = vector.shape_cast %140 : vector<1x128x128xbf16> to vector<128x128xbf16>
    %cst_134 = arith.constant dense<0.000000e+00> : vector<64x128xf32>
    %142 = tpu.matmul %139, %141, %cst_134 {dimension_numbers = #tpu.dot_dimension_numbers<[1], [0], [0], [1], [0, 0, 1, 1], [], []>} : vector<64x128xbf16>, vector<128x128xbf16>, vector<64x128xf32> -> vector<64x128xf32>
    %143 = arith.addf %135, %142 : vector<64x128xf32>
    %c15 = arith.constant 15 : index
    %c0_135 = arith.constant 0 : index
    %c0_136 = arith.constant 0 : index
    %144 = vector.load %arg4[%c15, %c0_135, %c0_136] : memref<25x64x144xbf16, #tpu.memory_space<vmem>>, vector<1x64x144xbf16>
    %145 = vector.shape_cast %144 : vector<1x64x144xbf16> to vector<64x144xbf16>
    %cst_137 = arith.constant dense<0.000000e+00> : vector<64x128xf32>
    %146 = tpu.matmul %145, %24, %cst_137 {dimension_numbers = #tpu.dot_dimension_numbers<[1], [0], [0], [1], [0, 0, 1, 1], [], []>} : vector<64x144xbf16>, vector<144x128xbf16>, vector<64x128xf32> -> vector<64x128xf32>
    %147 = arith.truncf %146 : vector<64x128xf32> to vector<64x128xbf16>
    %c15_138 = arith.constant 15 : index
    %c0_139 = arith.constant 0 : index
    %c0_140 = arith.constant 0 : index
    %148 = vector.load %arg5[%c15_138, %c0_139, %c0_140] : memref<25x128x128xbf16, #tpu.memory_space<vmem>>, vector<1x128x128xbf16>
    %149 = vector.shape_cast %148 : vector<1x128x128xbf16> to vector<128x128xbf16>
    %cst_141 = arith.constant dense<0.000000e+00> : vector<64x128xf32>
    %150 = tpu.matmul %147, %149, %cst_141 {dimension_numbers = #tpu.dot_dimension_numbers<[1], [0], [0], [1], [0, 0, 1, 1], [], []>} : vector<64x128xbf16>, vector<128x128xbf16>, vector<64x128xf32> -> vector<64x128xf32>
    %151 = arith.addf %143, %150 : vector<64x128xf32>
    %c16 = arith.constant 16 : index
    %c0_142 = arith.constant 0 : index
    %c0_143 = arith.constant 0 : index
    %152 = vector.load %arg4[%c16, %c0_142, %c0_143] : memref<25x64x144xbf16, #tpu.memory_space<vmem>>, vector<1x64x144xbf16>
    %153 = vector.shape_cast %152 : vector<1x64x144xbf16> to vector<64x144xbf16>
    %cst_144 = arith.constant dense<0.000000e+00> : vector<64x128xf32>
    %154 = tpu.matmul %153, %24, %cst_144 {dimension_numbers = #tpu.dot_dimension_numbers<[1], [0], [0], [1], [0, 0, 1, 1], [], []>} : vector<64x144xbf16>, vector<144x128xbf16>, vector<64x128xf32> -> vector<64x128xf32>
    %155 = arith.truncf %154 : vector<64x128xf32> to vector<64x128xbf16>
    %c16_145 = arith.constant 16 : index
    %c0_146 = arith.constant 0 : index
    %c0_147 = arith.constant 0 : index
    %156 = vector.load %arg5[%c16_145, %c0_146, %c0_147] : memref<25x128x128xbf16, #tpu.memory_space<vmem>>, vector<1x128x128xbf16>
    %157 = vector.shape_cast %156 : vector<1x128x128xbf16> to vector<128x128xbf16>
    %cst_148 = arith.constant dense<0.000000e+00> : vector<64x128xf32>
    %158 = tpu.matmul %155, %157, %cst_148 {dimension_numbers = #tpu.dot_dimension_numbers<[1], [0], [0], [1], [0, 0, 1, 1], [], []>} : vector<64x128xbf16>, vector<128x128xbf16>, vector<64x128xf32> -> vector<64x128xf32>
    %159 = arith.addf %151, %158 : vector<64x128xf32>
    %c17 = arith.constant 17 : index
    %c0_149 = arith.constant 0 : index
    %c0_150 = arith.constant 0 : index
    %160 = vector.load %arg4[%c17, %c0_149, %c0_150] : memref<25x64x144xbf16, #tpu.memory_space<vmem>>, vector<1x64x144xbf16>
    %161 = vector.shape_cast %160 : vector<1x64x144xbf16> to vector<64x144xbf16>
    %cst_151 = arith.constant dense<0.000000e+00> : vector<64x128xf32>
    %162 = tpu.matmul %161, %24, %cst_151 {dimension_numbers = #tpu.dot_dimension_numbers<[1], [0], [0], [1], [0, 0, 1, 1], [], []>} : vector<64x144xbf16>, vector<144x128xbf16>, vector<64x128xf32> -> vector<64x128xf32>
    %163 = arith.truncf %162 : vector<64x128xf32> to vector<64x128xbf16>
    %c17_152 = arith.constant 17 : index
    %c0_153 = arith.constant 0 : index
    %c0_154 = arith.constant 0 : index
    %164 = vector.load %arg5[%c17_152, %c0_153, %c0_154] : memref<25x128x128xbf16, #tpu.memory_space<vmem>>, vector<1x128x128xbf16>
    %165 = vector.shape_cast %164 : vector<1x128x128xbf16> to vector<128x128xbf16>
    %cst_155 = arith.constant dense<0.000000e+00> : vector<64x128xf32>
    %166 = tpu.matmul %163, %165, %cst_155 {dimension_numbers = #tpu.dot_dimension_numbers<[1], [0], [0], [1], [0, 0, 1, 1], [], []>} : vector<64x128xbf16>, vector<128x128xbf16>, vector<64x128xf32> -> vector<64x128xf32>
    %167 = arith.addf %159, %166 : vector<64x128xf32>
    %c18 = arith.constant 18 : index
    %c0_156 = arith.constant 0 : index
    %c0_157 = arith.constant 0 : index
    %168 = vector.load %arg4[%c18, %c0_156, %c0_157] : memref<25x64x144xbf16, #tpu.memory_space<vmem>>, vector<1x64x144xbf16>
    %169 = vector.shape_cast %168 : vector<1x64x144xbf16> to vector<64x144xbf16>
    %cst_158 = arith.constant dense<0.000000e+00> : vector<64x128xf32>
    %170 = tpu.matmul %169, %24, %cst_158 {dimension_numbers = #tpu.dot_dimension_numbers<[1], [0], [0], [1], [0, 0, 1, 1], [], []>} : vector<64x144xbf16>, vector<144x128xbf16>, vector<64x128xf32> -> vector<64x128xf32>
    %171 = arith.truncf %170 : vector<64x128xf32> to vector<64x128xbf16>
    %c18_159 = arith.constant 18 : index
    %c0_160 = arith.constant 0 : index
    %c0_161 = arith.constant 0 : index
    %172 = vector.load %arg5[%c18_159, %c0_160, %c0_161] : memref<25x128x128xbf16, #tpu.memory_space<vmem>>, vector<1x128x128xbf16>
    %173 = vector.shape_cast %172 : vector<1x128x128xbf16> to vector<128x128xbf16>
    %cst_162 = arith.constant dense<0.000000e+00> : vector<64x128xf32>
    %174 = tpu.matmul %171, %173, %cst_162 {dimension_numbers = #tpu.dot_dimension_numbers<[1], [0], [0], [1], [0, 0, 1, 1], [], []>} : vector<64x128xbf16>, vector<128x128xbf16>, vector<64x128xf32> -> vector<64x128xf32>
    %175 = arith.addf %167, %174 : vector<64x128xf32>
    %c19 = arith.constant 19 : index
    %c0_163 = arith.constant 0 : index
    %c0_164 = arith.constant 0 : index
    %176 = vector.load %arg4[%c19, %c0_163, %c0_164] : memref<25x64x144xbf16, #tpu.memory_space<vmem>>, vector<1x64x144xbf16>
    %177 = vector.shape_cast %176 : vector<1x64x144xbf16> to vector<64x144xbf16>
    %cst_165 = arith.constant dense<0.000000e+00> : vector<64x128xf32>
    %178 = tpu.matmul %177, %24, %cst_165 {dimension_numbers = #tpu.dot_dimension_numbers<[1], [0], [0], [1], [0, 0, 1, 1], [], []>} : vector<64x144xbf16>, vector<144x128xbf16>, vector<64x128xf32> -> vector<64x128xf32>
    %179 = arith.truncf %178 : vector<64x128xf32> to vector<64x128xbf16>
    %c19_166 = arith.constant 19 : index
    %c0_167 = arith.constant 0 : index
    %c0_168 = arith.constant 0 : index
    %180 = vector.load %arg5[%c19_166, %c0_167, %c0_168] : memref<25x128x128xbf16, #tpu.memory_space<vmem>>, vector<1x128x128xbf16>
    %181 = vector.shape_cast %180 : vector<1x128x128xbf16> to vector<128x128xbf16>
    %cst_169 = arith.constant dense<0.000000e+00> : vector<64x128xf32>
    %182 = tpu.matmul %179, %181, %cst_169 {dimension_numbers = #tpu.dot_dimension_numbers<[1], [0], [0], [1], [0, 0, 1, 1], [], []>} : vector<64x128xbf16>, vector<128x128xbf16>, vector<64x128xf32> -> vector<64x128xf32>
    %183 = arith.addf %175, %182 : vector<64x128xf32>
    %c20 = arith.constant 20 : index
    %c0_170 = arith.constant 0 : index
    %c0_171 = arith.constant 0 : index
    %184 = vector.load %arg4[%c20, %c0_170, %c0_171] : memref<25x64x144xbf16, #tpu.memory_space<vmem>>, vector<1x64x144xbf16>
    %185 = vector.shape_cast %184 : vector<1x64x144xbf16> to vector<64x144xbf16>
    %cst_172 = arith.constant dense<0.000000e+00> : vector<64x128xf32>
    %186 = tpu.matmul %185, %24, %cst_172 {dimension_numbers = #tpu.dot_dimension_numbers<[1], [0], [0], [1], [0, 0, 1, 1], [], []>} : vector<64x144xbf16>, vector<144x128xbf16>, vector<64x128xf32> -> vector<64x128xf32>
    %187 = arith.truncf %186 : vector<64x128xf32> to vector<64x128xbf16>
    %c20_173 = arith.constant 20 : index
    %c0_174 = arith.constant 0 : index
    %c0_175 = arith.constant 0 : index
    %188 = vector.load %arg5[%c20_173, %c0_174, %c0_175] : memref<25x128x128xbf16, #tpu.memory_space<vmem>>, vector<1x128x128xbf16>
    %189 = vector.shape_cast %188 : vector<1x128x128xbf16> to vector<128x128xbf16>
    %cst_176 = arith.constant dense<0.000000e+00> : vector<64x128xf32>
    %190 = tpu.matmul %187, %189, %cst_176 {dimension_numbers = #tpu.dot_dimension_numbers<[1], [0], [0], [1], [0, 0, 1, 1], [], []>} : vector<64x128xbf16>, vector<128x128xbf16>, vector<64x128xf32> -> vector<64x128xf32>
    %191 = arith.addf %183, %190 : vector<64x128xf32>
    %c21 = arith.constant 21 : index
    %c0_177 = arith.constant 0 : index
    %c0_178 = arith.constant 0 : index
    %192 = vector.load %arg4[%c21, %c0_177, %c0_178] : memref<25x64x144xbf16, #tpu.memory_space<vmem>>, vector<1x64x144xbf16>
    %193 = vector.shape_cast %192 : vector<1x64x144xbf16> to vector<64x144xbf16>
    %cst_179 = arith.constant dense<0.000000e+00> : vector<64x128xf32>
    %194 = tpu.matmul %193, %24, %cst_179 {dimension_numbers = #tpu.dot_dimension_numbers<[1], [0], [0], [1], [0, 0, 1, 1], [], []>} : vector<64x144xbf16>, vector<144x128xbf16>, vector<64x128xf32> -> vector<64x128xf32>
    %195 = arith.truncf %194 : vector<64x128xf32> to vector<64x128xbf16>
    %c21_180 = arith.constant 21 : index
    %c0_181 = arith.constant 0 : index
    %c0_182 = arith.constant 0 : index
    %196 = vector.load %arg5[%c21_180, %c0_181, %c0_182] : memref<25x128x128xbf16, #tpu.memory_space<vmem>>, vector<1x128x128xbf16>
    %197 = vector.shape_cast %196 : vector<1x128x128xbf16> to vector<128x128xbf16>
    %cst_183 = arith.constant dense<0.000000e+00> : vector<64x128xf32>
    %198 = tpu.matmul %195, %197, %cst_183 {dimension_numbers = #tpu.dot_dimension_numbers<[1], [0], [0], [1], [0, 0, 1, 1], [], []>} : vector<64x128xbf16>, vector<128x128xbf16>, vector<64x128xf32> -> vector<64x128xf32>
    %199 = arith.addf %191, %198 : vector<64x128xf32>
    %c22 = arith.constant 22 : index
    %c0_184 = arith.constant 0 : index
    %c0_185 = arith.constant 0 : index
    %200 = vector.load %arg4[%c22, %c0_184, %c0_185] : memref<25x64x144xbf16, #tpu.memory_space<vmem>>, vector<1x64x144xbf16>
    %201 = vector.shape_cast %200 : vector<1x64x144xbf16> to vector<64x144xbf16>
    %cst_186 = arith.constant dense<0.000000e+00> : vector<64x128xf32>
    %202 = tpu.matmul %201, %24, %cst_186 {dimension_numbers = #tpu.dot_dimension_numbers<[1], [0], [0], [1], [0, 0, 1, 1], [], []>} : vector<64x144xbf16>, vector<144x128xbf16>, vector<64x128xf32> -> vector<64x128xf32>
    %203 = arith.truncf %202 : vector<64x128xf32> to vector<64x128xbf16>
    %c22_187 = arith.constant 22 : index
    %c0_188 = arith.constant 0 : index
    %c0_189 = arith.constant 0 : index
    %204 = vector.load %arg5[%c22_187, %c0_188, %c0_189] : memref<25x128x128xbf16, #tpu.memory_space<vmem>>, vector<1x128x128xbf16>
    %205 = vector.shape_cast %204 : vector<1x128x128xbf16> to vector<128x128xbf16>
    %cst_190 = arith.constant dense<0.000000e+00> : vector<64x128xf32>
    %206 = tpu.matmul %203, %205, %cst_190 {dimension_numbers = #tpu.dot_dimension_numbers<[1], [0], [0], [1], [0, 0, 1, 1], [], []>} : vector<64x128xbf16>, vector<128x128xbf16>, vector<64x128xf32> -> vector<64x128xf32>
    %207 = arith.addf %199, %206 : vector<64x128xf32>
    %c23 = arith.constant 23 : index
    %c0_191 = arith.constant 0 : index
    %c0_192 = arith.constant 0 : index
    %208 = vector.load %arg4[%c23, %c0_191, %c0_192] : memref<25x64x144xbf16, #tpu.memory_space<vmem>>, vector<1x64x144xbf16>
    %209 = vector.shape_cast %208 : vector<1x64x144xbf16> to vector<64x144xbf16>
    %cst_193 = arith.constant dense<0.000000e+00> : vector<64x128xf32>
    %210 = tpu.matmul %209, %24, %cst_193 {dimension_numbers = #tpu.dot_dimension_numbers<[1], [0], [0], [1], [0, 0, 1, 1], [], []>} : vector<64x144xbf16>, vector<144x128xbf16>, vector<64x128xf32> -> vector<64x128xf32>
    %211 = arith.truncf %210 : vector<64x128xf32> to vector<64x128xbf16>
    %c23_194 = arith.constant 23 : index
    %c0_195 = arith.constant 0 : index
    %c0_196 = arith.constant 0 : index
    %212 = vector.load %arg5[%c23_194, %c0_195, %c0_196] : memref<25x128x128xbf16, #tpu.memory_space<vmem>>, vector<1x128x128xbf16>
    %213 = vector.shape_cast %212 : vector<1x128x128xbf16> to vector<128x128xbf16>
    %cst_197 = arith.constant dense<0.000000e+00> : vector<64x128xf32>
    %214 = tpu.matmul %211, %213, %cst_197 {dimension_numbers = #tpu.dot_dimension_numbers<[1], [0], [0], [1], [0, 0, 1, 1], [], []>} : vector<64x128xbf16>, vector<128x128xbf16>, vector<64x128xf32> -> vector<64x128xf32>
    %215 = arith.addf %207, %214 : vector<64x128xf32>
    %c24 = arith.constant 24 : index
    %c0_198 = arith.constant 0 : index
    %c0_199 = arith.constant 0 : index
    %216 = vector.load %arg4[%c24, %c0_198, %c0_199] : memref<25x64x144xbf16, #tpu.memory_space<vmem>>, vector<1x64x144xbf16>
    %217 = vector.shape_cast %216 : vector<1x64x144xbf16> to vector<64x144xbf16>
    %cst_200 = arith.constant dense<0.000000e+00> : vector<64x128xf32>
    %218 = tpu.matmul %217, %24, %cst_200 {dimension_numbers = #tpu.dot_dimension_numbers<[1], [0], [0], [1], [0, 0, 1, 1], [], []>} : vector<64x144xbf16>, vector<144x128xbf16>, vector<64x128xf32> -> vector<64x128xf32>
    %219 = arith.truncf %218 : vector<64x128xf32> to vector<64x128xbf16>
    %c24_201 = arith.constant 24 : index
    %c0_202 = arith.constant 0 : index
    %c0_203 = arith.constant 0 : index
    %220 = vector.load %arg5[%c24_201, %c0_202, %c0_203] : memref<25x128x128xbf16, #tpu.memory_space<vmem>>, vector<1x128x128xbf16>
    %221 = vector.shape_cast %220 : vector<1x128x128xbf16> to vector<128x128xbf16>
    %cst_204 = arith.constant dense<0.000000e+00> : vector<64x128xf32>
    %222 = tpu.matmul %219, %221, %cst_204 {dimension_numbers = #tpu.dot_dimension_numbers<[1], [0], [0], [1], [0, 0, 1, 1], [], []>} : vector<64x128xbf16>, vector<128x128xbf16>, vector<64x128xf32> -> vector<64x128xf32>
    %223 = arith.addf %215, %222 : vector<64x128xf32>
    %224 = vector.extract_strided_slice %223 {offsets = [0, 0], sizes = [16, 128], strides = [1, 1]} : vector<64x128xf32> to vector<16x128xf32>
    %225 = vector.extract_strided_slice %223 {offsets = [16, 0], sizes = [16, 128], strides = [1, 1]} : vector<64x128xf32> to vector<16x128xf32>
    %226 = arith.maximumf %224, %225 : vector<16x128xf32>
    %227 = vector.extract_strided_slice %223 {offsets = [32, 0], sizes = [16, 128], strides = [1, 1]} : vector<64x128xf32> to vector<16x128xf32>
    %228 = vector.extract_strided_slice %223 {offsets = [48, 0], sizes = [16, 128], strides = [1, 1]} : vector<64x128xf32> to vector<16x128xf32>
    %229 = arith.maximumf %227, %228 : vector<16x128xf32>
    %230 = arith.maximumf %226, %229 : vector<16x128xf32>
    %c0_205 = arith.constant 0 : index
    %c0_206 = arith.constant 0 : index
    %231 = vector.load %arg6[%c0_205, %c0_206] : memref<1x128xf32, #tpu.memory_space<vmem>>, vector<1x128xf32>
    %232 = vector.broadcast %231 : vector<1x128xf32> to vector<16x128xf32>
    %233 = arith.addf %230, %232 : vector<16x128xf32>
    %cst_207 = arith.constant 0.000000e+00 : f32
    %234 = vector.broadcast %cst_207 : f32 to vector<16x128xf32>
    %235 = arith.maximumf %233, %234 : vector<16x128xf32>
    %c0_208 = arith.constant 0 : index
    %c0_209 = arith.constant 0 : index
    %236 = vector.load %arg8[%c0_208, %c0_209] : memref<1x512xf32, #tpu.memory_space<vmem>>, vector<1x512xf32>
    %237 = vector.extract_strided_slice %235 {offsets = [0, 0], sizes = [1, 128], strides = [1, 1]} : vector<16x128xf32> to vector<1x128xf32>
    %238 = arith.truncf %237 : vector<1x128xf32> to vector<1x128xbf16>
    %c0_210 = arith.constant 0 : index
    %c0_211 = arith.constant 0 : index
    %c0_212 = arith.constant 0 : index
    %239 = vector.load %arg7[%c0_210, %c0_211, %c0_212] : memref<16x128x512xbf16, #tpu.memory_space<vmem>>, vector<1x128x512xbf16>
    %240 = vector.shape_cast %239 : vector<1x128x512xbf16> to vector<128x512xbf16>
    %cst_213 = arith.constant dense<0.000000e+00> : vector<1x512xf32>
    %241 = tpu.matmul %238, %240, %cst_213 {dimension_numbers = #tpu.dot_dimension_numbers<[1], [0], [0], [1], [0, 0, 1, 1], [], []>} : vector<1x128xbf16>, vector<128x512xbf16>, vector<1x512xf32> -> vector<1x512xf32>
    %242 = arith.addf %236, %241 : vector<1x512xf32>
    %243 = vector.extract_strided_slice %235 {offsets = [1, 0], sizes = [1, 128], strides = [1, 1]} : vector<16x128xf32> to vector<1x128xf32>
    %244 = arith.truncf %243 : vector<1x128xf32> to vector<1x128xbf16>
    %c1_214 = arith.constant 1 : index
    %c0_215 = arith.constant 0 : index
    %c0_216 = arith.constant 0 : index
    %245 = vector.load %arg7[%c1_214, %c0_215, %c0_216] : memref<16x128x512xbf16, #tpu.memory_space<vmem>>, vector<1x128x512xbf16>
    %246 = vector.shape_cast %245 : vector<1x128x512xbf16> to vector<128x512xbf16>
    %cst_217 = arith.constant dense<0.000000e+00> : vector<1x512xf32>
    %247 = tpu.matmul %244, %246, %cst_217 {dimension_numbers = #tpu.dot_dimension_numbers<[1], [0], [0], [1], [0, 0, 1, 1], [], []>} : vector<1x128xbf16>, vector<128x512xbf16>, vector<1x512xf32> -> vector<1x512xf32>
    %248 = arith.addf %242, %247 : vector<1x512xf32>
    %249 = vector.extract_strided_slice %235 {offsets = [2, 0], sizes = [1, 128], strides = [1, 1]} : vector<16x128xf32> to vector<1x128xf32>
    %250 = arith.truncf %249 : vector<1x128xf32> to vector<1x128xbf16>
    %c2_218 = arith.constant 2 : index
    %c0_219 = arith.constant 0 : index
    %c0_220 = arith.constant 0 : index
    %251 = vector.load %arg7[%c2_218, %c0_219, %c0_220] : memref<16x128x512xbf16, #tpu.memory_space<vmem>>, vector<1x128x512xbf16>
    %252 = vector.shape_cast %251 : vector<1x128x512xbf16> to vector<128x512xbf16>
    %cst_221 = arith.constant dense<0.000000e+00> : vector<1x512xf32>
    %253 = tpu.matmul %250, %252, %cst_221 {dimension_numbers = #tpu.dot_dimension_numbers<[1], [0], [0], [1], [0, 0, 1, 1], [], []>} : vector<1x128xbf16>, vector<128x512xbf16>, vector<1x512xf32> -> vector<1x512xf32>
    %254 = arith.addf %248, %253 : vector<1x512xf32>
    %255 = vector.extract_strided_slice %235 {offsets = [3, 0], sizes = [1, 128], strides = [1, 1]} : vector<16x128xf32> to vector<1x128xf32>
    %256 = arith.truncf %255 : vector<1x128xf32> to vector<1x128xbf16>
    %c3_222 = arith.constant 3 : index
    %c0_223 = arith.constant 0 : index
    %c0_224 = arith.constant 0 : index
    %257 = vector.load %arg7[%c3_222, %c0_223, %c0_224] : memref<16x128x512xbf16, #tpu.memory_space<vmem>>, vector<1x128x512xbf16>
    %258 = vector.shape_cast %257 : vector<1x128x512xbf16> to vector<128x512xbf16>
    %cst_225 = arith.constant dense<0.000000e+00> : vector<1x512xf32>
    %259 = tpu.matmul %256, %258, %cst_225 {dimension_numbers = #tpu.dot_dimension_numbers<[1], [0], [0], [1], [0, 0, 1, 1], [], []>} : vector<1x128xbf16>, vector<128x512xbf16>, vector<1x512xf32> -> vector<1x512xf32>
    %260 = arith.addf %254, %259 : vector<1x512xf32>
    %261 = vector.extract_strided_slice %235 {offsets = [4, 0], sizes = [1, 128], strides = [1, 1]} : vector<16x128xf32> to vector<1x128xf32>
    %262 = arith.truncf %261 : vector<1x128xf32> to vector<1x128xbf16>
    %c4_226 = arith.constant 4 : index
    %c0_227 = arith.constant 0 : index
    %c0_228 = arith.constant 0 : index
    %263 = vector.load %arg7[%c4_226, %c0_227, %c0_228] : memref<16x128x512xbf16, #tpu.memory_space<vmem>>, vector<1x128x512xbf16>
    %264 = vector.shape_cast %263 : vector<1x128x512xbf16> to vector<128x512xbf16>
    %cst_229 = arith.constant dense<0.000000e+00> : vector<1x512xf32>
    %265 = tpu.matmul %262, %264, %cst_229 {dimension_numbers = #tpu.dot_dimension_numbers<[1], [0], [0], [1], [0, 0, 1, 1], [], []>} : vector<1x128xbf16>, vector<128x512xbf16>, vector<1x512xf32> -> vector<1x512xf32>
    %266 = arith.addf %260, %265 : vector<1x512xf32>
    %267 = vector.extract_strided_slice %235 {offsets = [5, 0], sizes = [1, 128], strides = [1, 1]} : vector<16x128xf32> to vector<1x128xf32>
    %268 = arith.truncf %267 : vector<1x128xf32> to vector<1x128xbf16>
    %c5_230 = arith.constant 5 : index
    %c0_231 = arith.constant 0 : index
    %c0_232 = arith.constant 0 : index
    %269 = vector.load %arg7[%c5_230, %c0_231, %c0_232] : memref<16x128x512xbf16, #tpu.memory_space<vmem>>, vector<1x128x512xbf16>
    %270 = vector.shape_cast %269 : vector<1x128x512xbf16> to vector<128x512xbf16>
    %cst_233 = arith.constant dense<0.000000e+00> : vector<1x512xf32>
    %271 = tpu.matmul %268, %270, %cst_233 {dimension_numbers = #tpu.dot_dimension_numbers<[1], [0], [0], [1], [0, 0, 1, 1], [], []>} : vector<1x128xbf16>, vector<128x512xbf16>, vector<1x512xf32> -> vector<1x512xf32>
    %272 = arith.addf %266, %271 : vector<1x512xf32>
    %273 = vector.extract_strided_slice %235 {offsets = [6, 0], sizes = [1, 128], strides = [1, 1]} : vector<16x128xf32> to vector<1x128xf32>
    %274 = arith.truncf %273 : vector<1x128xf32> to vector<1x128xbf16>
    %c6_234 = arith.constant 6 : index
    %c0_235 = arith.constant 0 : index
    %c0_236 = arith.constant 0 : index
    %275 = vector.load %arg7[%c6_234, %c0_235, %c0_236] : memref<16x128x512xbf16, #tpu.memory_space<vmem>>, vector<1x128x512xbf16>
    %276 = vector.shape_cast %275 : vector<1x128x512xbf16> to vector<128x512xbf16>
    %cst_237 = arith.constant dense<0.000000e+00> : vector<1x512xf32>
    %277 = tpu.matmul %274, %276, %cst_237 {dimension_numbers = #tpu.dot_dimension_numbers<[1], [0], [0], [1], [0, 0, 1, 1], [], []>} : vector<1x128xbf16>, vector<128x512xbf16>, vector<1x512xf32> -> vector<1x512xf32>
    %278 = arith.addf %272, %277 : vector<1x512xf32>
    %279 = vector.extract_strided_slice %235 {offsets = [7, 0], sizes = [1, 128], strides = [1, 1]} : vector<16x128xf32> to vector<1x128xf32>
    %280 = arith.truncf %279 : vector<1x128xf32> to vector<1x128xbf16>
    %c7_238 = arith.constant 7 : index
    %c0_239 = arith.constant 0 : index
    %c0_240 = arith.constant 0 : index
    %281 = vector.load %arg7[%c7_238, %c0_239, %c0_240] : memref<16x128x512xbf16, #tpu.memory_space<vmem>>, vector<1x128x512xbf16>
    %282 = vector.shape_cast %281 : vector<1x128x512xbf16> to vector<128x512xbf16>
    %cst_241 = arith.constant dense<0.000000e+00> : vector<1x512xf32>
    %283 = tpu.matmul %280, %282, %cst_241 {dimension_numbers = #tpu.dot_dimension_numbers<[1], [0], [0], [1], [0, 0, 1, 1], [], []>} : vector<1x128xbf16>, vector<128x512xbf16>, vector<1x512xf32> -> vector<1x512xf32>
    %284 = arith.addf %278, %283 : vector<1x512xf32>
    %285 = vector.extract_strided_slice %235 {offsets = [8, 0], sizes = [1, 128], strides = [1, 1]} : vector<16x128xf32> to vector<1x128xf32>
    %286 = arith.truncf %285 : vector<1x128xf32> to vector<1x128xbf16>
    %c8_242 = arith.constant 8 : index
    %c0_243 = arith.constant 0 : index
    %c0_244 = arith.constant 0 : index
    %287 = vector.load %arg7[%c8_242, %c0_243, %c0_244] : memref<16x128x512xbf16, #tpu.memory_space<vmem>>, vector<1x128x512xbf16>
    %288 = vector.shape_cast %287 : vector<1x128x512xbf16> to vector<128x512xbf16>
    %cst_245 = arith.constant dense<0.000000e+00> : vector<1x512xf32>
    %289 = tpu.matmul %286, %288, %cst_245 {dimension_numbers = #tpu.dot_dimension_numbers<[1], [0], [0], [1], [0, 0, 1, 1], [], []>} : vector<1x128xbf16>, vector<128x512xbf16>, vector<1x512xf32> -> vector<1x512xf32>
    %290 = arith.addf %284, %289 : vector<1x512xf32>
    %291 = vector.extract_strided_slice %235 {offsets = [9, 0], sizes = [1, 128], strides = [1, 1]} : vector<16x128xf32> to vector<1x128xf32>
    %292 = arith.truncf %291 : vector<1x128xf32> to vector<1x128xbf16>
    %c9_246 = arith.constant 9 : index
    %c0_247 = arith.constant 0 : index
    %c0_248 = arith.constant 0 : index
    %293 = vector.load %arg7[%c9_246, %c0_247, %c0_248] : memref<16x128x512xbf16, #tpu.memory_space<vmem>>, vector<1x128x512xbf16>
    %294 = vector.shape_cast %293 : vector<1x128x512xbf16> to vector<128x512xbf16>
    %cst_249 = arith.constant dense<0.000000e+00> : vector<1x512xf32>
    %295 = tpu.matmul %292, %294, %cst_249 {dimension_numbers = #tpu.dot_dimension_numbers<[1], [0], [0], [1], [0, 0, 1, 1], [], []>} : vector<1x128xbf16>, vector<128x512xbf16>, vector<1x512xf32> -> vector<1x512xf32>
    %296 = arith.addf %290, %295 : vector<1x512xf32>
    %297 = vector.extract_strided_slice %235 {offsets = [10, 0], sizes = [1, 128], strides = [1, 1]} : vector<16x128xf32> to vector<1x128xf32>
    %298 = arith.truncf %297 : vector<1x128xf32> to vector<1x128xbf16>
    %c10_250 = arith.constant 10 : index
    %c0_251 = arith.constant 0 : index
    %c0_252 = arith.constant 0 : index
    %299 = vector.load %arg7[%c10_250, %c0_251, %c0_252] : memref<16x128x512xbf16, #tpu.memory_space<vmem>>, vector<1x128x512xbf16>
    %300 = vector.shape_cast %299 : vector<1x128x512xbf16> to vector<128x512xbf16>
    %cst_253 = arith.constant dense<0.000000e+00> : vector<1x512xf32>
    %301 = tpu.matmul %298, %300, %cst_253 {dimension_numbers = #tpu.dot_dimension_numbers<[1], [0], [0], [1], [0, 0, 1, 1], [], []>} : vector<1x128xbf16>, vector<128x512xbf16>, vector<1x512xf32> -> vector<1x512xf32>
    %302 = arith.addf %296, %301 : vector<1x512xf32>
    %303 = vector.extract_strided_slice %235 {offsets = [11, 0], sizes = [1, 128], strides = [1, 1]} : vector<16x128xf32> to vector<1x128xf32>
    %304 = arith.truncf %303 : vector<1x128xf32> to vector<1x128xbf16>
    %c11_254 = arith.constant 11 : index
    %c0_255 = arith.constant 0 : index
    %c0_256 = arith.constant 0 : index
    %305 = vector.load %arg7[%c11_254, %c0_255, %c0_256] : memref<16x128x512xbf16, #tpu.memory_space<vmem>>, vector<1x128x512xbf16>
    %306 = vector.shape_cast %305 : vector<1x128x512xbf16> to vector<128x512xbf16>
    %cst_257 = arith.constant dense<0.000000e+00> : vector<1x512xf32>
    %307 = tpu.matmul %304, %306, %cst_257 {dimension_numbers = #tpu.dot_dimension_numbers<[1], [0], [0], [1], [0, 0, 1, 1], [], []>} : vector<1x128xbf16>, vector<128x512xbf16>, vector<1x512xf32> -> vector<1x512xf32>
    %308 = arith.addf %302, %307 : vector<1x512xf32>
    %309 = vector.extract_strided_slice %235 {offsets = [12, 0], sizes = [1, 128], strides = [1, 1]} : vector<16x128xf32> to vector<1x128xf32>
    %310 = arith.truncf %309 : vector<1x128xf32> to vector<1x128xbf16>
    %c12_258 = arith.constant 12 : index
    %c0_259 = arith.constant 0 : index
    %c0_260 = arith.constant 0 : index
    %311 = vector.load %arg7[%c12_258, %c0_259, %c0_260] : memref<16x128x512xbf16, #tpu.memory_space<vmem>>, vector<1x128x512xbf16>
    %312 = vector.shape_cast %311 : vector<1x128x512xbf16> to vector<128x512xbf16>
    %cst_261 = arith.constant dense<0.000000e+00> : vector<1x512xf32>
    %313 = tpu.matmul %310, %312, %cst_261 {dimension_numbers = #tpu.dot_dimension_numbers<[1], [0], [0], [1], [0, 0, 1, 1], [], []>} : vector<1x128xbf16>, vector<128x512xbf16>, vector<1x512xf32> -> vector<1x512xf32>
    %314 = arith.addf %308, %313 : vector<1x512xf32>
    %315 = vector.extract_strided_slice %235 {offsets = [13, 0], sizes = [1, 128], strides = [1, 1]} : vector<16x128xf32> to vector<1x128xf32>
    %316 = arith.truncf %315 : vector<1x128xf32> to vector<1x128xbf16>
    %c13_262 = arith.constant 13 : index
    %c0_263 = arith.constant 0 : index
    %c0_264 = arith.constant 0 : index
    %317 = vector.load %arg7[%c13_262, %c0_263, %c0_264] : memref<16x128x512xbf16, #tpu.memory_space<vmem>>, vector<1x128x512xbf16>
    %318 = vector.shape_cast %317 : vector<1x128x512xbf16> to vector<128x512xbf16>
    %cst_265 = arith.constant dense<0.000000e+00> : vector<1x512xf32>
    %319 = tpu.matmul %316, %318, %cst_265 {dimension_numbers = #tpu.dot_dimension_numbers<[1], [0], [0], [1], [0, 0, 1, 1], [], []>} : vector<1x128xbf16>, vector<128x512xbf16>, vector<1x512xf32> -> vector<1x512xf32>
    %320 = arith.addf %314, %319 : vector<1x512xf32>
    %321 = vector.extract_strided_slice %235 {offsets = [14, 0], sizes = [1, 128], strides = [1, 1]} : vector<16x128xf32> to vector<1x128xf32>
    %322 = arith.truncf %321 : vector<1x128xf32> to vector<1x128xbf16>
    %c14_266 = arith.constant 14 : index
    %c0_267 = arith.constant 0 : index
    %c0_268 = arith.constant 0 : index
    %323 = vector.load %arg7[%c14_266, %c0_267, %c0_268] : memref<16x128x512xbf16, #tpu.memory_space<vmem>>, vector<1x128x512xbf16>
    %324 = vector.shape_cast %323 : vector<1x128x512xbf16> to vector<128x512xbf16>
    %cst_269 = arith.constant dense<0.000000e+00> : vector<1x512xf32>
    %325 = tpu.matmul %322, %324, %cst_269 {dimension_numbers = #tpu.dot_dimension_numbers<[1], [0], [0], [1], [0, 0, 1, 1], [], []>} : vector<1x128xbf16>, vector<128x512xbf16>, vector<1x512xf32> -> vector<1x512xf32>
    %326 = arith.addf %320, %325 : vector<1x512xf32>
    %327 = vector.extract_strided_slice %235 {offsets = [15, 0], sizes = [1, 128], strides = [1, 1]} : vector<16x128xf32> to vector<1x128xf32>
    %328 = arith.truncf %327 : vector<1x128xf32> to vector<1x128xbf16>
    %c15_270 = arith.constant 15 : index
    %c0_271 = arith.constant 0 : index
    %c0_272 = arith.constant 0 : index
    %329 = vector.load %arg7[%c15_270, %c0_271, %c0_272] : memref<16x128x512xbf16, #tpu.memory_space<vmem>>, vector<1x128x512xbf16>
    %330 = vector.shape_cast %329 : vector<1x128x512xbf16> to vector<128x512xbf16>
    %cst_273 = arith.constant dense<0.000000e+00> : vector<1x512xf32>
    %331 = tpu.matmul %328, %330, %cst_273 {dimension_numbers = #tpu.dot_dimension_numbers<[1], [0], [0], [1], [0, 0, 1, 1], [], []>} : vector<1x128xbf16>, vector<128x512xbf16>, vector<1x512xf32> -> vector<1x512xf32>
    %332 = arith.addf %326, %331 : vector<1x512xf32>
    %cst_274 = arith.constant 0.000000e+00 : f32
    %333 = vector.broadcast %cst_274 : f32 to vector<1x512xf32>
    %334 = arith.maximumf %332, %333 : vector<1x512xf32>
    %335 = arith.truncf %334 : vector<1x512xf32> to vector<1x512xbf16>
    %c0_275 = arith.constant 0 : index
    %c0_276 = arith.constant 0 : index
    %336 = vector.load %arg9[%c0_275, %c0_276] : memref<512x128xbf16, #tpu.memory_space<vmem>>, vector<512x128xbf16>
    %cst_277 = arith.constant dense<0.000000e+00> : vector<1x128xf32>
    %337 = tpu.matmul %335, %336, %cst_277 {dimension_numbers = #tpu.dot_dimension_numbers<[1], [0], [0], [1], [0, 0, 1, 1], [], []>} : vector<1x512xbf16>, vector<512x128xbf16>, vector<1x128xf32> -> vector<1x128xf32>
    %c0_278 = arith.constant 0 : index
    %c0_279 = arith.constant 0 : index
    %338 = vector.load %arg10[%c0_278, %c0_279] : memref<1x128xf32, #tpu.memory_space<vmem>>, vector<1x128xf32>
    %339 = arith.addf %337, %338 : vector<1x128xf32>
    %340 = tpu.iota {dimensions = array<i32: 1>} : vector<1x128xi32>
    %c10_i32 = arith.constant 10 : i32
    %341 = vector.broadcast %c10_i32 : i32 to vector<1x128xi32>
    %342 = arith.cmpi slt, %340, %341 : vector<1x128xi32>
    %cst_280 = arith.constant -1.000000e+30 : f32
    %343 = vector.broadcast %cst_280 : f32 to vector<1x128xf32>
    %344 = arith.select %342, %339, %343 : vector<1x128xi1>, vector<1x128xf32>
    %cst_281 = arith.constant dense<0xFF800000> : vector<1xf32>
    %345 = vector.multi_reduction <maximumf>, %344, %cst_281 [1] : vector<1x128xf32> to vector<1xf32>
    %346 = vector.shape_cast %345 : vector<1xf32> to vector<1x1xf32>
    %347 = vector.broadcast %346 : vector<1x1xf32> to vector<1x128xf32>
    %348 = arith.subf %344, %347 : vector<1x128xf32>
    %349 = math.exp %348 : vector<1x128xf32>
    %cst_282 = arith.constant dense<0.000000e+00> : vector<1xf32>
    %350 = vector.multi_reduction <add>, %349, %cst_282 [1] : vector<1x128xf32> to vector<1xf32>
    %351 = vector.shape_cast %350 : vector<1xf32> to vector<1x1xf32>
    %352 = math.log %351 : vector<1x1xf32>
    %353 = arith.addf %352, %346 : vector<1x1xf32>
    %354 = vector.broadcast %353 : vector<1x1xf32> to vector<1x128xf32>
    %355 = arith.subf %344, %354 : vector<1x128xf32>
    %356 = vector.shape_cast %355 : vector<1x128xf32> to vector<1x128xf32>
    %357 = vector.broadcast %356 : vector<1x128xf32> to vector<8x128xf32>
    %c0_283 = arith.constant 0 : index
    %c0_284 = arith.constant 0 : index
    %c0_285 = arith.constant 0 : index
    %358 = vector.load %arg11[%c0_283, %c0_284, %c0_285] : memref<1x8x128xf32, #tpu.memory_space<vmem>>, vector<1x8x128xf32>
    %359 = vector.shape_cast %358 : vector<1x8x128xf32> to vector<8x128xf32>
    %360 = vector.shape_cast %357 : vector<8x128xf32> to vector<1x8x128xf32>
    tpu.vector_store %arg11[%c0_283, %c0_284, %c0_285], %360 {strides = array<i32>} : memref<1x8x128xf32, #tpu.memory_space<vmem>>, vector<1x8x128xf32>,
    return
  }
  func.func @transform_0(%arg0: i32) -> (i32, i32, i32, i32) {
    %c0_i32 = arith.constant 0 : i32
    %c0_i32_0 = arith.constant 0 : i32
    %c0_i32_1 = arith.constant 0 : i32
    %c0_i32_2 = arith.constant 0 : i32
    return %arg0, %c0_i32, %c0_i32_0, %c0_i32_1 : i32, i32, i32, i32
  }
  func.func @transform_1(%arg0: i32) -> (i32, i32) {
    %c0_i32 = arith.constant 0 : i32
    %c0_i32_0 = arith.constant 0 : i32
    %c0_i32_1 = arith.constant 0 : i32
    return %c0_i32, %c0_i32_0 : i32, i32
  }
  func.func @transform_2(%arg0: i32) -> (i32, i32) {
    %c0_i32 = arith.constant 0 : i32
    %c0_i32_0 = arith.constant 0 : i32
    %c0_i32_1 = arith.constant 0 : i32
    return %c0_i32, %c0_i32_0 : i32, i32
  }
  func.func @transform_3(%arg0: i32) -> (i32, i32, i32) {
    %c0_i32 = arith.constant 0 : i32
    %c0_i32_0 = arith.constant 0 : i32
    %c0_i32_1 = arith.constant 0 : i32
    %c0_i32_2 = arith.constant 0 : i32
    return %c0_i32, %c0_i32_0, %c0_i32_1 : i32, i32, i32
  }
  func.func @transform_4(%arg0: i32) -> (i32, i32, i32) {
    %c0_i32 = arith.constant 0 : i32
    %c0_i32_0 = arith.constant 0 : i32
    %c0_i32_1 = arith.constant 0 : i32
    %c0_i32_2 = arith.constant 0 : i32
    return %c0_i32, %c0_i32_0, %c0_i32_1 : i32, i32, i32
  }
  func.func @transform_5(%arg0: i32) -> (i32, i32) {
    %c0_i32 = arith.constant 0 : i32
    %c0_i32_0 = arith.constant 0 : i32
    %c0_i32_1 = arith.constant 0 : i32
    return %c0_i32, %c0_i32_0 : i32, i32
  }
  func.func @transform_6(%arg0: i32) -> (i32, i32, i32) {
    %c0_i32 = arith.constant 0 : i32
    %c0_i32_0 = arith.constant 0 : i32
    %c0_i32_1 = arith.constant 0 : i32
    %c0_i32_2 = arith.constant 0 : i32
    return %c0_i32, %c0_i32_0, %c0_i32_1 : i32, i32, i32
  }
  func.func @transform_7(%arg0: i32) -> (i32, i32) {
    %c0_i32 = arith.constant 0 : i32
    %c0_i32_0 = arith.constant 0 : i32
    %c0_i32_1 = arith.constant 0 : i32
    return %c0_i32, %c0_i32_0 : i32, i32
  }
  func.func @transform_8(%arg0: i32) -> (i32, i32) {
    %c0_i32 = arith.constant 0 : i32
    %c0_i32_0 = arith.constant 0 : i32
    %c0_i32_1 = arith.constant 0 : i32
    return %c0_i32, %c0_i32_0 : i32, i32
  }
  func.func @transform_9(%arg0: i32) -> (i32, i32) {
    %c0_i32 = arith.constant 0 : i32
    %c0_i32_0 = arith.constant 0 : i32
    %c0_i32_1 = arith.constant 0 : i32
    return %c0_i32, %c0_i32_0 : i32, i32
  }
  func.func @transform_10(%arg0: i32) -> (i32, i32, i32) {
    %c0_i32 = arith.constant 0 : i32
    %c0_i32_0 = arith.constant 0 : i32
    %c0_i32_1 = arith.constant 0 : i32
    return %arg0, %c0_i32, %c0_i32_0 : i32, i32, i32
  }
}

</mosaic_0001>

<bundles_post_ra>
// kernel: net_forward.1
= control target key start
LH: loop header
LB: loop body
LE: loop exit
PB: predicated region body
PF: predicated region fallthrough
CT: control target
= control target key end

     0   :  { %15 = vsyncpa [#allocation3], 0  ;;  %s20964_s0 = inlined_call_operand.vmem [shape: bf16[2,4,144,128], index: 0, kind: input, shape index: {}]   ;;  %s20965_s1 = inlined_call_operand.vmem [shape: bf16[128,128], index: 1, kind: input, shape index: {}]   ;;  %s20966_s2 = inlined_call_operand.vmem [shape: f32[1,128], index: 2, kind: input, shape index: {}]   ;;  %s20967_s3 = inlined_call_operand.hbm [shape: bf16[25,64,144], index: 3, kind: input, shape index: {}]   ;;  %s20968_s4 = inlined_call_operand.hbm [shape: bf16[25,128,128], index: 4, kind: input, shape index: {}]   ;;  %s20969_s5 = inlined_call_operand.vmem [shape: f32[1,128], index: 5, kind: input, shape index: {}]   ;;  %s20970_s6 = inlined_call_operand.vmem [shape: bf16[16,128,512], index: 6, kind: input, shape index: {}]   ;;  %s20971_s7 = inlined_call_operand.vmem [shape: f32[1,512], index: 7, kind: input, shape index: {}]   ;;  %s20972_s8 = inlined_call_operand.vmem [shape: bf16[512,128], index: 8, kind: input, shape index: {}]   ;;  %s20973_s9 = inlined_call_operand.vmem [shape: f32[1,128], index: 9, kind: input, shape index: {}]   ;;  %s20974_s10 = inlined_call_operand.vmem [shape: f32[2,8,128], index: 10, kind: output, shape index: {}]  }
   0x1   :  { %16 = vsyncpa [#allocation5], 0  ;;  %s17623_s13 = smov 0  }
   0x2 LB: > { %s17558_s14 = smov [#allocation2]   ;;  %s17629_s16 = sadd.s32 4294967295, %s17556_s13   ;;  %s17556_s13 = sphi %s17623_s13, %s22_s13  }
   0x3   : > { %s286_s15 = sshll.u32 %s17558_s14, 4  ;;  %p13249_p0 = scmp.ge.s32.totalorder %s17556_s13, 1  ;;  %s287_s15 = int_to_ptr.vmem [resolvable:$true] %s286_s15 }
   0x4   : > { %p268_p1 = scmp.lt.s32.totalorder %s17556_s13, 3  ;;  %p16120_p3 = scmp.eq.s32.totalorder %s17629_s16, 0 }
   0x5   : > { %s17559_s18 = smov [#allocation4]   ;;  %s17501_s21 = scalar_lea.vmem %s287_s15, 25600 }
   0x6   : > { %p17633_p2 = pnand %p13249_p0, %p268_p1  ;;  %s299_s19 = sshll.u32 %s17559_s18, 4  ;;  %s300_s19 = int_to_ptr.vmem [resolvable:$true] %s299_s19 }
   0x7   : > { %p17502_p7 = scmp.ne.s32.totalorder %s287_s15, %s17501_s21  ;;  %p17509_p10 = scmp.lt.s32.totalorder %s287_s15, %s287_s15 }
   0x8   : > { %p16113_p4 = pneg %p17633_p2  ;;  %p17510_p11 = scmp.lt.s32.totalorder %s17501_s21, %s17501_s21 }
   0xa   : > { %p17642_p5 = pnand %p16120_p3, %p16113_p4  ;;  %p17511_p12 = por %p17510_p11, %p17509_p10 }
   0xc   : > { %p17492_p6 = pneg %p17642_p5 }
   0xe   : > { %p17504_p8 = pnand %p17502_p7, %p17492_p6 }
  0x10   : > { %p17505_p9 = pneg %p17504_p8 }
  0x12   : > { %p17512_p13 = pnand %p17511_p12, %p17505_p9 }
  0x14   : > { %17515 = shalt.err (!%p17512_p13)
}
  0x15   : > { %s17560_s22 = smov 128   ;;  %s17561_s23 = smov 8  }
  0x16   : > { %16116 = dma.hbm_to_vmem [thread:$0]  (!%p17642_p5), %s20967_s3, 25600, %s287_s15, [#allocation3], %s17560_s22, %s17560_s22, %s17561_s23  }
  0x17   : > { %s17527_s26 = scalar_lea.vmem %s300_s19, 25600  ;;  %p17535_p7 = scmp.lt.s32.totalorder %s300_s19, %s300_s19 }
  0x18   : > { %p17528_p0 = scmp.ne.s32.totalorder %s300_s19, %s17527_s26  ;;  %p17536_p8 = scmp.lt.s32.totalorder %s17527_s26, %s17527_s26 }
  0x1a   : > { %p17530_p1 = pnand %p17528_p0, %p17492_p6  ;;  %p17537_p10 = por %p17536_p8, %p17535_p7 }
  0x1c   : > { %p17531_p4 = pneg %p17530_p1 }
  0x1e   : > { %p17538_p9 = pnand %p17537_p10, %p17531_p4 }
  0x20   : > { %17541 = shalt.err (!%p17538_p9)
}
  0x21   : > { %s17562_s27 = smov 64   ;;  %s17563_s28 = smov 4  }
  0x22   : > { %16119 = dma.hbm_to_vmem [thread:$0]  (!%p17642_p5), %s20968_s4, 25600, %s300_s19, [#allocation5], %s17562_s27, %s17562_s27, %s17563_s28  }
  0x23   : > { %338 = sbr.rel (%p17633_p2) target bundleno = 7679 (0x1dff), region = 60 }
  0x28   : > { %17547 = dma.done.wait (%p16120_p3), [#allocation3], 25600  }
  0x29   : > { %17549 = vsyncadd (%p16120_p3), [#allocation3], 4294941696 }
  0x2a   : > { %17551 = dma.done.wait (%p16120_p3), [#allocation5], 25600  }
  0x2b   : > { %17553 = vsyncadd (%p16120_p3), [#allocation5], 4294941696  ;;  %v17564_v0 = vmov 0.0   ;;  %vm17565_vm0 = vmmov 0   ;;  %p379_p2 = scmp.lt.s32.totalorder %s17629_s16, 1  ;;  %v16142_v1 = vld [vmem:[%s20965_s1 + $0x38] sm:$0xff]  }
  0x2c   : > { %15296 = vmatprep.subr.bf16.mxu0 %v17564_v0  ;;  %15348 = vmatprep.subr.bf16.mxu1 %v17564_v0  ;;  %v16143_v2 = vld [vmem:[%s20965_s1 + $0x30] sm:$0xff]   ;;  %v16144_v3 = vld [vmem:[%s20965_s1 + $0x28] sm:$0xff]   ;;  %v16145_v4 = vld [vmem:[%s20965_s1 + $0x20] sm:$0xff]   ;;  %vm1314_vm1 = vcmask 130048   ;;  %vm13153_vm3 = vcmask 1040384  }
  0x2d   : > { %15312 = vmatprep.mubr.msk.bf16.mxu0 %vm17565_vm0, %v17564_v0  ;;  %15364 = vmatprep.mubr.msk.bf16.mxu1 %vm17565_vm0, %v17564_v0  ;;  %s21006_s16 = smov (!%p379_p2, %s17629_s16), 1  ;;  %v16146_v5 = vld [vmem:[%s20965_s1 + $0x18] sm:$0xff]   ;;  %v16147_v6 = vld [vmem:[%s20965_s1 + $0x10] sm:$0xff]   ;;  %v16148_v7 = vld [vmem:[%s20965_s1 + $0x8] sm:$0xff]  }
  0x2e   : > { %15297 = vmatpush3.bf16.msra.mxu0 %v16142_v1  ;;  %15349 = vmatpush3.bf16.msra.mxu1 %v16142_v1  ;;  %s16104_s17 = smul.u32 288, %s21006_s16  ;;  %v16149_v8 = vld [vmem:[%s20965_s1] sm:$0xff]   ;;  %s13257_s11 = sshll.u32 %s21006_s16, 3 }
  0x2f   : > { %15298 = vmatprep.subr.bf16.mxu0 %v17564_v0  ;;  %15350 = vmatprep.subr.bf16.mxu1 %v17564_v0  ;;  %s387_s15 = scalar_lea.vmem %s20974_s10, %s13257_s11 }
  0x30   : > { %s17701_s22 = scalar_lea.vmem %s20964_s0, %s16104_s17 }
  0x31   : > { %v16150_v9 = vld [vmem:[%s17701_s22] sm:$0xff]   ;;  %v16151_v10 = vld [vmem:[%s17701_s22 + $0x48] sm:$0xff]   ;;  %v16153_v12 = vld [vmem:[%s17701_s22 + $0x50] sm:$0xff]  }
  0x32   : > { %15299 = vmatpush3.bf16.msra.mxu0 %v16143_v2  ;;  %15351 = vmatpush3.bf16.msra.mxu1 %v16143_v2  ;;  %v16152_v11 = vld [vmem:[%s17701_s22 + $0x8] sm:$0xff]   ;;  %v16154_v13 = vld [vmem:[%s17701_s22 + $0x10] sm:$0xff]   ;;  %v16155_v14 = vld [vmem:[%s17701_s22 + $0x58] sm:$0xff]  }
  0x33   : > { %15300 = vmatprep.subr.bf16.mxu0 %v17564_v0  ;;  %15352 = vmatprep.subr.bf16.mxu1 %v17564_v0  ;;  %v16156_v15 = vld [vmem:[%s17701_s22 + $0x18] sm:$0xff]   ;;  %v16157_v16 = vld [vmem:[%s17701_s22 + $0x60] sm:$0xff]   ;;  %v16159_v18 = vld [vmem:[%s17701_s22 + $0x68] sm:$0xff]  }
  0x34   : > { %v16158_v17 = vld [vmem:[%s17701_s22 + $0x20] sm:$0xff]   ;;  %v16160_v19 = vld [vmem:[%s17701_s22 + $0x28] sm:$0xff]   ;;  %v16161_v20 = vld [vmem:[%s17701_s22 + $0x70] sm:$0xff]  }
  0x35   : > { %v16162_v21 = vld [vmem:[%s17701_s22 + $0x30] sm:$0xff]   ;;  %v16163_v22 = vld [vmem:[%s17701_s22 + $0x78] sm:$0xff]   ;;  %v16165_v24 = vld [vmem:[%s17701_s22 + $0x80] sm:$0xff]  }
  0x36   : > { %15301 = vmatpush3.bf16.msra.mxu0 %v16144_v3  ;;  %15353 = vmatpush3.bf16.msra.mxu1 %v16144_v3  ;;  %v16164_v23 = vld [vmem:[%s17701_s22 + $0x38] sm:$0xff]   ;;  %v16166_v25 = vld [vmem:[%s17701_s22 + $0x40] sm:$0xff]   ;;  %v16167_v26 = vld [vmem:[%s17701_s22 + $0x88] sm:$0xff]  }
  0x37   : > { %15302 = vmatprep.subr.bf16.mxu0 %v17564_v0  ;;  %15354 = vmatprep.subr.bf16.mxu1 %v17564_v0  ;;  %v16168_v27 = vld [vmem:[%s17701_s22 + $0x90] sm:$0xff]   ;;  %v16169_v28 = vld [vmem:[%s17701_s22 + $0xd8] sm:$0xff]   ;;  %v16171_v30 = vld [vmem:[%s17701_s22 + $0xe0] sm:$0xff]  }
  0x38   : > { %v16170_v29 = vld [vmem:[%s17701_s22 + $0x98] sm:$0xff]   ;;  %v16172_v31 = vld [vmem:[%s17701_s22 + $0xa0] sm:$0xff]   ;;  %v16173_v32 = vld [vmem:[%s17701_s22 + $0xe8] sm:$0xff]  }
  0x39   : > { %v16174_v33 = vld [vmem:[%s17701_s22 + $0xa8] sm:$0xff]   ;;  %v16175_v34 = vld [vmem:[%s17701_s22 + $0xf0] sm:$0xff]   ;;  %v16177_v36 = vld [vmem:[%s17701_s22 + $0xf8] sm:$0xff]  }
  0x3a   : > { %15303 = vmatpush3.bf16.msra.mxu0 %v16145_v4  ;;  %15355 = vmatpush3.bf16.msra.mxu1 %v16145_v4  ;;  %v16176_v35 = vld [vmem:[%s17701_s22 + $0xb0] sm:$0xff]   ;;  %v16178_v37 = vld [vmem:[%s17701_s22 + $0xb8] sm:$0xff]   ;;  %v16179_v38 = vld [vmem:[%s17701_s22 + $0x100] sm:$0xff]  }
  0x3b   : > { %15304 = vmatprep.subr.bf16.mxu0 %v17564_v0  ;;  %15356 = vmatprep.subr.bf16.mxu1 %v17564_v0  ;;  %v16180_v39 = vld [vmem:[%s17701_s22 + $0xc0] sm:$0xff]   ;;  %v16181_v40 = vld [vmem:[%s17701_s22 + $0x108] sm:$0xff]   ;;  %v16183_v42 = vld [vmem:[%s17701_s22 + $0x110] sm:$0xff]  }
  0x3c   : > { %v16182_v41 = vld [vmem:[%s17701_s22 + $0xc8] sm:$0xff]   ;;  %v16184_v43 = vld [vmem:[%s17701_s22 + $0xd0] sm:$0xff]   ;;  %v16185_v44 = vld [vmem:[%s17701_s22 + $0x118] sm:$0xff]  }
  0x3e   : > { %15305 = vmatpush3.bf16.msra.mxu0 %v16146_v5  ;;  %15357 = vmatpush3.bf16.msra.mxu1 %v16146_v5 }
  0x3f   : > { %15306 = vmatprep.subr.bf16.mxu0 %v17564_v0  ;;  %15358 = vmatprep.subr.bf16.mxu1 %v17564_v0 }
  0x42   : > { %15307 = vmatpush3.bf16.msra.mxu0 %v16147_v6  ;;  %15359 = vmatpush3.bf16.msra.mxu1 %v16147_v6 }
  0x43   : > { %15308 = vmatprep.subr.bf16.mxu0 %v17564_v0  ;;  %15360 = vmatprep.subr.bf16.mxu1 %v17564_v0 }
  0x46   : > { %15309 = vmatpush3.bf16.msra.mxu0 %v16148_v7  ;;  %15361 = vmatpush3.bf16.msra.mxu1 %v16148_v7 }
  0x47   : > { %15310 = vmatprep.subr.bf16.mxu0 %v17564_v0  ;;  %15362 = vmatprep.subr.bf16.mxu1 %v17564_v0 }
  0x4a   : > { %15311 = vmatpush3.bf16.msra.mxu0 %v16149_v8  ;;  %15363 = vmatpush3.bf16.msra.mxu1 %v16149_v8 }
  0x4b   : > { %15400 = vmatprep.subr.bf16.mxu0 %v17564_v0  ;;  %15452 = vmatprep.subr.bf16.mxu1 %v17564_v0 }
  0x4d   : > { %15313 = vmatmul.mubr.bf16.vlgmr.msra.gmra.mxu0 %v16150_v9  ;;  %15365 = vmatmul.mubr.bf16.vlgmr.msra.gmra.mxu1 %v16151_v10 }
  0x4e   : > { %15316 = vmatprep.mubr.msk.bf16.mxu0 %vm17565_vm0, %v17564_v0  ;;  %15368 = vmatprep.mubr.msk.bf16.mxu1 %vm17565_vm0, %v17564_v0 }
  0x4f   : > { %15401 = vmatpush3.bf16.msra.mxu0 %v16142_v1  ;;  %15453 = vmatpush3.bf16.msra.mxu1 %v16142_v1  ;;  %v20975_v1 = vmov 0  }
  0x50   : > { %15402 = vmatprep.subr.bf16.mxu0 %v17564_v0  ;;  %15454 = vmatprep.subr.bf16.mxu1 %v17564_v0 }
  0x53   : > { %15403 = vmatpush3.bf16.msra.mxu0 %v16143_v2  ;;  %15455 = vmatpush3.bf16.msra.mxu1 %v16143_v2 }
  0x54   : > { %15404 = vmatprep.subr.bf16.mxu0 %v17564_v0  ;;  %15456 = vmatprep.subr.bf16.mxu1 %v17564_v0 }
  0x55   : > { %15317 = vmatmul.mubr.bf16.gmra.mxu0 %v16152_v11  ;;  %15369 = vmatmul.mubr.bf16.gmra.mxu1 %v16153_v12 }
  0x56   : > { %15320 = vmatprep.mubr.msk.bf16.mxu0 %vm17565_vm0, %v17564_v0  ;;  %15372 = vmatprep.mubr.msk.bf16.mxu1 %vm17565_vm0, %v17564_v0 }
  0x57   : > { %15405 = vmatpush3.bf16.msra.mxu0 %v16144_v3  ;;  %15457 = vmatpush3.bf16.msra.mxu1 %v16144_v3 }
  0x58   : > { %15406 = vmatprep.subr.bf16.mxu0 %v17564_v0  ;;  %15458 = vmatprep.subr.bf16.mxu1 %v17564_v0 }
  0x5b   : > { %15407 = vmatpush3.bf16.msra.mxu0 %v16145_v4  ;;  %15459 = vmatpush3.bf16.msra.mxu1 %v16145_v4 }
  0x5c   : > { %15408 = vmatprep.subr.bf16.mxu0 %v17564_v0  ;;  %15460 = vmatprep.subr.bf16.mxu1 %v17564_v0 }
  0x5d   : > { %15321 = vmatmul.mubr.bf16.gmra.mxu0 %v16154_v13  ;;  %15373 = vmatmul.mubr.bf16.gmra.mxu1 %v16155_v14 }
  0x5e   : > { %15324 = vmatprep.mubr.msk.bf16.mxu0 %vm17565_vm0, %v17564_v0  ;;  %15376 = vmatprep.mubr.msk.bf16.mxu1 %vm17565_vm0, %v17564_v0 }
  0x5f   : > { %15409 = vmatpush3.bf16.msra.mxu0 %v16146_v5  ;;  %15461 = vmatpush3.bf16.msra.mxu1 %v16146_v5 }
  0x60   : > { %15410 = vmatprep.subr.bf16.mxu0 %v17564_v0  ;;  %15462 = vmatprep.subr.bf16.mxu1 %v17564_v0 }
  0x63   : > { %15411 = vmatpush3.bf16.msra.mxu0 %v16147_v6  ;;  %15463 = vmatpush3.bf16.msra.mxu1 %v16147_v6 }
  0x64   : > { %15412 = vmatprep.subr.bf16.mxu0 %v17564_v0  ;;  %15464 = vmatprep.subr.bf16.mxu1 %v17564_v0 }
  0x65   : > { %15325 = vmatmul.mubr.bf16.gmra.mxu0 %v16156_v15  ;;  %15377 = vmatmul.mubr.bf16.gmra.mxu1 %v16157_v16 }
  0x66   : > { %15328 = vmatprep.mubr.msk.bf16.mxu0 %vm17565_vm0, %v17564_v0  ;;  %15380 = vmatprep.mubr.msk.bf16.mxu1 %vm17565_vm0, %v17564_v0 }
  0x67   : > { %15413 = vmatpush3.bf16.msra.mxu0 %v16148_v7  ;;  %15465 = vmatpush3.bf16.msra.mxu1 %v16148_v7 }
  0x68   : > { %15414 = vmatprep.subr.bf16.mxu0 %v17564_v0  ;;  %15466 = vmatprep.subr.bf16.mxu1 %v17564_v0 }
  0x6b   : > { %15415 = vmatpush3.bf16.msra.mxu0 %v16149_v8  ;;  %15467 = vmatpush3.bf16.msra.mxu1 %v16149_v8 }
  0x6c   : > { %1327 = vmatprep.subr.bf16.mxu0 %v20975_v1  ;;  %1469 = vmatprep.subr.bf16.mxu1 %v20975_v1 }
  0x6d   : > { %15329 = vmatmul.mubr.bf16.gmra.mxu0 %v16158_v17  ;;  %15381 = vmatmul.mubr.bf16.gmra.mxu1 %v16159_v18 }
  0x6e   : > { %15332 = vmatprep.mubr.msk.bf16.mxu0 %vm17565_vm0, %v17564_v0  ;;  %15384 = vmatprep.mubr.msk.bf16.mxu1 %vm17565_vm0, %v17564_v0 }
  0x75   : > { %15333 = vmatmul.mubr.bf16.gmra.mxu0 %v16160_v19  ;;  %15385 = vmatmul.mubr.bf16.gmra.mxu1 %v16161_v20 }
  0x76   : > { %15336 = vmatprep.mubr.msk.bf16.mxu0 %vm17565_vm0, %v17564_v0  ;;  %15388 = vmatprep.mubr.msk.bf16.mxu1 %vm17565_vm0, %v17564_v0 }
  0x7d   : > { %15337 = vmatmul.mubr.bf16.gmra.mxu0 %v16162_v21  ;;  %15389 = vmatmul.mubr.bf16.gmra.mxu1 %v16163_v22 }
  0x7e   : > { %15340 = vmatprep.mubr.msk.bf16.mxu0 %vm17565_vm0, %v17564_v0  ;;  %15392 = vmatprep.mubr.msk.bf16.mxu1 %vm17565_vm0, %v17564_v0 }
  0x85   : > { %15341 = vmatmul.mubr.bf16.gmra.mxu0 %v16164_v23  ;;  %15393 = vmatmul.mubr.bf16.gmra.mxu1 %v16165_v24 }
  0x86   : > { %15344 = vmatprep.mubr.msk.bf16.mxu0 %vm17565_vm0, %v17564_v0  ;;  %15396 = vmatprep.mubr.msk.bf16.mxu1 %vm17565_vm0, %v17564_v0 }
  0x8d   : > { %15345 = vmatmul.mubr.bf16.gmra.mxu0 %v16166_v25  ;;  %15397 = vmatmul.mubr.bf16.gmra.mxu1 %v16167_v26 }
  0x8e   : > { %15416 = vmatprep.mubr.msk.bf16.mxu0 %vm17565_vm0, %v17564_v0  ;;  %15468 = vmatprep.mubr.msk.bf16.mxu1 %vm17565_vm0, %v17564_v0 }
  0x95   : > { %15417 = vmatmul.mubr.bf16.vlgmr.msra.gmra.mxu0 %v16168_v27  ;;  %15469 = vmatmul.mubr.bf16.vlgmr.msra.gmra.mxu1 %v16169_v28 }
  0x96   : > { %15420 = vmatprep.mubr.msk.bf16.mxu0 %vm17565_vm0, %v17564_v0  ;;  %15472 = vmatprep.mubr.msk.bf16.mxu1 %vm17565_vm0, %v17564_v0 }
  0x9d   : > { %15421 = vmatmul.mubr.bf16.gmra.mxu0 %v16170_v29  ;;  %15473 = vmatmul.mubr.bf16.gmra.mxu1 %v16171_v30 }
  0x9e   : > { %15424 = vmatprep.mubr.msk.bf16.mxu0 %vm17565_vm0, %v17564_v0  ;;  %15476 = vmatprep.mubr.msk.bf16.mxu1 %vm17565_vm0, %v17564_v0 }
  0xa5   : > { %15425 = vmatmul.mubr.bf16.gmra.mxu0 %v16172_v31  ;;  %15477 = vmatmul.mubr.bf16.gmra.mxu1 %v16173_v32 }
  0xa6   : > { %15428 = vmatprep.mubr.msk.bf16.mxu0 %vm17565_vm0, %v17564_v0  ;;  %15480 = vmatprep.mubr.msk.bf16.mxu1 %vm17565_vm0, %v17564_v0 }
  0xad   : > { %15429 = vmatmul.mubr.bf16.gmra.mxu0 %v16174_v33  ;;  %15481 = vmatmul.mubr.bf16.gmra.mxu1 %v16175_v34 }
  0xae   : > { %15432 = vmatprep.mubr.msk.bf16.mxu0 %vm17565_vm0, %v17564_v0  ;;  %15484 = vmatprep.mubr.msk.bf16.mxu1 %vm17565_vm0, %v17564_v0 }
  0xb5   : > { %15433 = vmatmul.mubr.bf16.gmra.mxu0 %v16176_v35  ;;  %15485 = vmatmul.mubr.bf16.gmra.mxu1 %v16177_v36 }
  0xb6   : > { %15436 = vmatprep.mubr.msk.bf16.mxu0 %vm17565_vm0, %v17564_v0  ;;  %15488 = vmatprep.mubr.msk.bf16.mxu1 %vm17565_vm0, %v17564_v0 }
  0xbd   : > { %15437 = vmatmul.mubr.bf16.gmra.mxu0 %v16178_v37  ;;  %15489 = vmatmul.mubr.bf16.gmra.mxu1 %v16179_v38 }
  0xbe   : > { %15440 = vmatprep.mubr.msk.bf16.mxu0 %vm17565_vm0, %v17564_v0  ;;  %15492 = vmatprep.mubr.msk.bf16.mxu1 %vm17565_vm0, %v17564_v0 }
  0xc5   : > { %15441 = vmatmul.mubr.bf16.gmra.mxu0 %v16180_v39  ;;  %15493 = vmatmul.mubr.bf16.gmra.mxu1 %v16181_v40 }
  0xc6   : > { %15444 = vmatprep.mubr.msk.bf16.mxu0 %vm17565_vm0, %v17564_v0  ;;  %15496 = vmatprep.mubr.msk.bf16.mxu1 %vm17565_vm0, %v17564_v0 }
  0xcd   : > { %15445 = vmatmul.mubr.bf16.gmra.mxu0 %v16182_v41  ;;  %15497 = vmatmul.mubr.bf16.gmra.mxu1 %v16183_v42  ;;  %v16188_v42 = vld [vmem:[#allocation2 + $0x44] ss:$8 sps:$4 sm:$0xff]  }
  0xce   : > { %15448 = vmatprep.mubr.msk.bf16.mxu0 %vm17565_vm0, %v17564_v0  ;;  %15500 = vmatprep.mubr.msk.bf16.mxu1 %vm17565_vm0, %v17564_v0 }
  0xd5   : > { %15449 = vmatmul.mubr.bf16.gmra.mxu0 %v16184_v43  ;;  %15501 = vmatmul.mubr.bf16.gmra.mxu1 %v16185_v44 }
  0xd6   : > { %13377 = vmatprep.mubr.msk.bf16.mxu1 %vm1314_vm1, %v16188_v42 }
 0x10d   : > { %v17848_v45 = vpop.f32.mrf.mxu0  ;;  %v17850_v46 = vpop.f32.mrf.mxu1 }
 0x10e   : > { %v808_v47 = vmax.f32 %v17848_v45, %v17850_v46 }
 0x10f   : > { %v15314_v48 = vpop.f32.mrf.mxu0  ;;  %v15366_v49 = vpop.f32.mrf.mxu1 }
 0x110   : > { %v16194_v48 = vld [vmem:[#allocation2 + $0x4] ss:$8 sps:$4 sm:$0xff]  }
 0x111   : > { %v17854_v50 = vpop.f32.mrf.mxu0  ;;  %v17856_v51 = vpop.f32.mrf.mxu1  ;;  %13365 = vmatprep.mubr.msk.bf16.mxu0 %vm1314_vm1, %v16194_v48 }
 0x112   : > { %v809_v52 = vmax.f32 %v17854_v50, %v17856_v51 }
 0x113   : > { %v15315_v53 = vpop.f32.mrf.mxu0  ;;  %v15367_v54 = vpop.f32.mrf.mxu1 }
 0x115   : > { %v17860_v55 = vpop.f32.mrf.mxu0  ;;  %v17862_v56 = vpop.f32.mrf.mxu1 }
 0x116   : > { %v810_v57 = vmax.f32 %v17860_v55, %v17862_v56 }
 0x117   : > { %v15318_v58 = vpop.f32.mrf.mxu0  ;;  %v15370_v59 = vpop.f32.mrf.mxu1 }
 0x119   : > { %v17866_v60 = vpop.f32.mrf.mxu0  ;;  %v17868_v61 = vpop.f32.mrf.mxu1 }
 0x11a   : > { %v811_v62 = vmax.f32 %v17866_v60, %v17868_v61 }
 0x11b   : > { %v15319_v63 = vpop.f32.mrf.mxu0  ;;  %v15371_v0 = vpop.f32.mrf.mxu1 }
 0x11d   : > { %v17874_v2 = vpop.f32.mrf.mxu0  ;;  %v17876_v3 = vpop.f32.mrf.mxu1 }
 0x11e   : > { %v812_v4 = vmax.f32 %v17874_v2, %v17876_v3 }
 0x11f   : > { %v15322_v5 = vpop.f32.mrf.mxu0  ;;  %v15374_v6 = vpop.f32.mrf.mxu1 }
 0x121   : > { %v17880_v7 = vpop.f32.mrf.mxu0  ;;  %v17882_v8 = vpop.f32.mrf.mxu1 }
 0x122   : > { %v813_v9 = vmax.f32 %v17880_v7, %v17882_v8 }
 0x123   : > { %v15323_v10 = vpop.f32.mrf.mxu0  ;;  %v15375_v11 = vpop.f32.mrf.mxu1 }
 0x125   : > { %v17886_v12 = vpop.f32.mrf.mxu0  ;;  %v17888_v13 = vpop.f32.mrf.mxu1 }
 0x126   : > { %v814_v14 = vmax.f32 %v17886_v12, %v17888_v13 }
 0x127   : > { %v15326_v15 = vpop.f32.mrf.mxu0  ;;  %v15378_v16 = vpop.f32.mrf.mxu1 }
 0x129   : > { %v17892_v17 = vpop.f32.mrf.mxu0  ;;  %v17894_v18 = vpop.f32.mrf.mxu1 }
 0x12a   : > { %v815_v19 = vmax.f32 %v17892_v17, %v17894_v18 }
 0x12b   : > { %v15327_v20 = vpop.f32.mrf.mxu0  ;;  %v15379_v21 = vpop.f32.mrf.mxu1 }
 0x12d   : > { %v17898_v22 = vpop.f32.mrf.mxu0  ;;  %v17900_v23 = vpop.f32.mrf.mxu1 }
 0x12e   : > { %v816_v24 = vmax.f32 %v17898_v22, %v17900_v23 }
 0x12f   : > { %v15330_v25 = vpop.f32.mrf.mxu0  ;;  %v15382_v26 = vpop.f32.mrf.mxu1 }
 0x131   : > { %v17904_v27 = vpop.f32.mrf.mxu0  ;;  %v17906_v28 = vpop.f32.mrf.mxu1 }
 0x132   : > { %v817_v29 = vmax.f32 %v17904_v27, %v17906_v28 }
 0x133   : > { %v15331_v30 = vpop.f32.mrf.mxu0  ;;  %v15383_v31 = vpop.f32.mrf.mxu1 }
 0x135   : > { %v17910_v32 = vpop.f32.mrf.mxu0  ;;  %v17912_v33 = vpop.f32.mrf.mxu1 }
 0x136   : > { %v818_v34 = vmax.f32 %v17910_v32, %v17912_v33 }
 0x137   : > { %v15334_v35 = vpop.f32.mrf.mxu0  ;;  %v15386_v36 = vpop.f32.mrf.mxu1 }
 0x139   : > { %v17916_v37 = vpop.f32.mrf.mxu0  ;;  %v17918_v38 = vpop.f32.mrf.mxu1 }
 0x13a   : > { %v819_v39 = vmax.f32 %v17916_v37, %v17918_v38 }
 0x13b   : > { %v15335_v40 = vpop.f32.mrf.mxu0  ;;  %v15387_v41 = vpop.f32.mrf.mxu1 }
 0x13d   : > { %v17922_v43 = vpop.f32.mrf.mxu0  ;;  %v17924_v44 = vpop.f32.mrf.mxu1 }
 0x13e   : > { %v820_v49 = vmax.f32 %v17922_v43, %v17924_v44 }
 0x13f   : > { %v15338_v53 = vpop.f32.mrf.mxu0  ;;  %v15390_v54 = vpop.f32.mrf.mxu1 }
 0x141   : > { %v17930_v58 = vpop.f32.mrf.mxu0  ;;  %v17932_v59 = vpop.f32.mrf.mxu1 }
 0x143   : > { %v15339_v0 = vpop.f32.mrf.mxu0  ;;  %v15391_v5 = vpop.f32.mrf.mxu1 }
 0x145   : > { %v17936_v6 = vpop.f32.mrf.mxu0  ;;  %v17938_v10 = vpop.f32.mrf.mxu1 }
 0x147   : > { %v15342_v15 = vpop.f32.mrf.mxu0  ;;  %v15394_v16 = vpop.f32.mrf.mxu1 }
 0x149   : > { %v17942_v20 = vpop.f32.mrf.mxu0  ;;  %v17944_v21 = vpop.f32.mrf.mxu1 }
 0x14b   : > { %v15343_v26 = vpop.f32.mrf.mxu0  ;;  %v15395_v30 = vpop.f32.mrf.mxu1 }
 0x14d   : > { %v17948_v31 = vpop.f32.mrf.mxu0  ;;  %v17950_v35 = vpop.f32.mrf.mxu1 }
 0x14f   : > { %v15346_v40 = vpop.f32.mrf.mxu0  ;;  %v15398_v41 = vpop.f32.mrf.mxu1 }
 0x150   : > { %v17966_v40 = vld [vmem:[%s20966_s2] ss:$0 sm:$0xff] }
 0x151   : > { %v17954_v42 = vpop.f32.mrf.mxu0  ;;  %v17956_v48 = vpop.f32.mrf.mxu1 }
 0x153   : > { %v15347_v54 = vpop.f32.mrf.mxu0  ;;  %v15399_v0 = vpop.f32.mrf.mxu1 }
 0x155   : > { %v933_v5 = vpop.f32.mrf.mxu0  ;;  %v1129_v15 = vpop.f32.mrf.mxu1 }
 0x156   : > { %v1004_v16 = vmax.f32 %v808_v47, %v933_v5 }
 0x157   : > { %v15418_v26 = vpop.f32.mrf.mxu0  ;;  %v15470_v30 = vpop.f32.mrf.mxu1 }
 0x158   : > { %v1200_v1 = vmax.f32 %v1004_v16, %v1129_v15 }
 0x159   : > { %v936_v41 = vpop.f32.mrf.mxu0  ;;  %v1132_v36 = vpop.f32.mrf.mxu1 }
 0x15a   : > { %v1005_v54 = vmax.f32 %v809_v52, %v936_v41  ;;  %v1225_v25 = vadd.f32 %v17966_v40, %v1200_v1 }
 0x15b   : > { %v15419_v0 = vpop.f32.mrf.mxu0  ;;  %v15471_v53 = vpop.f32.mrf.mxu1 }
 0x15c   : > { %v1201_v45 = vmax.f32 %v1005_v54, %v1132_v36  ;;  %v1243_v30 = vmax.f32 %v1225_v25, 0.0 }
 0x15d   : > { %v941_v46 = vpop.f32.mrf.mxu0  ;;  %v1137_v47 = vpop.f32.mrf.mxu1 }
 0x15e   : > { %v1226_v5 = vadd.f32 %v17966_v40, %v1201_v45  ;;  %v1006_v15 = vmax.f32 %v810_v57, %v941_v46 }
 0x15f   : > { %v15422_v16 = vpop.f32.mrf.mxu0  ;;  %v15474_v26 = vpop.f32.mrf.mxu1 }
 0x160   : > { %v1244_v11 = vmax.f32 %v1226_v5, 0.0  ;;  %v1202_v63 = vmax.f32 %v1006_v15, %v1137_v47 }
 0x161   : > { %v944_v50 = vpop.f32.mrf.mxu0  ;;  %v1140_v51 = vpop.f32.mrf.mxu1 }
 0x162   : > { %v17976_v52 = vpack.c.bf16 %v1244_v11, %v1243_v30  ;;  %v1007_v1 = vmax.f32 %v811_v62, %v944_v50  ;;  %v1227_v41 = vadd.f32 %v17966_v40, %v1202_v63 }
 0x163   : > { %v15423_v36 = vpop.f32.mrf.mxu0  ;;  %v15475_v53 = vpop.f32.mrf.mxu1 }
 0x164   : > { %v1203_v54 = vmax.f32 %v1007_v1, %v1140_v51  ;;  %v1245_v45 = vmax.f32 %v1227_v41, 0.0 }
 0x165   : > { %v949_v55 = vpop.f32.mrf.mxu0  ;;  %v1145_v56 = vpop.f32.mrf.mxu1 }
 0x166   : > { %v1228_v57 = vadd.f32 %v17966_v40, %v1203_v54  ;;  %v1008_v25 = vmax.f32 %v812_v4, %v949_v55 }
 0x167   : > { %v15426_v0 = vpop.f32.mrf.mxu0  ;;  %v15478_v11 = vpop.f32.mrf.mxu1 }
 0x168   : > { %v1246_v46 = vmax.f32 %v1228_v57, 0.0  ;;  %v1204_v47 = vmax.f32 %v1008_v25, %v1145_v56 }
 0x169   : > { %v952_v60 = vpop.f32.mrf.mxu0  ;;  %v1148_v61 = vpop.f32.mrf.mxu1 }
 0x16a   : > { %v17986_v62 = vpack.c.bf16 %v1246_v46, %v1245_v45  ;;  %v1009_v63 = vmax.f32 %v813_v9, %v952_v60  ;;  %v1229_v16 = vadd.f32 %v17966_v40, %v1204_v47 }
 0x16b   : > { %v15427_v5 = vpop.f32.mrf.mxu0  ;;  %v15479_v15 = vpop.f32.mrf.mxu1 }
 0x16c   : > { %v1205_v26 = vmax.f32 %v1009_v63, %v1148_v61  ;;  %v1247_v1 = vmax.f32 %v1229_v16, 0.0 }
 0x16d   : > { %v957_v2 = vpop.f32.mrf.mxu0  ;;  %v1153_v3 = vpop.f32.mrf.mxu1 }
 0x16e   : > { %v1230_v4 = vadd.f32 %v17966_v40, %v1205_v26  ;;  %v1010_v30 = vmax.f32 %v814_v14, %v957_v2 }
 0x16f   : > { %v15430_v50 = vpop.f32.mrf.mxu0  ;;  %v15482_v51 = vpop.f32.mrf.mxu1 }
 0x170   : > { %v1248_v36 = vmax.f32 %v1230_v4, 0.0  ;;  %v1206_v53 = vmax.f32 %v1010_v30, %v1153_v3 }
 0x171   : > { %v960_v7 = vpop.f32.mrf.mxu0  ;;  %v1156_v8 = vpop.f32.mrf.mxu1 }
 0x172   : > { %v17996_v9 = vpack.c.bf16 %v1248_v36, %v1247_v1  ;;  %v1011_v41 = vmax.f32 %v815_v19, %v960_v7  ;;  %v1231_v56 = vadd.f32 %v17966_v40, %v1206_v53 }
 0x173   : > { %v15431_v54 = vpop.f32.mrf.mxu0  ;;  %v15483_v55 = vpop.f32.mrf.mxu1 }
 0x174   : > { %v1207_v57 = vmax.f32 %v1011_v41, %v1156_v8  ;;  %v1249_v45 = vmax.f32 %v1231_v56, 0.0 }
 0x175   : > { %v965_v12 = vpop.f32.mrf.mxu0  ;;  %v1161_v13 = vpop.f32.mrf.mxu1 }
 0x176   : > { %v1232_v14 = vadd.f32 %v17966_v40, %v1207_v57  ;;  %v1012_v25 = vmax.f32 %v816_v24, %v965_v12  ;;  %v20979_v57 = vmax.f32 %v17930_v58, %v17932_v59 }
 0x177   : > { %v15434_v0 = vpop.f32.mrf.mxu0  ;;  %v15486_v11 = vpop.f32.mrf.mxu1 }
 0x178   : > { %v1250_v46 = vmax.f32 %v1232_v14, 0.0  ;;  %v1208_v47 = vmax.f32 %v1012_v25, %v1161_v13  ;;  %v20980_v11 = vmax.f32 %v17936_v6, %v17938_v10 }
 0x179   : > { %v968_v17 = vpop.f32.mrf.mxu0  ;;  %v1164_v18 = vpop.f32.mrf.mxu1 }
 0x17a   : > { %v18006_v19 = vpack.c.bf16 %v1250_v46, %v1249_v45  ;;  %v1013_v60 = vmax.f32 %v817_v29, %v968_v17  ;;  %v1233_v5 = vadd.f32 %v17966_v40, %v1208_v47 }
 0x17b   : > { %v15435_v61 = vpop.f32.mrf.mxu0  ;;  %v15487_v63 = vpop.f32.mrf.mxu1 }
 0x17c   : > { %v1209_v15 = vmax.f32 %v1013_v60, %v1164_v18  ;;  %v1251_v3 = vmax.f32 %v1233_v5, 0.0  ;;  %v20981_v63 = vmax.f32 %v17942_v20, %v17944_v21 }
 0x17d   : > { %v973_v22 = vpop.f32.mrf.mxu0  ;;  %v1169_v23 = vpop.f32.mrf.mxu1 }
 0x17e   : > { %v1234_v24 = vadd.f32 %v17966_v40, %v1209_v15  ;;  %v1014_v16 = vmax.f32 %v818_v34, %v973_v22 }
 0x17f   : > { %v15438_v26 = vpop.f32.mrf.mxu0  ;;  %v15490_v2 = vpop.f32.mrf.mxu1 }
 0x180   : > { %v1252_v4 = vmax.f32 %v1234_v24, 0.0  ;;  %v1210_v30 = vmax.f32 %v1014_v16, %v1169_v23  ;;  %v20982_v26 = vmax.f32 %v17948_v31, %v17950_v35  ;;  %v20984_v31 = vmov 0  }
 0x181   : > { %v976_v27 = vpop.f32.mrf.mxu0  ;;  %v1172_v28 = vpop.f32.mrf.mxu1 }
 0x182   : > { %v18016_v29 = vpack.c.bf16 %v1252_v4, %v1251_v3  ;;  %v1015_v50 = vmax.f32 %v819_v39, %v976_v27  ;;  %v1235_v36 = vadd.f32 %v17966_v40, %v1210_v30 }
 0x183   : > { %v15439_v51 = vpop.f32.mrf.mxu0  ;;  %v15491_v1 = vpop.f32.mrf.mxu1 }
 0x184   : > { %v1211_v53 = vmax.f32 %v1015_v50, %v1172_v28  ;;  %v1253_v54 = vmax.f32 %v1235_v36, 0.0  ;;  %v20983_v51 = vmax.f32 %v17954_v42, %v17956_v48  ;;  %v16210_v48 = vld [vmem:[#allocation4 + $0x78] sm:$0xff]  }
 0x185   : > { %v981_v32 = vpop.f32.mrf.mxu0  ;;  %v1177_v33 = vpop.f32.mrf.mxu1 }
 0x186   : > { %v1236_v34 = vadd.f32 %v17966_v40, %v1211_v53  ;;  %v1016_v7 = vmax.f32 %v820_v49, %v981_v32 }
 0x187   : > { %v15442_v8 = vpop.f32.mrf.mxu0  ;;  %v15494_v41 = vpop.f32.mrf.mxu1 }
 0x188   : > { %v1254_v55 = vmax.f32 %v1236_v34, 0.0  ;;  %v1212_v56 = vmax.f32 %v1016_v7, %v1177_v33  ;;  %v16192_v8 = vld [vmem:[#allocation2] ss:$8 sps:$4 sm:$0xff]   ;;  %v16189_v41 = vld [vmem:[#allocation2 + $0x54] ss:$8 sps:$4 sm:$0xff]  }
 0x189   : > { %v984_v37 = vpop.f32.mrf.mxu0  ;;  %v1180_v38 = vpop.f32.mrf.mxu1 }
 0x18a   : > { %v18026_v39 = vpack.c.bf16 %v1254_v55, %v1253_v54  ;;  %v1017_v12 = vmax.f32 %v20979_v57, %v984_v37  ;;  %v1237_v25 = vadd.f32 %v17966_v40, %v1212_v56  ;;  %v16198_v54 = vld [vmem:[#allocation2 + $0x14] ss:$8 sps:$4 sm:$0xff]   ;;  %v16212_v56 = vld [vmem:[#allocation4 + $0x68] sm:$0xff]   ;;  %v16191_v37 = vld [vmem:[#allocation2 + $0x50] ss:$8 sps:$4 sm:$0xff]  }
 0x18b   : > { %v15443_v13 = vpop.f32.mrf.mxu0  ;;  %v15495_v14 = vpop.f32.mrf.mxu1  ;;  %v16211_v55 = vld [vmem:[#allocation4 + $0x70] sm:$0xff]   ;;  %v16195_v57 = vld [vmem:[#allocation2 + $0x64] ss:$8 sps:$4 sm:$0xff]  }
 0x18c   : > { %v1213_v0 = vmax.f32 %v1017_v12, %v1180_v38  ;;  %v1255_v17 = vmax.f32 %v1237_v25, 0.0  ;;  %v16202_v38 = vld [vmem:[#allocation2 + $0x10] ss:$8 sps:$4 sm:$0xff]   ;;  %v16204_v12 = vld [vmem:[#allocation2 + $0x24] ss:$8 sps:$4 sm:$0xff]  }
 0x18d   : > { %v989_v43 = vpop.f32.mrf.mxu0  ;;  %v1185_v44 = vpop.f32.mrf.mxu1  ;;  %v16213_v13 = vld [vmem:[#allocation4 + $0x60] sm:$0xff]   ;;  %v16214_v14 = vld [vmem:[#allocation4 + $0x58] sm:$0xff]  }
 0x18e   : > { %v1238_v49 = vadd.f32 %v17966_v40, %v1213_v0  ;;  %v1018_v45 = vmax.f32 %v20980_v11, %v989_v43  ;;  %v16197_v25 = vld [vmem:[#allocation2 + $0x60] ss:$8 sps:$4 sm:$0xff]   ;;  %v16200_v43 = vld [vmem:[#allocation2 + $0x74] ss:$8 sps:$4 sm:$0xff]   ;;  %v16209_v11 = vld [vmem:[#allocation2 + $0x30] ss:$8 sps:$4 sm:$0xff]  }
 0x18f   : > { %v15446_v46 = vpop.f32.mrf.mxu0  ;;  %v15498_v47 = vpop.f32.mrf.mxu1  ;;  %v16206_v0 = vld [vmem:[#allocation2 + $0x20] ss:$8 sps:$4 sm:$0xff]  }
 0x190   : > { %v1256_v18 = vmax.f32 %v1238_v49, 0.0  ;;  %v1214_v60 = vmax.f32 %v1018_v45, %v1185_v44  ;;  %v16207_v44 = vld [vmem:[#allocation2 + $0x34] ss:$8 sps:$4 sm:$0xff]   ;;  %v16203_v49 = vld [vmem:[#allocation2 + $0x70] ss:$8 sps:$4 sm:$0xff]   ;;  %v16220_v47 = vld [vmem:[#allocation4 + $0x28] sm:$0xff]  }
 0x191   : > { %v992_v58 = vpop.f32.mrf.mxu0  ;;  %v1188_v59 = vpop.f32.mrf.mxu1  ;;  %v16218_v45 = vld [vmem:[#allocation4 + $0x38] sm:$0xff]   ;;  %v16219_v46 = vld [vmem:[#allocation4 + $0x30] sm:$0xff]  }
 0x192   : > { %v18036_v61 = vpack.c.bf16 %v1256_v18, %v1255_v17  ;;  %v1019_v5 = vmax.f32 %v20981_v63, %v992_v58  ;;  %v1239_v23 = vadd.f32 %v17966_v40, %v1214_v60  ;;  %v16221_v17 = vld [vmem:[#allocation4 + $0x20] sm:$0xff]   ;;  %v16222_v18 = vld [vmem:[#allocation4 + $0x18] sm:$0xff]   ;;  %v16215_v60 = vld [vmem:[#allocation4 + $0x50] sm:$0xff]  }
 0x193   : > { %v15447_v15 = vpop.f32.mrf.mxu0  ;;  %v15499_v22 = vpop.f32.mrf.mxu1  ;;  %v16223_v58 = vld [vmem:[#allocation4 + $0x10] sm:$0xff]   ;;  %v16224_v63 = vld [vmem:[#allocation4 + $0x8] sm:$0xff]  }
 0x194   : > { %v1215_v24 = vmax.f32 %v1019_v5, %v1188_v59  ;;  %v1257_v30 = vmax.f32 %v1239_v23, 0.0  ;;  %v16216_v59 = vld [vmem:[#allocation4 + $0x48] sm:$0xff]   ;;  %v16217_v5 = vld [vmem:[#allocation4 + $0x40] sm:$0xff]   ;;  %v16238_v22 = vld [vmem:[#allocation4 + $0xb8] sm:$0xff]  }
 0x195   : > { %v997_v6 = vpop.f32.mrf.mxu0  ;;  %v1193_v10 = vpop.f32.mrf.mxu1  ;;  %v16225_v15 = vld [vmem:[#allocation4] sm:$0xff]  }
 0x196   : > { %v1240_v16 = vadd.f32 %v17966_v40, %v1215_v24  ;;  %v1020_v2 = vmax.f32 %v20982_v26, %v997_v6 }
 0x197   : > { %v15450_v3 = vpop.f32.mrf.mxu0  ;;  %v15502_v4 = vpop.f32.mrf.mxu1 }
 0x198   : > { %v1258_v27 = vmax.f32 %v1240_v16, 0.0  ;;  %v1216_v28 = vmax.f32 %v1020_v2, %v1193_v10 }
 0x199   : > { %v1000_v20 = vpop.f32.mrf.mxu0  ;;  %v1196_v21 = vpop.f32.mrf.mxu1 }
 0x19a   : > { %v18046_v50 = vpack.c.bf16 %v1258_v27, %v1257_v30  ;;  %v1021_v1 = vmax.f32 %v20983_v51, %v1000_v20  ;;  %v1241_v32 = vadd.f32 %v17966_v40, %v1216_v28 }
 0x19b   : > { %v15451_v36 = vpop.f32.mrf.mxu0  ;;  %v15503_v53 = vpop.f32.mrf.mxu1 }
 0x19c   : > { %v1217_v33 = vmax.f32 %v1021_v1, %v1196_v21  ;;  %1328 = vmatpush1.bf16.msra.mxu0 %v18046_v50  ;;  %1470 = vmatpush1.bf16.msra.mxu1 %v18046_v50  ;;  %v1259_v34 = vmax.f32 %v1241_v32, 0.0 }
 0x19d   : > { %1329 = vmatprep.subr.bf16.mxu0 %v20984_v31  ;;  %1471 = vmatprep.subr.bf16.mxu1 %v20984_v31 }
 0x19e   : > { %v1242_v35 = vadd.f32 %v17966_v40, %v1217_v33  ;;  %v16186_v40 = vld [vmem:[#allocation2 + $0x40] ss:$8 sps:$4 sm:$0xff]  }
 0x1a0   : > { %v1260_v7 = vmax.f32 %v1242_v35, 0.0  ;;  %1330 = vmatpush1.bf16.msra.mxu0 %v18036_v61  ;;  %1472 = vmatpush1.bf16.msra.mxu1 %v18036_v61 }
 0x1a1   : > { %1331 = vmatprep.subr.bf16.mxu0 %v20984_v31  ;;  %1473 = vmatprep.subr.bf16.mxu1 %v20984_v31 }
 0x1a2   : > { %v18061_v42 = vpack.c.bf16 %v1260_v7, %v1259_v34 }
 0x1a4   : > { %1332 = vmatpush1.bf16.msra.mxu0 %v18026_v39  ;;  %1474 = vmatpush1.bf16.msra.mxu1 %v18026_v39 }
 0x1a5   : > { %1333 = vmatprep.subr.bf16.mxu0 %v20984_v31  ;;  %1475 = vmatprep.subr.bf16.mxu1 %v20984_v31 }
 0x1a8   : > { %1334 = vmatpush1.bf16.msra.mxu0 %v18016_v29  ;;  %1476 = vmatpush1.bf16.msra.mxu1 %v18016_v29 }
 0x1a9   : > { %1335 = vmatprep.subr.bf16.mxu0 %v20984_v31  ;;  %1477 = vmatprep.subr.bf16.mxu1 %v20984_v31 }
 0x1ac   : > { %1336 = vmatpush1.bf16.msra.mxu0 %v18006_v19  ;;  %1478 = vmatpush1.bf16.msra.mxu1 %v18006_v19 }
 0x1ad   : > { %1337 = vmatprep.subr.bf16.mxu0 %v20984_v31  ;;  %1479 = vmatprep.subr.bf16.mxu1 %v20984_v31 }
 0x1b0   : > { %1338 = vmatpush1.bf16.msra.mxu0 %v17996_v9  ;;  %1480 = vmatpush1.bf16.msra.mxu1 %v17996_v9 }
 0x1b1   : > { %1339 = vmatprep.subr.bf16.mxu0 %v20984_v31  ;;  %1481 = vmatprep.subr.bf16.mxu1 %v20984_v31 }
 0x1b4   : > { %1340 = vmatpush1.bf16.msra.mxu0 %v17986_v62  ;;  %1482 = vmatpush1.bf16.msra.mxu1 %v17986_v62 }
 0x1b5   : > { %1341 = vmatprep.subr.bf16.mxu0 %v20984_v31  ;;  %1483 = vmatprep.subr.bf16.mxu1 %v20984_v31 }
 0x1b8   : > { %1342 = vmatpush1.bf16.msra.mxu0 %v17976_v52  ;;  %1484 = vmatpush1.bf16.msra.mxu1 %v17976_v52 }
 0x1b9   : > { %1357 = vmatprep.subr.bf16.mxu0 %v20984_v31  ;;  %1499 = vmatprep.subr.bf16.mxu1 %v20984_v31 }
 0x1bc   : > { %1358 = vmatpush2.bf16.msra.mxu0 %v18061_v42  ;;  %1500 = vmatpush2.bf16.msra.mxu1 %v18061_v42 }
 0x1bd   : > { %15504 = vmatprep.subr.bf16.mxu0 %v16210_v48  ;;  %15528 = vmatprep.subr.bf16.mxu1 %v16218_v45 }
 0x1bf   : > { %1502 = vmatmul.mubr.bf16.vlgmr.msra.gmra.mxu1 %v16186_v40  ;;  %1360 = vmatmul.mubr.bf16.vlgmr.msra.gmra.mxu0 %v16192_v8 }
 0x1c0   : > { %13378 = vmatprep.mubr.msk.bf16.mxu1 %vm1314_vm1, %v16189_v41  ;;  %13366 = vmatprep.mubr.msk.bf16.mxu0 %vm1314_vm1, %v16198_v54 }
 0x1c1   : > { %15505 = vmatpush3.bf16.msra.mxu0 %v16210_v48  ;;  %15529 = vmatpush3.bf16.msra.mxu1 %v16218_v45  ;;  %v16229_v45 = vld [vmem:[#allocation2 + $0x94] ss:$8 sps:$4 sm:$0xff]  }
 0x1c2   : > { %15506 = vmatprep.subr.bf16.mxu0 %v16211_v55  ;;  %15530 = vmatprep.subr.bf16.mxu1 %v16219_v46 }
 0x1c5   : > { %15507 = vmatpush3.bf16.msra.mxu0 %v16211_v55  ;;  %15531 = vmatpush3.bf16.msra.mxu1 %v16219_v46  ;;  %v16231_v46 = vld [vmem:[#allocation2 + $0x90] ss:$8 sps:$4 sm:$0xff]  }
 0x1c6   : > { %15508 = vmatprep.subr.bf16.mxu0 %v16212_v56  ;;  %15532 = vmatprep.subr.bf16.mxu1 %v16220_v47 }
 0x1c7   : > { %1510 = vmatmul.mubr.bf16.gmra.mxu1 %v16191_v37  ;;  %1368 = vmatmul.mubr.bf16.gmra.mxu0 %v16202_v38 }
 0x1c8   : > { %13379 = vmatprep.mubr.msk.bf16.mxu1 %vm1314_vm1, %v16195_v57  ;;  %13367 = vmatprep.mubr.msk.bf16.mxu0 %vm1314_vm1, %v16204_v12 }
 0x1c9   : > { %15509 = vmatpush3.bf16.msra.mxu0 %v16212_v56  ;;  %15533 = vmatpush3.bf16.msra.mxu1 %v16220_v47  ;;  %v16232_v47 = vld [vmem:[#allocation2 + $0xa4] ss:$8 sps:$4 sm:$0xff]  }
 0x1ca   : > { %15510 = vmatprep.subr.bf16.mxu0 %v16213_v13  ;;  %15534 = vmatprep.subr.bf16.mxu1 %v16221_v17 }
 0x1cd   : > { %15511 = vmatpush3.bf16.msra.mxu0 %v16213_v13  ;;  %15535 = vmatpush3.bf16.msra.mxu1 %v16221_v17  ;;  %v16234_v17 = vld [vmem:[#allocation2 + $0xa0] ss:$8 sps:$4 sm:$0xff]  }
 0x1ce   : > { %15512 = vmatprep.subr.bf16.mxu0 %v16214_v14  ;;  %15536 = vmatprep.subr.bf16.mxu1 %v16222_v18 }
 0x1cf   : > { %1518 = vmatmul.mubr.bf16.gmra.mxu1 %v16197_v25  ;;  %1376 = vmatmul.mubr.bf16.gmra.mxu0 %v16206_v0 }
 0x1d0   : > { %13380 = vmatprep.mubr.msk.bf16.mxu1 %vm1314_vm1, %v16200_v43  ;;  %13368 = vmatprep.mubr.msk.bf16.mxu0 %vm1314_vm1, %v16207_v44 }
 0x1d1   : > { %15513 = vmatpush3.bf16.msra.mxu0 %v16214_v14  ;;  %15537 = vmatpush3.bf16.msra.mxu1 %v16222_v18  ;;  %v16228_v14 = vld [vmem:[#allocation2 + $0x84] ss:$8 sps:$4 sm:$0xff]   ;;  %v16235_v18 = vld [vmem:[#allocation2 + $0xb4] ss:$8 sps:$4 sm:$0xff]  }
 0x1d2   : > { %15514 = vmatprep.subr.bf16.mxu0 %v16215_v60  ;;  %15538 = vmatprep.subr.bf16.mxu1 %v16223_v58 }
 0x1d5   : > { %15515 = vmatpush3.bf16.msra.mxu0 %v16215_v60  ;;  %15539 = vmatpush3.bf16.msra.mxu1 %v16223_v58  ;;  %v16237_v60 = vld [vmem:[#allocation2 + $0xb0] ss:$8 sps:$4 sm:$0xff]  }
 0x1d6   : > { %15516 = vmatprep.subr.bf16.mxu0 %v16216_v59  ;;  %15540 = vmatprep.subr.bf16.mxu1 %v16224_v63  ;;  %v16239_v58 = vld [vmem:[#allocation4 + $0xb0] sm:$0xff]  }
 0x1d7   : > { %1526 = vmatmul.mubr.bf16.gmra.mxu1 %v16203_v49  ;;  %1384 = vmatmul.mubr.bf16.gmra.mxu0 %v16209_v11  ;;  %v16226_v11 = vld [vmem:[#allocation2 + $0x80] ss:$8 sps:$4 sm:$0xff]  }
 0x1d9   : > { %15517 = vmatpush3.bf16.msra.mxu0 %v16216_v59  ;;  %15541 = vmatpush3.bf16.msra.mxu1 %v16224_v63  ;;  %v16240_v59 = vld [vmem:[#allocation4 + $0xa8] sm:$0xff]   ;;  %v16241_v63 = vld [vmem:[#allocation4 + $0xa0] sm:$0xff]  }
 0x1da   : > { %15518 = vmatprep.subr.bf16.mxu0 %v16217_v5  ;;  %15542 = vmatprep.subr.bf16.mxu1 %v16225_v15 }
 0x1dd   : > { %15519 = vmatpush3.bf16.msra.mxu0 %v16217_v5  ;;  %15543 = vmatpush3.bf16.msra.mxu1 %v16225_v15  ;;  %v16242_v5 = vld [vmem:[#allocation4 + $0x98] sm:$0xff]   ;;  %v16243_v15 = vld [vmem:[#allocation4 + $0x90] sm:$0xff]  }
 0x1de   : > { %1838 = vmatprep.subr.bf16.mxu0 %v20984_v31  ;;  %15552 = vmatprep.subr.bf16.mxu1 %v16238_v22 }
 0x27f   : > { %v1503_v23 = vpop.f32.mrf.mxu1  ;;  %v1361_v24 = vpop.f32.mrf.mxu0 }
 0x281   : > { %v1505_v6 = vpop.f32.mrf.mxu1  ;;  %v1363_v10 = vpop.f32.mrf.mxu0 }
 0x283   : > { %v1506_v16 = vpop.f32.mrf.mxu1  ;;  %v1364_v26 = vpop.f32.mrf.mxu0 }
 0x284   : > { %v1534_v2 = vpack.c.bf16 %v1506_v16, %v1503_v23  ;;  %v1392_v3 = vpack.c.bf16 %v1364_v26, %v1361_v24  ;;  %v16245_v23 = vld [vmem:[#allocation4 + $0x80] sm:$0xff]  }
 0x285   : > { %v1508_v4 = vpop.f32.mrf.mxu1  ;;  %v1366_v30 = vpop.f32.mrf.mxu0 }
 0x286   : > { %15520 = vmatprep.mubr.bf16.mxu0 %v1534_v2  ;;  %15544 = vmatprep.mubr.bf16.mxu1 %v1392_v3 }
 0x287   : > { %v1511_v27 = vpop.f32.mrf.mxu1  ;;  %v1369_v28 = vpop.f32.mrf.mxu0 }
 0x289   : > { %v1513_v20 = vpop.f32.mrf.mxu1  ;;  %v1371_v21 = vpop.f32.mrf.mxu0 }
 0x28b   : > { %v1514_v51 = vpop.f32.mrf.mxu1  ;;  %v1372_v1 = vpop.f32.mrf.mxu0 }
 0x28c   : > { %v1535_v36 = vpack.c.bf16 %v1514_v51, %v1511_v27  ;;  %v1393_v53 = vpack.c.bf16 %v1372_v1, %v1369_v28 }
 0x28d   : > { %v1516_v32 = vpop.f32.mrf.mxu1  ;;  %v1374_v33 = vpop.f32.mrf.mxu0 }
 0x28e   : > { %15521 = vmatmul.mubr.bf16.vlgmr.msra.gmra.mxu0 %v1535_v36  ;;  %15545 = vmatmul.mubr.bf16.vlgmr.msra.gmra.mxu1 %v1393_v53 }
 0x28f   : > { %1839 = vmatpush1.bf16.msra.mxu0 %v18046_v50  ;;  %v1519_v35 = vpop.f32.mrf.mxu1  ;;  %v1377_v34 = vpop.f32.mrf.mxu0  ;;  %15553 = vmatpush3.bf16.msra.mxu1 %v16238_v22  ;;  %v16244_v22 = vld [vmem:[#allocation4 + $0x88] sm:$0xff]  }
 0x290   : > { %1840 = vmatprep.subr.bf16.mxu0 %v20984_v31  ;;  %15554 = vmatprep.subr.bf16.mxu1 %v16239_v58 }
 0x291   : > { %v1521_v7 = vpop.f32.mrf.mxu1  ;;  %v1379_v48 = vpop.f32.mrf.mxu0 }
 0x293   : > { %1841 = vmatpush1.bf16.msra.mxu0 %v18036_v61  ;;  %v1522_v40 = vpop.f32.mrf.mxu1  ;;  %v1380_v8 = vpop.f32.mrf.mxu0  ;;  %15555 = vmatpush3.bf16.msra.mxu1 %v16239_v58  ;;  %v16255_v58 = vld [vmem:[#allocation2 + $0xf4] ss:$8 sps:$4 sm:$0xff]  }
 0x294   : > { %1842 = vmatprep.subr.bf16.mxu0 %v20984_v31  ;;  %v1536_v41 = vpack.c.bf16 %v1522_v40, %v1519_v35  ;;  %v1394_v54 = vpack.c.bf16 %v1380_v8, %v1377_v34  ;;  %15556 = vmatprep.subr.bf16.mxu1 %v16240_v59 }
 0x295   : > { %v1524_v55 = vpop.f32.mrf.mxu1  ;;  %v1382_v56 = vpop.f32.mrf.mxu0 }
 0x296   : > { %15524 = vmatprep.mubr.bf16.mxu0 %v1536_v41  ;;  %15548 = vmatprep.mubr.bf16.mxu1 %v1394_v54 }
 0x297   : > { %1843 = vmatpush1.bf16.msra.mxu0 %v18026_v39  ;;  %v1527_v37 = vpop.f32.mrf.mxu1  ;;  %v1385_v38 = vpop.f32.mrf.mxu0  ;;  %15557 = vmatpush3.bf16.msra.mxu1 %v16240_v59  ;;  %v16257_v59 = vld [vmem:[#allocation2 + $0xf0] ss:$8 sps:$4 sm:$0xff]  }
 0x298   : > { %1844 = vmatprep.subr.bf16.mxu0 %v20984_v31  ;;  %15558 = vmatprep.subr.bf16.mxu1 %v16241_v63 }
 0x299   : > { %v1529_v57 = vpop.f32.mrf.mxu1  ;;  %v1387_v12 = vpop.f32.mrf.mxu0 }
 0x29b   : > { %1845 = vmatpush1.bf16.msra.mxu0 %v18016_v29  ;;  %v1530_v13 = vpop.f32.mrf.mxu1  ;;  %v1388_v25 = vpop.f32.mrf.mxu0  ;;  %15559 = vmatpush3.bf16.msra.mxu1 %v16241_v63  ;;  %v16258_v63 = vld [vmem:[#allocation4 + $0xf8] sm:$0xff]  }
 0x29c   : > { %1846 = vmatprep.subr.bf16.mxu0 %v20984_v31  ;;  %v1537_v0 = vpack.c.bf16 %v1530_v13, %v1527_v37  ;;  %v1395_v43 = vpack.c.bf16 %v1388_v25, %v1385_v38  ;;  %15560 = vmatprep.subr.bf16.mxu1 %v16242_v5 }
 0x29d   : > { %v1532_v44 = vpop.f32.mrf.mxu1  ;;  %v1390_v49 = vpop.f32.mrf.mxu0 }
 0x29e   : > { %15525 = vmatmul.mubr.bf16.gmra.mxu0 %v1537_v0  ;;  %15549 = vmatmul.mubr.bf16.gmra.mxu1 %v1395_v43  ;;  %v16248_v49 = vld [vmem:[#allocation2 + $0xc4] ss:$8 sps:$4 sm:$0xff]  }
 0x29f   : > { %1847 = vmatpush1.bf16.msra.mxu0 %v18006_v19  ;;  %13405 = vmatprep.mubr.msk.bf16.mxu0 %vm1314_vm1, %v16228_v14 }
 0x2a0   : > { %1848 = vmatprep.subr.bf16.mxu0 %v20984_v31  ;;  %15561 = vmatpush3.bf16.msra.mxu1 %v16242_v5  ;;  %v16259_v5 = vld [vmem:[#allocation4 + $0xf0] sm:$0xff]  }
 0x2a1   : > { %15562 = vmatprep.subr.bf16.mxu1 %v16243_v15 }
 0x2a3   : > { %1849 = vmatpush1.bf16.msra.mxu0 %v17996_v9 }
 0x2a4   : > { %1850 = vmatprep.subr.bf16.mxu0 %v20984_v31  ;;  %15563 = vmatpush3.bf16.msra.mxu1 %v16243_v15  ;;  %v16260_v15 = vld [vmem:[#allocation4 + $0xe8] sm:$0xff]  }
 0x2a5   : > { %15564 = vmatprep.subr.bf16.mxu1 %v16244_v22 }
 0x2a7   : > { %1851 = vmatpush1.bf16.msra.mxu0 %v17986_v62 }
 0x2a8   : > { %1852 = vmatprep.subr.bf16.mxu0 %v20984_v31  ;;  %15565 = vmatpush3.bf16.msra.mxu1 %v16244_v22  ;;  %v16261_v22 = vld [vmem:[#allocation4 + $0xe0] sm:$0xff]  }
 0x2a9   : > { %15566 = vmatprep.subr.bf16.mxu1 %v16245_v23 }
 0x2ab   : > { %1853 = vmatpush1.bf16.msra.mxu0 %v17976_v52 }
 0x2ac   : > { %1868 = vmatprep.subr.bf16.mxu0 %v20984_v31  ;;  %15567 = vmatpush3.bf16.msra.mxu1 %v16245_v23  ;;  %v16262_v23 = vld [vmem:[#allocation4 + $0xd8] sm:$0xff]  }
 0x2ad   : > { %2102 = vmatprep.subr.bf16.mxu1 %v20984_v31 }
 0x2af   : > { %1869 = vmatpush2.bf16.msra.mxu0 %v18061_v42 }
 0x2b0   : > { %15576 = vmatprep.subr.bf16.mxu0 %v16258_v63 }
 0x2b2   : > { %1871 = vmatmul.mubr.bf16.vlgmr.msra.gmra.mxu0 %v16226_v11 }
 0x2b3   : > { %13406 = vmatprep.mubr.msk.bf16.mxu0 %vm1314_vm1, %v16229_v45  ;;  %15577 = vmatpush3.bf16.msra.mxu0 %v16258_v63  ;;  %v16278_v63 = vld [vmem:[#allocation4 + $0x138] sm:$0xff]  }
 0x2b4   : > { %15578 = vmatprep.subr.bf16.mxu0 %v16259_v5 }
 0x2b7   : > { %15579 = vmatpush3.bf16.msra.mxu0 %v16259_v5  ;;  %v16279_v5 = vld [vmem:[#allocation4 + $0x130] sm:$0xff]  }
 0x2b8   : > { %15580 = vmatprep.subr.bf16.mxu0 %v16260_v15 }
 0x2ba   : > { %1879 = vmatmul.mubr.bf16.gmra.mxu0 %v16231_v46  ;;  %v16246_v46 = vld [vmem:[#allocation2 + $0xc0] ss:$8 sps:$4 sm:$0xff]  }
 0x2bb   : > { %13407 = vmatprep.mubr.msk.bf16.mxu0 %vm1314_vm1, %v16232_v47  ;;  %v16249_v47 = vld [vmem:[#allocation2 + $0xd4] ss:$8 sps:$4 sm:$0xff]   ;;  %15581 = vmatpush3.bf16.msra.mxu0 %v16260_v15  ;;  %v16280_v15 = vld [vmem:[#allocation4 + $0x128] sm:$0xff]  }
 0x2bc   : > { %15582 = vmatprep.subr.bf16.mxu0 %v16261_v22 }
 0x2bf   : > { %15583 = vmatpush3.bf16.msra.mxu0 %v16261_v22  ;;  %v16281_v22 = vld [vmem:[#allocation4 + $0x120] sm:$0xff]  }
 0x2c0   : > { %15584 = vmatprep.subr.bf16.mxu0 %v16262_v23 }
 0x2c2   : > { %1887 = vmatmul.mubr.bf16.gmra.mxu0 %v16234_v17  ;;  %v16251_v17 = vld [vmem:[#allocation2 + $0xd0] ss:$8 sps:$4 sm:$0xff]  }
 0x2c3   : > { %13408 = vmatprep.mubr.msk.bf16.mxu0 %vm1314_vm1, %v16235_v18  ;;  %v16252_v18 = vld [vmem:[#allocation2 + $0xe4] ss:$8 sps:$4 sm:$0xff]   ;;  %15585 = vmatpush3.bf16.msra.mxu0 %v16262_v23  ;;  %v16282_v23 = vld [vmem:[#allocation4 + $0x118] sm:$0xff]  }
 0x2ca   : > { %1895 = vmatmul.mubr.bf16.gmra.mxu0 %v16237_v60  ;;  %v16254_v60 = vld [vmem:[#allocation2 + $0xe0] ss:$8 sps:$4 sm:$0xff]  }
 0x34e   : > { %v15522_v24 = vpop.f32.mrf.mxu0  ;;  %v15546_v6 = vpop.f32.mrf.mxu1 }
 0x34f   : > { %v18118_v10 = vadd.f32 %v15546_v6, %v15522_v24  ;;  %v16263_v24 = vld [vmem:[#allocation4 + $0xd0] sm:$0xff]   ;;  %v16264_v6 = vld [vmem:[#allocation4 + $0xc8] sm:$0xff]  }
 0x350   : > { %v1637_v16 = vpop.f32.mrf.mxu0  ;;  %v1750_v26 = vpop.f32.mrf.mxu1  ;;  %15586 = vmatprep.subr.bf16.mxu0 %v16263_v24 }
 0x351   : > { %v18120_v2 = vadd.f32 %v1750_v26, %v1637_v16  ;;  %15587 = vmatpush3.bf16.msra.mxu0 %v16263_v24  ;;  %v16265_v16 = vld [vmem:[#allocation4 + $0xc0] sm:$0xff]   ;;  %v16283_v24 = vld [vmem:[#allocation4 + $0x110] sm:$0xff]  }
 0x352   : > { %v15523_v3 = vpop.f32.mrf.mxu0  ;;  %v15547_v4 = vpop.f32.mrf.mxu1  ;;  %15588 = vmatprep.subr.bf16.mxu0 %v16264_v6 }
 0x353   : > { %v18122_v30 = vadd.f32 %v15547_v4, %v15523_v3 }
 0x354   : > { %v18124_v27 = vpop.f32.mrf.mxu0  ;;  %v18126_v28 = vpop.f32.mrf.mxu1 }
 0x355   : > { %15589 = vmatpush3.bf16.msra.mxu0 %v16264_v6  ;;  %v16284_v6 = vld [vmem:[#allocation4 + $0x108] sm:$0xff]  }
 0x356   : > { %15590 = vmatprep.subr.bf16.mxu0 %v16265_v16 }
 0x359   : > { %15591 = vmatpush3.bf16.msra.mxu0 %v16265_v16  ;;  %v16285_v16 = vld [vmem:[#allocation4 + $0x100] sm:$0xff]  }
 0x35a   : > { %2366 = vmatprep.subr.bf16.mxu0 %v20984_v31 }
 0x35e   : > { %v15526_v20 = vpop.f32.mrf.mxu0  ;;  %v15550_v21 = vpop.f32.mrf.mxu1 }
 0x35f   : > { %v18128_v51 = vadd.f32 %v15550_v21, %v15526_v20 }
 0x360   : > { %v1653_v1 = vpop.f32.mrf.mxu0  ;;  %v1766_v36 = vpop.f32.mrf.mxu1 }
 0x361   : > { %v18130_v53 = vadd.f32 %v1766_v36, %v1653_v1 }
 0x362   : > { %v15527_v32 = vpop.f32.mrf.mxu0  ;;  %v15551_v33 = vpop.f32.mrf.mxu1 }
 0x363   : > { %v18132_v35 = vadd.f32 %v15551_v33, %v15527_v32 }
 0x364   : > { %v18134_v34 = vpop.f32.mrf.mxu0  ;;  %v18158_v26 = vpop.f32.mrf.mxu1 }
 0x372   : > { %v1872_v7 = vpop.f32.mrf.mxu0 }
 0x374   : > { %v1874_v48 = vpop.f32.mrf.mxu0 }
 0x376   : > { %v1875_v40 = vpop.f32.mrf.mxu0 }
 0x377   : > { %v1903_v8 = vpack.c.bf16 %v1875_v40, %v1872_v7 }
 0x378   : > { %v1877_v41 = vpop.f32.mrf.mxu0 }
 0x379   : > { %15568 = vmatprep.mubr.bf16.mxu1 %v1903_v8 }
 0x37a   : > { %v1880_v54 = vpop.f32.mrf.mxu0 }
 0x37c   : > { %v1882_v55 = vpop.f32.mrf.mxu0 }
 0x37e   : > { %v1883_v56 = vpop.f32.mrf.mxu0 }
 0x37f   : > { %v1904_v37 = vpack.c.bf16 %v1883_v56, %v1880_v54 }
 0x380   : > { %v1885_v38 = vpop.f32.mrf.mxu0 }
 0x381   : > { %15569 = vmatmul.mubr.bf16.vlgmr.msra.gmra.mxu1 %v1904_v37 }
 0x382   : > { %2103 = vmatpush1.bf16.msra.mxu1 %v18046_v50  ;;  %v1888_v57 = vpop.f32.mrf.mxu0 }
 0x383   : > { %2104 = vmatprep.subr.bf16.mxu1 %v20984_v31 }
 0x384   : > { %v1890_v12 = vpop.f32.mrf.mxu0 }
 0x386   : > { %2105 = vmatpush1.bf16.msra.mxu1 %v18036_v61  ;;  %v1891_v13 = vpop.f32.mrf.mxu0 }
 0x387   : > { %v1905_v14 = vpack.c.bf16 %v1891_v13, %v1888_v57  ;;  %2106 = vmatprep.subr.bf16.mxu1 %v20984_v31 }
 0x388   : > { %v1893_v25 = vpop.f32.mrf.mxu0 }
 0x389   : > { %15572 = vmatprep.mubr.bf16.mxu1 %v1905_v14 }
 0x38a   : > { %2107 = vmatpush1.bf16.msra.mxu1 %v18026_v39  ;;  %v1896_v0 = vpop.f32.mrf.mxu0 }
 0x38b   : > { %2108 = vmatprep.subr.bf16.mxu1 %v20984_v31 }
 0x38c   : > { %v1898_v43 = vpop.f32.mrf.mxu0 }
 0x38e   : > { %2109 = vmatpush1.bf16.msra.mxu1 %v18016_v29  ;;  %v1899_v44 = vpop.f32.mrf.mxu0 }
 0x38f   : > { %v1906_v11 = vpack.c.bf16 %v1899_v44, %v1896_v0  ;;  %2110 = vmatprep.subr.bf16.mxu1 %v20984_v31 }
 0x390   : > { %v1901_v45 = vpop.f32.mrf.mxu0 }
 0x391   : > { %15573 = vmatmul.mubr.bf16.gmra.mxu1 %v1906_v11 }
 0x392   : > { %2111 = vmatpush1.bf16.msra.mxu1 %v18006_v19  ;;  %13425 = vmatprep.mubr.msk.bf16.mxu1 %vm1314_vm1, %v16248_v49  ;;  %v16268_v49 = vld [vmem:[#allocation2 + $0x104] ss:$8 sps:$4 sm:$0xff]  }
 0x393   : > { %2112 = vmatprep.subr.bf16.mxu1 %v20984_v31 }
 0x396   : > { %2113 = vmatpush1.bf16.msra.mxu1 %v17996_v9 }
 0x397   : > { %2114 = vmatprep.subr.bf16.mxu1 %v20984_v31 }
 0x39a   : > { %2115 = vmatpush1.bf16.msra.mxu1 %v17986_v62 }
 0x39b   : > { %2116 = vmatprep.subr.bf16.mxu1 %v20984_v31 }
 0x39e   : > { %2117 = vmatpush1.bf16.msra.mxu1 %v17976_v52 }
 0x39f   : > { %2132 = vmatprep.subr.bf16.mxu1 %v20984_v31 }
 0x3a2   : > { %2133 = vmatpush2.bf16.msra.mxu1 %v18061_v42 }
 0x3a3   : > { %15600 = vmatprep.subr.bf16.mxu1 %v16278_v63 }
 0x3a5   : > { %2135 = vmatmul.mubr.bf16.vlgmr.msra.gmra.mxu1 %v16246_v46  ;;  %v16266_v46 = vld [vmem:[#allocation2 + $0x100] ss:$8 sps:$4 sm:$0xff]  }
 0x3a6   : > { %13426 = vmatprep.mubr.msk.bf16.mxu1 %vm1314_vm1, %v16249_v47  ;;  %v16269_v47 = vld [vmem:[#allocation2 + $0x114] ss:$8 sps:$4 sm:$0xff]   ;;  %15601 = vmatpush3.bf16.msra.mxu1 %v16278_v63 }
 0x3a7   : > { %15602 = vmatprep.subr.bf16.mxu1 %v16279_v5  ;;  %v16295_v63 = vld [vmem:[#allocation2 + $0x174] ss:$8 sps:$4 sm:$0xff]  }
 0x3aa   : > { %15603 = vmatpush3.bf16.msra.mxu1 %v16279_v5  ;;  %v16297_v5 = vld [vmem:[#allocation2 + $0x170] ss:$8 sps:$4 sm:$0xff]  }
 0x3ab   : > { %15604 = vmatprep.subr.bf16.mxu1 %v16280_v15 }
 0x3ad   : > { %2143 = vmatmul.mubr.bf16.gmra.mxu1 %v16251_v17  ;;  %v16271_v17 = vld [vmem:[#allocation2 + $0x110] ss:$8 sps:$4 sm:$0xff]  }
 0x3ae   : > { %13427 = vmatprep.mubr.msk.bf16.mxu1 %vm1314_vm1, %v16252_v18  ;;  %v16272_v18 = vld [vmem:[#allocation2 + $0x124] ss:$8 sps:$4 sm:$0xff]   ;;  %15605 = vmatpush3.bf16.msra.mxu1 %v16280_v15  ;;  %v16298_v15 = vld [vmem:[#allocation4 + $0x178] sm:$0xff]  }
 0x3af   : > { %15606 = vmatprep.subr.bf16.mxu1 %v16281_v22 }
 0x3b2   : > { %15607 = vmatpush3.bf16.msra.mxu1 %v16281_v22  ;;  %v16299_v22 = vld [vmem:[#allocation4 + $0x170] sm:$0xff]  }
 0x3b3   : > { %15608 = vmatprep.subr.bf16.mxu1 %v16282_v23 }
 0x3b5   : > { %2151 = vmatmul.mubr.bf16.gmra.mxu1 %v16254_v60  ;;  %v16274_v60 = vld [vmem:[#allocation2 + $0x120] ss:$8 sps:$4 sm:$0xff]  }
 0x3b6   : > { %13428 = vmatprep.mubr.msk.bf16.mxu1 %vm1314_vm1, %v16255_v58  ;;  %v16275_v58 = vld [vmem:[#allocation2 + $0x134] ss:$8 sps:$4 sm:$0xff]   ;;  %15609 = vmatpush3.bf16.msra.mxu1 %v16282_v23  ;;  %v16300_v23 = vld [vmem:[#allocation4 + $0x168] sm:$0xff]  }
 0x3b7   : > { %15610 = vmatprep.subr.bf16.mxu1 %v16283_v24 }
 0x3ba   : > { %15611 = vmatpush3.bf16.msra.mxu1 %v16283_v24  ;;  %v16301_v24 = vld [vmem:[#allocation4 + $0x160] sm:$0xff]  }
 0x3bb   : > { %15612 = vmatprep.subr.bf16.mxu1 %v16284_v6 }
 0x3bd   : > { %2159 = vmatmul.mubr.bf16.gmra.mxu1 %v16257_v59  ;;  %v16277_v59 = vld [vmem:[#allocation2 + $0x130] ss:$8 sps:$4 sm:$0xff]  }
 0x3be   : > { %15613 = vmatpush3.bf16.msra.mxu1 %v16284_v6  ;;  %v16302_v6 = vld [vmem:[#allocation4 + $0x158] sm:$0xff]  }
 0x3bf   : > { %15614 = vmatprep.subr.bf16.mxu1 %v16285_v16 }
 0x3c2   : > { %15615 = vmatpush3.bf16.msra.mxu1 %v16285_v16  ;;  %v16303_v16 = vld [vmem:[#allocation4 + $0x150] sm:$0xff]  }
 0x3c3   : > { %2630 = vmatprep.subr.bf16.mxu1 %v20984_v31 }
 0x441   : > { %v15570_v3 = vpop.f32.mrf.mxu1 }
 0x442   : > { %v18161_v4 = vadd.f32 %v15570_v3, %v18118_v10 }
 0x443   : > { %v2006_v20 = vpop.f32.mrf.mxu1 }
 0x444   : > { %v18164_v21 = vadd.f32 %v2006_v20, %v18120_v2 }
 0x445   : > { %v15571_v1 = vpop.f32.mrf.mxu1 }
 0x446   : > { %v18167_v36 = vadd.f32 %v15571_v1, %v18122_v30 }
 0x447   : > { %v18169_v32 = vpop.f32.mrf.mxu1 }
 0x451   : > { %v15574_v33 = vpop.f32.mrf.mxu1 }
 0x452   : > { %v18172_v7 = vadd.f32 %v15574_v33, %v18128_v51 }
 0x453   : > { %v2022_v48 = vpop.f32.mrf.mxu1 }
 0x454   : > { %v18175_v40 = vadd.f32 %v2022_v48, %v18130_v53 }
 0x455   : > { %v15575_v10 = vpop.f32.mrf.mxu1 }
 0x456   : > { %v18178_v8 = vadd.f32 %v15575_v10, %v18132_v35 }
 0x457   : > { %v18180_v2 = vpop.f32.mrf.mxu1 }
 0x465   : > { %v2136_v41 = vpop.f32.mrf.mxu1 }
 0x467   : > { %v2138_v54 = vpop.f32.mrf.mxu1 }
 0x469   : > { %v2139_v30 = vpop.f32.mrf.mxu1 }
 0x46a   : > { %v2167_v55 = vpack.c.bf16 %v2139_v30, %v2136_v41 }
 0x46b   : > { %v2141_v56 = vpop.f32.mrf.mxu1 }
 0x46c   : > { %15592 = vmatprep.mubr.bf16.mxu0 %v2167_v55 }
 0x46d   : > { %v2144_v37 = vpop.f32.mrf.mxu1 }
 0x46f   : > { %v2146_v38 = vpop.f32.mrf.mxu1 }
 0x471   : > { %v2147_v51 = vpop.f32.mrf.mxu1 }
 0x472   : > { %v2168_v57 = vpack.c.bf16 %v2147_v51, %v2144_v37 }
 0x473   : > { %v2149_v12 = vpop.f32.mrf.mxu1 }
 0x474   : > { %15593 = vmatmul.mubr.bf16.vlgmr.msra.gmra.mxu0 %v2168_v57 }
 0x475   : > { %2367 = vmatpush1.bf16.msra.mxu0 %v18046_v50  ;;  %v2152_v53 = vpop.f32.mrf.mxu1 }
 0x476   : > { %2368 = vmatprep.subr.bf16.mxu0 %v20984_v31 }
 0x477   : > { %v2154_v35 = vpop.f32.mrf.mxu1 }
 0x479   : > { %2369 = vmatpush1.bf16.msra.mxu0 %v18036_v61  ;;  %v2155_v13 = vpop.f32.mrf.mxu1 }
 0x47a   : > { %v2169_v14 = vpack.c.bf16 %v2155_v13, %v2152_v53  ;;  %2370 = vmatprep.subr.bf16.mxu0 %v20984_v31 }
 0x47b   : > { %v2157_v25 = vpop.f32.mrf.mxu1 }
 0x47c   : > { %15596 = vmatprep.mubr.bf16.mxu0 %v2169_v14 }
 0x47d   : > { %2371 = vmatpush1.bf16.msra.mxu0 %v18026_v39  ;;  %v2160_v0 = vpop.f32.mrf.mxu1 }
 0x47e   : > { %2372 = vmatprep.subr.bf16.mxu0 %v20984_v31 }
 0x47f   : > { %v2162_v43 = vpop.f32.mrf.mxu1 }
 0x481   : > { %2373 = vmatpush1.bf16.msra.mxu0 %v18016_v29  ;;  %v2163_v44 = vpop.f32.mrf.mxu1 }
 0x482   : > { %v2170_v11 = vpack.c.bf16 %v2163_v44, %v2160_v0  ;;  %2374 = vmatprep.subr.bf16.mxu0 %v20984_v31 }
 0x483   : > { %v2165_v45 = vpop.f32.mrf.mxu1 }
 0x484   : > { %15597 = vmatmul.mubr.bf16.gmra.mxu0 %v2170_v11  ;;  %v16288_v45 = vld [vmem:[#allocation2 + $0x144] ss:$8 sps:$4 sm:$0xff]  }
 0x485   : > { %2375 = vmatpush1.bf16.msra.mxu0 %v18006_v19  ;;  %13445 = vmatprep.mubr.msk.bf16.mxu0 %vm1314_vm1, %v16268_v49 }
 0x486   : > { %2376 = vmatprep.subr.bf16.mxu0 %v20984_v31 }
 0x489   : > { %2377 = vmatpush1.bf16.msra.mxu0 %v17996_v9 }
 0x48a   : > { %2378 = vmatprep.subr.bf16.mxu0 %v20984_v31 }
 0x48d   : > { %2379 = vmatpush1.bf16.msra.mxu0 %v17986_v62 }
 0x48e   : > { %2380 = vmatprep.subr.bf16.mxu0 %v20984_v31 }
 0x491   : > { %2381 = vmatpush1.bf16.msra.mxu0 %v17976_v52 }
 0x492   : > { %2396 = vmatprep.subr.bf16.mxu0 %v20984_v31 }
 0x495   : > { %2397 = vmatpush2.bf16.msra.mxu0 %v18061_v42 }
 0x496   : > { %15624 = vmatprep.subr.bf16.mxu0 %v16298_v15 }
 0x498   : > { %2399 = vmatmul.mubr.bf16.vlgmr.msra.gmra.mxu0 %v16266_v46 }
 0x499   : > { %13446 = vmatprep.mubr.msk.bf16.mxu0 %vm1314_vm1, %v16269_v47  ;;  %15625 = vmatpush3.bf16.msra.mxu0 %v16298_v15  ;;  %v16312_v15 = vld [vmem:[#allocation2 + $0x1a4] ss:$8 sps:$4 sm:$0xff]  }
 0x49a   : > { %15626 = vmatprep.subr.bf16.mxu0 %v16299_v22 }
 0x49d   : > { %15627 = vmatpush3.bf16.msra.mxu0 %v16299_v22  ;;  %v16314_v22 = vld [vmem:[#allocation2 + $0x1a0] ss:$8 sps:$4 sm:$0xff]  }
 0x49e   : > { %15628 = vmatprep.subr.bf16.mxu0 %v16300_v23 }
 0x4a0   : > { %2407 = vmatmul.mubr.bf16.gmra.mxu0 %v16271_v17  ;;  %v16286_v17 = vld [vmem:[#allocation2 + $0x140] ss:$8 sps:$4 sm:$0xff]  }
 0x4a1   : > { %13447 = vmatprep.mubr.msk.bf16.mxu0 %vm1314_vm1, %v16272_v18  ;;  %v16289_v18 = vld [vmem:[#allocation2 + $0x154] ss:$8 sps:$4 sm:$0xff]   ;;  %15629 = vmatpush3.bf16.msra.mxu0 %v16300_v23 }
 0x4a2   : > { %15630 = vmatprep.subr.bf16.mxu0 %v16301_v24  ;;  %v16315_v23 = vld [vmem:[#allocation2 + $0x1b4] ss:$8 sps:$4 sm:$0xff]  }
 0x4a5   : > { %15631 = vmatpush3.bf16.msra.mxu0 %v16301_v24  ;;  %v16317_v24 = vld [vmem:[#allocation2 + $0x1b0] ss:$8 sps:$4 sm:$0xff]  }
 0x4a6   : > { %15632 = vmatprep.subr.bf16.mxu0 %v16302_v6 }
 0x4a8   : > { %2415 = vmatmul.mubr.bf16.gmra.mxu0 %v16274_v60  ;;  %v16291_v60 = vld [vmem:[#allocation2 + $0x150] ss:$8 sps:$4 sm:$0xff]  }
 0x4a9   : > { %13448 = vmatprep.mubr.msk.bf16.mxu0 %vm1314_vm1, %v16275_v58  ;;  %v16292_v58 = vld [vmem:[#allocation2 + $0x164] ss:$8 sps:$4 sm:$0xff]   ;;  %15633 = vmatpush3.bf16.msra.mxu0 %v16302_v6  ;;  %v16318_v6 = vld [vmem:[#allocation4 + $0x1b8] sm:$0xff]  }
 0x4aa   : > { %15634 = vmatprep.subr.bf16.mxu0 %v16303_v16 }
 0x4ad   : > { %15635 = vmatpush3.bf16.msra.mxu0 %v16303_v16  ;;  %v16319_v16 = vld [vmem:[#allocation4 + $0x1b0] sm:$0xff]  }
 0x4b0   : > { %2423 = vmatmul.mubr.bf16.gmra.mxu0 %v16277_v59  ;;  %v16294_v59 = vld [vmem:[#allocation2 + $0x160] ss:$8 sps:$4 sm:$0xff]  }
 0x534   : > { %v15594_v3 = vpop.f32.mrf.mxu0 }
 0x535   : > { %v18205_v20 = vadd.f32 %v15594_v3, %v18161_v4  ;;  %v16304_v3 = vld [vmem:[#allocation4 + $0x148] sm:$0xff]  }
 0x536   : > { %v2270_v1 = vpop.f32.mrf.mxu0  ;;  %15636 = vmatprep.subr.bf16.mxu0 %v16304_v3 }
 0x537   : > { %v18208_v33 = vadd.f32 %v2270_v1, %v18164_v21  ;;  %15637 = vmatpush3.bf16.msra.mxu0 %v16304_v3  ;;  %v16305_v1 = vld [vmem:[#allocation4 + $0x140] sm:$0xff]   ;;  %v16320_v3 = vld [vmem:[#allocation4 + $0x1a8] sm:$0xff]  }
 0x538   : > { %v15595_v48 = vpop.f32.mrf.mxu0  ;;  %15638 = vmatprep.subr.bf16.mxu0 %v16305_v1 }
 0x539   : > { %v18211_v10 = vadd.f32 %v15595_v48, %v18167_v36 }
 0x53a   : > { %v18213_v41 = vpop.f32.mrf.mxu0 }
 0x53b   : > { %15639 = vmatpush3.bf16.msra.mxu0 %v16305_v1  ;;  %v16321_v1 = vld [vmem:[#allocation4 + $0x1a0] sm:$0xff]  }
 0x53c   : > { %2894 = vmatprep.subr.bf16.mxu0 %v20984_v31 }
 0x544   : > { %v15598_v54 = vpop.f32.mrf.mxu0 }
 0x545   : > { %v18216_v30 = vadd.f32 %v15598_v54, %v18172_v7 }
 0x546   : > { %v2286_v55 = vpop.f32.mrf.mxu0 }
 0x547   : > { %v18219_v56 = vadd.f32 %v2286_v55, %v18175_v40 }
 0x548   : > { %v15599_v4 = vpop.f32.mrf.mxu0 }
 0x549   : > { %v18222_v37 = vadd.f32 %v15599_v4, %v18178_v8 }
 0x54a   : > { %v18224_v21 = vpop.f32.mrf.mxu0 }
 0x558   : > { %v2400_v38 = vpop.f32.mrf.mxu0 }
 0x55a   : > { %v2402_v51 = vpop.f32.mrf.mxu0 }
 0x55c   : > { %v2403_v36 = vpop.f32.mrf.mxu0 }
 0x55d   : > { %v2431_v57 = vpack.c.bf16 %v2403_v36, %v2400_v38 }
 0x55e   : > { %v2405_v12 = vpop.f32.mrf.mxu0 }
 0x55f   : > { %15616 = vmatprep.mubr.bf16.mxu1 %v2431_v57 }
 0x560   : > { %v2408_v53 = vpop.f32.mrf.mxu0 }
 0x562   : > { %v2410_v35 = vpop.f32.mrf.mxu0 }
 0x564   : > { %v2411_v7 = vpop.f32.mrf.mxu0 }
 0x565   : > { %v2432_v13 = vpack.c.bf16 %v2411_v7, %v2408_v53 }
 0x566   : > { %v2413_v14 = vpop.f32.mrf.mxu0 }
 0x567   : > { %15617 = vmatmul.mubr.bf16.vlgmr.msra.gmra.mxu1 %v2432_v13 }
 0x568   : > { %2631 = vmatpush1.bf16.msra.mxu1 %v18046_v50  ;;  %v2416_v40 = vpop.f32.mrf.mxu0 }
 0x569   : > { %2632 = vmatprep.subr.bf16.mxu1 %v20984_v31 }
 0x56a   : > { %v2418_v8 = vpop.f32.mrf.mxu0 }
 0x56c   : > { %2633 = vmatpush1.bf16.msra.mxu1 %v18036_v61  ;;  %v2419_v25 = vpop.f32.mrf.mxu0 }
 0x56d   : > { %v2433_v0 = vpack.c.bf16 %v2419_v25, %v2416_v40  ;;  %2634 = vmatprep.subr.bf16.mxu1 %v20984_v31 }
 0x56e   : > { %v2421_v43 = vpop.f32.mrf.mxu0 }
 0x56f   : > { %15620 = vmatprep.mubr.bf16.mxu1 %v2433_v0 }
 0x570   : > { %2635 = vmatpush1.bf16.msra.mxu1 %v18026_v39  ;;  %v2424_v44 = vpop.f32.mrf.mxu0 }
 0x571   : > { %2636 = vmatprep.subr.bf16.mxu1 %v20984_v31 }
 0x572   : > { %v2426_v49 = vpop.f32.mrf.mxu0 }
 0x574   : > { %2637 = vmatpush1.bf16.msra.mxu1 %v18016_v29  ;;  %v2427_v11 = vpop.f32.mrf.mxu0 }
 0x575   : > { %v2434_v46 = vpack.c.bf16 %v2427_v11, %v2424_v44  ;;  %2638 = vmatprep.subr.bf16.mxu1 %v20984_v31 }
 0x576   : > { %v2429_v47 = vpop.f32.mrf.mxu0 }
 0x577   : > { %15621 = vmatmul.mubr.bf16.gmra.mxu1 %v2434_v46 }
 0x578   : > { %2639 = vmatpush1.bf16.msra.mxu1 %v18006_v19  ;;  %13465 = vmatprep.mubr.msk.bf16.mxu1 %vm1314_vm1, %v16288_v45 }
 0x579   : > { %2640 = vmatprep.subr.bf16.mxu1 %v20984_v31 }
 0x57c   : > { %2641 = vmatpush1.bf16.msra.mxu1 %v17996_v9 }
 0x57d   : > { %2642 = vmatprep.subr.bf16.mxu1 %v20984_v31 }
 0x580   : > { %2643 = vmatpush1.bf16.msra.mxu1 %v17986_v62 }
 0x581   : > { %2644 = vmatprep.subr.bf16.mxu1 %v20984_v31 }
 0x584   : > { %2645 = vmatpush1.bf16.msra.mxu1 %v17976_v52 }
 0x585   : > { %2660 = vmatprep.subr.bf16.mxu1 %v20984_v31 }
 0x588   : > { %2661 = vmatpush2.bf16.msra.mxu1 %v18061_v42 }
 0x589   : > { %15648 = vmatprep.subr.bf16.mxu1 %v16318_v6 }
 0x58b   : > { %2663 = vmatmul.mubr.bf16.vlgmr.msra.gmra.mxu1 %v16286_v17 }
 0x58c   : > { %13466 = vmatprep.mubr.msk.bf16.mxu1 %vm1314_vm1, %v16289_v18  ;;  %v16308_v18 = vld [vmem:[#allocation2 + $0x184] ss:$8 sps:$4 sm:$0xff]   ;;  %15649 = vmatpush3.bf16.msra.mxu1 %v16318_v6  ;;  %v16329_v6 = vld [vmem:[#allocation2 + $0x1d4] ss:$8 sps:$4 sm:$0xff]  }
 0x58d   : > { %15650 = vmatprep.subr.bf16.mxu1 %v16319_v16 }
 0x590   : > { %15651 = vmatpush3.bf16.msra.mxu1 %v16319_v16  ;;  %v16331_v16 = vld [vmem:[#allocation2 + $0x1d0] ss:$8 sps:$4 sm:$0xff]  }
 0x591   : > { %15652 = vmatprep.subr.bf16.mxu1 %v16320_v3 }
 0x593   : > { %2671 = vmatmul.mubr.bf16.gmra.mxu1 %v16291_v60 }
 0x594   : > { %13467 = vmatprep.mubr.msk.bf16.mxu1 %vm1314_vm1, %v16292_v58  ;;  %15653 = vmatpush3.bf16.msra.mxu1 %v16320_v3  ;;  %v16332_v3 = vld [vmem:[#allocation2 + $0x1e4] ss:$8 sps:$4 sm:$0xff]  }
 0x595   : > { %15654 = vmatprep.subr.bf16.mxu1 %v16321_v1 }
 0x598   : > { %15655 = vmatpush3.bf16.msra.mxu1 %v16321_v1  ;;  %v16334_v1 = vld [vmem:[#allocation2 + $0x1e0] ss:$8 sps:$4 sm:$0xff]  }
 0x59b   : > { %2679 = vmatmul.mubr.bf16.gmra.mxu1 %v16294_v59  ;;  %v16306_v59 = vld [vmem:[#allocation2 + $0x180] ss:$8 sps:$4 sm:$0xff]  }
 0x59c   : > { %13468 = vmatprep.mubr.msk.bf16.mxu1 %vm1314_vm1, %v16295_v63  ;;  %v16309_v63 = vld [vmem:[#allocation2 + $0x194] ss:$8 sps:$4 sm:$0xff]  }
 0x5a3   : > { %2687 = vmatmul.mubr.bf16.gmra.mxu1 %v16297_v5  ;;  %v16311_v5 = vld [vmem:[#allocation2 + $0x190] ss:$8 sps:$4 sm:$0xff]  }
 0x627   : > { %v15618_v48 = vpop.f32.mrf.mxu1 }
 0x628   : > { %v18249_v54 = vadd.f32 %v15618_v48, %v18205_v20  ;;  %v16322_v48 = vld [vmem:[#allocation4 + $0x198] sm:$0xff]  }
 0x629   : > { %v2534_v55 = vpop.f32.mrf.mxu1  ;;  %15656 = vmatprep.subr.bf16.mxu1 %v16322_v48 }
 0x62a   : > { %v18252_v4 = vadd.f32 %v2534_v55, %v18208_v33  ;;  %15657 = vmatpush3.bf16.msra.mxu1 %v16322_v48  ;;  %v16323_v55 = vld [vmem:[#allocation4 + $0x190] sm:$0xff]  }
 0x62b   : > { %v15619_v38 = vpop.f32.mrf.mxu1  ;;  %15658 = vmatprep.subr.bf16.mxu1 %v16323_v55  ;;  %v16335_v48 = vld [vmem:[#allocation2 + $0x1f4] ss:$8 sps:$4 sm:$0xff]  }
 0x62c   : > { %v18255_v51 = vadd.f32 %v15619_v38, %v18211_v10  ;;  %v16324_v38 = vld [vmem:[#allocation4 + $0x188] sm:$0xff]  }
 0x62d   : > { %v18257_v36 = vpop.f32.mrf.mxu1 }
 0x62e   : > { %15659 = vmatpush3.bf16.msra.mxu1 %v16323_v55  ;;  %v16337_v55 = vld [vmem:[#allocation2 + $0x1f0] ss:$8 sps:$4 sm:$0xff]  }
 0x62f   : > { %15660 = vmatprep.subr.bf16.mxu1 %v16324_v38 }
 0x632   : > { %15661 = vmatpush3.bf16.msra.mxu1 %v16324_v38  ;;  %v16338_v38 = vld [vmem:[#allocation4 + $0x1f8] sm:$0xff]  }
 0x637   : > { %v15622_v57 = vpop.f32.mrf.mxu1 }
 0x638   : > { %v18260_v12 = vadd.f32 %v15622_v57, %v18216_v30  ;;  %v16325_v57 = vld [vmem:[#allocation4 + $0x180] sm:$0xff]  }
 0x639   : > { %v2550_v53 = vpop.f32.mrf.mxu1  ;;  %15662 = vmatprep.subr.bf16.mxu1 %v16325_v57 }
 0x63a   : > { %v18263_v35 = vadd.f32 %v2550_v53, %v18219_v56  ;;  %15663 = vmatpush3.bf16.msra.mxu1 %v16325_v57  ;;  %v16339_v57 = vld [vmem:[#allocation4 + $0x1f0] sm:$0xff]  }
 0x63b   : > { %v15623_v20 = vpop.f32.mrf.mxu1  ;;  %3158 = vmatprep.subr.bf16.mxu1 %v20984_v31 }
 0x63c   : > { %v18266_v7 = vadd.f32 %v15623_v20, %v18222_v37 }
 0x63d   : > { %v18268_v33 = vpop.f32.mrf.mxu1 }
 0x64b   : > { %v2664_v13 = vpop.f32.mrf.mxu1 }
 0x64d   : > { %v2666_v14 = vpop.f32.mrf.mxu1 }
 0x64f   : > { %v2667_v10 = vpop.f32.mrf.mxu1 }
 0x650   : > { %v2695_v40 = vpack.c.bf16 %v2667_v10, %v2664_v13 }
 0x651   : > { %v2669_v8 = vpop.f32.mrf.mxu1 }
 0x652   : > { %15640 = vmatprep.mubr.bf16.mxu0 %v2695_v40 }
 0x653   : > { %v2672_v25 = vpop.f32.mrf.mxu1 }
 0x655   : > { %v2674_v0 = vpop.f32.mrf.mxu1 }
 0x657   : > { %v2675_v30 = vpop.f32.mrf.mxu1 }
 0x658   : > { %v2696_v43 = vpack.c.bf16 %v2675_v30, %v2672_v25 }
 0x659   : > { %v2677_v44 = vpop.f32.mrf.mxu1 }
 0x65a   : > { %15641 = vmatmul.mubr.bf16.vlgmr.msra.gmra.mxu0 %v2696_v43 }
 0x65b   : > { %2895 = vmatpush1.bf16.msra.mxu0 %v18046_v50  ;;  %v2680_v56 = vpop.f32.mrf.mxu1 }
 0x65c   : > { %2896 = vmatprep.subr.bf16.mxu0 %v20984_v31 }
 0x65d   : > { %v2682_v37 = vpop.f32.mrf.mxu1 }
 0x65f   : > { %2897 = vmatpush1.bf16.msra.mxu0 %v18036_v61  ;;  %v2683_v49 = vpop.f32.mrf.mxu1 }
 0x660   : > { %v2697_v11 = vpack.c.bf16 %v2683_v49, %v2680_v56  ;;  %2898 = vmatprep.subr.bf16.mxu0 %v20984_v31 }
 0x661   : > { %v2685_v45 = vpop.f32.mrf.mxu1 }
 0x662   : > { %15644 = vmatprep.mubr.bf16.mxu0 %v2697_v11 }
 0x663   : > { %2899 = vmatpush1.bf16.msra.mxu0 %v18026_v39  ;;  %v2688_v46 = vpop.f32.mrf.mxu1 }
 0x664   : > { %2900 = vmatprep.subr.bf16.mxu0 %v20984_v31 }
 0x665   : > { %v2690_v47 = vpop.f32.mrf.mxu1 }
 0x667   : > { %2901 = vmatpush1.bf16.msra.mxu0 %v18016_v29  ;;  %v2691_v17 = vpop.f32.mrf.mxu1 }
 0x668   : > { %v2698_v60 = vpack.c.bf16 %v2691_v17, %v2688_v46  ;;  %2902 = vmatprep.subr.bf16.mxu0 %v20984_v31 }
 0x669   : > { %v2693_v58 = vpop.f32.mrf.mxu1 }
 0x66a   : > { %15645 = vmatmul.mubr.bf16.gmra.mxu0 %v2698_v60 }
 0x66b   : > { %2903 = vmatpush1.bf16.msra.mxu0 %v18006_v19  ;;  %13485 = vmatprep.mubr.msk.bf16.mxu0 %vm1314_vm1, %v16308_v18 }
 0x66c   : > { %2904 = vmatprep.subr.bf16.mxu0 %v20984_v31 }
 0x66f   : > { %2905 = vmatpush1.bf16.msra.mxu0 %v17996_v9 }
 0x670   : > { %2906 = vmatprep.subr.bf16.mxu0 %v20984_v31 }
 0x673   : > { %2907 = vmatpush1.bf16.msra.mxu0 %v17986_v62 }
 0x674   : > { %2908 = vmatprep.subr.bf16.mxu0 %v20984_v31 }
 0x677   : > { %2909 = vmatpush1.bf16.msra.mxu0 %v17976_v52 }
 0x678   : > { %2924 = vmatprep.subr.bf16.mxu0 %v20984_v31 }
 0x67b   : > { %2925 = vmatpush2.bf16.msra.mxu0 %v18061_v42 }
 0x67c   : > { %15672 = vmatprep.subr.bf16.mxu0 %v16338_v38 }
 0x67e   : > { %2927 = vmatmul.mubr.bf16.vlgmr.msra.gmra.mxu0 %v16306_v59 }
 0x67f   : > { %13486 = vmatprep.mubr.msk.bf16.mxu0 %vm1314_vm1, %v16309_v63  ;;  %15673 = vmatpush3.bf16.msra.mxu0 %v16338_v38 }
 0x680   : > { %15674 = vmatprep.subr.bf16.mxu0 %v16339_v57 }
 0x683   : > { %15675 = vmatpush3.bf16.msra.mxu0 %v16339_v57  ;;  %v16346_v57 = vld [vmem:[#allocation2 + $0x200] ss:$8 sps:$4 sm:$0xff]  }
 0x686   : > { %2935 = vmatmul.mubr.bf16.gmra.mxu0 %v16311_v5 }
 0x687   : > { %13487 = vmatprep.mubr.msk.bf16.mxu0 %vm1314_vm1, %v16312_v15  ;;  %v16328_v15 = vld [vmem:[#allocation2 + $0x1c4] ss:$8 sps:$4 sm:$0xff]  }
 0x68e   : > { %2943 = vmatmul.mubr.bf16.gmra.mxu0 %v16314_v22 }
 0x68f   : > { %13488 = vmatprep.mubr.msk.bf16.mxu0 %vm1314_vm1, %v16315_v23 }
 0x696   : > { %2951 = vmatmul.mubr.bf16.gmra.mxu0 %v16317_v24  ;;  %v16326_v24 = vld [vmem:[#allocation2 + $0x1c0] ss:$8 sps:$4 sm:$0xff]  }
 0x71a   : > { %v15642_v53 = vpop.f32.mrf.mxu0 }
 0x71b   : > { %v18293_v20 = vadd.f32 %v15642_v53, %v18249_v54  ;;  %v16340_v53 = vld [vmem:[#allocation4 + $0x1e8] sm:$0xff]  }
 0x71c   : > { %v2798_v13 = vpop.f32.mrf.mxu0  ;;  %15676 = vmatprep.subr.bf16.mxu0 %v16340_v53 }
 0x71d   : > { %v18296_v14 = vadd.f32 %v2798_v13, %v18252_v4  ;;  %v16341_v13 = vld [vmem:[#allocation4 + $0x1e0] sm:$0xff]   ;;  %15677 = vmatpush3.bf16.msra.mxu0 %v16340_v53  ;;  %v16349_v53 = vld [vmem:[#allocation2 + $0x214] ss:$8 sps:$4 sm:$0xff]  }
 0x71e   : > { %v15643_v10 = vpop.f32.mrf.mxu0  ;;  %15678 = vmatprep.subr.bf16.mxu0 %v16341_v13 }
 0x71f   : > { %v18299_v40 = vadd.f32 %v15643_v10, %v18255_v51  ;;  %v16342_v10 = vld [vmem:[#allocation4 + $0x1d8] sm:$0xff]  }
 0x720   : > { %v18301_v8 = vpop.f32.mrf.mxu0 }
 0x721   : > { %15679 = vmatpush3.bf16.msra.mxu0 %v16341_v13  ;;  %v16351_v13 = vld [vmem:[#allocation2 + $0x210] ss:$8 sps:$4 sm:$0xff]  }
 0x722   : > { %15680 = vmatprep.subr.bf16.mxu0 %v16342_v10 }
 0x725   : > { %15681 = vmatpush3.bf16.msra.mxu0 %v16342_v10  ;;  %v16352_v10 = vld [vmem:[#allocation2 + $0x224] ss:$8 sps:$4 sm:$0xff]  }
 0x72a   : > { %v15646_v25 = vpop.f32.mrf.mxu0 }
 0x72b   : > { %v18304_v0 = vadd.f32 %v15646_v25, %v18260_v12  ;;  %v16343_v25 = vld [vmem:[#allocation4 + $0x1d0] sm:$0xff]  }
 0x72c   : > { %v2814_v30 = vpop.f32.mrf.mxu0  ;;  %15682 = vmatprep.subr.bf16.mxu0 %v16343_v25 }
 0x72d   : > { %v18307_v43 = vadd.f32 %v2814_v30, %v18263_v35  ;;  %15683 = vmatpush3.bf16.msra.mxu0 %v16343_v25  ;;  %v16344_v30 = vld [vmem:[#allocation4 + $0x1c8] sm:$0xff]  }
 0x72e   : > { %v15647_v54 = vpop.f32.mrf.mxu0  ;;  %15684 = vmatprep.subr.bf16.mxu0 %v16344_v30  ;;  %v16354_v25 = vld [vmem:[#allocation2 + $0x220] ss:$8 sps:$4 sm:$0xff]  }
 0x72f   : > { %v18310_v44 = vadd.f32 %v15647_v54, %v18266_v7  ;;  %v16345_v54 = vld [vmem:[#allocation4 + $0x1c0] sm:$0xff]  }
 0x730   : > { %v18312_v4 = vpop.f32.mrf.mxu0 }
 0x731   : > { %15685 = vmatpush3.bf16.msra.mxu0 %v16344_v30  ;;  %v16355_v30 = vld [vmem:[#allocation2 + $0x234] ss:$8 sps:$4 sm:$0xff]  }
 0x732   : > { %15686 = vmatprep.subr.bf16.mxu0 %v16345_v54 }
 0x735   : > { %15687 = vmatpush3.bf16.msra.mxu0 %v16345_v54  ;;  %v16357_v54 = vld [vmem:[#allocation2 + $0x230] ss:$8 sps:$4 sm:$0xff]  }
 0x736   : > { %3422 = vmatprep.subr.bf16.mxu0 %v20984_v31 }
 0x73e   : > { %v2928_v56 = vpop.f32.mrf.mxu0 }
 0x740   : > { %v2930_v37 = vpop.f32.mrf.mxu0 }
 0x742   : > { %v2931_v51 = vpop.f32.mrf.mxu0 }
 0x743   : > { %v2959_v49 = vpack.c.bf16 %v2931_v51, %v2928_v56 }
 0x744   : > { %v2933_v11 = vpop.f32.mrf.mxu0 }
 0x745   : > { %15664 = vmatprep.mubr.bf16.mxu1 %v2959_v49 }
 0x746   : > { %v2936_v45 = vpop.f32.mrf.mxu0 }
 0x748   : > { %v2938_v46 = vpop.f32.mrf.mxu0 }
 0x74a   : > { %v2939_v12 = vpop.f32.mrf.mxu0 }
 0x74b   : > { %v2960_v47 = vpack.c.bf16 %v2939_v12, %v2936_v45 }
 0x74c   : > { %v2941_v17 = vpop.f32.mrf.mxu0 }
 0x74d   : > { %15665 = vmatmul.mubr.bf16.vlgmr.msra.gmra.mxu1 %v2960_v47 }
 0x74e   : > { %3159 = vmatpush1.bf16.msra.mxu1 %v18046_v50  ;;  %v2944_v35 = vpop.f32.mrf.mxu0 }
 0x74f   : > { %3160 = vmatprep.subr.bf16.mxu1 %v20984_v31 }
 0x750   : > { %v2946_v7 = vpop.f32.mrf.mxu0 }
 0x752   : > { %3161 = vmatpush1.bf16.msra.mxu1 %v18036_v61  ;;  %v2947_v18 = vpop.f32.mrf.mxu0 }
 0x753   : > { %v2961_v60 = vpack.c.bf16 %v2947_v18, %v2944_v35  ;;  %3162 = vmatprep.subr.bf16.mxu1 %v20984_v31 }
 0x754   : > { %v2949_v58 = vpop.f32.mrf.mxu0 }
 0x755   : > { %15668 = vmatprep.mubr.bf16.mxu1 %v2961_v60 }
 0x756   : > { %3163 = vmatpush1.bf16.msra.mxu1 %v18026_v39  ;;  %v2952_v59 = vpop.f32.mrf.mxu0 }
 0x757   : > { %3164 = vmatprep.subr.bf16.mxu1 %v20984_v31 }
 0x758   : > { %v2954_v63 = vpop.f32.mrf.mxu0 }
 0x75a   : > { %3165 = vmatpush1.bf16.msra.mxu1 %v18016_v29  ;;  %v2955_v5 = vpop.f32.mrf.mxu0 }
 0x75b   : > { %v2962_v22 = vpack.c.bf16 %v2955_v5, %v2952_v59  ;;  %3166 = vmatprep.subr.bf16.mxu1 %v20984_v31 }
 0x75c   : > { %v2957_v23 = vpop.f32.mrf.mxu0 }
 0x75d   : > { %15669 = vmatmul.mubr.bf16.gmra.mxu1 %v2962_v22 }
 0x75e   : > { %3167 = vmatpush1.bf16.msra.mxu1 %v18006_v19  ;;  %13505 = vmatprep.mubr.msk.bf16.mxu1 %vm1314_vm1, %v16328_v15 }
 0x75f   : > { %3168 = vmatprep.subr.bf16.mxu1 %v20984_v31 }
 0x762   : > { %3169 = vmatpush1.bf16.msra.mxu1 %v17996_v9 }
 0x763   : > { %3170 = vmatprep.subr.bf16.mxu1 %v20984_v31 }
 0x766   : > { %3171 = vmatpush1.bf16.msra.mxu1 %v17986_v62 }
 0x767   : > { %3172 = vmatprep.subr.bf16.mxu1 %v20984_v31 }
 0x76a   : > { %3173 = vmatpush1.bf16.msra.mxu1 %v17976_v52 }
 0x76b   : > { %3188 = vmatprep.subr.bf16.mxu1 %v20984_v31 }
 0x76e   : > { %3189 = vmatpush2.bf16.msra.mxu1 %v18061_v42 }
 0x771   : > { %3191 = vmatmul.mubr.bf16.vlgmr.msra.gmra.mxu1 %v16326_v24 }
 0x772   : > { %13506 = vmatprep.mubr.msk.bf16.mxu1 %vm1314_vm1, %v16329_v6 }
 0x779   : > { %3199 = vmatmul.mubr.bf16.gmra.mxu1 %v16331_v16 }
 0x77a   : > { %13507 = vmatprep.mubr.msk.bf16.mxu1 %vm1314_vm1, %v16332_v3 }
 0x781   : > { %3207 = vmatmul.mubr.bf16.gmra.mxu1 %v16334_v1 }
 0x782   : > { %13508 = vmatprep.mubr.msk.bf16.mxu1 %vm1314_vm1, %v16335_v48  ;;  %v16348_v48 = vld [vmem:[#allocation2 + $0x204] ss:$8 sps:$4 sm:$0xff]  }
 0x789   : > { %3215 = vmatmul.mubr.bf16.gmra.mxu1 %v16337_v55 }
 0x80d   : > { %v15666_v56 = vpop.f32.mrf.mxu1 }
 0x80e   : > { %v18337_v37 = vadd.f32 %v15666_v56, %v18293_v20  ;;  %v16358_v56 = vld [vmem:[#allocation4 + $0x238] sm:$0xff]  }
 0x80f   : > { %v3062_v51 = vpop.f32.mrf.mxu1  ;;  %15696 = vmatprep.subr.bf16.mxu1 %v16358_v56 }
 0x810   : > { %v18340_v49 = vadd.f32 %v3062_v51, %v18296_v14  ;;  %15697 = vmatpush3.bf16.msra.mxu1 %v16358_v56  ;;  %v16359_v51 = vld [vmem:[#allocation4 + $0x230] sm:$0xff]   ;;  %v16368_v56 = vld [vmem:[#allocation2 + $0x244] ss:$8 sps:$4 sm:$0xff]  }
 0x811   : > { %v15667_v11 = vpop.f32.mrf.mxu1  ;;  %15698 = vmatprep.subr.bf16.mxu1 %v16359_v51 }
 0x812   : > { %v18343_v45 = vadd.f32 %v15667_v11, %v18299_v40  ;;  %v16360_v11 = vld [vmem:[#allocation4 + $0x228] sm:$0xff]  }
 0x813   : > { %v18345_v46 = vpop.f32.mrf.mxu1 }
 0x814   : > { %15699 = vmatpush3.bf16.msra.mxu1 %v16359_v51 }
 0x815   : > { %15700 = vmatprep.subr.bf16.mxu1 %v16360_v11 }
 0x818   : > { %15701 = vmatpush3.bf16.msra.mxu1 %v16360_v11 }
 0x81d   : > { %v15670_v12 = vpop.f32.mrf.mxu1 }
 0x81e   : > { %v18348_v47 = vadd.f32 %v15670_v12, %v18304_v0  ;;  %v16361_v12 = vld [vmem:[#allocation4 + $0x220] sm:$0xff]  }
 0x81f   : > { %v3078_v17 = vpop.f32.mrf.mxu1  ;;  %15702 = vmatprep.subr.bf16.mxu1 %v16361_v12 }
 0x820   : > { %v18351_v35 = vadd.f32 %v3078_v17, %v18307_v43  ;;  %v16362_v17 = vld [vmem:[#allocation4 + $0x218] sm:$0xff]   ;;  %15703 = vmatpush3.bf16.msra.mxu1 %v16361_v12  ;;  %v16366_v12 = vld [vmem:[#allocation2 + $0x240] ss:$8 sps:$4 sm:$0xff]  }
 0x821   : > { %v15671_v20 = vpop.f32.mrf.mxu1  ;;  %15704 = vmatprep.subr.bf16.mxu1 %v16362_v17 }
 0x822   : > { %v18354_v7 = vadd.f32 %v15671_v20, %v18310_v44  ;;  %v16363_v20 = vld [vmem:[#allocation4 + $0x210] sm:$0xff]  }
 0x823   : > { %v18356_v14 = vpop.f32.mrf.mxu1 }
 0x824   : > { %15705 = vmatpush3.bf16.msra.mxu1 %v16362_v17  ;;  %v16369_v17 = vld [vmem:[#allocation2 + $0x254] ss:$8 sps:$4 sm:$0xff]  }
 0x825   : > { %15706 = vmatprep.subr.bf16.mxu1 %v16363_v20 }
 0x828   : > { %15707 = vmatpush3.bf16.msra.mxu1 %v16363_v20  ;;  %v16371_v20 = vld [vmem:[#allocation2 + $0x250] ss:$8 sps:$4 sm:$0xff]  }
 0x831   : > { %v3192_v18 = vpop.f32.mrf.mxu1 }
 0x833   : > { %v3194_v60 = vpop.f32.mrf.mxu1 }
 0x834   : > { %v16365_v60 = vld [vmem:[#allocation4 + $0x200] sm:$0xff]  }
 0x835   : > { %v3195_v40 = vpop.f32.mrf.mxu1 }
 0x836   : > { %v3223_v58 = vpack.c.bf16 %v3195_v40, %v3192_v18  ;;  %v16364_v18 = vld [vmem:[#allocation4 + $0x208] sm:$0xff]  }
 0x837   : > { %v3197_v59 = vpop.f32.mrf.mxu1  ;;  %15708 = vmatprep.subr.bf16.mxu1 %v16364_v18 }
 0x838   : > { %15688 = vmatprep.mubr.bf16.mxu0 %v3223_v58  ;;  %15709 = vmatpush3.bf16.msra.mxu1 %v16364_v18  ;;  %v16372_v18 = vld [vmem:[#allocation2 + $0x264] ss:$8 sps:$4 sm:$0xff]  }
 0x839   : > { %v3200_v63 = vpop.f32.mrf.mxu1  ;;  %15710 = vmatprep.subr.bf16.mxu1 %v16365_v60 }
 0x83b   : > { %v3202_v5 = vpop.f32.mrf.mxu1 }
 0x83c   : > { %15711 = vmatpush3.bf16.msra.mxu1 %v16365_v60  ;;  %v16374_v60 = vld [vmem:[#allocation2 + $0x260] ss:$8 sps:$4 sm:$0xff]  }
 0x83d   : > { %v3203_v0 = vpop.f32.mrf.mxu1  ;;  %3686 = vmatprep.subr.bf16.mxu1 %v20984_v31 }
 0x83e   : > { %v3224_v15 = vpack.c.bf16 %v3203_v0, %v3200_v63 }
 0x83f   : > { %v3205_v22 = vpop.f32.mrf.mxu1 }
 0x840   : > { %15689 = vmatmul.mubr.bf16.vlgmr.msra.gmra.mxu0 %v3224_v15 }
 0x841   : > { %3423 = vmatpush1.bf16.msra.mxu0 %v18046_v50  ;;  %v3208_v43 = vpop.f32.mrf.mxu1 }
 0x842   : > { %3424 = vmatprep.subr.bf16.mxu0 %v20984_v31 }
 0x843   : > { %v3210_v44 = vpop.f32.mrf.mxu1 }
 0x845   : > { %3425 = vmatpush1.bf16.msra.mxu0 %v18036_v61  ;;  %v3211_v23 = vpop.f32.mrf.mxu1 }
 0x846   : > { %v3225_v24 = vpack.c.bf16 %v3211_v23, %v3208_v43  ;;  %3426 = vmatprep.subr.bf16.mxu0 %v20984_v31 }
 0x847   : > { %v3213_v6 = vpop.f32.mrf.mxu1 }
 0x848   : > { %15692 = vmatprep.mubr.bf16.mxu0 %v3225_v24 }
 0x849   : > { %3427 = vmatpush1.bf16.msra.mxu0 %v18026_v39  ;;  %v3216_v16 = vpop.f32.mrf.mxu1 }
 0x84a   : > { %3428 = vmatprep.subr.bf16.mxu0 %v20984_v31 }
 0x84b   : > { %v3218_v3 = vpop.f32.mrf.mxu1 }
 0x84d   : > { %3429 = vmatpush1.bf16.msra.mxu0 %v18016_v29  ;;  %v3219_v1 = vpop.f32.mrf.mxu1 }
 0x84e   : > { %v3226_v55 = vpack.c.bf16 %v3219_v1, %v3216_v16  ;;  %3430 = vmatprep.subr.bf16.mxu0 %v20984_v31 }
 0x84f   : > { %v3221_v38 = vpop.f32.mrf.mxu1 }
 0x850   : > { %15693 = vmatmul.mubr.bf16.gmra.mxu0 %v3226_v55 }
 0x851   : > { %3431 = vmatpush1.bf16.msra.mxu0 %v18006_v19  ;;  %13525 = vmatprep.mubr.msk.bf16.mxu0 %vm1314_vm1, %v16348_v48 }
 0x852   : > { %3432 = vmatprep.subr.bf16.mxu0 %v20984_v31 }
 0x855   : > { %3433 = vmatpush1.bf16.msra.mxu0 %v17996_v9 }
 0x856   : > { %3434 = vmatprep.subr.bf16.mxu0 %v20984_v31 }
 0x859   : > { %3435 = vmatpush1.bf16.msra.mxu0 %v17986_v62 }
 0x85a   : > { %3436 = vmatprep.subr.bf16.mxu0 %v20984_v31 }
 0x85d   : > { %3437 = vmatpush1.bf16.msra.mxu0 %v17976_v52 }
 0x85e   : > { %3452 = vmatprep.subr.bf16.mxu0 %v20984_v31 }
 0x861   : > { %3453 = vmatpush2.bf16.msra.mxu0 %v18061_v42 }
 0x864   : > { %3455 = vmatmul.mubr.bf16.vlgmr.msra.gmra.mxu0 %v16346_v57 }
 0x865   : > { %13526 = vmatprep.mubr.msk.bf16.mxu0 %vm1314_vm1, %v16349_v53 }
 0x86c   : > { %3463 = vmatmul.mubr.bf16.gmra.mxu0 %v16351_v13 }
 0x86d   : > { %13527 = vmatprep.mubr.msk.bf16.mxu0 %vm1314_vm1, %v16352_v10 }
 0x874   : > { %3471 = vmatmul.mubr.bf16.gmra.mxu0 %v16354_v25 }
 0x875   : > { %13528 = vmatprep.mubr.msk.bf16.mxu0 %vm1314_vm1, %v16355_v30 }
 0x87c   : > { %3479 = vmatmul.mubr.bf16.gmra.mxu0 %v16357_v54 }
 0x900   : > { %v15690_v40 = vpop.f32.mrf.mxu0 }
 0x901   : > { %v18381_v58 = vadd.f32 %v15690_v40, %v18337_v37  ;;  %v16375_v40 = vld [vmem:[#allocation2 + $0x274] ss:$8 sps:$4 sm:$0xff]  }
 0x902   : > { %v3326_v59 = vpop.f32.mrf.mxu0 }
 0x903   : > { %v18384_v63 = vadd.f32 %v3326_v59, %v18340_v49  ;;  %v16377_v59 = vld [vmem:[#allocation2 + $0x270] ss:$8 sps:$4 sm:$0xff]  }
 0x904   : > { %v15691_v5 = vpop.f32.mrf.mxu0 }
 0x905   : > { %v18387_v0 = vadd.f32 %v15691_v5, %v18343_v45  ;;  %v16378_v5 = vld [vmem:[#allocation4 + $0x278] sm:$0xff]  }
 0x906   : > { %v18389_v15 = vpop.f32.mrf.mxu0  ;;  %15720 = vmatprep.subr.bf16.mxu0 %v16378_v5 }
 0x907   : > { %15721 = vmatpush3.bf16.msra.mxu0 %v16378_v5 }
 0x910   : > { %v15694_v22 = vpop.f32.mrf.mxu0 }
 0x911   : > { %v18392_v43 = vadd.f32 %v15694_v22, %v18348_v47  ;;  %v16379_v22 = vld [vmem:[#allocation4 + $0x270] sm:$0xff]  }
 0x912   : > { %v3342_v44 = vpop.f32.mrf.mxu0  ;;  %15722 = vmatprep.subr.bf16.mxu0 %v16379_v22 }
 0x913   : > { %v18395_v23 = vadd.f32 %v3342_v44, %v18351_v35  ;;  %15723 = vmatpush3.bf16.msra.mxu0 %v16379_v22  ;;  %v16380_v44 = vld [vmem:[#allocation4 + $0x268] sm:$0xff]  }
 0x914   : > { %v15695_v37 = vpop.f32.mrf.mxu0  ;;  %15724 = vmatprep.subr.bf16.mxu0 %v16380_v44 }
 0x915   : > { %v18398_v24 = vadd.f32 %v15695_v37, %v18354_v7  ;;  %v16381_v37 = vld [vmem:[#allocation4 + $0x260] sm:$0xff]  }
 0x916   : > { %v18400_v49 = vpop.f32.mrf.mxu0 }
 0x917   : > { %15725 = vmatpush3.bf16.msra.mxu0 %v16380_v44  ;;  %v16388_v44 = vld [vmem:[#allocation2 + $0x284] ss:$8 sps:$4 sm:$0xff]  }
 0x918   : > { %15726 = vmatprep.subr.bf16.mxu0 %v16381_v37 }
 0x91b   : > { %15727 = vmatpush3.bf16.msra.mxu0 %v16381_v37 }
 0x924   : > { %v3456_v6 = vpop.f32.mrf.mxu0 }
 0x926   : > { %v3458_v16 = vpop.f32.mrf.mxu0 }
 0x927   : > { %v16383_v16 = vld [vmem:[#allocation4 + $0x250] sm:$0xff]  }
 0x928   : > { %v3459_v45 = vpop.f32.mrf.mxu0 }
 0x929   : > { %v3487_v3 = vpack.c.bf16 %v3459_v45, %v3456_v6  ;;  %v16382_v6 = vld [vmem:[#allocation4 + $0x258] sm:$0xff]   ;;  %v16384_v45 = vld [vmem:[#allocation4 + $0x248] sm:$0xff]  }
 0x92a   : > { %v3461_v1 = vpop.f32.mrf.mxu0  ;;  %15728 = vmatprep.subr.bf16.mxu0 %v16382_v6 }
 0x92b   : > { %15712 = vmatprep.mubr.bf16.mxu1 %v3487_v3  ;;  %15729 = vmatpush3.bf16.msra.mxu0 %v16382_v6  ;;  %v16385_v3 = vld [vmem:[#allocation4 + $0x240] sm:$0xff]  }
 0x92c   : > { %v3464_v48 = vpop.f32.mrf.mxu0  ;;  %15730 = vmatprep.subr.bf16.mxu0 %v16383_v16 }
 0x92e   : > { %v3466_v55 = vpop.f32.mrf.mxu0 }
 0x92f   : > { %15731 = vmatpush3.bf16.msra.mxu0 %v16383_v16  ;;  %v16386_v16 = vld [vmem:[#allocation2 + $0x280] ss:$8 sps:$4 sm:$0xff]  }
 0x930   : > { %v3467_v47 = vpop.f32.mrf.mxu0  ;;  %15732 = vmatprep.subr.bf16.mxu0 %v16384_v45 }
 0x931   : > { %v3488_v38 = vpack.c.bf16 %v3467_v47, %v3464_v48 }
 0x932   : > { %v3469_v57 = vpop.f32.mrf.mxu0 }
 0x933   : > { %15713 = vmatmul.mubr.bf16.vlgmr.msra.gmra.mxu1 %v3488_v38  ;;  %15733 = vmatpush3.bf16.msra.mxu0 %v16384_v45  ;;  %v16389_v45 = vld [vmem:[#allocation2 + $0x294] ss:$8 sps:$4 sm:$0xff]  }
 0x934   : > { %3687 = vmatpush1.bf16.msra.mxu1 %v18046_v50  ;;  %v3472_v35 = vpop.f32.mrf.mxu0  ;;  %15734 = vmatprep.subr.bf16.mxu0 %v16385_v3 }
 0x935   : > { %3688 = vmatprep.subr.bf16.mxu1 %v20984_v31 }
 0x936   : > { %v3474_v7 = vpop.f32.mrf.mxu0 }
 0x937   : > { %15735 = vmatpush3.bf16.msra.mxu0 %v16385_v3  ;;  %v16391_v3 = vld [vmem:[#allocation2 + $0x290] ss:$8 sps:$4 sm:$0xff]  }
 0x938   : > { %3689 = vmatpush1.bf16.msra.mxu1 %v18036_v61  ;;  %v3475_v53 = vpop.f32.mrf.mxu0  ;;  %3950 = vmatprep.subr.bf16.mxu0 %v20984_v31 }
 0x939   : > { %v3489_v13 = vpack.c.bf16 %v3475_v53, %v3472_v35  ;;  %3690 = vmatprep.subr.bf16.mxu1 %v20984_v31 }
 0x93a   : > { %v3477_v10 = vpop.f32.mrf.mxu0 }
 0x93b   : > { %15716 = vmatprep.mubr.bf16.mxu1 %v3489_v13 }
 0x93c   : > { %3691 = vmatpush1.bf16.msra.mxu1 %v18026_v39  ;;  %v3480_v25 = vpop.f32.mrf.mxu0 }
 0x93d   : > { %3692 = vmatprep.subr.bf16.mxu1 %v20984_v31 }
 0x93e   : > { %v3482_v30 = vpop.f32.mrf.mxu0 }
 0x940   : > { %3693 = vmatpush1.bf16.msra.mxu1 %v18016_v29  ;;  %v3483_v54 = vpop.f32.mrf.mxu0 }
 0x941   : > { %v3490_v51 = vpack.c.bf16 %v3483_v54, %v3480_v25  ;;  %3694 = vmatprep.subr.bf16.mxu1 %v20984_v31 }
 0x942   : > { %v3485_v11 = vpop.f32.mrf.mxu0 }
 0x943   : > { %15717 = vmatmul.mubr.bf16.gmra.mxu1 %v3490_v51 }
 0x944   : > { %3695 = vmatpush1.bf16.msra.mxu1 %v18006_v19  ;;  %13545 = vmatprep.mubr.msk.bf16.mxu1 %vm1314_vm1, %v16368_v56 }
 0x945   : > { %3696 = vmatprep.subr.bf16.mxu1 %v20984_v31 }
 0x948   : > { %3697 = vmatpush1.bf16.msra.mxu1 %v17996_v9 }
 0x949   : > { %3698 = vmatprep.subr.bf16.mxu1 %v20984_v31 }
 0x94c   : > { %3699 = vmatpush1.bf16.msra.mxu1 %v17986_v62 }
 0x94d   : > { %3700 = vmatprep.subr.bf16.mxu1 %v20984_v31 }
 0x950   : > { %3701 = vmatpush1.bf16.msra.mxu1 %v17976_v52 }
 0x951   : > { %3716 = vmatprep.subr.bf16.mxu1 %v20984_v31 }
 0x954   : > { %3717 = vmatpush2.bf16.msra.mxu1 %v18061_v42 }
 0x957   : > { %3719 = vmatmul.mubr.bf16.vlgmr.msra.gmra.mxu1 %v16366_v12 }
 0x958   : > { %13546 = vmatprep.mubr.msk.bf16.mxu1 %vm1314_vm1, %v16369_v17 }
 0x95f   : > { %3727 = vmatmul.mubr.bf16.gmra.mxu1 %v16371_v20 }
 0x960   : > { %13547 = vmatprep.mubr.msk.bf16.mxu1 %vm1314_vm1, %v16372_v18 }
 0x967   : > { %3735 = vmatmul.mubr.bf16.gmra.mxu1 %v16374_v60 }
 0x968   : > { %13548 = vmatprep.mubr.msk.bf16.mxu1 %vm1314_vm1, %v16375_v40 }
 0x96f   : > { %3743 = vmatmul.mubr.bf16.gmra.mxu1 %v16377_v59 }
 0x9f3   : > { %v15714_v1 = vpop.f32.mrf.mxu1 }
 0x9f4   : > { %v18425_v48 = vadd.f32 %v15714_v1, %v18381_v58  ;;  %v16392_v1 = vld [vmem:[#allocation2 + $0x2a4] ss:$8 sps:$4 sm:$0xff]  }
 0x9f5   : > { %v3590_v55 = vpop.f32.mrf.mxu1 }
 0x9f6   : > { %v18428_v47 = vadd.f32 %v3590_v55, %v18384_v63  ;;  %v16394_v55 = vld [vmem:[#allocation2 + $0x2a0] ss:$8 sps:$4 sm:$0xff]  }
 0x9f7   : > { %v15715_v38 = vpop.f32.mrf.mxu1 }
 0x9f8   : > { %v18431_v57 = vadd.f32 %v15715_v38, %v18387_v0  ;;  %v16395_v38 = vld [vmem:[#allocation2 + $0x2b4] ss:$8 sps:$4 sm:$0xff]  }
 0x9f9   : > { %v18433_v35 = vpop.f32.mrf.mxu1 }
 0xa03   : > { %v15718_v7 = vpop.f32.mrf.mxu1 }
 0xa04   : > { %v18436_v53 = vadd.f32 %v15718_v7, %v18392_v43  ;;  %v16397_v7 = vld [vmem:[#allocation2 + $0x2b0] ss:$8 sps:$4 sm:$0xff]  }
 0xa05   : > { %v3606_v13 = vpop.f32.mrf.mxu1 }
 0xa06   : > { %v18439_v10 = vadd.f32 %v3606_v13, %v18395_v23  ;;  %v16398_v13 = vld [vmem:[#allocation4 + $0x2b8] sm:$0xff]  }
 0xa07   : > { %v15719_v58 = vpop.f32.mrf.mxu1  ;;  %15744 = vmatprep.subr.bf16.mxu1 %v16398_v13 }
 0xa08   : > { %v18442_v25 = vadd.f32 %v15719_v58, %v18398_v24  ;;  %15745 = vmatpush3.bf16.msra.mxu1 %v16398_v13  ;;  %v16399_v58 = vld [vmem:[#allocation4 + $0x2b0] sm:$0xff]  }
 0xa09   : > { %v18444_v63 = vpop.f32.mrf.mxu1  ;;  %15746 = vmatprep.subr.bf16.mxu1 %v16399_v58 }
 0xa0c   : > { %15747 = vmatpush3.bf16.msra.mxu1 %v16399_v58 }
 0xa17   : > { %v3720_v30 = vpop.f32.mrf.mxu1 }
 0xa19   : > { %v3722_v54 = vpop.f32.mrf.mxu1 }
 0xa1a   : > { %v16401_v54 = vld [vmem:[#allocation4 + $0x2a0] sm:$0xff]  }
 0xa1b   : > { %v3723_v0 = vpop.f32.mrf.mxu1 }
 0xa1c   : > { %v3751_v56 = vpack.c.bf16 %v3723_v0, %v3720_v30  ;;  %v16400_v30 = vld [vmem:[#allocation4 + $0x2a8] sm:$0xff]   ;;  %v16402_v0 = vld [vmem:[#allocation4 + $0x298] sm:$0xff]  }
 0xa1d   : > { %v3725_v51 = vpop.f32.mrf.mxu1  ;;  %15748 = vmatprep.subr.bf16.mxu1 %v16400_v30 }
 0xa1e   : > { %15736 = vmatprep.mubr.bf16.mxu0 %v3751_v56  ;;  %15749 = vmatpush3.bf16.msra.mxu1 %v16400_v30  ;;  %v16403_v56 = vld [vmem:[#allocation4 + $0x290] sm:$0xff]   ;;  %v16404_v51 = vld [vmem:[#allocation4 + $0x288] sm:$0xff]  }
 0xa1f   : > { %v3728_v11 = vpop.f32.mrf.mxu1  ;;  %15750 = vmatprep.subr.bf16.mxu1 %v16401_v54 }
 0xa21   : > { %v3730_v12 = vpop.f32.mrf.mxu1 }
 0xa22   : > { %15751 = vmatpush3.bf16.msra.mxu1 %v16401_v54 }
 0xa23   : > { %v3731_v43 = vpop.f32.mrf.mxu1  ;;  %15752 = vmatprep.subr.bf16.mxu1 %v16402_v0 }
 0xa24   : > { %v3752_v17 = vpack.c.bf16 %v3731_v43, %v3728_v11  ;;  %v16405_v11 = vld [vmem:[#allocation4 + $0x280] sm:$0xff]  }
 0xa25   : > { %v3733_v20 = vpop.f32.mrf.mxu1 }
 0xa26   : > { %15737 = vmatmul.mubr.bf16.vlgmr.msra.gmra.mxu0 %v3752_v17  ;;  %15753 = vmatpush3.bf16.msra.mxu1 %v16402_v0  ;;  %v16408_v0 = vld [vmem:[#allocation2 + $0x2c4] ss:$8 sps:$4 sm:$0xff]  }
 0xa27   : > { %3951 = vmatpush1.bf16.msra.mxu0 %v18046_v50  ;;  %v3736_v23 = vpop.f32.mrf.mxu1  ;;  %15754 = vmatprep.subr.bf16.mxu1 %v16403_v56 }
 0xa28   : > { %3952 = vmatprep.subr.bf16.mxu0 %v20984_v31 }
 0xa29   : > { %v3738_v24 = vpop.f32.mrf.mxu1 }
 0xa2a   : > { %15755 = vmatpush3.bf16.msra.mxu1 %v16403_v56 }
 0xa2b   : > { %3953 = vmatpush1.bf16.msra.mxu0 %v18036_v61  ;;  %v3739_v18 = vpop.f32.mrf.mxu1  ;;  %15756 = vmatprep.subr.bf16.mxu1 %v16404_v51 }
 0xa2c   : > { %v3753_v60 = vpack.c.bf16 %v3739_v18, %v3736_v23  ;;  %3954 = vmatprep.subr.bf16.mxu0 %v20984_v31 }
 0xa2d   : > { %v3741_v40 = vpop.f32.mrf.mxu1 }
 0xa2e   : > { %15740 = vmatprep.mubr.bf16.mxu0 %v3753_v60  ;;  %15757 = vmatpush3.bf16.msra.mxu1 %v16404_v51 }
 0xa2f   : > { %3955 = vmatpush1.bf16.msra.mxu0 %v18026_v39  ;;  %v3744_v59 = vpop.f32.mrf.mxu1  ;;  %15758 = vmatprep.subr.bf16.mxu1 %v16405_v11 }
 0xa30   : > { %3956 = vmatprep.subr.bf16.mxu0 %v20984_v31 }
 0xa31   : > { %v3746_v5 = vpop.f32.mrf.mxu1 }
 0xa32   : > { %15759 = vmatpush3.bf16.msra.mxu1 %v16405_v11  ;;  %v16406_v11 = vld [vmem:[#allocation2 + $0x2c0] ss:$8 sps:$4 sm:$0xff]  }
 0xa33   : > { %3957 = vmatpush1.bf16.msra.mxu0 %v18016_v29  ;;  %v3747_v22 = vpop.f32.mrf.mxu1  ;;  %4214 = vmatprep.subr.bf16.mxu1 %v20984_v31 }
 0xa34   : > { %v3754_v37 = vpack.c.bf16 %v3747_v22, %v3744_v59  ;;  %3958 = vmatprep.subr.bf16.mxu0 %v20984_v31 }
 0xa35   : > { %v3749_v6 = vpop.f32.mrf.mxu1 }
 0xa36   : > { %15741 = vmatmul.mubr.bf16.gmra.mxu0 %v3754_v37 }
 0xa37   : > { %3959 = vmatpush1.bf16.msra.mxu0 %v18006_v19  ;;  %13565 = vmatprep.mubr.msk.bf16.mxu0 %vm1314_vm1, %v16388_v44 }
 0xa38   : > { %3960 = vmatprep.subr.bf16.mxu0 %v20984_v31 }
 0xa3b   : > { %3961 = vmatpush1.bf16.msra.mxu0 %v17996_v9 }
 0xa3c   : > { %3962 = vmatprep.subr.bf16.mxu0 %v20984_v31 }
 0xa3f   : > { %3963 = vmatpush1.bf16.msra.mxu0 %v17986_v62 }
 0xa40   : > { %3964 = vmatprep.subr.bf16.mxu0 %v20984_v31 }
 0xa43   : > { %3965 = vmatpush1.bf16.msra.mxu0 %v17976_v52 }
 0xa44   : > { %3980 = vmatprep.subr.bf16.mxu0 %v20984_v31 }
 0xa47   : > { %3981 = vmatpush2.bf16.msra.mxu0 %v18061_v42 }
 0xa4a   : > { %3983 = vmatmul.mubr.bf16.vlgmr.msra.gmra.mxu0 %v16386_v16 }
 0xa4b   : > { %13566 = vmatprep.mubr.msk.bf16.mxu0 %vm1314_vm1, %v16389_v45 }
 0xa52   : > { %3991 = vmatmul.mubr.bf16.gmra.mxu0 %v16391_v3 }
 0xa53   : > { %13567 = vmatprep.mubr.msk.bf16.mxu0 %vm1314_vm1, %v16392_v1 }
 0xa5a   : > { %3999 = vmatmul.mubr.bf16.gmra.mxu0 %v16394_v55 }
 0xa5b   : > { %13568 = vmatprep.mubr.msk.bf16.mxu0 %vm1314_vm1, %v16395_v38 }
 0xa62   : > { %4007 = vmatmul.mubr.bf16.gmra.mxu0 %v16397_v7 }
 0xae6   : > { %v15738_v12 = vpop.f32.mrf.mxu0 }
 0xae7   : > { %v18469_v43 = vadd.f32 %v15738_v12, %v18425_v48  ;;  %v16409_v12 = vld [vmem:[#allocation2 + $0x2d4] ss:$8 sps:$4 sm:$0xff]  }
 0xae8   : > { %v3854_v17 = vpop.f32.mrf.mxu0 }
 0xae9   : > { %v18472_v20 = vadd.f32 %v3854_v17, %v18428_v47  ;;  %v16411_v17 = vld [vmem:[#allocation2 + $0x2d0] ss:$8 sps:$4 sm:$0xff]  }
 0xaea   : > { %v15739_v23 = vpop.f32.mrf.mxu0 }
 0xaeb   : > { %v18475_v24 = vadd.f32 %v15739_v23, %v18431_v57  ;;  %v16412_v23 = vld [vmem:[#allocation2 + $0x2e4] ss:$8 sps:$4 sm:$0xff]  }
 0xaec   : > { %v18477_v18 = vpop.f32.mrf.mxu0 }
 0xaf6   : > { %v15742_v60 = vpop.f32.mrf.mxu0 }
 0xaf7   : > { %v18480_v40 = vadd.f32 %v15742_v60, %v18436_v53  ;;  %v16414_v60 = vld [vmem:[#allocation2 + $0x2e0] ss:$8 sps:$4 sm:$0xff]  }
 0xaf8   : > { %v3870_v59 = vpop.f32.mrf.mxu0 }
 0xaf9   : > { %v18483_v5 = vadd.f32 %v3870_v59, %v18439_v10  ;;  %v16415_v59 = vld [vmem:[#allocation2 + $0x2f4] ss:$8 sps:$4 sm:$0xff]  }
 0xafa   : > { %v15743_v48 = vpop.f32.mrf.mxu0 }
 0xafb   : > { %v18486_v22 = vadd.f32 %v15743_v48, %v18442_v25  ;;  %v16417_v48 = vld [vmem:[#allocation2 + $0x2f0] ss:$8 sps:$4 sm:$0xff]  }
 0xafc   : > { %v18488_v47 = vpop.f32.mrf.mxu0 }
 0xb0a   : > { %v3984_v44 = vpop.f32.mrf.mxu0 }
 0xb0c   : > { %v3986_v37 = vpop.f32.mrf.mxu0 }
 0xb0d   : > { %v16419_v37 = vld [vmem:[#allocation4 + $0x2f0] sm:$0xff]  }
 0xb0e   : > { %v3987_v57 = vpop.f32.mrf.mxu0 }
 0xb0f   : > { %v4015_v6 = vpack.c.bf16 %v3987_v57, %v3984_v44  ;;  %v16418_v44 = vld [vmem:[#allocation4 + $0x2f8] sm:$0xff]   ;;  %v16420_v57 = vld [vmem:[#allocation4 + $0x2e8] sm:$0xff]  }
 0xb10   : > { %v3989_v16 = vpop.f32.mrf.mxu0  ;;  %15768 = vmatprep.subr.bf16.mxu0 %v16418_v44 }
 0xb11   : > { %15760 = vmatprep.mubr.bf16.mxu1 %v4015_v6  ;;  %15769 = vmatpush3.bf16.msra.mxu0 %v16418_v44  ;;  %v16421_v6 = vld [vmem:[#allocation4 + $0x2e0] sm:$0xff]   ;;  %v16422_v16 = vld [vmem:[#allocation4 + $0x2d8] sm:$0xff]  }
 0xb12   : > { %v3992_v45 = vpop.f32.mrf.mxu0  ;;  %15770 = vmatprep.subr.bf16.mxu0 %v16419_v37 }
 0xb14   : > { %v3994_v3 = vpop.f32.mrf.mxu0 }
 0xb15   : > { %15771 = vmatpush3.bf16.msra.mxu0 %v16419_v37  ;;  %v16424_v3 = vld [vmem:[#allocation4 + $0x2c8] sm:$0xff]  }
 0xb16   : > { %v3995_v53 = vpop.f32.mrf.mxu0  ;;  %15772 = vmatprep.subr.bf16.mxu0 %v16420_v57 }
 0xb17   : > { %v4016_v1 = vpack.c.bf16 %v3995_v53, %v3992_v45  ;;  %v16423_v45 = vld [vmem:[#allocation4 + $0x2d0] sm:$0xff]   ;;  %v16425_v53 = vld [vmem:[#allocation4 + $0x2c0] sm:$0xff]  }
 0xb18   : > { %v3997_v55 = vpop.f32.mrf.mxu0 }
 0xb19   : > { %15761 = vmatmul.mubr.bf16.vlgmr.msra.gmra.mxu1 %v4016_v1  ;;  %15773 = vmatpush3.bf16.msra.mxu0 %v16420_v57 }
 0xb1a   : > { %4215 = vmatpush1.bf16.msra.mxu1 %v18046_v50  ;;  %v4000_v10 = vpop.f32.mrf.mxu0  ;;  %15774 = vmatprep.subr.bf16.mxu0 %v16421_v6 }
 0xb1b   : > { %4216 = vmatprep.subr.bf16.mxu1 %v20984_v31 }
 0xb1c   : > { %v4002_v25 = vpop.f32.mrf.mxu0 }
 0xb1d   : > { %15775 = vmatpush3.bf16.msra.mxu0 %v16421_v6 }
 0xb1e   : > { %4217 = vmatpush1.bf16.msra.mxu1 %v18036_v61  ;;  %v4003_v38 = vpop.f32.mrf.mxu0  ;;  %15776 = vmatprep.subr.bf16.mxu0 %v16422_v16 }
 0xb1f   : > { %v4017_v7 = vpack.c.bf16 %v4003_v38, %v4000_v10  ;;  %4218 = vmatprep.subr.bf16.mxu1 %v20984_v31 }
 0xb20   : > { %v4005_v13 = vpop.f32.mrf.mxu0 }
 0xb21   : > { %15764 = vmatprep.mubr.bf16.mxu1 %v4017_v7  ;;  %15777 = vmatpush3.bf16.msra.mxu0 %v16422_v16 }
 0xb22   : > { %4219 = vmatpush1.bf16.msra.mxu1 %v18026_v39  ;;  %v4008_v58 = vpop.f32.mrf.mxu0  ;;  %15778 = vmatprep.subr.bf16.mxu0 %v16423_v45 }
 0xb23   : > { %4220 = vmatprep.subr.bf16.mxu1 %v20984_v31 }
 0xb24   : > { %v4010_v30 = vpop.f32.mrf.mxu0 }
 0xb25   : > { %15779 = vmatpush3.bf16.msra.mxu0 %v16423_v45 }
 0xb26   : > { %4221 = vmatpush1.bf16.msra.mxu1 %v18016_v29  ;;  %v4011_v54 = vpop.f32.mrf.mxu0  ;;  %15780 = vmatprep.subr.bf16.mxu0 %v16424_v3 }
 0xb27   : > { %v4018_v56 = vpack.c.bf16 %v4011_v54, %v4008_v58  ;;  %4222 = vmatprep.subr.bf16.mxu1 %v20984_v31 }
 0xb28   : > { %v4013_v51 = vpop.f32.mrf.mxu0 }
 0xb29   : > { %15765 = vmatmul.mubr.bf16.gmra.mxu1 %v4018_v56  ;;  %15781 = vmatpush3.bf16.msra.mxu0 %v16424_v3  ;;  %v16428_v3 = vld [vmem:[#allocation2 + $0x304] ss:$8 sps:$4 sm:$0xff]  }
 0xb2a   : > { %4223 = vmatpush1.bf16.msra.mxu1 %v18006_v19  ;;  %13585 = vmatprep.mubr.msk.bf16.mxu1 %vm1314_vm1, %v16408_v0 }
 0xb2b   : > { %4224 = vmatprep.subr.bf16.mxu1 %v20984_v31  ;;  %15782 = vmatprep.subr.bf16.mxu0 %v16425_v53 }
 0xb2d   : > { %15783 = vmatpush3.bf16.msra.mxu0 %v16425_v53 }
 0xb2e   : > { %4225 = vmatpush1.bf16.msra.mxu1 %v17996_v9  ;;  %4478 = vmatprep.subr.bf16.mxu0 %v20984_v31 }
 0xb2f   : > { %4226 = vmatprep.subr.bf16.mxu1 %v20984_v31 }
 0xb32   : > { %4227 = vmatpush1.bf16.msra.mxu1 %v17986_v62 }
 0xb33   : > { %4228 = vmatprep.subr.bf16.mxu1 %v20984_v31 }
 0xb36   : > { %4229 = vmatpush1.bf16.msra.mxu1 %v17976_v52 }
 0xb37   : > { %4244 = vmatprep.subr.bf16.mxu1 %v20984_v31 }
 0xb3a   : > { %4245 = vmatpush2.bf16.msra.mxu1 %v18061_v42 }
 0xb3d   : > { %4247 = vmatmul.mubr.bf16.vlgmr.msra.gmra.mxu1 %v16406_v11 }
 0xb3e   : > { %13586 = vmatprep.mubr.msk.bf16.mxu1 %vm1314_vm1, %v16409_v12 }
 0xb45   : > { %4255 = vmatmul.mubr.bf16.gmra.mxu1 %v16411_v17 }
 0xb46   : > { %13587 = vmatprep.mubr.msk.bf16.mxu1 %vm1314_vm1, %v16412_v23 }
 0xb4d   : > { %4263 = vmatmul.mubr.bf16.gmra.mxu1 %v16414_v60 }
 0xb4e   : > { %13588 = vmatprep.mubr.msk.bf16.mxu1 %vm1314_vm1, %v16415_v59 }
 0xb55   : > { %4271 = vmatmul.mubr.bf16.gmra.mxu1 %v16417_v48 }
 0xbd9   : > { %v15762_v1 = vpop.f32.mrf.mxu1 }
 0xbda   : > { %v18513_v55 = vadd.f32 %v15762_v1, %v18469_v43 }
 0xbdb   : > { %v4118_v10 = vpop.f32.mrf.mxu1 }
 0xbdc   : > { %v18516_v25 = vadd.f32 %v4118_v10, %v18472_v20  ;;  %v16426_v10 = vld [vmem:[#allocation2 + $0x300] ss:$8 sps:$4 sm:$0xff]  }
 0xbdd   : > { %v15763_v38 = vpop.f32.mrf.mxu1 }
 0xbde   : > { %v18519_v7 = vadd.f32 %v15763_v38, %v18475_v24  ;;  %v16429_v38 = vld [vmem:[#allocation2 + $0x314] ss:$8 sps:$4 sm:$0xff]  }
 0xbdf   : > { %v18521_v13 = vpop.f32.mrf.mxu1 }
 0xbe9   : > { %v15766_v58 = vpop.f32.mrf.mxu1 }
 0xbea   : > { %v18524_v30 = vadd.f32 %v15766_v58, %v18480_v40  ;;  %v16431_v58 = vld [vmem:[#allocation2 + $0x310] ss:$8 sps:$4 sm:$0xff]  }
 0xbeb   : > { %v4134_v54 = vpop.f32.mrf.mxu1 }
 0xbec   : > { %v18527_v0 = vadd.f32 %v4134_v54, %v18483_v5  ;;  %v16432_v54 = vld [vmem:[#allocation2 + $0x324] ss:$8 sps:$4 sm:$0xff]  }
 0xbed   : > { %v15767_v43 = vpop.f32.mrf.mxu1 }
 0xbee   : > { %v18530_v56 = vadd.f32 %v15767_v43, %v18486_v22  ;;  %v16434_v43 = vld [vmem:[#allocation2 + $0x320] ss:$8 sps:$4 sm:$0xff]  }
 0xbef   : > { %v18532_v20 = vpop.f32.mrf.mxu1 }
 0xbfd   : > { %v4248_v51 = vpop.f32.mrf.mxu1 }
 0xbff   : > { %v4250_v11 = vpop.f32.mrf.mxu1 }
 0xc00   : > { %v16437_v11 = vld [vmem:[#allocation2 + $0x330] ss:$8 sps:$4 sm:$0xff]  }
 0xc01   : > { %v4251_v24 = vpop.f32.mrf.mxu1 }
 0xc02   : > { %v4279_v12 = vpack.c.bf16 %v4251_v24, %v4248_v51  ;;  %v16435_v51 = vld [vmem:[#allocation2 + $0x334] ss:$8 sps:$4 sm:$0xff]  }
 0xc03   : > { %v4253_v17 = vpop.f32.mrf.mxu1  ;;  %v16438_v24 = vld [vmem:[#allocation4 + $0x338] sm:$0xff]  }
 0xc04   : > { %15784 = vmatprep.mubr.bf16.mxu0 %v4279_v12  ;;  %15792 = vmatprep.subr.bf16.mxu1 %v16438_v24  ;;  %v16439_v12 = vld [vmem:[#allocation4 + $0x330] sm:$0xff]   ;;  %v16440_v17 = vld [vmem:[#allocation4 + $0x328] sm:$0xff]  }
 0xc05   : > { %v4256_v23 = vpop.f32.mrf.mxu1  ;;  %15793 = vmatpush3.bf16.msra.mxu1 %v16438_v24 }
 0xc06   : > { %15794 = vmatprep.subr.bf16.mxu1 %v16439_v12 }
 0xc07   : > { %v4258_v60 = vpop.f32.mrf.mxu1 }
 0xc08   : > { %v16442_v60 = vld [vmem:[#allocation4 + $0x318] sm:$0xff]  }
 0xc09   : > { %v4259_v40 = vpop.f32.mrf.mxu1  ;;  %15795 = vmatpush3.bf16.msra.mxu1 %v16439_v12 }
 0xc0a   : > { %v4280_v59 = vpack.c.bf16 %v4259_v40, %v4256_v23  ;;  %v16441_v23 = vld [vmem:[#allocation4 + $0x320] sm:$0xff]   ;;  %15796 = vmatprep.subr.bf16.mxu1 %v16440_v17  ;;  %v16443_v40 = vld [vmem:[#allocation4 + $0x310] sm:$0xff]  }
 0xc0b   : > { %v4261_v48 = vpop.f32.mrf.mxu1 }
 0xc0c   : > { %15785 = vmatmul.mubr.bf16.vlgmr.msra.gmra.mxu0 %v4280_v59  ;;  %v16444_v59 = vld [vmem:[#allocation4 + $0x308] sm:$0xff]   ;;  %v16445_v48 = vld [vmem:[#allocation4 + $0x300] sm:$0xff]  }
 0xc0d   : > { %4479 = vmatpush1.bf16.msra.mxu0 %v18046_v50  ;;  %v4264_v5 = vpop.f32.mrf.mxu1  ;;  %15797 = vmatpush3.bf16.msra.mxu1 %v16440_v17 }
 0xc0e   : > { %4480 = vmatprep.subr.bf16.mxu0 %v20984_v31  ;;  %15798 = vmatprep.subr.bf16.mxu1 %v16441_v23 }
 0xc0f   : > { %v4266_v22 = vpop.f32.mrf.mxu1 }
 0xc11   : > { %4481 = vmatpush1.bf16.msra.mxu0 %v18036_v61  ;;  %v4267_v44 = vpop.f32.mrf.mxu1  ;;  %15799 = vmatpush3.bf16.msra.mxu1 %v16441_v23 }
 0xc12   : > { %v4281_v37 = vpack.c.bf16 %v4267_v44, %v4264_v5  ;;  %4482 = vmatprep.subr.bf16.mxu0 %v20984_v31  ;;  %15800 = vmatprep.subr.bf16.mxu1 %v16442_v60 }
 0xc13   : > { %v4269_v57 = vpop.f32.mrf.mxu1 }
 0xc14   : > { %15788 = vmatprep.mubr.bf16.mxu0 %v4281_v37 }
 0xc15   : > { %4483 = vmatpush1.bf16.msra.mxu0 %v18026_v39  ;;  %v4272_v6 = vpop.f32.mrf.mxu1  ;;  %15801 = vmatpush3.bf16.msra.mxu1 %v16442_v60 }
 0xc16   : > { %4484 = vmatprep.subr.bf16.mxu0 %v20984_v31  ;;  %15802 = vmatprep.subr.bf16.mxu1 %v16443_v40 }
 0xc17   : > { %v4274_v16 = vpop.f32.mrf.mxu1 }
 0xc19   : > { %4485 = vmatpush1.bf16.msra.mxu0 %v18016_v29  ;;  %v4275_v45 = vpop.f32.mrf.mxu1  ;;  %15803 = vmatpush3.bf16.msra.mxu1 %v16443_v40 }
 0xc1a   : > { %v4282_v53 = vpack.c.bf16 %v4275_v45, %v4272_v6  ;;  %4486 = vmatprep.subr.bf16.mxu0 %v20984_v31  ;;  %15804 = vmatprep.subr.bf16.mxu1 %v16444_v59 }
 0xc1b   : > { %v4277_v1 = vpop.f32.mrf.mxu1 }
 0xc1c   : > { %15789 = vmatmul.mubr.bf16.gmra.mxu0 %v4282_v53 }
 0xc1d   : > { %4487 = vmatpush1.bf16.msra.mxu0 %v18006_v19  ;;  %13605 = vmatprep.mubr.msk.bf16.mxu0 %vm1314_vm1, %v16428_v3 }
 0xc1e   : > { %4488 = vmatprep.subr.bf16.mxu0 %v20984_v31  ;;  %15805 = vmatpush3.bf16.msra.mxu1 %v16444_v59 }
 0xc1f   : > { %15806 = vmatprep.subr.bf16.mxu1 %v16445_v48 }
 0xc21   : > { %4489 = vmatpush1.bf16.msra.mxu0 %v17996_v9 }
 0xc22   : > { %4490 = vmatprep.subr.bf16.mxu0 %v20984_v31  ;;  %15807 = vmatpush3.bf16.msra.mxu1 %v16445_v48 }
 0xc23   : > { %4742 = vmatprep.subr.bf16.mxu1 %v20984_v31 }
 0xc25   : > { %4491 = vmatpush1.bf16.msra.mxu0 %v17986_v62 }
 0xc26   : > { %4492 = vmatprep.subr.bf16.mxu0 %v20984_v31 }
 0xc29   : > { %4493 = vmatpush1.bf16.msra.mxu0 %v17976_v52 }
 0xc2a   : > { %4508 = vmatprep.subr.bf16.mxu0 %v20984_v31 }
 0xc2d   : > { %4509 = vmatpush2.bf16.msra.mxu0 %v18061_v42 }
 0xc30   : > { %4511 = vmatmul.mubr.bf16.vlgmr.msra.gmra.mxu0 %v16426_v10 }
 0xc31   : > { %13606 = vmatprep.mubr.msk.bf16.mxu0 %vm1314_vm1, %v16429_v38 }
 0xc38   : > { %4519 = vmatmul.mubr.bf16.gmra.mxu0 %v16431_v58 }
 0xc39   : > { %13607 = vmatprep.mubr.msk.bf16.mxu0 %vm1314_vm1, %v16432_v54 }
 0xc40   : > { %4527 = vmatmul.mubr.bf16.gmra.mxu0 %v16434_v43 }
 0xc41   : > { %13608 = vmatprep.mubr.msk.bf16.mxu0 %vm1314_vm1, %v16435_v51 }
 0xc48   : > { %4535 = vmatmul.mubr.bf16.gmra.mxu0 %v16437_v11 }
 0xccc   : > { %v15786_v5 = vpop.f32.mrf.mxu0 }
 0xccd   : > { %v18557_v22 = vadd.f32 %v15786_v5, %v18513_v55  ;;  %v16448_v5 = vld [vmem:[#allocation2 + $0x344] ss:$8 sps:$4 sm:$0xff]  }
 0xcce   : > { %v4382_v44 = vpop.f32.mrf.mxu0 }
 0xccf   : > { %v18560_v37 = vadd.f32 %v4382_v44, %v18516_v25 }
 0xcd0   : > { %v15787_v57 = vpop.f32.mrf.mxu0 }
 0xcd1   : > { %v18563_v6 = vadd.f32 %v15787_v57, %v18519_v7 }
 0xcd2   : > { %v18565_v16 = vpop.f32.mrf.mxu0 }
 0xcdc   : > { %v15790_v45 = vpop.f32.mrf.mxu0 }
 0xcdd   : > { %v18568_v3 = vadd.f32 %v15790_v45, %v18524_v30  ;;  %v16446_v45 = vld [vmem:[#allocation2 + $0x340] ss:$8 sps:$4 sm:$0xff]  }
 0xcde   : > { %v4398_v53 = vpop.f32.mrf.mxu0 }
 0xcdf   : > { %v18571_v1 = vadd.f32 %v4398_v53, %v18527_v0  ;;  %v16449_v53 = vld [vmem:[#allocation2 + $0x354] ss:$8 sps:$4 sm:$0xff]  }
 0xce0   : > { %v15791_v55 = vpop.f32.mrf.mxu0 }
 0xce1   : > { %v18574_v10 = vadd.f32 %v15791_v55, %v18530_v56  ;;  %v16451_v55 = vld [vmem:[#allocation2 + $0x350] ss:$8 sps:$4 sm:$0xff]  }
 0xce2   : > { %v18576_v25 = vpop.f32.mrf.mxu0 }
 0xcf0   : > { %v4512_v38 = vpop.f32.mrf.mxu0 }
 0xcf2   : > { %v4514_v58 = vpop.f32.mrf.mxu0 }
 0xcf3   : > { %v16454_v58 = vld [vmem:[#allocation2 + $0x360] ss:$8 sps:$4 sm:$0xff]  }
 0xcf4   : > { %v4515_v7 = vpop.f32.mrf.mxu0 }
 0xcf5   : > { %v4543_v54 = vpack.c.bf16 %v4515_v7, %v4512_v38  ;;  %v16452_v38 = vld [vmem:[#allocation2 + $0x364] ss:$8 sps:$4 sm:$0xff]   ;;  %v16455_v7 = vld [vmem:[#allocation2 + $0x374] ss:$8 sps:$4 sm:$0xff]  }
 0xcf6   : > { %v4517_v43 = vpop.f32.mrf.mxu0 }
 0xcf7   : > { %15808 = vmatprep.mubr.bf16.mxu1 %v4543_v54  ;;  %v16457_v54 = vld [vmem:[#allocation2 + $0x370] ss:$8 sps:$4 sm:$0xff]  }
 0xcf8   : > { %v4520_v51 = vpop.f32.mrf.mxu0  ;;  %v16458_v43 = vld [vmem:[#allocation4 + $0x378] sm:$0xff]  }
 0xcf9   : > { %15816 = vmatprep.subr.bf16.mxu0 %v16458_v43 }
 0xcfa   : > { %v4522_v11 = vpop.f32.mrf.mxu0  ;;  %15817 = vmatpush3.bf16.msra.mxu0 %v16458_v43 }
 0xcfb   : > { %v16460_v11 = vld [vmem:[#allocation4 + $0x368] sm:$0xff]  }
 0xcfc   : > { %v4523_v30 = vpop.f32.mrf.mxu0 }
 0xcfd   : > { %v4544_v24 = vpack.c.bf16 %v4523_v30, %v4520_v51  ;;  %v16459_v51 = vld [vmem:[#allocation4 + $0x370] sm:$0xff]   ;;  %v16461_v30 = vld [vmem:[#allocation4 + $0x360] sm:$0xff]  }
 0xcfe   : > { %v4525_v12 = vpop.f32.mrf.mxu0  ;;  %15818 = vmatprep.subr.bf16.mxu0 %v16459_v51 }
 0xcff   : > { %15809 = vmatmul.mubr.bf16.vlgmr.msra.gmra.mxu1 %v4544_v24  ;;  %15819 = vmatpush3.bf16.msra.mxu0 %v16459_v51  ;;  %v16462_v24 = vld [vmem:[#allocation4 + $0x358] sm:$0xff]   ;;  %v16463_v12 = vld [vmem:[#allocation4 + $0x350] sm:$0xff]  }
 0xd00   : > { %4743 = vmatpush1.bf16.msra.mxu1 %v18046_v50  ;;  %v4528_v0 = vpop.f32.mrf.mxu0  ;;  %15820 = vmatprep.subr.bf16.mxu0 %v16460_v11 }
 0xd01   : > { %4744 = vmatprep.subr.bf16.mxu1 %v20984_v31 }
 0xd02   : > { %v4530_v56 = vpop.f32.mrf.mxu0 }
 0xd03   : > { %15821 = vmatpush3.bf16.msra.mxu0 %v16460_v11  ;;  %v16465_v56 = vld [vmem:[#allocation4 + $0x340] sm:$0xff]  }
 0xd04   : > { %4745 = vmatpush1.bf16.msra.mxu1 %v18036_v61  ;;  %v4531_v17 = vpop.f32.mrf.mxu0  ;;  %15822 = vmatprep.subr.bf16.mxu0 %v16461_v30 }
 0xd05   : > { %v4545_v23 = vpack.c.bf16 %v4531_v17, %v4528_v0  ;;  %4746 = vmatprep.subr.bf16.mxu1 %v20984_v31  ;;  %v16464_v0 = vld [vmem:[#allocation4 + $0x348] sm:$0xff]  }
 0xd06   : > { %v4533_v60 = vpop.f32.mrf.mxu0 }
 0xd07   : > { %15812 = vmatprep.mubr.bf16.mxu1 %v4545_v23  ;;  %15823 = vmatpush3.bf16.msra.mxu0 %v16461_v30 }
 0xd08   : > { %4747 = vmatpush1.bf16.msra.mxu1 %v18026_v39  ;;  %v4536_v40 = vpop.f32.mrf.mxu0  ;;  %15824 = vmatprep.subr.bf16.mxu0 %v16462_v24 }
 0xd09   : > { %4748 = vmatprep.subr.bf16.mxu1 %v20984_v31 }
 0xd0a   : > { %v4538_v59 = vpop.f32.mrf.mxu0 }
 0xd0b   : > { %15825 = vmatpush3.bf16.msra.mxu0 %v16462_v24 }
 0xd0c   : > { %4749 = vmatpush1.bf16.msra.mxu1 %v18016_v29  ;;  %v4539_v48 = vpop.f32.mrf.mxu0  ;;  %15826 = vmatprep.subr.bf16.mxu0 %v16463_v12 }
 0xd0d   : > { %v4546_v44 = vpack.c.bf16 %v4539_v48, %v4536_v40  ;;  %4750 = vmatprep.subr.bf16.mxu1 %v20984_v31 }
 0xd0e   : > { %v4541_v57 = vpop.f32.mrf.mxu0 }
 0xd0f   : > { %15813 = vmatmul.mubr.bf16.gmra.mxu1 %v4546_v44  ;;  %15827 = vmatpush3.bf16.msra.mxu0 %v16463_v12 }
 0xd10   : > { %4751 = vmatpush1.bf16.msra.mxu1 %v18006_v19  ;;  %13625 = vmatprep.mubr.msk.bf16.mxu1 %vm1314_vm1, %v16448_v5 }
 0xd11   : > { %4752 = vmatprep.subr.bf16.mxu1 %v20984_v31  ;;  %15828 = vmatprep.subr.bf16.mxu0 %v16464_v0 }
 0xd13   : > { %15829 = vmatpush3.bf16.msra.mxu0 %v16464_v0 }
 0xd14   : > { %4753 = vmatpush1.bf16.msra.mxu1 %v17996_v9  ;;  %15830 = vmatprep.subr.bf16.mxu0 %v16465_v56 }
 0xd15   : > { %4754 = vmatprep.subr.bf16.mxu1 %v20984_v31 }
 0xd17   : > { %15831 = vmatpush3.bf16.msra.mxu0 %v16465_v56 }
 0xd18   : > { %4755 = vmatpush1.bf16.msra.mxu1 %v17986_v62  ;;  %5006 = vmatprep.subr.bf16.mxu0 %v20984_v31 }
 0xd19   : > { %4756 = vmatprep.subr.bf16.mxu1 %v20984_v31 }
 0xd1c   : > { %4757 = vmatpush1.bf16.msra.mxu1 %v17976_v52 }
 0xd1d   : > { %4772 = vmatprep.subr.bf16.mxu1 %v20984_v31 }
 0xd20   : > { %4773 = vmatpush2.bf16.msra.mxu1 %v18061_v42 }
 0xd23   : > { %4775 = vmatmul.mubr.bf16.vlgmr.msra.gmra.mxu1 %v16446_v45 }
 0xd24   : > { %13626 = vmatprep.mubr.msk.bf16.mxu1 %vm1314_vm1, %v16449_v53 }
 0xd2b   : > { %4783 = vmatmul.mubr.bf16.gmra.mxu1 %v16451_v55 }
 0xd2c   : > { %13627 = vmatprep.mubr.msk.bf16.mxu1 %vm1314_vm1, %v16452_v38 }
 0xd33   : > { %4791 = vmatmul.mubr.bf16.gmra.mxu1 %v16454_v58 }
 0xd34   : > { %13628 = vmatprep.mubr.msk.bf16.mxu1 %vm1314_vm1, %v16455_v7 }
 0xd3b   : > { %4799 = vmatmul.mubr.bf16.gmra.mxu1 %v16457_v54 }
 0xdbf   : > { %v15810_v17 = vpop.f32.mrf.mxu1 }
 0xdc0   : > { %v18601_v23 = vadd.f32 %v15810_v17, %v18557_v22 }
 0xdc1   : > { %v4646_v60 = vpop.f32.mrf.mxu1 }
 0xdc2   : > { %v18604_v40 = vadd.f32 %v4646_v60, %v18560_v37 }
 0xdc3   : > { %v15811_v59 = vpop.f32.mrf.mxu1 }
 0xdc4   : > { %v18607_v48 = vadd.f32 %v15811_v59, %v18563_v6  ;;  %v16468_v59 = vld [vmem:[#allocation2 + $0x384] ss:$8 sps:$4 sm:$0xff]  }
 0xdc5   : > { %v18609_v5 = vpop.f32.mrf.mxu1 }
 0xdc6   : > { %20985 = vst [vmem:[#allocation8_spill] sm:$0xff] %v18609_v5 }
 0xdcf   : > { %v15814_v44 = vpop.f32.mrf.mxu1 }
 0xdd0   : > { %v18612_v57 = vadd.f32 %v15814_v44, %v18568_v3 }
 0xdd1   : > { %v4662_v45 = vpop.f32.mrf.mxu1 }
 0xdd2   : > { %v18615_v53 = vadd.f32 %v4662_v45, %v18571_v1 }
 0xdd3   : > { %v15815_v22 = vpop.f32.mrf.mxu1 }
 0xdd4   : > { %v18618_v55 = vadd.f32 %v15815_v22, %v18574_v10  ;;  %v16466_v22 = vld [vmem:[#allocation2 + $0x380] ss:$8 sps:$4 sm:$0xff]  }
 0xdd5   : > { %v18620_v37 = vpop.f32.mrf.mxu1 }
 0xde3   : > { %v4776_v38 = vpop.f32.mrf.mxu1 }
 0xde5   : > { %v4778_v58 = vpop.f32.mrf.mxu1 }
 0xde6   : > { %v16471_v58 = vld [vmem:[#allocation2 + $0x390] ss:$8 sps:$4 sm:$0xff]  }
 0xde7   : > { %v4779_v6 = vpop.f32.mrf.mxu1 }
 0xde8   : > { %v4807_v7 = vpack.c.bf16 %v4779_v6, %v4776_v38  ;;  %v16469_v38 = vld [vmem:[#allocation2 + $0x394] ss:$8 sps:$4 sm:$0xff]   ;;  %v16472_v6 = vld [vmem:[#allocation2 + $0x3a4] ss:$8 sps:$4 sm:$0xff]  }
 0xde9   : > { %v4781_v54 = vpop.f32.mrf.mxu1 }
 0xdea   : > { %15832 = vmatprep.mubr.bf16.mxu0 %v4807_v7  ;;  %v16474_v7 = vld [vmem:[#allocation2 + $0x3a0] ss:$8 sps:$4 sm:$0xff]   ;;  %v16475_v54 = vld [vmem:[#allocation2 + $0x3b4] ss:$8 sps:$4 sm:$0xff]  }
 0xdeb   : > { %v4784_v43 = vpop.f32.mrf.mxu1 }
 0xded   : > { %v4786_v51 = vpop.f32.mrf.mxu1 }
 0xdee   : > { %v16478_v51 = vld [vmem:[#allocation4 + $0x3b8] sm:$0xff]  }
 0xdef   : > { %v4787_v3 = vpop.f32.mrf.mxu1  ;;  %15840 = vmatprep.subr.bf16.mxu1 %v16478_v51 }
 0xdf0   : > { %v4808_v11 = vpack.c.bf16 %v4787_v3, %v4784_v43  ;;  %v16477_v43 = vld [vmem:[#allocation2 + $0x3b0] ss:$8 sps:$4 sm:$0xff]   ;;  %15841 = vmatpush3.bf16.msra.mxu1 %v16478_v51 }
 0xdf1   : > { %v4789_v30 = vpop.f32.mrf.mxu1  ;;  %v16479_v3 = vld [vmem:[#allocation4 + $0x3b0] sm:$0xff]  }
 0xdf2   : > { %15833 = vmatmul.mubr.bf16.vlgmr.msra.gmra.mxu0 %v4808_v11  ;;  %15842 = vmatprep.subr.bf16.mxu1 %v16479_v3  ;;  %v16480_v11 = vld [vmem:[#allocation4 + $0x3a8] sm:$0xff]   ;;  %v16481_v30 = vld [vmem:[#allocation4 + $0x3a0] sm:$0xff]  }
 0xdf3   : > { %5007 = vmatpush1.bf16.msra.mxu0 %v18046_v50  ;;  %v4792_v1 = vpop.f32.mrf.mxu1 }
 0xdf4   : > { %5008 = vmatprep.subr.bf16.mxu0 %v20984_v31  ;;  %15843 = vmatpush3.bf16.msra.mxu1 %v16479_v3 }
 0xdf5   : > { %v4794_v10 = vpop.f32.mrf.mxu1  ;;  %15844 = vmatprep.subr.bf16.mxu1 %v16480_v11 }
 0xdf6   : > { %v16483_v10 = vld [vmem:[#allocation4 + $0x390] sm:$0xff]  }
 0xdf7   : > { %5009 = vmatpush1.bf16.msra.mxu0 %v18036_v61  ;;  %v4795_v24 = vpop.f32.mrf.mxu1 }
 0xdf8   : > { %v4809_v12 = vpack.c.bf16 %v4795_v24, %v4792_v1  ;;  %5010 = vmatprep.subr.bf16.mxu0 %v20984_v31  ;;  %15845 = vmatpush3.bf16.msra.mxu1 %v16480_v11  ;;  %v16482_v1 = vld [vmem:[#allocation4 + $0x398] sm:$0xff]   ;;  %v16484_v24 = vld [vmem:[#allocation4 + $0x388] sm:$0xff]  }
 0xdf9   : > { %v4797_v0 = vpop.f32.mrf.mxu1  ;;  %15846 = vmatprep.subr.bf16.mxu1 %v16481_v30 }
 0xdfa   : > { %15836 = vmatprep.mubr.bf16.mxu0 %v4809_v12  ;;  %v16485_v12 = vld [vmem:[#allocation4 + $0x380] sm:$0xff]  }
 0xdfb   : > { %5011 = vmatpush1.bf16.msra.mxu0 %v18026_v39  ;;  %v4800_v56 = vpop.f32.mrf.mxu1 }
 0xdfc   : > { %5012 = vmatprep.subr.bf16.mxu0 %v20984_v31  ;;  %15847 = vmatpush3.bf16.msra.mxu1 %v16481_v30 }
 0xdfd   : > { %v4802_v17 = vpop.f32.mrf.mxu1  ;;  %15848 = vmatprep.subr.bf16.mxu1 %v16482_v1 }
 0xdff   : > { %5013 = vmatpush1.bf16.msra.mxu0 %v18016_v29  ;;  %v4803_v60 = vpop.f32.mrf.mxu1 }
 0xe00   : > { %v4810_v44 = vpack.c.bf16 %v4803_v60, %v4800_v56  ;;  %5014 = vmatprep.subr.bf16.mxu0 %v20984_v31  ;;  %15849 = vmatpush3.bf16.msra.mxu1 %v16482_v1 }
 0xe01   : > { %v4805_v45 = vpop.f32.mrf.mxu1  ;;  %15850 = vmatprep.subr.bf16.mxu1 %v16483_v10 }
 0xe02   : > { %15837 = vmatmul.mubr.bf16.gmra.mxu0 %v4810_v44 }
 0xe03   : > { %5015 = vmatpush1.bf16.msra.mxu0 %v18006_v19  ;;  %13645 = vmatprep.mubr.msk.bf16.mxu0 %vm1314_vm1, %v16468_v59 }
 0xe04   : > { %5016 = vmatprep.subr.bf16.mxu0 %v20984_v31  ;;  %15851 = vmatpush3.bf16.msra.mxu1 %v16483_v10 }
 0xe05   : > { %15852 = vmatprep.subr.bf16.mxu1 %v16484_v24 }
 0xe07   : > { %5017 = vmatpush1.bf16.msra.mxu0 %v17996_v9 }
 0xe08   : > { %5018 = vmatprep.subr.bf16.mxu0 %v20984_v31  ;;  %15853 = vmatpush3.bf16.msra.mxu1 %v16484_v24 }
 0xe09   : > { %15854 = vmatprep.subr.bf16.mxu1 %v16485_v12 }
 0xe0b   : > { %5019 = vmatpush1.bf16.msra.mxu0 %v17986_v62 }
 0xe0c   : > { %5020 = vmatprep.subr.bf16.mxu0 %v20984_v31  ;;  %15855 = vmatpush3.bf16.msra.mxu1 %v16485_v12 }
 0xe0d   : > { %5270 = vmatprep.subr.bf16.mxu1 %v20984_v31 }
 0xe0f   : > { %5021 = vmatpush1.bf16.msra.mxu0 %v17976_v52 }
 0xe10   : > { %5036 = vmatprep.subr.bf16.mxu0 %v20984_v31 }
 0xe13   : > { %5037 = vmatpush2.bf16.msra.mxu0 %v18061_v42 }
 0xe16   : > { %5039 = vmatmul.mubr.bf16.vlgmr.msra.gmra.mxu0 %v16466_v22 }
 0xe17   : > { %13646 = vmatprep.mubr.msk.bf16.mxu0 %vm1314_vm1, %v16469_v38 }
 0xe1e   : > { %5047 = vmatmul.mubr.bf16.gmra.mxu0 %v16471_v58 }
 0xe1f   : > { %13647 = vmatprep.mubr.msk.bf16.mxu0 %vm1314_vm1, %v16472_v6 }
 0xe26   : > { %5055 = vmatmul.mubr.bf16.gmra.mxu0 %v16474_v7 }
 0xe27   : > { %13648 = vmatprep.mubr.msk.bf16.mxu0 %vm1314_vm1, %v16475_v54 }
 0xe2e   : > { %5063 = vmatmul.mubr.bf16.gmra.mxu0 %v16477_v43 }
 0xeb2   : > { %v15834_v0 = vpop.f32.mrf.mxu0 }
 0xeb3   : > { %v18645_v56 = vadd.f32 %v15834_v0, %v18601_v23 }
 0xeb4   : > { %v4910_v17 = vpop.f32.mrf.mxu0 }
 0xeb5   : > { %v18648_v60 = vadd.f32 %v4910_v17, %v18604_v40 }
 0xeb6   : > { %v15835_v59 = vpop.f32.mrf.mxu0 }
 0xeb7   : > { %v18651_v44 = vadd.f32 %v15835_v59, %v18607_v48 }
 0xeb8   : > { %v18653_v45 = vpop.f32.mrf.mxu0 }
 0xeb9   : > { %20986 = vst [vmem:[#allocation9_spill] sm:$0xff] %v18653_v45 }
 0xec2   : > { %v15838_v22 = vpop.f32.mrf.mxu0 }
 0xec3   : > { %v18656_v38 = vadd.f32 %v15838_v22, %v18612_v57 }
 0xec4   : > { %v4926_v58 = vpop.f32.mrf.mxu0 }
 0xec5   : > { %v18659_v6 = vadd.f32 %v4926_v58, %v18615_v53  ;;  %v16488_v58 = vld [vmem:[#allocation2 + $0x3c4] ss:$8 sps:$4 sm:$0xff]  }
 0xec6   : > { %v15839_v23 = vpop.f32.mrf.mxu0 }
 0xec7   : > { %v18662_v7 = vadd.f32 %v15839_v23, %v18618_v55 }
 0xec8   : > { %v18664_v40 = vpop.f32.mrf.mxu0 }
 0xed6   : > { %v5040_v54 = vpop.f32.mrf.mxu0 }
 0xed8   : > { %v5042_v43 = vpop.f32.mrf.mxu0 }
 0xed9   : > { %v16486_v43 = vld [vmem:[#allocation2 + $0x3c0] ss:$8 sps:$4 sm:$0xff]  }
 0xeda   : > { %v5043_v48 = vpop.f32.mrf.mxu0 }
 0xedb   : > { %v5071_v51 = vpack.c.bf16 %v5043_v48, %v5040_v54  ;;  %v16489_v48 = vld [vmem:[#allocation2 + $0x3d4] ss:$8 sps:$4 sm:$0xff]  }
 0xedc   : > { %v5045_v3 = vpop.f32.mrf.mxu0 }
 0xedd   : > { %15856 = vmatprep.mubr.bf16.mxu1 %v5071_v51  ;;  %v16491_v51 = vld [vmem:[#allocation2 + $0x3d0] ss:$8 sps:$4 sm:$0xff]   ;;  %v16492_v3 = vld [vmem:[#allocation2 + $0x3e4] ss:$8 sps:$4 sm:$0xff]  }
 0xede   : > { %v5048_v11 = vpop.f32.mrf.mxu0 }
 0xee0   : > { %v5050_v30 = vpop.f32.mrf.mxu0 }
 0xee1   : > { %v16495_v30 = vld [vmem:[#allocation2 + $0x3f4] ss:$8 sps:$4 sm:$0xff]  }
 0xee2   : > { %v5051_v57 = vpop.f32.mrf.mxu0 }
 0xee3   : > { %v5072_v1 = vpack.c.bf16 %v5051_v57, %v5048_v11  ;;  %v16494_v11 = vld [vmem:[#allocation2 + $0x3e0] ss:$8 sps:$4 sm:$0xff]   ;;  %v16497_v57 = vld [vmem:[#allocation2 + $0x3f0] ss:$8 sps:$4 sm:$0xff]  }
 0xee4   : > { %v5053_v10 = vpop.f32.mrf.mxu0 }
 0xee5   : > { %15857 = vmatmul.mubr.bf16.vlgmr.msra.gmra.mxu1 %v5072_v1  ;;  %v16498_v1 = vld [vmem:[#allocation4 + $0x3f8] sm:$0xff]   ;;  %v16499_v10 = vld [vmem:[#allocation4 + $0x3f0] sm:$0xff]  }
 0xee6   : > { %5271 = vmatpush1.bf16.msra.mxu1 %v18046_v50  ;;  %v5056_v53 = vpop.f32.mrf.mxu0  ;;  %15864 = vmatprep.subr.bf16.mxu0 %v16498_v1 }
 0xee7   : > { %5272 = vmatprep.subr.bf16.mxu1 %v20984_v31  ;;  %15865 = vmatpush3.bf16.msra.mxu0 %v16498_v1 }
 0xee8   : > { %v5058_v55 = vpop.f32.mrf.mxu0  ;;  %15866 = vmatprep.subr.bf16.mxu0 %v16499_v10 }
 0xee9   : > { %v16501_v55 = vld [vmem:[#allocation4 + $0x3e0] sm:$0xff]  }
 0xeea   : > { %5273 = vmatpush1.bf16.msra.mxu1 %v18036_v61  ;;  %v5059_v24 = vpop.f32.mrf.mxu0 }
 0xeeb   : > { %v5073_v12 = vpack.c.bf16 %v5059_v24, %v5056_v53  ;;  %5274 = vmatprep.subr.bf16.mxu1 %v20984_v31  ;;  %15867 = vmatpush3.bf16.msra.mxu0 %v16499_v10  ;;  %v16500_v53 = vld [vmem:[#allocation4 + $0x3e8] sm:$0xff]   ;;  %v16502_v24 = vld [vmem:[#allocation4 + $0x3d8] sm:$0xff]  }
 0xeec   : > { %v5061_v0 = vpop.f32.mrf.mxu0  ;;  %15868 = vmatprep.subr.bf16.mxu0 %v16500_v53 }
 0xeed   : > { %15860 = vmatprep.mubr.bf16.mxu1 %v5073_v12  ;;  %v16503_v12 = vld [vmem:[#allocation4 + $0x3d0] sm:$0xff]   ;;  %v16504_v0 = vld [vmem:[#allocation4 + $0x3c8] sm:$0xff]  }
 0xeee   : > { %5275 = vmatpush1.bf16.msra.mxu1 %v18026_v39  ;;  %v5064_v17 = vpop.f32.mrf.mxu0 }
 0xeef   : > { %5276 = vmatprep.subr.bf16.mxu1 %v20984_v31  ;;  %15869 = vmatpush3.bf16.msra.mxu0 %v16500_v53 }
 0xef0   : > { %v5066_v59 = vpop.f32.mrf.mxu0  ;;  %15870 = vmatprep.subr.bf16.mxu0 %v16501_v55 }
 0xef2   : > { %5277 = vmatpush1.bf16.msra.mxu1 %v18016_v29  ;;  %v5067_v22 = vpop.f32.mrf.mxu0 }
 0xef3   : > { %v5074_v23 = vpack.c.bf16 %v5067_v22, %v5064_v17  ;;  %5278 = vmatprep.subr.bf16.mxu1 %v20984_v31  ;;  %15871 = vmatpush3.bf16.msra.mxu0 %v16501_v55  ;;  %v16505_v17 = vld [vmem:[#allocation4 + $0x3c0] sm:$0xff]  }
 0xef4   : > { %v5069_v54 = vpop.f32.mrf.mxu0  ;;  %15872 = vmatprep.subr.bf16.mxu0 %v16502_v24 }
 0xef5   : > { %15861 = vmatmul.mubr.bf16.gmra.mxu1 %v5074_v23 }
 0xef6   : > { %5279 = vmatpush1.bf16.msra.mxu1 %v18006_v19  ;;  %13665 = vmatprep.mubr.msk.bf16.mxu1 %vm1314_vm1, %v16488_v58 }
 0xef7   : > { %5280 = vmatprep.subr.bf16.mxu1 %v20984_v31  ;;  %15873 = vmatpush3.bf16.msra.mxu0 %v16502_v24 }
 0xef8   : > { %15874 = vmatprep.subr.bf16.mxu0 %v16503_v12 }
 0xefa   : > { %5281 = vmatpush1.bf16.msra.mxu1 %v17996_v9 }
 0xefb   : > { %5282 = vmatprep.subr.bf16.mxu1 %v20984_v31  ;;  %15875 = vmatpush3.bf16.msra.mxu0 %v16503_v12 }
 0xefc   : > { %15876 = vmatprep.subr.bf16.mxu0 %v16504_v0 }
 0xefe   : > { %5283 = vmatpush1.bf16.msra.mxu1 %v17986_v62 }
 0xeff   : > { %5284 = vmatprep.subr.bf16.mxu1 %v20984_v31  ;;  %15877 = vmatpush3.bf16.msra.mxu0 %v16504_v0 }
 0xf00   : > { %15878 = vmatprep.subr.bf16.mxu0 %v16505_v17 }
 0xf02   : > { %5285 = vmatpush1.bf16.msra.mxu1 %v17976_v52 }
 0xf03   : > { %5300 = vmatprep.subr.bf16.mxu1 %v20984_v31  ;;  %15879 = vmatpush3.bf16.msra.mxu0 %v16505_v17 }
 0xf04   : > { %5534 = vmatprep.subr.bf16.mxu0 %v20984_v31 }
 0xf06   : > { %5301 = vmatpush2.bf16.msra.mxu1 %v18061_v42 }
 0xf09   : > { %5303 = vmatmul.mubr.bf16.vlgmr.msra.gmra.mxu1 %v16486_v43 }
 0xf0a   : > { %13666 = vmatprep.mubr.msk.bf16.mxu1 %vm1314_vm1, %v16489_v48 }
 0xf11   : > { %5311 = vmatmul.mubr.bf16.gmra.mxu1 %v16491_v51 }
 0xf12   : > { %13667 = vmatprep.mubr.msk.bf16.mxu1 %vm1314_vm1, %v16492_v3 }
 0xf19   : > { %5319 = vmatmul.mubr.bf16.gmra.mxu1 %v16494_v11 }
 0xf1a   : > { %13668 = vmatprep.mubr.msk.bf16.mxu1 %vm1314_vm1, %v16495_v30 }
 0xf21   : > { %5327 = vmatmul.mubr.bf16.gmra.mxu1 %v16497_v57 }
 0xfa5   : > { %v15858_v59 = vpop.f32.mrf.mxu1 }
 0xfa6   : > { %v18689_v22 = vadd.f32 %v15858_v59, %v18645_v56 }
 0xfa7   : > { %v5174_v58 = vpop.f32.mrf.mxu1 }
 0xfa8   : > { %v18692_v23 = vadd.f32 %v5174_v58, %v18648_v60 }
 0xfa9   : > { %v15859_v54 = vpop.f32.mrf.mxu1 }
 0xfaa   : > { %v18695_v43 = vadd.f32 %v15859_v54, %v18651_v44 }
 0xfab   : > { %v18697_v48 = vpop.f32.mrf.mxu1 }
 0xfac   : > { %20987 = vst [vmem:[#allocation10_spill] sm:$0xff] %v18697_v48 }
 0xfb5   : > { %v15862_v51 = vpop.f32.mrf.mxu1 }
 0xfb6   : > { %v18700_v3 = vadd.f32 %v15862_v51, %v18656_v38 }
 0xfb7   : > { %v5190_v11 = vpop.f32.mrf.mxu1 }
 0xfb8   : > { %v18703_v30 = vadd.f32 %v5190_v11, %v18659_v6 }
 0xfb9   : > { %v15863_v56 = vpop.f32.mrf.mxu1 }
 0xfba   : > { %v18706_v57 = vadd.f32 %v15863_v56, %v18662_v7 }
 0xfbb   : > { %v18708_v60 = vpop.f32.mrf.mxu1 }
 0xfc9   : > { %v5304_v1 = vpop.f32.mrf.mxu1 }
 0xfcb   : > { %v5306_v10 = vpop.f32.mrf.mxu1 }
 0xfcd   : > { %v5307_v44 = vpop.f32.mrf.mxu1 }
 0xfce   : > { %v5335_v53 = vpack.c.bf16 %v5307_v44, %v5304_v1  ;;  %v16508_v1 = vld [vmem:[#allocation2 + $0x404] ss:$8 sps:$4 sm:$0xff]  }
 0xfcf   : > { %v5309_v55 = vpop.f32.mrf.mxu1 }
 0xfd0   : > { %15880 = vmatprep.mubr.bf16.mxu0 %v5335_v53  ;;  %v16506_v53 = vld [vmem:[#allocation2 + $0x400] ss:$8 sps:$4 sm:$0xff]   ;;  %v16509_v55 = vld [vmem:[#allocation2 + $0x414] ss:$8 sps:$4 sm:$0xff]  }
 0xfd1   : > { %v5312_v24 = vpop.f32.mrf.mxu1 }
 0xfd3   : > { %v5314_v12 = vpop.f32.mrf.mxu1 }
 0xfd4   : > { %v16512_v12 = vld [vmem:[#allocation2 + $0x424] ss:$8 sps:$4 sm:$0xff]  }
 0xfd5   : > { %v5315_v38 = vpop.f32.mrf.mxu1 }
 0xfd6   : > { %v5336_v0 = vpack.c.bf16 %v5315_v38, %v5312_v24  ;;  %v16511_v24 = vld [vmem:[#allocation2 + $0x410] ss:$8 sps:$4 sm:$0xff]   ;;  %v16514_v38 = vld [vmem:[#allocation2 + $0x420] ss:$8 sps:$4 sm:$0xff]  }
 0xfd7   : > { %v5317_v17 = vpop.f32.mrf.mxu1 }
 0xfd8   : > { %15881 = vmatmul.mubr.bf16.vlgmr.msra.gmra.mxu0 %v5336_v0  ;;  %v16515_v0 = vld [vmem:[#allocation2 + $0x434] ss:$8 sps:$4 sm:$0xff]   ;;  %v16517_v17 = vld [vmem:[#allocation2 + $0x430] ss:$8 sps:$4 sm:$0xff]  }
 0xfd9   : > { %5535 = vmatpush1.bf16.msra.mxu0 %v18046_v50  ;;  %v5320_v6 = vpop.f32.mrf.mxu1 }
 0xfda   : > { %5536 = vmatprep.subr.bf16.mxu0 %v20984_v31 }
 0xfdb   : > { %v5322_v7 = vpop.f32.mrf.mxu1 }
 0xfdc   : > { %v16519_v7 = vld [vmem:[#allocation4 + $0x430] sm:$0xff]  }
 0xfdd   : > { %5537 = vmatpush1.bf16.msra.mxu0 %v18036_v61  ;;  %v5323_v59 = vpop.f32.mrf.mxu1 }
 0xfde   : > { %v5337_v58 = vpack.c.bf16 %v5323_v59, %v5320_v6  ;;  %5538 = vmatprep.subr.bf16.mxu0 %v20984_v31  ;;  %v16518_v6 = vld [vmem:[#allocation4 + $0x438] sm:$0xff]   ;;  %v16520_v59 = vld [vmem:[#allocation4 + $0x428] sm:$0xff]  }
 0xfdf   : > { %v5325_v54 = vpop.f32.mrf.mxu1  ;;  %15888 = vmatprep.subr.bf16.mxu1 %v16518_v6 }
 0xfe0   : > { %15884 = vmatprep.mubr.bf16.mxu0 %v5337_v58  ;;  %15889 = vmatpush3.bf16.msra.mxu1 %v16518_v6  ;;  %v16521_v58 = vld [vmem:[#allocation4 + $0x420] sm:$0xff]   ;;  %v16522_v54 = vld [vmem:[#allocation4 + $0x418] sm:$0xff]  }
 0xfe1   : > { %5539 = vmatpush1.bf16.msra.mxu0 %v18026_v39  ;;  %v5328_v51 = vpop.f32.mrf.mxu1  ;;  %15890 = vmatprep.subr.bf16.mxu1 %v16519_v7 }
 0xfe2   : > { %5540 = vmatprep.subr.bf16.mxu0 %v20984_v31 }
 0xfe3   : > { %v5330_v11 = vpop.f32.mrf.mxu1 }
 0xfe4   : > { %15891 = vmatpush3.bf16.msra.mxu1 %v16519_v7  ;;  %v16524_v11 = vld [vmem:[#allocation4 + $0x408] sm:$0xff]  }
 0xfe5   : > { %5541 = vmatpush1.bf16.msra.mxu0 %v18016_v29  ;;  %v5331_v56 = vpop.f32.mrf.mxu1  ;;  %15892 = vmatprep.subr.bf16.mxu1 %v16520_v59 }
 0xfe6   : > { %v5338_v10 = vpack.c.bf16 %v5331_v56, %v5328_v51  ;;  %5542 = vmatprep.subr.bf16.mxu0 %v20984_v31  ;;  %v16523_v51 = vld [vmem:[#allocation4 + $0x410] sm:$0xff]   ;;  %v16525_v56 = vld [vmem:[#allocation4 + $0x400] sm:$0xff]  }
 0xfe7   : > { %v5333_v44 = vpop.f32.mrf.mxu1 }
 0xfe8   : > { %15885 = vmatmul.mubr.bf16.gmra.mxu0 %v5338_v10  ;;  %15893 = vmatpush3.bf16.msra.mxu1 %v16520_v59 }
 0xfe9   : > { %5543 = vmatpush1.bf16.msra.mxu0 %v18006_v19  ;;  %13685 = vmatprep.mubr.msk.bf16.mxu0 %vm1314_vm1, %v16508_v1 }
 0xfea   : > { %5544 = vmatprep.subr.bf16.mxu0 %v20984_v31  ;;  %15894 = vmatprep.subr.bf16.mxu1 %v16521_v58 }
 0xfec   : > { %15895 = vmatpush3.bf16.msra.mxu1 %v16521_v58 }
 0xfed   : > { %5545 = vmatpush1.bf16.msra.mxu0 %v17996_v9  ;;  %15896 = vmatprep.subr.bf16.mxu1 %v16522_v54 }
 0xfee   : > { %5546 = vmatprep.subr.bf16.mxu0 %v20984_v31 }
 0xff0   : > { %15897 = vmatpush3.bf16.msra.mxu1 %v16522_v54 }
 0xff1   : > { %5547 = vmatpush1.bf16.msra.mxu0 %v17986_v62  ;;  %15898 = vmatprep.subr.bf16.mxu1 %v16523_v51 }
 0xff2   : > { %5548 = vmatprep.subr.bf16.mxu0 %v20984_v31 }
 0xff4   : > { %15899 = vmatpush3.bf16.msra.mxu1 %v16523_v51 }
 0xff5   : > { %5549 = vmatpush1.bf16.msra.mxu0 %v17976_v52  ;;  %15900 = vmatprep.subr.bf16.mxu1 %v16524_v11 }
 0xff6   : > { %5564 = vmatprep.subr.bf16.mxu0 %v20984_v31 }
 0xff8   : > { %15901 = vmatpush3.bf16.msra.mxu1 %v16524_v11 }
 0xff9   : > { %5565 = vmatpush2.bf16.msra.mxu0 %v18061_v42  ;;  %15902 = vmatprep.subr.bf16.mxu1 %v16525_v56 }
 0xffc   : > { %5567 = vmatmul.mubr.bf16.vlgmr.msra.gmra.mxu0 %v16506_v53  ;;  %15903 = vmatpush3.bf16.msra.mxu1 %v16525_v56 }
 0xffd   : > { %13686 = vmatprep.mubr.msk.bf16.mxu0 %vm1314_vm1, %v16509_v55  ;;  %5798 = vmatprep.subr.bf16.mxu1 %v20984_v31 }
0x1004   : > { %5575 = vmatmul.mubr.bf16.gmra.mxu0 %v16511_v24 }
0x1005   : > { %13687 = vmatprep.mubr.msk.bf16.mxu0 %vm1314_vm1, %v16512_v12 }
0x100c   : > { %5583 = vmatmul.mubr.bf16.gmra.mxu0 %v16514_v38 }
0x100d   : > { %13688 = vmatprep.mubr.msk.bf16.mxu0 %vm1314_vm1, %v16515_v0 }
0x1014   : > { %5591 = vmatmul.mubr.bf16.gmra.mxu0 %v16517_v17 }
0x1098   : > { %v15882_v1 = vpop.f32.mrf.mxu0 }
0x1099   : > { %v18733_v10 = vadd.f32 %v15882_v1, %v18689_v22 }
0x109a   : > { %v5438_v44 = vpop.f32.mrf.mxu0 }
0x109b   : > { %v18736_v53 = vadd.f32 %v5438_v44, %v18692_v23 }
0x109c   : > { %v15883_v55 = vpop.f32.mrf.mxu0 }
0x109d   : > { %v18739_v24 = vadd.f32 %v15883_v55, %v18695_v43 }
0x109e   : > { %v18741_v12 = vpop.f32.mrf.mxu0 }
0x109f   : > { %20988 = vst [vmem:[#allocation11_spill] sm:$0xff] %v18741_v12 }
0x10a8   : > { %v15886_v38 = vpop.f32.mrf.mxu0 }
0x10a9   : > { %v18744_v0 = vadd.f32 %v15886_v38, %v18700_v3 }
0x10aa   : > { %v5454_v17 = vpop.f32.mrf.mxu0 }
0x10ab   : > { %v18747_v6 = vadd.f32 %v5454_v17, %v18703_v30 }
0x10ac   : > { %v15887_v22 = vpop.f32.mrf.mxu0 }
0x10ad   : > { %v18750_v7 = vadd.f32 %v15887_v22, %v18706_v57 }
0x10ae   : > { %v18752_v23 = vpop.f32.mrf.mxu0 }
0x10bc   : > { %v5568_v59 = vpop.f32.mrf.mxu0 }
0x10be   : > { %v5570_v58 = vpop.f32.mrf.mxu0 }
0x10c0   : > { %v5571_v43 = vpop.f32.mrf.mxu0 }
0x10c1   : > { %v5599_v54 = vpack.c.bf16 %v5571_v43, %v5568_v59  ;;  %v16528_v43 = vld [vmem:[#allocation2 + $0x444] ss:$8 sps:$4 sm:$0xff]  }
0x10c2   : > { %v5573_v51 = vpop.f32.mrf.mxu0 }
0x10c3   : > { %15904 = vmatprep.mubr.bf16.mxu1 %v5599_v54 }
0x10c4   : > { %v5576_v11 = vpop.f32.mrf.mxu0 }
0x10c6   : > { %v5578_v56 = vpop.f32.mrf.mxu0 }
0x10c7   : > { %v16529_v56 = vld [vmem:[#allocation2 + $0x454] ss:$8 sps:$4 sm:$0xff]  }
0x10c8   : > { %v5579_v3 = vpop.f32.mrf.mxu0 }
0x10c9   : > { %v5600_v1 = vpack.c.bf16 %v5579_v3, %v5576_v11  ;;  %v16526_v11 = vld [vmem:[#allocation2 + $0x440] ss:$8 sps:$4 sm:$0xff]   ;;  %v16531_v3 = vld [vmem:[#allocation2 + $0x450] ss:$8 sps:$4 sm:$0xff]  }
0x10ca   : > { %v5581_v44 = vpop.f32.mrf.mxu0 }
0x10cb   : > { %15905 = vmatmul.mubr.bf16.vlgmr.msra.gmra.mxu1 %v5600_v1  ;;  %v16532_v1 = vld [vmem:[#allocation2 + $0x464] ss:$8 sps:$4 sm:$0xff]   ;;  %v16534_v44 = vld [vmem:[#allocation2 + $0x460] ss:$8 sps:$4 sm:$0xff]  }
0x10cc   : > { %5799 = vmatpush1.bf16.msra.mxu1 %v18046_v50  ;;  %v5584_v30 = vpop.f32.mrf.mxu0 }
0x10cd   : > { %5800 = vmatprep.subr.bf16.mxu1 %v20984_v31 }
0x10ce   : > { %v5586_v57 = vpop.f32.mrf.mxu0 }
0x10cf   : > { %v16537_v57 = vld [vmem:[#allocation2 + $0x470] ss:$8 sps:$4 sm:$0xff]  }
0x10d0   : > { %5801 = vmatpush1.bf16.msra.mxu1 %v18036_v61  ;;  %v5587_v55 = vpop.f32.mrf.mxu0 }
0x10d1   : > { %v5601_v38 = vpack.c.bf16 %v5587_v55, %v5584_v30  ;;  %5802 = vmatprep.subr.bf16.mxu1 %v20984_v31  ;;  %v16535_v30 = vld [vmem:[#allocation2 + $0x474] ss:$8 sps:$4 sm:$0xff]  }
0x10d2   : > { %v5589_v17 = vpop.f32.mrf.mxu0  ;;  %v16538_v55 = vld [vmem:[#allocation4 + $0x478] sm:$0xff]  }
0x10d3   : > { %15908 = vmatprep.mubr.bf16.mxu1 %v5601_v38  ;;  %15912 = vmatprep.subr.bf16.mxu0 %v16538_v55  ;;  %v16539_v38 = vld [vmem:[#allocation4 + $0x470] sm:$0xff]   ;;  %v16540_v17 = vld [vmem:[#allocation4 + $0x468] sm:$0xff]  }
0x10d4   : > { %5803 = vmatpush1.bf16.msra.mxu1 %v18026_v39  ;;  %v5592_v22 = vpop.f32.mrf.mxu0  ;;  %15913 = vmatpush3.bf16.msra.mxu0 %v16538_v55 }
0x10d5   : > { %5804 = vmatprep.subr.bf16.mxu1 %v20984_v31  ;;  %15914 = vmatprep.subr.bf16.mxu0 %v16539_v38 }
0x10d6   : > { %v5594_v59 = vpop.f32.mrf.mxu0 }
0x10d7   : > { %v16542_v59 = vld [vmem:[#allocation4 + $0x458] sm:$0xff]  }
0x10d8   : > { %5805 = vmatpush1.bf16.msra.mxu1 %v18016_v29  ;;  %v5595_v58 = vpop.f32.mrf.mxu0  ;;  %15915 = vmatpush3.bf16.msra.mxu0 %v16539_v38 }
0x10d9   : > { %v5602_v54 = vpack.c.bf16 %v5595_v58, %v5592_v22  ;;  %5806 = vmatprep.subr.bf16.mxu1 %v20984_v31  ;;  %v16541_v22 = vld [vmem:[#allocation4 + $0x460] sm:$0xff]   ;;  %15916 = vmatprep.subr.bf16.mxu0 %v16540_v17  ;;  %v16543_v58 = vld [vmem:[#allocation4 + $0x450] sm:$0xff]  }
0x10da   : > { %v5597_v51 = vpop.f32.mrf.mxu0 }
0x10db   : > { %15909 = vmatmul.mubr.bf16.gmra.mxu1 %v5602_v54  ;;  %v16545_v54 = vld [vmem:[#allocation4 + $0x440] sm:$0xff]  }
0x10dc   : > { %5807 = vmatpush1.bf16.msra.mxu1 %v18006_v19  ;;  %13705 = vmatprep.mubr.msk.bf16.mxu1 %vm1314_vm1, %v16528_v43  ;;  %v16544_v43 = vld [vmem:[#allocation4 + $0x448] sm:$0xff]  }
0x10dd   : > { %5808 = vmatprep.subr.bf16.mxu1 %v20984_v31  ;;  %15917 = vmatpush3.bf16.msra.mxu0 %v16540_v17 }
0x10de   : > { %15918 = vmatprep.subr.bf16.mxu0 %v16541_v22 }
0x10e0   : > { %5809 = vmatpush1.bf16.msra.mxu1 %v17996_v9 }
0x10e1   : > { %5810 = vmatprep.subr.bf16.mxu1 %v20984_v31  ;;  %15919 = vmatpush3.bf16.msra.mxu0 %v16541_v22 }
0x10e2   : > { %15920 = vmatprep.subr.bf16.mxu0 %v16542_v59 }
0x10e4   : > { %5811 = vmatpush1.bf16.msra.mxu1 %v17986_v62 }
0x10e5   : > { %5812 = vmatprep.subr.bf16.mxu1 %v20984_v31  ;;  %15921 = vmatpush3.bf16.msra.mxu0 %v16542_v59 }
0x10e6   : > { %15922 = vmatprep.subr.bf16.mxu0 %v16543_v58 }
0x10e8   : > { %5813 = vmatpush1.bf16.msra.mxu1 %v17976_v52 }
0x10e9   : > { %5828 = vmatprep.subr.bf16.mxu1 %v20984_v31  ;;  %15923 = vmatpush3.bf16.msra.mxu0 %v16543_v58 }
0x10ea   : > { %15924 = vmatprep.subr.bf16.mxu0 %v16544_v43 }
0x10ec   : > { %5829 = vmatpush2.bf16.msra.mxu1 %v18061_v42 }
0x10ed   : > { %15925 = vmatpush3.bf16.msra.mxu0 %v16544_v43 }
0x10ee   : > { %15926 = vmatprep.subr.bf16.mxu0 %v16545_v54 }
0x10ef   : > { %5831 = vmatmul.mubr.bf16.vlgmr.msra.gmra.mxu1 %v16526_v11 }
0x10f0   : > { %13706 = vmatprep.mubr.msk.bf16.mxu1 %vm1314_vm1, %v16529_v56 }
0x10f1   : > { %15927 = vmatpush3.bf16.msra.mxu0 %v16545_v54 }
0x10f2   : > { %6062 = vmatprep.subr.bf16.mxu0 %v20984_v31 }
0x10f7   : > { %5839 = vmatmul.mubr.bf16.gmra.mxu1 %v16531_v3 }
0x10f8   : > { %13707 = vmatprep.mubr.msk.bf16.mxu1 %vm1314_vm1, %v16532_v1 }
0x10ff   : > { %5847 = vmatmul.mubr.bf16.gmra.mxu1 %v16534_v44 }
0x1100   : > { %13708 = vmatprep.mubr.msk.bf16.mxu1 %vm1314_vm1, %v16535_v30 }
0x1107   : > { %5855 = vmatmul.mubr.bf16.gmra.mxu1 %v16537_v57 }
0x118b   : > { %v15906_v51 = vpop.f32.mrf.mxu1 }
0x118c   : > { %v18777_v11 = vadd.f32 %v15906_v51, %v18733_v10 }
0x118d   : > { %v5702_v56 = vpop.f32.mrf.mxu1 }
0x118e   : > { %v18780_v3 = vadd.f32 %v5702_v56, %v18736_v53 }
0x118f   : > { %v15907_v1 = vpop.f32.mrf.mxu1 }
0x1190   : > { %v18783_v44 = vadd.f32 %v15907_v1, %v18739_v24 }
0x1191   : > { %v18785_v30 = vpop.f32.mrf.mxu1 }
0x1192   : > { %20989 = vst [vmem:[#allocation12_spill] sm:$0xff] %v18785_v30 }
0x119b   : > { %v15910_v57 = vpop.f32.mrf.mxu1 }
0x119c   : > { %v18788_v55 = vadd.f32 %v15910_v57, %v18744_v0 }
0x119d   : > { %v5718_v38 = vpop.f32.mrf.mxu1 }
0x119e   : > { %v18791_v17 = vadd.f32 %v5718_v38, %v18747_v6 }
0x119f   : > { %v15911_v10 = vpop.f32.mrf.mxu1 }
0x11a0   : > { %v18794_v22 = vadd.f32 %v15911_v10, %v18750_v7 }
0x11a1   : > { %v18796_v53 = vpop.f32.mrf.mxu1 }
0x11af   : > { %v5832_v59 = vpop.f32.mrf.mxu1 }
0x11b1   : > { %v5834_v58 = vpop.f32.mrf.mxu1 }
0x11b3   : > { %v5835_v24 = vpop.f32.mrf.mxu1 }
0x11b4   : > { %v5863_v43 = vpack.c.bf16 %v5835_v24, %v5832_v59 }
0x11b5   : > { %v5837_v54 = vpop.f32.mrf.mxu1 }
0x11b6   : > { %15928 = vmatprep.mubr.bf16.mxu0 %v5863_v43  ;;  %v16548_v54 = vld [vmem:[#allocation2 + $0x484] ss:$8 sps:$4 sm:$0xff]  }
0x11b7   : > { %v5840_v51 = vpop.f32.mrf.mxu1 }
0x11b9   : > { %v5842_v56 = vpop.f32.mrf.mxu1 }
0x11bb   : > { %v5843_v0 = vpop.f32.mrf.mxu1 }
0x11bc   : > { %v5864_v1 = vpack.c.bf16 %v5843_v0, %v5840_v51  ;;  %v16546_v0 = vld [vmem:[#allocation2 + $0x480] ss:$8 sps:$4 sm:$0xff]  }
0x11bd   : > { %v5845_v57 = vpop.f32.mrf.mxu1 }
0x11be   : > { %15929 = vmatmul.mubr.bf16.vlgmr.msra.gmra.mxu0 %v5864_v1  ;;  %v16549_v1 = vld [vmem:[#allocation2 + $0x494] ss:$8 sps:$4 sm:$0xff]   ;;  %v16551_v57 = vld [vmem:[#allocation2 + $0x490] ss:$8 sps:$4 sm:$0xff]  }
0x11bf   : > { %6063 = vmatpush1.bf16.msra.mxu0 %v18046_v50  ;;  %v5848_v6 = vpop.f32.mrf.mxu1 }
0x11c0   : > { %6064 = vmatprep.subr.bf16.mxu0 %v20984_v31 }
0x11c1   : > { %v5850_v7 = vpop.f32.mrf.mxu1 }
0x11c2   : > { %v16554_v7 = vld [vmem:[#allocation2 + $0x4a0] ss:$8 sps:$4 sm:$0xff]  }
0x11c3   : > { %6065 = vmatpush1.bf16.msra.mxu0 %v18036_v61  ;;  %v5851_v38 = vpop.f32.mrf.mxu1 }
0x11c4   : > { %v5865_v10 = vpack.c.bf16 %v5851_v38, %v5848_v6  ;;  %6066 = vmatprep.subr.bf16.mxu0 %v20984_v31  ;;  %v16552_v6 = vld [vmem:[#allocation2 + $0x4a4] ss:$8 sps:$4 sm:$0xff]   ;;  %v16555_v38 = vld [vmem:[#allocation2 + $0x4b4] ss:$8 sps:$4 sm:$0xff]  }
0x11c5   : > { %v5853_v59 = vpop.f32.mrf.mxu1 }
0x11c6   : > { %15932 = vmatprep.mubr.bf16.mxu0 %v5865_v10  ;;  %v16557_v10 = vld [vmem:[#allocation2 + $0x4b0] ss:$8 sps:$4 sm:$0xff]  }
0x11c7   : > { %6067 = vmatpush1.bf16.msra.mxu0 %v18026_v39  ;;  %v5856_v58 = vpop.f32.mrf.mxu1  ;;  %v16558_v59 = vld [vmem:[#allocation4 + $0x4b8] sm:$0xff]  }
0x11c8   : > { %6068 = vmatprep.subr.bf16.mxu0 %v20984_v31  ;;  %15936 = vmatprep.subr.bf16.mxu1 %v16558_v59 }
0x11c9   : > { %v5858_v24 = vpop.f32.mrf.mxu1  ;;  %15937 = vmatpush3.bf16.msra.mxu1 %v16558_v59 }
0x11ca   : > { %v16560_v24 = vld [vmem:[#allocation4 + $0x4a8] sm:$0xff]  }
0x11cb   : > { %6069 = vmatpush1.bf16.msra.mxu0 %v18016_v29  ;;  %v5859_v43 = vpop.f32.mrf.mxu1 }
0x11cc   : > { %v5866_v51 = vpack.c.bf16 %v5859_v43, %v5856_v58  ;;  %6070 = vmatprep.subr.bf16.mxu0 %v20984_v31  ;;  %v16559_v58 = vld [vmem:[#allocation4 + $0x4b0] sm:$0xff]   ;;  %v16561_v43 = vld [vmem:[#allocation4 + $0x4a0] sm:$0xff]  }
0x11cd   : > { %v5861_v56 = vpop.f32.mrf.mxu1  ;;  %15938 = vmatprep.subr.bf16.mxu1 %v16559_v58 }
0x11ce   : > { %15933 = vmatmul.mubr.bf16.gmra.mxu0 %v5866_v51  ;;  %15939 = vmatpush3.bf16.msra.mxu1 %v16559_v58  ;;  %v16563_v51 = vld [vmem:[#allocation4 + $0x490] sm:$0xff]   ;;  %v16564_v56 = vld [vmem:[#allocation4 + $0x488] sm:$0xff]  }
0x11cf   : > { %6071 = vmatpush1.bf16.msra.mxu0 %v18006_v19  ;;  %13725 = vmatprep.mubr.msk.bf16.mxu0 %vm1314_vm1, %v16548_v54  ;;  %v16562_v54 = vld [vmem:[#allocation4 + $0x498] sm:$0xff]  }
0x11d0   : > { %6072 = vmatprep.subr.bf16.mxu0 %v20984_v31  ;;  %15940 = vmatprep.subr.bf16.mxu1 %v16560_v24 }
0x11d2   : > { %15941 = vmatpush3.bf16.msra.mxu1 %v16560_v24 }
0x11d3   : > { %6073 = vmatpush1.bf16.msra.mxu0 %v17996_v9  ;;  %15942 = vmatprep.subr.bf16.mxu1 %v16561_v43 }
0x11d4   : > { %6074 = vmatprep.subr.bf16.mxu0 %v20984_v31 }
0x11d6   : > { %15943 = vmatpush3.bf16.msra.mxu1 %v16561_v43 }
0x11d7   : > { %6075 = vmatpush1.bf16.msra.mxu0 %v17986_v62  ;;  %15944 = vmatprep.subr.bf16.mxu1 %v16562_v54 }
0x11d8   : > { %6076 = vmatprep.subr.bf16.mxu0 %v20984_v31 }
0x11da   : > { %15945 = vmatpush3.bf16.msra.mxu1 %v16562_v54 }
0x11db   : > { %6077 = vmatpush1.bf16.msra.mxu0 %v17976_v52  ;;  %15946 = vmatprep.subr.bf16.mxu1 %v16563_v51 }
0x11dc   : > { %6092 = vmatprep.subr.bf16.mxu0 %v20984_v31 }
0x11de   : > { %15947 = vmatpush3.bf16.msra.mxu1 %v16563_v51 }
0x11df   : > { %6093 = vmatpush2.bf16.msra.mxu0 %v18061_v42  ;;  %15948 = vmatprep.subr.bf16.mxu1 %v16564_v56 }
0x11e2   : > { %6095 = vmatmul.mubr.bf16.vlgmr.msra.gmra.mxu0 %v16546_v0  ;;  %15949 = vmatpush3.bf16.msra.mxu1 %v16564_v56  ;;  %v16565_v0 = vld [vmem:[#allocation4 + $0x480] sm:$0xff]  }
0x11e3   : > { %13726 = vmatprep.mubr.msk.bf16.mxu0 %vm1314_vm1, %v16549_v1  ;;  %15950 = vmatprep.subr.bf16.mxu1 %v16565_v0 }
0x11e6   : > { %15951 = vmatpush3.bf16.msra.mxu1 %v16565_v0 }
0x11e7   : > { %6326 = vmatprep.subr.bf16.mxu1 %v20984_v31 }
0x11ea   : > { %6103 = vmatmul.mubr.bf16.gmra.mxu0 %v16551_v57 }
0x11eb   : > { %13727 = vmatprep.mubr.msk.bf16.mxu0 %vm1314_vm1, %v16552_v6 }
0x11f2   : > { %6111 = vmatmul.mubr.bf16.gmra.mxu0 %v16554_v7 }
0x11f3   : > { %13728 = vmatprep.mubr.msk.bf16.mxu0 %vm1314_vm1, %v16555_v38 }
0x11fa   : > { %6119 = vmatmul.mubr.bf16.gmra.mxu0 %v16557_v10 }
0x127e   : > { %v15930_v1 = vpop.f32.mrf.mxu0 }
0x127f   : > { %v18821_v57 = vadd.f32 %v15930_v1, %v18777_v11 }
0x1280   : > { %v5966_v6 = vpop.f32.mrf.mxu0 }
0x1281   : > { %v18824_v7 = vadd.f32 %v5966_v6, %v18780_v3 }
0x1282   : > { %v15931_v38 = vpop.f32.mrf.mxu0 }
0x1283   : > { %v18827_v10 = vadd.f32 %v15931_v38, %v18783_v44 }
0x1284   : > { %v18829_v59 = vpop.f32.mrf.mxu0 }
0x1285   : > { %20990 = vst [vmem:[#allocation13_spill] sm:$0xff] %v18829_v59 }
0x128e   : > { %v15934_v58 = vpop.f32.mrf.mxu0 }
0x128f   : > { %v18832_v24 = vadd.f32 %v15934_v58, %v18788_v55 }
0x1290   : > { %v5982_v43 = vpop.f32.mrf.mxu0 }
0x1291   : > { %v18835_v54 = vadd.f32 %v5982_v43, %v18791_v17 }
0x1292   : > { %v15935_v11 = vpop.f32.mrf.mxu0 }
0x1293   : > { %v18838_v51 = vadd.f32 %v15935_v11, %v18794_v22 }
0x1294   : > { %v18840_v3 = vpop.f32.mrf.mxu0 }
0x12a2   : > { %v6096_v56 = vpop.f32.mrf.mxu0 }
0x12a4   : > { %v6098_v0 = vpop.f32.mrf.mxu0 }
0x12a6   : > { %v6099_v44 = vpop.f32.mrf.mxu0 }
0x12a7   : > { %v6127_v1 = vpack.c.bf16 %v6099_v44, %v6096_v56  ;;  %v16568_v44 = vld [vmem:[#allocation2 + $0x4c4] ss:$8 sps:$4 sm:$0xff]  }
0x12a8   : > { %v6101_v6 = vpop.f32.mrf.mxu0 }
0x12a9   : > { %15952 = vmatprep.mubr.bf16.mxu1 %v6127_v1 }
0x12aa   : > { %v6104_v38 = vpop.f32.mrf.mxu0 }
0x12ac   : > { %v6106_v59 = vpop.f32.mrf.mxu0 }
0x12ae   : > { %v6107_v55 = vpop.f32.mrf.mxu0 }
0x12af   : > { %v6128_v58 = vpack.c.bf16 %v6107_v55, %v6104_v38  ;;  %v16566_v38 = vld [vmem:[#allocation2 + $0x4c0] ss:$8 sps:$4 sm:$0xff]   ;;  %v16569_v55 = vld [vmem:[#allocation2 + $0x4d4] ss:$8 sps:$4 sm:$0xff]  }
0x12b0   : > { %v6109_v30 = vpop.f32.mrf.mxu0 }
0x12b1   : > { %15953 = vmatmul.mubr.bf16.vlgmr.msra.gmra.mxu1 %v6128_v58  ;;  %v16571_v58 = vld [vmem:[#allocation2 + $0x4d0] ss:$8 sps:$4 sm:$0xff]  }
0x12b2   : > { %6327 = vmatpush1.bf16.msra.mxu1 %v18046_v50  ;;  %v6112_v17 = vpop.f32.mrf.mxu0 }
0x12b3   : > { %6328 = vmatprep.subr.bf16.mxu1 %v20984_v31 }
0x12b4   : > { %v6114_v22 = vpop.f32.mrf.mxu0 }
0x12b5   : > { %v16574_v22 = vld [vmem:[#allocation2 + $0x4e0] ss:$8 sps:$4 sm:$0xff]  }
0x12b6   : > { %6329 = vmatpush1.bf16.msra.mxu1 %v18036_v61  ;;  %v6115_v43 = vpop.f32.mrf.mxu0 }
0x12b7   : > { %v6129_v11 = vpack.c.bf16 %v6115_v43, %v6112_v17  ;;  %6330 = vmatprep.subr.bf16.mxu1 %v20984_v31  ;;  %v16572_v17 = vld [vmem:[#allocation2 + $0x4e4] ss:$8 sps:$4 sm:$0xff]   ;;  %v16575_v43 = vld [vmem:[#allocation2 + $0x4f4] ss:$8 sps:$4 sm:$0xff]  }
0x12b8   : > { %v6117_v56 = vpop.f32.mrf.mxu0 }
0x12b9   : > { %15956 = vmatprep.mubr.bf16.mxu1 %v6129_v11  ;;  %v16577_v11 = vld [vmem:[#allocation2 + $0x4f0] ss:$8 sps:$4 sm:$0xff]  }
0x12ba   : > { %6331 = vmatpush1.bf16.msra.mxu1 %v18026_v39  ;;  %v6120_v59 = vpop.f32.mrf.mxu0  ;;  %v16578_v56 = vld [vmem:[#allocation4 + $0x4f8] sm:$0xff]  }
0x12bb   : > { %6332 = vmatprep.subr.bf16.mxu1 %v20984_v31  ;;  %15960 = vmatprep.subr.bf16.mxu0 %v16578_v56 }
0x12bc   : > { %v6122_v30 = vpop.f32.mrf.mxu0  ;;  %15961 = vmatpush3.bf16.msra.mxu0 %v16578_v56 }
0x12bd   : > { %v16580_v30 = vld [vmem:[#allocation4 + $0x4e8] sm:$0xff]  }
0x12be   : > { %6333 = vmatpush1.bf16.msra.mxu1 %v18016_v29  ;;  %v6123_v0 = vpop.f32.mrf.mxu0 }
0x12bf   : > { %v6130_v1 = vpack.c.bf16 %v6123_v0, %v6120_v59  ;;  %6334 = vmatprep.subr.bf16.mxu1 %v20984_v31  ;;  %v16579_v59 = vld [vmem:[#allocation4 + $0x4f0] sm:$0xff]   ;;  %v16581_v0 = vld [vmem:[#allocation4 + $0x4e0] sm:$0xff]  }
0x12c0   : > { %v6125_v6 = vpop.f32.mrf.mxu0  ;;  %15962 = vmatprep.subr.bf16.mxu0 %v16579_v59 }
0x12c1   : > { %15957 = vmatmul.mubr.bf16.gmra.mxu1 %v6130_v1  ;;  %15963 = vmatpush3.bf16.msra.mxu0 %v16579_v59  ;;  %v16583_v1 = vld [vmem:[#allocation4 + $0x4d0] sm:$0xff]   ;;  %v16584_v6 = vld [vmem:[#allocation4 + $0x4c8] sm:$0xff]  }
0x12c2   : > { %6335 = vmatpush1.bf16.msra.mxu1 %v18006_v19  ;;  %13745 = vmatprep.mubr.msk.bf16.mxu1 %vm1314_vm1, %v16568_v44  ;;  %v16582_v44 = vld [vmem:[#allocation4 + $0x4d8] sm:$0xff]  }
0x12c3   : > { %6336 = vmatprep.subr.bf16.mxu1 %v20984_v31  ;;  %15964 = vmatprep.subr.bf16.mxu0 %v16580_v30 }
0x12c5   : > { %15965 = vmatpush3.bf16.msra.mxu0 %v16580_v30 }
0x12c6   : > { %6337 = vmatpush1.bf16.msra.mxu1 %v17996_v9  ;;  %15966 = vmatprep.subr.bf16.mxu0 %v16581_v0 }
0x12c7   : > { %6338 = vmatprep.subr.bf16.mxu1 %v20984_v31 }
0x12c9   : > { %15967 = vmatpush3.bf16.msra.mxu0 %v16581_v0 }
0x12ca   : > { %6339 = vmatpush1.bf16.msra.mxu1 %v17986_v62  ;;  %15968 = vmatprep.subr.bf16.mxu0 %v16582_v44 }
0x12cb   : > { %6340 = vmatprep.subr.bf16.mxu1 %v20984_v31 }
0x12cd   : > { %15969 = vmatpush3.bf16.msra.mxu0 %v16582_v44 }
0x12ce   : > { %6341 = vmatpush1.bf16.msra.mxu1 %v17976_v52  ;;  %15970 = vmatprep.subr.bf16.mxu0 %v16583_v1 }
0x12cf   : > { %6356 = vmatprep.subr.bf16.mxu1 %v20984_v31 }
0x12d1   : > { %15971 = vmatpush3.bf16.msra.mxu0 %v16583_v1 }
0x12d2   : > { %6357 = vmatpush2.bf16.msra.mxu1 %v18061_v42  ;;  %15972 = vmatprep.subr.bf16.mxu0 %v16584_v6 }
0x12d5   : > { %6359 = vmatmul.mubr.bf16.vlgmr.msra.gmra.mxu1 %v16566_v38  ;;  %15973 = vmatpush3.bf16.msra.mxu0 %v16584_v6  ;;  %v16585_v38 = vld [vmem:[#allocation4 + $0x4c0] sm:$0xff]  }
0x12d6   : > { %13746 = vmatprep.mubr.msk.bf16.mxu1 %vm1314_vm1, %v16569_v55  ;;  %15974 = vmatprep.subr.bf16.mxu0 %v16585_v38 }
0x12d9   : > { %15975 = vmatpush3.bf16.msra.mxu0 %v16585_v38 }
0x12da   : > { %6590 = vmatprep.subr.bf16.mxu0 %v20984_v31 }
0x12dd   : > { %6367 = vmatmul.mubr.bf16.gmra.mxu1 %v16571_v58 }
0x12de   : > { %13747 = vmatprep.mubr.msk.bf16.mxu1 %vm1314_vm1, %v16572_v17 }
0x12e5   : > { %6375 = vmatmul.mubr.bf16.gmra.mxu1 %v16574_v22 }
0x12e6   : > { %13748 = vmatprep.mubr.msk.bf16.mxu1 %vm1314_vm1, %v16575_v43 }
0x12ed   : > { %6383 = vmatmul.mubr.bf16.gmra.mxu1 %v16577_v11 }
0x1371   : > { %v15954_v55 = vpop.f32.mrf.mxu1 }
0x1372   : > { %v18865_v58 = vadd.f32 %v15954_v55, %v18821_v57 }
0x1373   : > { %v6230_v17 = vpop.f32.mrf.mxu1 }
0x1374   : > { %v18868_v22 = vadd.f32 %v6230_v17, %v18824_v7 }
0x1375   : > { %v15955_v43 = vpop.f32.mrf.mxu1 }
0x1376   : > { %v18871_v11 = vadd.f32 %v15955_v43, %v18827_v10 }
0x1377   : > { %v18873_v56 = vpop.f32.mrf.mxu1 }
0x1378   : > { %20991 = vst [vmem:[#allocation14_spill] sm:$0xff] %v18873_v56 }
0x1381   : > { %v15958_v59 = vpop.f32.mrf.mxu1 }
0x1382   : > { %v18876_v30 = vadd.f32 %v15958_v59, %v18832_v24 }
0x1383   : > { %v6246_v0 = vpop.f32.mrf.mxu1 }
0x1384   : > { %v18879_v44 = vadd.f32 %v6246_v0, %v18835_v54 }
0x1385   : > { %v15959_v57 = vpop.f32.mrf.mxu1 }
0x1386   : > { %v18882_v1 = vadd.f32 %v15959_v57, %v18838_v51 }
0x1387   : > { %v18884_v7 = vpop.f32.mrf.mxu1 }
0x1395   : > { %v6360_v6 = vpop.f32.mrf.mxu1 }
0x1397   : > { %v6362_v38 = vpop.f32.mrf.mxu1 }
0x1399   : > { %v6363_v10 = vpop.f32.mrf.mxu1 }
0x139a   : > { %v6391_v55 = vpack.c.bf16 %v6363_v10, %v6360_v6  ;;  %v16588_v10 = vld [vmem:[#allocation2 + $0x504] ss:$8 sps:$4 sm:$0xff]  }
0x139b   : > { %v6365_v17 = vpop.f32.mrf.mxu1 }
0x139c   : > { %15976 = vmatprep.mubr.bf16.mxu0 %v6391_v55 }
0x139d   : > { %v6368_v43 = vpop.f32.mrf.mxu1 }
0x139f   : > { %v6370_v56 = vpop.f32.mrf.mxu1 }
0x13a1   : > { %v6371_v24 = vpop.f32.mrf.mxu1 }
0x13a2   : > { %v6392_v59 = vpack.c.bf16 %v6371_v24, %v6368_v43  ;;  %v16586_v43 = vld [vmem:[#allocation2 + $0x500] ss:$8 sps:$4 sm:$0xff]   ;;  %v16589_v24 = vld [vmem:[#allocation2 + $0x514] ss:$8 sps:$4 sm:$0xff]  }
0x13a3   : > { %v6373_v12 = vpop.f32.mrf.mxu1 }
0x13a4   : > { %15977 = vmatmul.mubr.bf16.vlgmr.msra.gmra.mxu0 %v6392_v59  ;;  %v16591_v59 = vld [vmem:[#allocation2 + $0x510] ss:$8 sps:$4 sm:$0xff]  }
0x13a5   : > { %6591 = vmatpush1.bf16.msra.mxu0 %v18046_v50  ;;  %v6376_v54 = vpop.f32.mrf.mxu1 }
0x13a6   : > { %6592 = vmatprep.subr.bf16.mxu0 %v20984_v31 }
0x13a7   : > { %v6378_v51 = vpop.f32.mrf.mxu1 }
0x13a8   : > { %v16594_v51 = vld [vmem:[#allocation2 + $0x520] ss:$8 sps:$4 sm:$0xff]  }
0x13a9   : > { %6593 = vmatpush1.bf16.msra.mxu0 %v18036_v61  ;;  %v6379_v0 = vpop.f32.mrf.mxu1 }
0x13aa   : > { %v6393_v57 = vpack.c.bf16 %v6379_v0, %v6376_v54  ;;  %6594 = vmatprep.subr.bf16.mxu0 %v20984_v31  ;;  %v16592_v54 = vld [vmem:[#allocation2 + $0x524] ss:$8 sps:$4 sm:$0xff]   ;;  %v16595_v0 = vld [vmem:[#allocation2 + $0x534] ss:$8 sps:$4 sm:$0xff]  }
0x13ab   : > { %v6381_v6 = vpop.f32.mrf.mxu1 }
0x13ac   : > { %15980 = vmatprep.mubr.bf16.mxu0 %v6393_v57  ;;  %v16597_v57 = vld [vmem:[#allocation2 + $0x530] ss:$8 sps:$4 sm:$0xff]  }
0x13ad   : > { %6595 = vmatpush1.bf16.msra.mxu0 %v18026_v39  ;;  %v6384_v56 = vpop.f32.mrf.mxu1  ;;  %v16598_v6 = vld [vmem:[#allocation4 + $0x538] sm:$0xff]  }
0x13ae   : > { %6596 = vmatprep.subr.bf16.mxu0 %v20984_v31  ;;  %15984 = vmatprep.subr.bf16.mxu1 %v16598_v6 }
0x13af   : > { %v6386_v12 = vpop.f32.mrf.mxu1  ;;  %15985 = vmatpush3.bf16.msra.mxu1 %v16598_v6 }
0x13b0   : > { %v16600_v12 = vld [vmem:[#allocation4 + $0x528] sm:$0xff]  }
0x13b1   : > { %6597 = vmatpush1.bf16.msra.mxu0 %v18016_v29  ;;  %v6387_v38 = vpop.f32.mrf.mxu1 }
0x13b2   : > { %v6394_v55 = vpack.c.bf16 %v6387_v38, %v6384_v56  ;;  %6598 = vmatprep.subr.bf16.mxu0 %v20984_v31  ;;  %v16599_v56 = vld [vmem:[#allocation4 + $0x530] sm:$0xff]   ;;  %v16601_v38 = vld [vmem:[#allocation4 + $0x520] sm:$0xff]  }
0x13b3   : > { %v6389_v17 = vpop.f32.mrf.mxu1  ;;  %15986 = vmatprep.subr.bf16.mxu1 %v16599_v56 }
0x13b4   : > { %15981 = vmatmul.mubr.bf16.gmra.mxu0 %v6394_v55  ;;  %15987 = vmatpush3.bf16.msra.mxu1 %v16599_v56  ;;  %v16603_v55 = vld [vmem:[#allocation4 + $0x510] sm:$0xff]   ;;  %v16604_v17 = vld [vmem:[#allocation4 + $0x508] sm:$0xff]  }
0x13b5   : > { %6599 = vmatpush1.bf16.msra.mxu0 %v18006_v19  ;;  %13765 = vmatprep.mubr.msk.bf16.mxu0 %vm1314_vm1, %v16588_v10  ;;  %v16602_v10 = vld [vmem:[#allocation4 + $0x518] sm:$0xff]  }
0x13b6   : > { %6600 = vmatprep.subr.bf16.mxu0 %v20984_v31  ;;  %15988 = vmatprep.subr.bf16.mxu1 %v16600_v12 }
0x13b8   : > { %15989 = vmatpush3.bf16.msra.mxu1 %v16600_v12 }
0x13b9   : > { %6601 = vmatpush1.bf16.msra.mxu0 %v17996_v9  ;;  %15990 = vmatprep.subr.bf16.mxu1 %v16601_v38 }
0x13ba   : > { %6602 = vmatprep.subr.bf16.mxu0 %v20984_v31 }
0x13bc   : > { %15991 = vmatpush3.bf16.msra.mxu1 %v16601_v38 }
0x13bd   : > { %6603 = vmatpush1.bf16.msra.mxu0 %v17986_v62  ;;  %15992 = vmatprep.subr.bf16.mxu1 %v16602_v10 }
0x13be   : > { %6604 = vmatprep.subr.bf16.mxu0 %v20984_v31 }
0x13c0   : > { %15993 = vmatpush3.bf16.msra.mxu1 %v16602_v10 }
0x13c1   : > { %6605 = vmatpush1.bf16.msra.mxu0 %v17976_v52  ;;  %15994 = vmatprep.subr.bf16.mxu1 %v16603_v55 }
0x13c2   : > { %6620 = vmatprep.subr.bf16.mxu0 %v20984_v31 }
0x13c4   : > { %15995 = vmatpush3.bf16.msra.mxu1 %v16603_v55 }
0x13c5   : > { %6621 = vmatpush2.bf16.msra.mxu0 %v18061_v42  ;;  %15996 = vmatprep.subr.bf16.mxu1 %v16604_v17 }
0x13c8   : > { %6623 = vmatmul.mubr.bf16.vlgmr.msra.gmra.mxu0 %v16586_v43  ;;  %15997 = vmatpush3.bf16.msra.mxu1 %v16604_v17  ;;  %v16605_v43 = vld [vmem:[#allocation4 + $0x500] sm:$0xff]  }
0x13c9   : > { %13766 = vmatprep.mubr.msk.bf16.mxu0 %vm1314_vm1, %v16589_v24  ;;  %15998 = vmatprep.subr.bf16.mxu1 %v16605_v43 }
0x13cc   : > { %15999 = vmatpush3.bf16.msra.mxu1 %v16605_v43 }
0x13cd   : > { %6854 = vmatprep.subr.bf16.mxu1 %v20984_v31 }
0x13d0   : > { %6631 = vmatmul.mubr.bf16.gmra.mxu0 %v16591_v59 }
0x13d1   : > { %13767 = vmatprep.mubr.msk.bf16.mxu0 %vm1314_vm1, %v16592_v54 }
0x13d8   : > { %6639 = vmatmul.mubr.bf16.gmra.mxu0 %v16594_v51 }
0x13d9   : > { %13768 = vmatprep.mubr.msk.bf16.mxu0 %vm1314_vm1, %v16595_v0 }
0x13e0   : > { %6647 = vmatmul.mubr.bf16.gmra.mxu0 %v16597_v57 }
0x1464   : > { %v15978_v24 = vpop.f32.mrf.mxu0 }
0x1465   : > { %v18909_v59 = vadd.f32 %v15978_v24, %v18865_v58 }
0x1466   : > { %v6494_v54 = vpop.f32.mrf.mxu0 }
0x1467   : > { %v18912_v51 = vadd.f32 %v6494_v54, %v18868_v22 }
0x1468   : > { %v15979_v0 = vpop.f32.mrf.mxu0 }
0x1469   : > { %v18915_v57 = vadd.f32 %v15979_v0, %v18871_v11 }
0x146a   : > { %v18917_v6 = vpop.f32.mrf.mxu0 }
0x146b   : > { %20992 = vst [vmem:[#allocation15_spill] sm:$0xff] %v18917_v6 }
0x1474   : > { %v15982_v56 = vpop.f32.mrf.mxu0 }
0x1475   : > { %v18920_v12 = vadd.f32 %v15982_v56, %v18876_v30 }
0x1476   : > { %v6510_v38 = vpop.f32.mrf.mxu0 }
0x1477   : > { %v18923_v10 = vadd.f32 %v6510_v38, %v18879_v44 }
0x1478   : > { %v15983_v58 = vpop.f32.mrf.mxu0 }
0x1479   : > { %v18926_v55 = vadd.f32 %v15983_v58, %v18882_v1 }
0x147a   : > { %v18928_v22 = vpop.f32.mrf.mxu0 }
0x1488   : > { %v6624_v17 = vpop.f32.mrf.mxu0 }
0x148a   : > { %v6626_v43 = vpop.f32.mrf.mxu0 }
0x148c   : > { %v6627_v11 = vpop.f32.mrf.mxu0 }
0x148d   : > { %v6655_v24 = vpack.c.bf16 %v6627_v11, %v6624_v17  ;;  %v16608_v11 = vld [vmem:[#allocation2 + $0x544] ss:$8 sps:$4 sm:$0xff]  }
0x148e   : > { %v6629_v54 = vpop.f32.mrf.mxu0 }
0x148f   : > { %16000 = vmatprep.mubr.bf16.mxu1 %v6655_v24 }
0x1490   : > { %v6632_v0 = vpop.f32.mrf.mxu0 }
0x1492   : > { %v6634_v6 = vpop.f32.mrf.mxu0 }
0x1494   : > { %v6635_v30 = vpop.f32.mrf.mxu0 }
0x1495   : > { %v6656_v56 = vpack.c.bf16 %v6635_v30, %v6632_v0  ;;  %v16606_v0 = vld [vmem:[#allocation2 + $0x540] ss:$8 sps:$4 sm:$0xff]   ;;  %v16609_v30 = vld [vmem:[#allocation2 + $0x554] ss:$8 sps:$4 sm:$0xff]  }
0x1496   : > { %v6637_v48 = vpop.f32.mrf.mxu0 }
0x1497   : > { %16001 = vmatmul.mubr.bf16.vlgmr.msra.gmra.mxu1 %v6656_v56  ;;  %v16611_v56 = vld [vmem:[#allocation2 + $0x550] ss:$8 sps:$4 sm:$0xff]  }
0x1498   : > { %6855 = vmatpush1.bf16.msra.mxu1 %v18046_v50  ;;  %v6640_v44 = vpop.f32.mrf.mxu0 }
0x1499   : > { %6856 = vmatprep.subr.bf16.mxu1 %v20984_v31 }
0x149a   : > { %v6642_v1 = vpop.f32.mrf.mxu0 }
0x149b   : > { %v16614_v1 = vld [vmem:[#allocation2 + $0x560] ss:$8 sps:$4 sm:$0xff]  }
0x149c   : > { %6857 = vmatpush1.bf16.msra.mxu1 %v18036_v61  ;;  %v6643_v38 = vpop.f32.mrf.mxu0 }
0x149d   : > { %v6657_v58 = vpack.c.bf16 %v6643_v38, %v6640_v44  ;;  %6858 = vmatprep.subr.bf16.mxu1 %v20984_v31  ;;  %v16612_v44 = vld [vmem:[#allocation2 + $0x564] ss:$8 sps:$4 sm:$0xff]   ;;  %v16615_v38 = vld [vmem:[#allocation2 + $0x574] ss:$8 sps:$4 sm:$0xff]  }
0x149e   : > { %v6645_v17 = vpop.f32.mrf.mxu0 }
0x149f   : > { %16004 = vmatprep.mubr.bf16.mxu1 %v6657_v58  ;;  %v16617_v58 = vld [vmem:[#allocation2 + $0x570] ss:$8 sps:$4 sm:$0xff]  }
0x14a0   : > { %6859 = vmatpush1.bf16.msra.mxu1 %v18026_v39  ;;  %v6648_v6 = vpop.f32.mrf.mxu0  ;;  %v16618_v17 = vld [vmem:[#allocation4 + $0x578] sm:$0xff]  }
0x14a1   : > { %6860 = vmatprep.subr.bf16.mxu1 %v20984_v31  ;;  %16008 = vmatprep.subr.bf16.mxu0 %v16618_v17 }
0x14a2   : > { %v6650_v48 = vpop.f32.mrf.mxu0  ;;  %16009 = vmatpush3.bf16.msra.mxu0 %v16618_v17 }
0x14a3   : > { %v16620_v48 = vld [vmem:[#allocation4 + $0x568] sm:$0xff]  }
0x14a4   : > { %6861 = vmatpush1.bf16.msra.mxu1 %v18016_v29  ;;  %v6651_v43 = vpop.f32.mrf.mxu0 }
0x14a5   : > { %v6658_v24 = vpack.c.bf16 %v6651_v43, %v6648_v6  ;;  %6862 = vmatprep.subr.bf16.mxu1 %v20984_v31  ;;  %v16619_v6 = vld [vmem:[#allocation4 + $0x570] sm:$0xff]   ;;  %v16621_v43 = vld [vmem:[#allocation4 + $0x560] sm:$0xff]  }
0x14a6   : > { %v6653_v54 = vpop.f32.mrf.mxu0  ;;  %16010 = vmatprep.subr.bf16.mxu0 %v16619_v6 }
0x14a7   : > { %16005 = vmatmul.mubr.bf16.gmra.mxu1 %v6658_v24  ;;  %16011 = vmatpush3.bf16.msra.mxu0 %v16619_v6  ;;  %v16623_v24 = vld [vmem:[#allocation4 + $0x550] sm:$0xff]   ;;  %v16624_v54 = vld [vmem:[#allocation4 + $0x548] sm:$0xff]  }
0x14a8   : > { %6863 = vmatpush1.bf16.msra.mxu1 %v18006_v19  ;;  %13785 = vmatprep.mubr.msk.bf16.mxu1 %vm1314_vm1, %v16608_v11  ;;  %v16622_v11 = vld [vmem:[#allocation4 + $0x558] sm:$0xff]  }
0x14a9   : > { %6864 = vmatprep.subr.bf16.mxu1 %v20984_v31  ;;  %16012 = vmatprep.subr.bf16.mxu0 %v16620_v48 }
0x14ab   : > { %16013 = vmatpush3.bf16.msra.mxu0 %v16620_v48 }
0x14ac   : > { %6865 = vmatpush1.bf16.msra.mxu1 %v17996_v9  ;;  %16014 = vmatprep.subr.bf16.mxu0 %v16621_v43 }
0x14ad   : > { %6866 = vmatprep.subr.bf16.mxu1 %v20984_v31 }
0x14af   : > { %16015 = vmatpush3.bf16.msra.mxu0 %v16621_v43 }
0x14b0   : > { %6867 = vmatpush1.bf16.msra.mxu1 %v17986_v62  ;;  %16016 = vmatprep.subr.bf16.mxu0 %v16622_v11 }
0x14b1   : > { %6868 = vmatprep.subr.bf16.mxu1 %v20984_v31 }
0x14b3   : > { %16017 = vmatpush3.bf16.msra.mxu0 %v16622_v11 }
0x14b4   : > { %6869 = vmatpush1.bf16.msra.mxu1 %v17976_v52  ;;  %16018 = vmatprep.subr.bf16.mxu0 %v16623_v24 }
0x14b5   : > { %6884 = vmatprep.subr.bf16.mxu1 %v20984_v31 }
0x14b7   : > { %16019 = vmatpush3.bf16.msra.mxu0 %v16623_v24 }
0x14b8   : > { %6885 = vmatpush2.bf16.msra.mxu1 %v18061_v42  ;;  %16020 = vmatprep.subr.bf16.mxu0 %v16624_v54 }
0x14bb   : > { %6887 = vmatmul.mubr.bf16.vlgmr.msra.gmra.mxu1 %v16606_v0  ;;  %16021 = vmatpush3.bf16.msra.mxu0 %v16624_v54  ;;  %v16625_v0 = vld [vmem:[#allocation4 + $0x540] sm:$0xff]  }
0x14bc   : > { %13786 = vmatprep.mubr.msk.bf16.mxu1 %vm1314_vm1, %v16609_v30  ;;  %16022 = vmatprep.subr.bf16.mxu0 %v16625_v0 }
0x14bf   : > { %16023 = vmatpush3.bf16.msra.mxu0 %v16625_v0 }
0x14c0   : > { %7118 = vmatprep.subr.bf16.mxu0 %v20984_v31 }
0x14c3   : > { %6895 = vmatmul.mubr.bf16.gmra.mxu1 %v16611_v56 }
0x14c4   : > { %13787 = vmatprep.mubr.msk.bf16.mxu1 %vm1314_vm1, %v16612_v44 }
0x14cb   : > { %6903 = vmatmul.mubr.bf16.gmra.mxu1 %v16614_v1 }
0x14cc   : > { %13788 = vmatprep.mubr.msk.bf16.mxu1 %vm1314_vm1, %v16615_v38 }
0x14d3   : > { %6911 = vmatmul.mubr.bf16.gmra.mxu1 %v16617_v58 }
0x1557   : > { %v16002_v30 = vpop.f32.mrf.mxu1 }
0x1558   : > { %v18953_v56 = vadd.f32 %v16002_v30, %v18909_v59 }
0x1559   : > { %v6758_v44 = vpop.f32.mrf.mxu1 }
0x155a   : > { %v18956_v1 = vadd.f32 %v6758_v44, %v18912_v51 }
0x155b   : > { %v16003_v38 = vpop.f32.mrf.mxu1 }
0x155c   : > { %v18959_v58 = vadd.f32 %v16003_v38, %v18915_v57 }
0x155d   : > { %v18961_v17 = vpop.f32.mrf.mxu1 }
0x155e   : > { %20993 = vst [vmem:[#allocation16_spill] sm:$0xff] %v18961_v17 }
0x1567   : > { %v16006_v6 = vpop.f32.mrf.mxu1 }
0x1568   : > { %v18964_v48 = vadd.f32 %v16006_v6, %v18920_v12 }
0x1569   : > { %v6774_v43 = vpop.f32.mrf.mxu1 }
0x156a   : > { %v18967_v11 = vadd.f32 %v6774_v43, %v18923_v10 }
0x156b   : > { %v16007_v59 = vpop.f32.mrf.mxu1 }
0x156c   : > { %v18970_v24 = vadd.f32 %v16007_v59, %v18926_v55 }
0x156d   : > { %v18972_v51 = vpop.f32.mrf.mxu1 }
0x157b   : > { %v6888_v54 = vpop.f32.mrf.mxu1 }
0x157d   : > { %v6890_v0 = vpop.f32.mrf.mxu1 }
0x157f   : > { %v6891_v57 = vpop.f32.mrf.mxu1 }
0x1580   : > { %v6919_v30 = vpack.c.bf16 %v6891_v57, %v6888_v54  ;;  %v16628_v57 = vld [vmem:[#allocation2 + $0x584] ss:$8 sps:$4 sm:$0xff]  }
0x1581   : > { %v6893_v44 = vpop.f32.mrf.mxu1 }
0x1582   : > { %16024 = vmatprep.mubr.bf16.mxu0 %v6919_v30 }
0x1583   : > { %v6896_v38 = vpop.f32.mrf.mxu1 }
0x1585   : > { %v6898_v17 = vpop.f32.mrf.mxu1 }
0x1587   : > { %v6899_v12 = vpop.f32.mrf.mxu1 }
0x1588   : > { %v6920_v6 = vpack.c.bf16 %v6899_v12, %v6896_v38  ;;  %v16626_v38 = vld [vmem:[#allocation2 + $0x580] ss:$8 sps:$4 sm:$0xff]   ;;  %v16629_v12 = vld [vmem:[#allocation2 + $0x594] ss:$8 sps:$4 sm:$0xff]  }
0x1589   : > { %v6901_v45 = vpop.f32.mrf.mxu1 }
0x158a   : > { %16025 = vmatmul.mubr.bf16.vlgmr.msra.gmra.mxu0 %v6920_v6  ;;  %v16631_v6 = vld [vmem:[#allocation2 + $0x590] ss:$8 sps:$4 sm:$0xff]  }
0x158b   : > { %7119 = vmatpush1.bf16.msra.mxu0 %v18046_v50  ;;  %v6904_v10 = vpop.f32.mrf.mxu1 }
0x158c   : > { %7120 = vmatprep.subr.bf16.mxu0 %v20984_v31 }
0x158d   : > { %v6906_v55 = vpop.f32.mrf.mxu1 }
0x158e   : > { %v16634_v55 = vld [vmem:[#allocation2 + $0x5a0] ss:$8 sps:$4 sm:$0xff]  }
0x158f   : > { %7121 = vmatpush1.bf16.msra.mxu0 %v18036_v61  ;;  %v6907_v43 = vpop.f32.mrf.mxu1 }
0x1590   : > { %v6921_v59 = vpack.c.bf16 %v6907_v43, %v6904_v10  ;;  %7122 = vmatprep.subr.bf16.mxu0 %v20984_v31  ;;  %v16632_v10 = vld [vmem:[#allocation2 + $0x5a4] ss:$8 sps:$4 sm:$0xff]   ;;  %v16635_v43 = vld [vmem:[#allocation2 + $0x5b4] ss:$8 sps:$4 sm:$0xff]  }
0x1591   : > { %v6909_v54 = vpop.f32.mrf.mxu1 }
0x1592   : > { %16028 = vmatprep.mubr.bf16.mxu0 %v6921_v59  ;;  %v16637_v59 = vld [vmem:[#allocation2 + $0x5b0] ss:$8 sps:$4 sm:$0xff]  }
0x1593   : > { %7123 = vmatpush1.bf16.msra.mxu0 %v18026_v39  ;;  %v6912_v17 = vpop.f32.mrf.mxu1  ;;  %v16638_v54 = vld [vmem:[#allocation4 + $0x5b8] sm:$0xff]  }
0x1594   : > { %7124 = vmatprep.subr.bf16.mxu0 %v20984_v31  ;;  %16032 = vmatprep.subr.bf16.mxu1 %v16638_v54 }
0x1595   : > { %v6914_v45 = vpop.f32.mrf.mxu1  ;;  %16033 = vmatpush3.bf16.msra.mxu1 %v16638_v54 }
0x1596   : > { %v16640_v45 = vld [vmem:[#allocation4 + $0x5a8] sm:$0xff]  }
0x1597   : > { %7125 = vmatpush1.bf16.msra.mxu0 %v18016_v29  ;;  %v6915_v0 = vpop.f32.mrf.mxu1 }
0x1598   : > { %v6922_v30 = vpack.c.bf16 %v6915_v0, %v6912_v17  ;;  %7126 = vmatprep.subr.bf16.mxu0 %v20984_v31  ;;  %v16639_v17 = vld [vmem:[#allocation4 + $0x5b0] sm:$0xff]   ;;  %v16641_v0 = vld [vmem:[#allocation4 + $0x5a0] sm:$0xff]  }
0x1599   : > { %v6917_v44 = vpop.f32.mrf.mxu1  ;;  %16034 = vmatprep.subr.bf16.mxu1 %v16639_v17 }
0x159a   : > { %16029 = vmatmul.mubr.bf16.gmra.mxu0 %v6922_v30  ;;  %16035 = vmatpush3.bf16.msra.mxu1 %v16639_v17  ;;  %v16643_v30 = vld [vmem:[#allocation4 + $0x590] sm:$0xff]   ;;  %v16644_v44 = vld [vmem:[#allocation4 + $0x588] sm:$0xff]  }
0x159b   : > { %7127 = vmatpush1.bf16.msra.mxu0 %v18006_v19  ;;  %13805 = vmatprep.mubr.msk.bf16.mxu0 %vm1314_vm1, %v16628_v57  ;;  %v16642_v57 = vld [vmem:[#allocation4 + $0x598] sm:$0xff]  }
0x159c   : > { %7128 = vmatprep.subr.bf16.mxu0 %v20984_v31  ;;  %16036 = vmatprep.subr.bf16.mxu1 %v16640_v45 }
0x159e   : > { %16037 = vmatpush3.bf16.msra.mxu1 %v16640_v45 }
0x159f   : > { %7129 = vmatpush1.bf16.msra.mxu0 %v17996_v9  ;;  %16038 = vmatprep.subr.bf16.mxu1 %v16641_v0 }
0x15a0   : > { %7130 = vmatprep.subr.bf16.mxu0 %v20984_v31 }
0x15a2   : > { %16039 = vmatpush3.bf16.msra.mxu1 %v16641_v0 }
0x15a3   : > { %7131 = vmatpush1.bf16.msra.mxu0 %v17986_v62  ;;  %16040 = vmatprep.subr.bf16.mxu1 %v16642_v57 }
0x15a4   : > { %7132 = vmatprep.subr.bf16.mxu0 %v20984_v31 }
0x15a6   : > { %16041 = vmatpush3.bf16.msra.mxu1 %v16642_v57 }
0x15a7   : > { %7133 = vmatpush1.bf16.msra.mxu0 %v17976_v52  ;;  %16042 = vmatprep.subr.bf16.mxu1 %v16643_v30 }
0x15a8   : > { %7148 = vmatprep.subr.bf16.mxu0 %v20984_v31 }
0x15aa   : > { %16043 = vmatpush3.bf16.msra.mxu1 %v16643_v30 }
0x15ab   : > { %7149 = vmatpush2.bf16.msra.mxu0 %v18061_v42  ;;  %16044 = vmatprep.subr.bf16.mxu1 %v16644_v44 }
0x15ae   : > { %7151 = vmatmul.mubr.bf16.vlgmr.msra.gmra.mxu0 %v16626_v38  ;;  %16045 = vmatpush3.bf16.msra.mxu1 %v16644_v44  ;;  %v16645_v38 = vld [vmem:[#allocation4 + $0x580] sm:$0xff]  }
0x15af   : > { %13806 = vmatprep.mubr.msk.bf16.mxu0 %vm1314_vm1, %v16629_v12  ;;  %16046 = vmatprep.subr.bf16.mxu1 %v16645_v38 }
0x15b2   : > { %16047 = vmatpush3.bf16.msra.mxu1 %v16645_v38 }
0x15b3   : > { %7382 = vmatprep.subr.bf16.mxu1 %v20984_v31 }
0x15b6   : > { %7159 = vmatmul.mubr.bf16.gmra.mxu0 %v16631_v6 }
0x15b7   : > { %13807 = vmatprep.mubr.msk.bf16.mxu0 %vm1314_vm1, %v16632_v10 }
0x15be   : > { %7167 = vmatmul.mubr.bf16.gmra.mxu0 %v16634_v55 }
0x15bf   : > { %13808 = vmatprep.mubr.msk.bf16.mxu0 %vm1314_vm1, %v16635_v43 }
0x15c6   : > { %7175 = vmatmul.mubr.bf16.gmra.mxu0 %v16637_v59 }
0x164a   : > { %v16026_v12 = vpop.f32.mrf.mxu0 }
0x164b   : > { %v18997_v6 = vadd.f32 %v16026_v12, %v18953_v56 }
0x164c   : > { %v7022_v10 = vpop.f32.mrf.mxu0 }
0x164d   : > { %v19000_v55 = vadd.f32 %v7022_v10, %v18956_v1 }
0x164e   : > { %v16027_v43 = vpop.f32.mrf.mxu0 }
0x164f   : > { %v19003_v59 = vadd.f32 %v16027_v43, %v18959_v58 }
0x1650   : > { %v19005_v54 = vpop.f32.mrf.mxu0 }
0x1651   : > { %20994 = vst [vmem:[#allocation17_spill] sm:$0xff] %v19005_v54 }
0x165a   : > { %v16030_v17 = vpop.f32.mrf.mxu0 }
0x165b   : > { %v19008_v45 = vadd.f32 %v16030_v17, %v18964_v48 }
0x165c   : > { %v7038_v0 = vpop.f32.mrf.mxu0 }
0x165d   : > { %v19011_v57 = vadd.f32 %v7038_v0, %v18967_v11 }
0x165e   : > { %v16031_v56 = vpop.f32.mrf.mxu0 }
0x165f   : > { %v19014_v30 = vadd.f32 %v16031_v56, %v18970_v24 }
0x1660   : > { %v19016_v1 = vpop.f32.mrf.mxu0 }
0x166e   : > { %v7152_v44 = vpop.f32.mrf.mxu0 }
0x1670   : > { %v7154_v38 = vpop.f32.mrf.mxu0 }
0x1672   : > { %v7155_v58 = vpop.f32.mrf.mxu0 }
0x1673   : > { %v7183_v12 = vpack.c.bf16 %v7155_v58, %v7152_v44  ;;  %v16648_v58 = vld [vmem:[#allocation2 + $0x5c4] ss:$8 sps:$4 sm:$0xff]  }
0x1674   : > { %v7157_v10 = vpop.f32.mrf.mxu0 }
0x1675   : > { %16048 = vmatprep.mubr.bf16.mxu1 %v7183_v12 }
0x1676   : > { %v7160_v43 = vpop.f32.mrf.mxu0 }
0x1678   : > { %v7162_v54 = vpop.f32.mrf.mxu0 }
0x167a   : > { %v7163_v48 = vpop.f32.mrf.mxu0 }
0x167b   : > { %v7184_v17 = vpack.c.bf16 %v7163_v48, %v7160_v43  ;;  %v16646_v43 = vld [vmem:[#allocation2 + $0x5c0] ss:$8 sps:$4 sm:$0xff]   ;;  %v16649_v48 = vld [vmem:[#allocation2 + $0x5d4] ss:$8 sps:$4 sm:$0xff]  }
0x167c   : > { %v7165_v5 = vpop.f32.mrf.mxu0 }
0x167d   : > { %16049 = vmatmul.mubr.bf16.vlgmr.msra.gmra.mxu1 %v7184_v17  ;;  %v16651_v17 = vld [vmem:[#allocation2 + $0x5d0] ss:$8 sps:$4 sm:$0xff]  }
0x167e   : > { %7383 = vmatpush1.bf16.msra.mxu1 %v18046_v50  ;;  %v7168_v11 = vpop.f32.mrf.mxu0 }
0x167f   : > { %7384 = vmatprep.subr.bf16.mxu1 %v20984_v31 }
0x1680   : > { %v7170_v24 = vpop.f32.mrf.mxu0 }
0x1681   : > { %v16654_v24 = vld [vmem:[#allocation2 + $0x5e0] ss:$8 sps:$4 sm:$0xff]  }
0x1682   : > { %7385 = vmatpush1.bf16.msra.mxu1 %v18036_v61  ;;  %v7171_v0 = vpop.f32.mrf.mxu0 }
0x1683   : > { %v7185_v56 = vpack.c.bf16 %v7171_v0, %v7168_v11  ;;  %7386 = vmatprep.subr.bf16.mxu1 %v20984_v31  ;;  %v16652_v11 = vld [vmem:[#allocation2 + $0x5e4] ss:$8 sps:$4 sm:$0xff]   ;;  %v16655_v0 = vld [vmem:[#allocation2 + $0x5f4] ss:$8 sps:$4 sm:$0xff]  }
0x1684   : > { %v7173_v44 = vpop.f32.mrf.mxu0 }
0x1685   : > { %16052 = vmatprep.mubr.bf16.mxu1 %v7185_v56  ;;  %v16657_v56 = vld [vmem:[#allocation2 + $0x5f0] ss:$8 sps:$4 sm:$0xff]  }
0x1686   : > { %7387 = vmatpush1.bf16.msra.mxu1 %v18026_v39  ;;  %v7176_v54 = vpop.f32.mrf.mxu0  ;;  %v16658_v44 = vld [vmem:[#allocation4 + $0x5f8] sm:$0xff]  }
0x1687   : > { %7388 = vmatprep.subr.bf16.mxu1 %v20984_v31  ;;  %16056 = vmatprep.subr.bf16.mxu0 %v16658_v44 }
0x1688   : > { %v7178_v5 = vpop.f32.mrf.mxu0  ;;  %16057 = vmatpush3.bf16.msra.mxu0 %v16658_v44 }
0x1689   : > { %v16660_v5 = vld [vmem:[#allocation4 + $0x5e8] sm:$0xff]  }
0x168a   : > { %7389 = vmatpush1.bf16.msra.mxu1 %v18016_v29  ;;  %v7179_v38 = vpop.f32.mrf.mxu0 }
0x168b   : > { %v7186_v12 = vpack.c.bf16 %v7179_v38, %v7176_v54  ;;  %7390 = vmatprep.subr.bf16.mxu1 %v20984_v31  ;;  %v16659_v54 = vld [vmem:[#allocation4 + $0x5f0] sm:$0xff]   ;;  %v16661_v38 = vld [vmem:[#allocation4 + $0x5e0] sm:$0xff]  }
0x168c   : > { %v7181_v10 = vpop.f32.mrf.mxu0  ;;  %16058 = vmatprep.subr.bf16.mxu0 %v16659_v54 }
0x168d   : > { %16053 = vmatmul.mubr.bf16.gmra.mxu1 %v7186_v12  ;;  %16059 = vmatpush3.bf16.msra.mxu0 %v16659_v54  ;;  %v16663_v12 = vld [vmem:[#allocation4 + $0x5d0] sm:$0xff]   ;;  %v16664_v10 = vld [vmem:[#allocation4 + $0x5c8] sm:$0xff]  }
0x168e   : > { %7391 = vmatpush1.bf16.msra.mxu1 %v18006_v19  ;;  %13825 = vmatprep.mubr.msk.bf16.mxu1 %vm1314_vm1, %v16648_v58  ;;  %v16662_v58 = vld [vmem:[#allocation4 + $0x5d8] sm:$0xff]  }
0x168f   : > { %7392 = vmatprep.subr.bf16.mxu1 %v20984_v31  ;;  %16060 = vmatprep.subr.bf16.mxu0 %v16660_v5 }
0x1691   : > { %16061 = vmatpush3.bf16.msra.mxu0 %v16660_v5 }
0x1692   : > { %7393 = vmatpush1.bf16.msra.mxu1 %v17996_v9  ;;  %16062 = vmatprep.subr.bf16.mxu0 %v16661_v38 }
0x1693   : > { %7394 = vmatprep.subr.bf16.mxu1 %v20984_v31 }
0x1695   : > { %16063 = vmatpush3.bf16.msra.mxu0 %v16661_v38 }
0x1696   : > { %7395 = vmatpush1.bf16.msra.mxu1 %v17986_v62  ;;  %16064 = vmatprep.subr.bf16.mxu0 %v16662_v58 }
0x1697   : > { %7396 = vmatprep.subr.bf16.mxu1 %v20984_v31 }
0x1699   : > { %16065 = vmatpush3.bf16.msra.mxu0 %v16662_v58 }
0x169a   : > { %7397 = vmatpush1.bf16.msra.mxu1 %v17976_v52  ;;  %16066 = vmatprep.subr.bf16.mxu0 %v16663_v12 }
0x169b   : > { %7412 = vmatprep.subr.bf16.mxu1 %v20984_v31 }
0x169d   : > { %16067 = vmatpush3.bf16.msra.mxu0 %v16663_v12 }
0x169e   : > { %7413 = vmatpush2.bf16.msra.mxu1 %v18061_v42  ;;  %16068 = vmatprep.subr.bf16.mxu0 %v16664_v10 }
0x16a1   : > { %7415 = vmatmul.mubr.bf16.vlgmr.msra.gmra.mxu1 %v16646_v43  ;;  %16069 = vmatpush3.bf16.msra.mxu0 %v16664_v10  ;;  %v16665_v43 = vld [vmem:[#allocation4 + $0x5c0] sm:$0xff]  }
0x16a2   : > { %13826 = vmatprep.mubr.msk.bf16.mxu1 %vm1314_vm1, %v16649_v48  ;;  %16070 = vmatprep.subr.bf16.mxu0 %v16665_v43  ;;  %v1770_v48 = vadd.f32 %v18158_v26, %v18134_v34 }
0x16a5   : > { %16071 = vmatpush3.bf16.msra.mxu0 %v16665_v43 }
0x16a6   : > { %7646 = vmatprep.subr.bf16.mxu0 %v20984_v31 }
0x16a9   : > { %7423 = vmatmul.mubr.bf16.gmra.mxu1 %v16651_v17  ;;  %v2042_v17 = vadd.f32 %v18180_v2, %v1770_v48 }
0x16aa   : > { %13827 = vmatprep.mubr.msk.bf16.mxu1 %vm1314_vm1, %v16652_v11 }
0x16ab   : > { %v2306_v11 = vadd.f32 %v18224_v21, %v2042_v17 }
0x16b1   : > { %7431 = vmatmul.mubr.bf16.gmra.mxu1 %v16654_v24  ;;  %v2570_v24 = vadd.f32 %v18268_v33, %v2306_v11 }
0x16b2   : > { %13828 = vmatprep.mubr.msk.bf16.mxu1 %vm1314_vm1, %v16655_v0 }
0x16b3   : > { %v2834_v0 = vadd.f32 %v18312_v4, %v2570_v24 }
0x16b9   : > { %7439 = vmatmul.mubr.bf16.gmra.mxu1 %v16657_v56  ;;  %v3098_v56 = vadd.f32 %v18356_v14, %v2834_v0 }
0x16bb   : > { %v3362_v44 = vadd.f32 %v18400_v49, %v3098_v56 }
0x16bd   : > { %v3626_v54 = vadd.f32 %v18444_v63, %v3362_v44 }
0x16bf   : > { %v3890_v5 = vadd.f32 %v18488_v47, %v3626_v54 }
0x16c1   : > { %v4154_v38 = vadd.f32 %v18532_v20, %v3890_v5 }
0x16c3   : > { %v4418_v34 = vadd.f32 %v18576_v25, %v4154_v38 }
0x16c5   : > { %v4682_v21 = vadd.f32 %v18620_v37, %v4418_v34  ;;  %v16668_v34 = vld [vmem:[#allocation2 + $0x604] ss:$8 sps:$4 sm:$0xff]  }
0x16c7   : > { %v4946_v14 = vadd.f32 %v18664_v40, %v4682_v21  ;;  %v16672_v21 = vld [vmem:[#allocation2 + $0x624] ss:$8 sps:$4 sm:$0xff]  }
0x16c9   : > { %v5210_v63 = vadd.f32 %v18708_v60, %v4946_v14  ;;  %v16680_v14 = vld [vmem:[#allocation4 + $0x628] sm:$0xff]  }
0x16cb   : > { %v5474_v47 = vadd.f32 %v18752_v23, %v5210_v63  ;;  %v16681_v63 = vld [vmem:[#allocation4 + $0x620] sm:$0xff]  }
0x16cd   : > { %v5738_v20 = vadd.f32 %v18796_v53, %v5474_v47  ;;  %v16682_v47 = vld [vmem:[#allocation4 + $0x618] sm:$0xff]  }
0x16cf   : > { %v6002_v25 = vadd.f32 %v18840_v3, %v5738_v20  ;;  %v16683_v20 = vld [vmem:[#allocation4 + $0x610] sm:$0xff]  }
0x16d1   : > { %v6266_v37 = vadd.f32 %v18884_v7, %v6002_v25  ;;  %v16684_v25 = vld [vmem:[#allocation4 + $0x608] sm:$0xff]  }
0x16d3   : > { %v6530_v12 = vadd.f32 %v18928_v22, %v6266_v37  ;;  %v16685_v37 = vld [vmem:[#allocation4 + $0x600] sm:$0xff]  }
0x16d5   : > { %v6794_v10 = vadd.f32 %v18972_v51, %v6530_v12  ;;  %v16689_v12 = vld [vmem:[%s20970_s6 + $0xe8] ss:$16 sps:$4 sm:$0xff]  }
0x16d7   : > { %v7058_v53 = vadd.f32 %v19016_v1, %v6794_v10  ;;  %v1754_v10 = vadd.f32 %v18126_v28, %v18124_v27  ;;  %v20995_v28 = vld [vmem:[#allocation8_spill] sm:$0xff] }
0x173d   : > { %v16050_v58 = vpop.f32.mrf.mxu1 }
0x173e   : > { %v19053_v26 = vadd.f32 %v16050_v58, %v18997_v6 }
0x173f   : > { %v7286_v2 = vpop.f32.mrf.mxu1 }
0x1740   : > { %v19057_v33 = vadd.f32 %v7286_v2, %v19000_v55 }
0x1741   : > { %v16051_v4 = vpop.f32.mrf.mxu1 }
0x1742   : > { %v19061_v49 = vadd.f32 %v16051_v4, %v19003_v59  ;;  %v16678_v4 = vld [vmem:[#allocation4 + $0x638] sm:$0xff]  }
0x1743   : > { %v19067_v6 = vpop.f32.mrf.mxu1  ;;  %16080 = vmatprep.subr.bf16.mxu1 %v16678_v4 }
0x1744   : > { %16081 = vmatpush3.bf16.msra.mxu1 %v16678_v4 }
0x174d   : > { %v16054_v55 = vpop.f32.mrf.mxu1 }
0x174e   : > { %v19072_v40 = vadd.f32 %v16054_v55, %v19008_v45  ;;  %v16688_v55 = vld [vmem:[%s20970_s6 + $0xe4] ss:$16 sps:$4 sm:$0xff]  }
0x174f   : > { %v7302_v59 = vpop.f32.mrf.mxu1 }
0x1750   : > { %v19076_v60 = vadd.f32 %v7302_v59, %v19011_v57  ;;  %v16691_v59 = vld [vmem:[%s20970_s6 + $0xec] ss:$16 sps:$4 sm:$0xff]  }
0x1751   : > { %v16055_v23 = vpop.f32.mrf.mxu1 }
0x1752   : > { %v19080_v3 = vadd.f32 %v16055_v23, %v19014_v30  ;;  %v2038_v23 = vadd.f32 %v18169_v32, %v1754_v10 }
0x1753   : > { %v7305_v43 = vpop.f32.mrf.mxu1 }
0x1754   : > { %v19082_v7 = vadd.f32 %v7305_v43, %v7058_v53  ;;  %v2302_v53 = vadd.f32 %v18213_v41, %v2038_v23 }
0x1756   : > { %v2566_v43 = vadd.f32 %v18257_v36, %v2302_v53 }
0x1761   : > { %v7416_v48 = vpop.f32.mrf.mxu1 }
0x1763   : > { %v7418_v22 = vpop.f32.mrf.mxu1 }
0x1765   : > { %v7419_v17 = vpop.f32.mrf.mxu1 }
0x1766   : > { %v7447_v45 = vpack.c.bf16 %v7419_v17, %v7416_v48  ;;  %v2830_v48 = vadd.f32 %v18301_v8, %v2566_v43 }
0x1767   : > { %v7421_v11 = vpop.f32.mrf.mxu1 }
0x1768   : > { %16072 = vmatprep.mubr.bf16.mxu0 %v7447_v45  ;;  %v3094_v22 = vadd.f32 %v18345_v46, %v2830_v48 }
0x1769   : > { %v7424_v24 = vpop.f32.mrf.mxu1 }
0x176a   : > { %v3358_v17 = vadd.f32 %v18389_v15, %v3094_v22 }
0x176b   : > { %v7426_v51 = vpop.f32.mrf.mxu1 }
0x176c   : > { %v3622_v45 = vadd.f32 %v18433_v35, %v3358_v17  ;;  %v20996_v51 = vld [vmem:[#allocation9_spill] sm:$0xff]  ;;  %v16694_v17 = vld [vmem:[%s20970_s6 + $0xc4] ss:$16 sps:$4 sm:$0xff]  }
0x176d   : > { %v7427_v0 = vpop.f32.mrf.mxu1 }
0x176e   : > { %v7448_v57 = vpack.c.bf16 %v7427_v0, %v7424_v24  ;;  %v3886_v11 = vadd.f32 %v18477_v18, %v3622_v45  ;;  %v20997_v0 = vld [vmem:[#allocation10_spill] sm:$0xff]  ;;  %v16697_v45 = vld [vmem:[%s20970_s6 + $0xcc] ss:$16 sps:$4 sm:$0xff]  }
0x176f   : > { %v7429_v56 = vpop.f32.mrf.mxu1 }
0x1770   : > { %16073 = vmatmul.mubr.bf16.vlgmr.msra.gmra.mxu0 %v7448_v57  ;;  %v4150_v24 = vadd.f32 %v18521_v13, %v3886_v11  ;;  %v20998_v57 = vld [vmem:[#allocation11_spill] sm:$0xff]  ;;  %v20999_v56 = vld [vmem:[#allocation12_spill] sm:$0xff] }
0x1771   : > { %7647 = vmatpush1.bf16.msra.mxu0 %v18046_v50  ;;  %v7432_v1 = vpop.f32.mrf.mxu1  ;;  %v21003_v13 = vld [vmem:[#allocation16_spill] sm:$0xff] }
0x1772   : > { %7648 = vmatprep.subr.bf16.mxu0 %v20984_v31  ;;  %v4414_v27 = vadd.f32 %v18565_v16, %v4150_v24  ;;  %v16692_v11 = vld [vmem:[%s20970_s6 + $0xc0] ss:$16 sps:$4 sm:$0xff]   ;;  %v16695_v24 = vld [vmem:[%s20970_s6 + $0xc8] ss:$16 sps:$4 sm:$0xff]  }
0x1773   : > { %v7434_v30 = vpop.f32.mrf.mxu1 }
0x1774   : > { %v4678_v32 = vadd.f32 %v20995_v28, %v4414_v27  ;;  %v21001_v30 = vld [vmem:[#allocation14_spill] sm:$0xff]  ;;  %v16703_v28 = vld [vmem:[%s20970_s6 + $0xac] ss:$16 sps:$4 sm:$0xff]  }
0x1775   : > { %7649 = vmatpush1.bf16.msra.mxu0 %v18036_v61  ;;  %v7435_v44 = vpop.f32.mrf.mxu1  ;;  %v16700_v27 = vld [vmem:[%s20970_s6 + $0xa4] ss:$16 sps:$4 sm:$0xff]  }
0x1776   : > { %v7449_v54 = vpack.c.bf16 %v7435_v44, %v7432_v1  ;;  %7650 = vmatprep.subr.bf16.mxu0 %v20984_v31  ;;  %v4942_v41 = vadd.f32 %v20996_v51, %v4678_v32  ;;  %v21000_v1 = vld [vmem:[#allocation13_spill] sm:$0xff]  ;;  %v21002_v44 = vld [vmem:[#allocation15_spill] sm:$0xff]  ;;  %v16698_v32 = vld [vmem:[%s20970_s6 + $0xa0] ss:$16 sps:$4 sm:$0xff]  }
0x1777   : > { %v7437_v5 = vpop.f32.mrf.mxu1  ;;  %v16701_v51 = vld [vmem:[%s20970_s6 + $0xa8] ss:$16 sps:$4 sm:$0xff]  }
0x1778   : > { %16076 = vmatprep.mubr.bf16.mxu0 %v7449_v54  ;;  %v5206_v36 = vadd.f32 %v20997_v0, %v4942_v41  ;;  %v16706_v41 = vld [vmem:[%s20970_s6 + $0x84] ss:$16 sps:$4 sm:$0xff]   ;;  %v16709_v0 = vld [vmem:[%s20970_s6 + $0x8c] ss:$16 sps:$4 sm:$0xff]  }
0x1779   : > { %7651 = vmatpush1.bf16.msra.mxu0 %v18026_v39  ;;  %v7440_v38 = vpop.f32.mrf.mxu1  ;;  %v16671_v39 = vld [vmem:[#allocation2 + $0x610] ss:$8 sps:$4 sm:$0xff]  }
0x177a   : > { %7652 = vmatprep.subr.bf16.mxu0 %v20984_v31  ;;  %v5470_v8 = vadd.f32 %v20998_v57, %v5206_v36  ;;  %v16704_v36 = vld [vmem:[%s20970_s6 + $0x80] ss:$16 sps:$4 sm:$0xff]   ;;  %v16707_v57 = vld [vmem:[%s20970_s6 + $0x88] ss:$16 sps:$4 sm:$0xff]  }
0x177b   : > { %v7442_v58 = vpop.f32.mrf.mxu1 }
0x177c   : > { %v5734_v46 = vadd.f32 %v20999_v56, %v5470_v8  ;;  %v21004_v58 = vld [vmem:[#allocation17_spill] sm:$0xff]  ;;  %v16712_v8 = vld [vmem:[%s20970_s6 + $0x64] ss:$16 sps:$4 sm:$0xff]  }
0x177d   : > { %7653 = vmatpush1.bf16.msra.mxu0 %v18016_v29  ;;  %v7443_v50 = vpop.f32.mrf.mxu1  ;;  %v16666_v29 = vld [vmem:[#allocation2 + $0x600] ss:$8 sps:$4 sm:$0xff]   ;;  %v16715_v56 = vld [vmem:[%s20970_s6 + $0x6c] ss:$16 sps:$4 sm:$0xff]  }
0x177e   : > { %v7450_v2 = vpack.c.bf16 %v7443_v50, %v7440_v38  ;;  %7654 = vmatprep.subr.bf16.mxu0 %v20984_v31  ;;  %v5998_v15 = vadd.f32 %v21000_v1, %v5734_v46  ;;  %v16710_v46 = vld [vmem:[%s20970_s6 + $0x60] ss:$16 sps:$4 sm:$0xff]   ;;  %v16713_v1 = vld [vmem:[%s20970_s6 + $0x68] ss:$16 sps:$4 sm:$0xff]  }
0x177f   : > { %v7445_v61 = vpop.f32.mrf.mxu1 }
0x1780   : > { %16077 = vmatmul.mubr.bf16.gmra.mxu0 %v7450_v2  ;;  %v6262_v35 = vadd.f32 %v21001_v30, %v5998_v15  ;;  %v16718_v15 = vld [vmem:[%s20970_s6 + $0x44] ss:$16 sps:$4 sm:$0xff]   ;;  %v16721_v30 = vld [vmem:[%s20970_s6 + $0x4c] ss:$16 sps:$4 sm:$0xff]  }
0x1781   : > { %7655 = vmatpush1.bf16.msra.mxu0 %v18006_v19  ;;  %13845 = vmatprep.mubr.msk.bf16.mxu0 %vm1314_vm1, %v16668_v34  ;;  %v16669_v19 = vld [vmem:[#allocation2 + $0x614] ss:$8 sps:$4 sm:$0xff]  }
0x1782   : > { %7656 = vmatprep.subr.bf16.mxu0 %v20984_v31  ;;  %v6526_v18 = vadd.f32 %v21002_v44, %v6262_v35  ;;  %v16716_v35 = vld [vmem:[%s20970_s6 + $0x40] ss:$16 sps:$4 sm:$0xff]   ;;  %v16719_v44 = vld [vmem:[%s20970_s6 + $0x48] ss:$16 sps:$4 sm:$0xff]  }
0x1784   : > { %v6790_v5 = vadd.f32 %v21003_v13, %v6526_v18  ;;  %v16724_v18 = vld [vmem:[%s20970_s6 + $0x24] ss:$16 sps:$4 sm:$0xff]   ;;  %v16722_v13 = vld [vmem:[%s20970_s6 + $0x20] ss:$16 sps:$4 sm:$0xff]  }
0x1785   : > { %7657 = vmatpush1.bf16.msra.mxu0 %v17996_v9  ;;  %v16674_v9 = vld [vmem:[#allocation2 + $0x620] ss:$8 sps:$4 sm:$0xff]  }
0x1786   : > { %7658 = vmatprep.subr.bf16.mxu0 %v20984_v31  ;;  %v7054_v50 = vadd.f32 %v21004_v58, %v6790_v5  ;;  %v16725_v5 = vld [vmem:[%s20970_s6 + $0x28] ss:$16 sps:$4 sm:$0xff]   ;;  %v16733_v58 = vld [vmem:[%s20970_s6 + $0xc] ss:$16 sps:$4 sm:$0xff]  }
0x1788   : > { %v7318_v61 = vadd.f32 %v19067_v6, %v7054_v50  ;;  %v16728_v50 = vld [vmem:[%s20970_s6] ss:$16 sps:$4 sm:$0xff]  }
0x1789   : > { %7659 = vmatpush1.bf16.msra.mxu0 %v17986_v62  ;;  %v16675_v62 = vld [vmem:[#allocation2 + $0x634] ss:$8 sps:$4 sm:$0xff]  }
0x178a   : > { %7660 = vmatprep.subr.bf16.mxu0 %v20984_v31 }
0x178d   : > { %7661 = vmatpush1.bf16.msra.mxu0 %v17976_v52  ;;  %v16677_v52 = vld [vmem:[#allocation2 + $0x630] ss:$8 sps:$4 sm:$0xff]  }
0x178e   : > { %7676 = vmatprep.subr.bf16.mxu0 %v20984_v31 }
0x1791   : > { %7677 = vmatpush2.bf16.msra.mxu0 %v18061_v42  ;;  %v16679_v42 = vld [vmem:[#allocation4 + $0x630] sm:$0xff]  }
0x1792   : > { %16082 = vmatprep.subr.bf16.mxu1 %v16679_v42  ;;  %8105 = vmatprep.subr.bf16.mxu0 %v16691_v59 }
0x1793   : > { %16083 = vmatpush3.bf16.msra.mxu1 %v16679_v42 }
0x1794   : > { %7679 = vmatmul.mubr.bf16.vlgmr.msra.gmra.mxu0 %v16666_v29  ;;  %16084 = vmatprep.subr.bf16.mxu1 %v16680_v14 }
0x1795   : > { %13846 = vmatprep.mubr.msk.bf16.mxu0 %vm1314_vm1, %v16669_v19  ;;  %8106 = vmatpush1.bf16.msra.mxu0 %v16689_v12 }
0x1796   : > { %8107 = vmatprep.subr.bf16.mxu0 %v16697_v45  ;;  %v16751_v45 = vld [vmem:[%s20970_s6 + $0x1ac] ss:$16 sps:$4 sm:$0xff]  }
0x1797   : > { %16085 = vmatpush3.bf16.msra.mxu1 %v16680_v14 }
0x1798   : > { %16086 = vmatprep.subr.bf16.mxu1 %v16681_v63 }
0x1799   : > { %8108 = vmatpush1.bf16.msra.mxu0 %v16695_v24  ;;  %v16749_v24 = vld [vmem:[%s20970_s6 + $0x1a8] ss:$16 sps:$4 sm:$0xff]  }
0x179a   : > { %8109 = vmatprep.subr.bf16.mxu0 %v16703_v28  ;;  %v16757_v28 = vld [vmem:[%s20970_s6 + $0x18c] ss:$16 sps:$4 sm:$0xff]  }
0x179b   : > { %16087 = vmatpush3.bf16.msra.mxu1 %v16681_v63 }
0x179c   : > { %7687 = vmatmul.mubr.bf16.gmra.mxu0 %v16671_v39  ;;  %16088 = vmatprep.subr.bf16.mxu1 %v16682_v47 }
0x179d   : > { %13847 = vmatprep.mubr.msk.bf16.mxu0 %vm1314_vm1, %v16672_v21  ;;  %8110 = vmatpush1.bf16.msra.mxu0 %v16701_v51  ;;  %v16755_v51 = vld [vmem:[%s20970_s6 + $0x188] ss:$16 sps:$4 sm:$0xff]  }
0x179e   : > { %8111 = vmatprep.subr.bf16.mxu0 %v16709_v0  ;;  %v16763_v0 = vld [vmem:[%s20970_s6 + $0x16c] ss:$16 sps:$4 sm:$0xff]  }
0x179f   : > { %16089 = vmatpush3.bf16.msra.mxu1 %v16682_v47 }
0x17a0   : > { %16090 = vmatprep.subr.bf16.mxu1 %v16683_v20 }
0x17a1   : > { %8112 = vmatpush1.bf16.msra.mxu0 %v16707_v57  ;;  %v16761_v57 = vld [vmem:[%s20970_s6 + $0x168] ss:$16 sps:$4 sm:$0xff]  }
0x17a2   : > { %8113 = vmatprep.subr.bf16.mxu0 %v16715_v56  ;;  %v16769_v56 = vld [vmem:[%s20970_s6 + $0x14c] ss:$16 sps:$4 sm:$0xff]  }
0x17a3   : > { %16091 = vmatpush3.bf16.msra.mxu1 %v16683_v20 }
0x17a4   : > { %7695 = vmatmul.mubr.bf16.gmra.mxu0 %v16674_v9  ;;  %16092 = vmatprep.subr.bf16.mxu1 %v16684_v25 }
0x17a5   : > { %13848 = vmatprep.mubr.msk.bf16.mxu0 %vm1314_vm1, %v16675_v62  ;;  %8114 = vmatpush1.bf16.msra.mxu0 %v16713_v1  ;;  %v16767_v1 = vld [vmem:[%s20970_s6 + $0x148] ss:$16 sps:$4 sm:$0xff]  }
0x17a6   : > { %8115 = vmatprep.subr.bf16.mxu0 %v16721_v30  ;;  %v16775_v30 = vld [vmem:[%s20970_s6 + $0x12c] ss:$16 sps:$4 sm:$0xff]  }
0x17a7   : > { %16093 = vmatpush3.bf16.msra.mxu1 %v16684_v25 }
0x17a8   : > { %16094 = vmatprep.subr.bf16.mxu1 %v16685_v37 }
0x17a9   : > { %8116 = vmatpush1.bf16.msra.mxu0 %v16719_v44  ;;  %v16773_v44 = vld [vmem:[%s20970_s6 + $0x128] ss:$16 sps:$4 sm:$0xff]  }
0x17ab   : > { %16095 = vmatpush3.bf16.msra.mxu1 %v16685_v37 }
0x17ac   : > { %7703 = vmatmul.mubr.bf16.gmra.mxu0 %v16677_v52  ;;  %8064 = vmatprep.subr.bf16.mxu1 %v16688_v55 }
0x17ad   : > { %8137 = vmatprep.mubr.bf16.mxu0 %v20984_v31 }
0x1830   : > { %v16074_v54 = vpop.f32.mrf.mxu0 }
0x1831   : > { %v19137_v16 = vadd.f32 %v16074_v54, %v19053_v26  ;;  %v16727_v54 = vld [vmem:[%s20970_s6 + $0x2c] ss:$16 sps:$4 sm:$0xff]  }
0x1832   : > { %v7550_v38 = vpop.f32.mrf.mxu0  ;;  %8117 = vmatprep.subr.bf16.mxu0 %v16727_v54  ;;  %v16781_v54 = vld [vmem:[%s20970_s6 + $0x10c] ss:$16 sps:$4 sm:$0xff]  }
0x1833   : > { %v19141_v34 = vadd.f32 %v7550_v38, %v19057_v33  ;;  %8118 = vmatpush1.bf16.msra.mxu0 %v16725_v5  ;;  %v16730_v38 = vld [vmem:[%s20970_s6 + $0x4] ss:$16 sps:$4 sm:$0xff]   ;;  %v16779_v5 = vld [vmem:[%s20970_s6 + $0x108] ss:$16 sps:$4 sm:$0xff]  }
0x1834   : > { %v16075_v2 = vpop.f32.mrf.mxu0  ;;  %8119 = vmatprep.subr.bf16.mxu0 %v16733_v58  ;;  %v16787_v58 = vld [vmem:[%s20970_s6 + $0x2ec] ss:$16 sps:$4 sm:$0xff]  }
0x1835   : > { %v19145_v29 = vadd.f32 %v16075_v2, %v19061_v49  ;;  %v16731_v2 = vld [vmem:[%s20970_s6 + $0x8] ss:$16 sps:$4 sm:$0xff]  }
0x1836   : > { %v7553_v19 = vpop.f32.mrf.mxu0 }
0x1837   : > { %v19147_v39 = vadd.f32 %v7553_v19, %v7318_v61  ;;  %8120 = vmatpush1.bf16.msra.mxu0 %v16731_v2  ;;  %v16736_v61 = vld [vmem:[%s20970_s6 + $0x1e4] ss:$16 sps:$4 sm:$0xff]   ;;  %v16739_v19 = vld [vmem:[%s20970_s6 + $0x1ec] ss:$16 sps:$4 sm:$0xff]   ;;  %v16785_v2 = vld [vmem:[%s20970_s6 + $0x2e8] ss:$16 sps:$4 sm:$0xff]  }
0x1838   : > { %8414 = vmatprep.subr.bf16.mxu0 %v16739_v19  ;;  %v16790_v19 = vld [vmem:[%s20970_s6 + $0x2c4] ss:$16 sps:$4 sm:$0xff]  }
0x1840   : > { %v16078_v21 = vpop.f32.mrf.mxu0 }
0x1841   : > { %v19150_v9 = vadd.f32 %v16078_v21, %v19072_v40 }
0x1842   : > { %v7566_v26 = vpop.f32.mrf.mxu0 }
0x1843   : > { %v19153_v62 = vadd.f32 %v7566_v26, %v19076_v60  ;;  %v16686_v60 = vld [vmem:[%s20970_s6 + $0xe0] ss:$16 sps:$4 sm:$0xff]  }
0x1844   : > { %v16079_v52 = vpop.f32.mrf.mxu0 }
0x1845   : > { %v19156_v33 = vadd.f32 %v16079_v52, %v19080_v3 }
0x1846   : > { %v7569_v4 = vpop.f32.mrf.mxu0 }
0x1847   : > { %v19159_v6 = vadd.f32 %v7569_v4, %v19082_v7 }
0x1854   : > { %v7680_v49 = vpop.f32.mrf.mxu0 }
0x1856   : > { %v7682_v42 = vpop.f32.mrf.mxu0 }
0x1858   : > { %v7683_v14 = vpop.f32.mrf.mxu0 }
0x1859   : > { %v7711_v63 = vpack.c.bf16 %v7683_v14, %v7680_v49 }
0x185a   : > { %v7685_v47 = vpop.f32.mrf.mxu0 }
0x185b   : > { %16096 = vmatprep.mubr.bf16.mxu1 %v7711_v63 }
0x185c   : > { %v7688_v40 = vpop.f32.mrf.mxu0 }
0x185e   : > { %v7690_v20 = vpop.f32.mrf.mxu0 }
0x1860   : > { %v7691_v25 = vpop.f32.mrf.mxu0 }
0x1861   : > { %v7712_v37 = vpack.c.bf16 %v7691_v25, %v7688_v40 }
0x1862   : > { %v7693_v3 = vpop.f32.mrf.mxu0 }
0x1863   : > { %16097 = vmatmul.mubr.bf16.vlgmr.msra.gmra.mxu1 %v7712_v37 }
0x1864   : > { %v7696_v55 = vpop.f32.mrf.mxu0  ;;  %8065 = vmatpush1.bf16.msra.mxu1 %v16686_v60 }
0x1865   : > { %8066 = vmatprep.subr.bf16.mxu1 %v16694_v17  ;;  %v16748_v17 = vld [vmem:[%s20970_s6 + $0x1a4] ss:$16 sps:$4 sm:$0xff]  }
0x1866   : > { %v7698_v7 = vpop.f32.mrf.mxu0 }
0x1868   : > { %v7699_v12 = vpop.f32.mrf.mxu0  ;;  %8067 = vmatpush1.bf16.msra.mxu1 %v16692_v11  ;;  %v16746_v11 = vld [vmem:[%s20970_s6 + $0x1a0] ss:$16 sps:$4 sm:$0xff]  }
0x1869   : > { %v7713_v59 = vpack.c.bf16 %v7699_v12, %v7696_v55  ;;  %8068 = vmatprep.subr.bf16.mxu1 %v16700_v27  ;;  %v16754_v27 = vld [vmem:[%s20970_s6 + $0x184] ss:$16 sps:$4 sm:$0xff]  }
0x186a   : > { %v7701_v10 = vpop.f32.mrf.mxu0 }
0x186b   : > { %16100 = vmatprep.mubr.bf16.mxu1 %v7713_v59 }
0x186c   : > { %v7704_v23 = vpop.f32.mrf.mxu0  ;;  %8069 = vmatpush1.bf16.msra.mxu1 %v16698_v32  ;;  %v16752_v32 = vld [vmem:[%s20970_s6 + $0x180] ss:$16 sps:$4 sm:$0xff]  }
0x186d   : > { %8070 = vmatprep.subr.bf16.mxu1 %v16706_v41  ;;  %v16760_v41 = vld [vmem:[%s20970_s6 + $0x164] ss:$16 sps:$4 sm:$0xff]  }
0x186e   : > { %v7706_v53 = vpop.f32.mrf.mxu0 }
0x1870   : > { %v7707_v43 = vpop.f32.mrf.mxu0  ;;  %8071 = vmatpush1.bf16.msra.mxu1 %v16704_v36  ;;  %v16758_v36 = vld [vmem:[%s20970_s6 + $0x160] ss:$16 sps:$4 sm:$0xff]  }
0x1871   : > { %v7714_v48 = vpack.c.bf16 %v7707_v43, %v7704_v23  ;;  %8072 = vmatprep.subr.bf16.mxu1 %v16712_v8  ;;  %v16766_v8 = vld [vmem:[%s20970_s6 + $0x144] ss:$16 sps:$4 sm:$0xff]  }
0x1872   : > { %v7709_v22 = vpop.f32.mrf.mxu0 }
0x1873   : > { %16101 = vmatmul.mubr.bf16.gmra.mxu1 %v7714_v48  ;;  %v16740_v48 = vld [vmem:[%s20970_s6 + $0x1c0] ss:$16 sps:$4 sm:$0xff]   ;;  %v16743_v22 = vld [vmem:[%s20970_s6 + $0x1c8] ss:$16 sps:$4 sm:$0xff]  }
0x1874   : > { %8096 = vmatprep.mubr.bf16.mxu1 %v20984_v31  ;;  %8073 = vmatpush1.bf16.msra.mxu1 %v16710_v46  ;;  %v16764_v46 = vld [vmem:[%s20970_s6 + $0x140] ss:$16 sps:$4 sm:$0xff]  }
0x1875   : > { %8074 = vmatprep.subr.bf16.mxu1 %v16718_v15  ;;  %v16772_v15 = vld [vmem:[%s20970_s6 + $0x124] ss:$16 sps:$4 sm:$0xff]  }
0x1878   : > { %8075 = vmatpush1.bf16.msra.mxu1 %v16716_v35  ;;  %v16770_v35 = vld [vmem:[%s20970_s6 + $0x120] ss:$16 sps:$4 sm:$0xff]  }
0x1879   : > { %8076 = vmatprep.subr.bf16.mxu1 %v16724_v18  ;;  %v16778_v18 = vld [vmem:[%s20970_s6 + $0x104] ss:$16 sps:$4 sm:$0xff]  }
0x187c   : > { %8077 = vmatpush1.bf16.msra.mxu1 %v16722_v13  ;;  %v16776_v13 = vld [vmem:[%s20970_s6 + $0x100] ss:$16 sps:$4 sm:$0xff]  }
0x187d   : > { %8078 = vmatprep.subr.bf16.mxu1 %v16730_v38  ;;  %v16784_v38 = vld [vmem:[%s20970_s6 + $0x2e4] ss:$16 sps:$4 sm:$0xff]  }
0x1880   : > { %8079 = vmatpush1.bf16.msra.mxu1 %v16728_v50  ;;  %v16782_v50 = vld [vmem:[%s20970_s6 + $0x2e0] ss:$16 sps:$4 sm:$0xff]  }
0x1881   : > { %8373 = vmatprep.subr.bf16.mxu1 %v16736_v61 }
0x1923   : > { %v16098_v21 = vpop.f32.mrf.mxu1 }
0x1924   : > { %v7847_v52 = vadd.f32 %v16098_v21, %v19137_v16  ;;  %v13857_v16 = vld [vmem:[%s20969_s5] ss:$0 sm:$0xff]  ;;  %v16793_v21 = vld [vmem:[%s20970_s6 + $0x2cc] ss:$16 sps:$4 sm:$0xff]  }
0x1925   : > { %v7814_v26 = vpop.f32.mrf.mxu1 }
0x1926   : > { %v7845_v4 = vadd.f32 %v7814_v26, %v19141_v34  ;;  %v16788_v26 = vld [vmem:[%s20970_s6 + $0x2c0] ss:$16 sps:$4 sm:$0xff]  }
0x1927   : > { %v16099_v49 = vpop.f32.mrf.mxu1 }
0x1928   : > { %v7853_v42 = vmax.f32 %v7845_v4, %v7847_v52  ;;  %v7848_v14 = vadd.f32 %v16099_v49, %v19145_v29  ;;  %v16791_v52 = vld [vmem:[%s20970_s6 + $0x2c8] ss:$16 sps:$4 sm:$0xff]   ;;  %v16796_v4 = vld [vmem:[%s20970_s6 + $0x2a4] ss:$16 sps:$4 sm:$0xff]   ;;  %v16799_v49 = vld [vmem:[%s20970_s6 + $0x2ac] ss:$16 sps:$4 sm:$0xff]  }
0x1929   : > { %v7817_v63 = vpop.f32.mrf.mxu1 }
0x192a   : > { %v7846_v47 = vadd.f32 %v7817_v63, %v19147_v39  ;;  %v16802_v63 = vld [vmem:[%s20970_s6 + $0x284] ss:$16 sps:$4 sm:$0xff]  }
0x192c   : > { %v7854_v40 = vmax.f32 %v7846_v47, %v7848_v14  ;;  %v16797_v14 = vld [vmem:[%s20970_s6 + $0x2a8] ss:$16 sps:$4 sm:$0xff]   ;;  %v16805_v47 = vld [vmem:[%s20970_s6 + $0x28c] ss:$16 sps:$4 sm:$0xff]  }
0x1933   : > { %v16102_v20 = vpop.f32.mrf.mxu1 }
0x1934   : > { %v7851_v60 = vadd.f32 %v16102_v20, %v19150_v9  ;;  %v16734_v9 = vld [vmem:[%s20970_s6 + $0x1e0] ss:$16 sps:$4 sm:$0xff]   ;;  %v16803_v20 = vld [vmem:[%s20970_s6 + $0x288] ss:$16 sps:$4 sm:$0xff]  }
0x1935   : > { %v7830_v25 = vpop.f32.mrf.mxu1 }
0x1936   : > { %v7849_v37 = vadd.f32 %v7830_v25, %v19153_v62  ;;  %v16737_v62 = vld [vmem:[%s20970_s6 + $0x1e8] ss:$16 sps:$4 sm:$0xff]   ;;  %v16808_v25 = vld [vmem:[%s20970_s6 + $0x264] ss:$16 sps:$4 sm:$0xff]  }
0x1937   : > { %v16103_v3 = vpop.f32.mrf.mxu1 }
0x1938   : > { %v7855_v55 = vmax.f32 %v7849_v37, %v7851_v60  ;;  %v7852_v29 = vadd.f32 %v16103_v3, %v19156_v33  ;;  %v16742_v33 = vld [vmem:[%s20970_s6 + $0x1c4] ss:$16 sps:$4 sm:$0xff]   ;;  %v16811_v60 = vld [vmem:[%s20970_s6 + $0x26c] ss:$16 sps:$4 sm:$0xff]   ;;  %v16806_v37 = vld [vmem:[%s20970_s6 + $0x260] ss:$16 sps:$4 sm:$0xff]  }
0x1939   : > { %v7833_v34 = vpop.f32.mrf.mxu1  ;;  %v16809_v3 = vld [vmem:[%s20970_s6 + $0x268] ss:$16 sps:$4 sm:$0xff]  }
0x193a   : > { %v7857_v7 = vmax.f32 %v7853_v42, %v7855_v55  ;;  %v7850_v12 = vadd.f32 %v7833_v34, %v19159_v6  ;;  %v16745_v6 = vld [vmem:[%s20970_s6 + $0x1cc] ss:$16 sps:$4 sm:$0xff]   ;;  %v16794_v42 = vld [vmem:[%s20970_s6 + $0x2a0] ss:$16 sps:$4 sm:$0xff]   ;;  %v16814_v55 = vld [vmem:[%s20970_s6 + $0x244] ss:$16 sps:$4 sm:$0xff]  }
0x193b   : > { %v16812_v34 = vld [vmem:[%s20970_s6 + $0x240] ss:$16 sps:$4 sm:$0xff]  }
0x193c   : > { %v7866_v39 = vadd.f32 %v13857_v16, %v7857_v7  ;;  %v7856_v59 = vmax.f32 %v7850_v12, %v7852_v29  ;;  %v16815_v7 = vld [vmem:[%s20970_s6 + $0x248] ss:$16 sps:$4 sm:$0xff]   ;;  %v16820_v29 = vld [vmem:[%s20970_s6 + $0x224] ss:$16 sps:$4 sm:$0xff]   ;;  %v16823_v12 = vld [vmem:[%s20970_s6 + $0x22c] ss:$16 sps:$4 sm:$0xff]  }
0x193e   : > { %v7868_v10 = vmax.f32 %v7866_v39, 0.0  ;;  %v7858_v23 = vmax.f32 %v7854_v40, %v7856_v59  ;;  %v16800_v40 = vld [vmem:[%s20970_s6 + $0x280] ss:$16 sps:$4 sm:$0xff]   ;;  %v16821_v59 = vld [vmem:[%s20970_s6 + $0x228] ss:$16 sps:$4 sm:$0xff]  }
0x193f   : > { %v16818_v39 = vld [vmem:[%s20970_s6 + $0x220] ss:$16 sps:$4 sm:$0xff]  }
0x1940   : > { %v19272_v53 = vpack.c.bf16 %v7868_v10, %v7868_v10  ;;  %v19274_v43 = vadd.f32 %v13857_v16, %v7858_v23  ;;  %v16817_v16 = vld [vmem:[%s20970_s6 + $0x24c] ss:$16 sps:$4 sm:$0xff]   ;;  %v16826_v10 = vld [vmem:[%s20970_s6 + $0x204] ss:$16 sps:$4 sm:$0xff]  }
0x1941   : > { %v16829_v23 = vld [vmem:[%s20970_s6 + $0x20c] ss:$16 sps:$4 sm:$0xff]  }
0x1942   : > { %8097 = vmatmul.mubr.bf16.vlgmr.msra.gmra.mxu1 %v19272_v53  ;;  %8138 = vmatmul.mubr.bf16.vlgmr.msra.gmra.mxu0 %v19272_v53  ;;  %v19377_v61 = vshrl.u32 %v19272_v53, 16 }
0x1943   : > { %8374 = vmatpush1.bf16.msra.mxu1 %v16734_v9  ;;  %8415 = vmatpush1.bf16.msra.mxu0 %v16737_v62  ;;  %v16824_v9 = vld [vmem:[%s20970_s6 + $0x200] ss:$16 sps:$4 sm:$0xff]   ;;  %v16827_v62 = vld [vmem:[%s20970_s6 + $0x208] ss:$16 sps:$4 sm:$0xff]  }
0x1944   : > { %8375 = vmatprep.subr.bf16.mxu1 %v16742_v33  ;;  %8416 = vmatprep.subr.bf16.mxu0 %v16745_v6  ;;  %v16832_v33 = vld [vmem:[%s20970_s6 + $0x3e4] ss:$16 sps:$4 sm:$0xff]   ;;  %v16835_v6 = vld [vmem:[%s20970_s6 + $0x3ec] ss:$16 sps:$4 sm:$0xff]  }
0x1945   : > { %8405 = vmatprep.mubr.bf16.mxu1 %v20984_v31  ;;  %8446 = vmatprep.mubr.bf16.mxu0 %v20984_v31 }
0x1947   : > { %8376 = vmatpush1.bf16.msra.mxu1 %v16740_v48  ;;  %8417 = vmatpush1.bf16.msra.mxu0 %v16743_v22  ;;  %v16830_v48 = vld [vmem:[%s20970_s6 + $0x3e0] ss:$16 sps:$4 sm:$0xff]   ;;  %v16833_v22 = vld [vmem:[%s20970_s6 + $0x3e8] ss:$16 sps:$4 sm:$0xff]  }
0x1948   : > { %8377 = vmatprep.subr.bf16.mxu1 %v16748_v17  ;;  %8418 = vmatprep.subr.bf16.mxu0 %v16751_v45  ;;  %v8519_v17 = vrot.slane %v19272_v53, 1  ;;  %v16838_v45 = vld [vmem:[%s20970_s6 + $0x3c4] ss:$16 sps:$4 sm:$0xff]  }
0x194b   : > { %8378 = vmatpush1.bf16.msra.mxu1 %v16746_v11  ;;  %8419 = vmatpush1.bf16.msra.mxu0 %v16749_v24  ;;  %v16841_v11 = vld [vmem:[%s20970_s6 + $0x3cc] ss:$16 sps:$4 sm:$0xff]   ;;  %v16836_v24 = vld [vmem:[%s20970_s6 + $0x3c0] ss:$16 sps:$4 sm:$0xff]  }
0x194c   : > { %8379 = vmatprep.subr.bf16.mxu1 %v16754_v27  ;;  %8420 = vmatprep.subr.bf16.mxu0 %v16757_v28  ;;  %v16839_v27 = vld [vmem:[%s20970_s6 + $0x3c8] ss:$16 sps:$4 sm:$0xff]   ;;  %v16844_v28 = vld [vmem:[%s20970_s6 + $0x3a4] ss:$16 sps:$4 sm:$0xff]  }
0x194f   : > { %8380 = vmatpush1.bf16.msra.mxu1 %v16752_v32  ;;  %8421 = vmatpush1.bf16.msra.mxu0 %v16755_v51  ;;  %v16847_v32 = vld [vmem:[%s20970_s6 + $0x3ac] ss:$16 sps:$4 sm:$0xff]   ;;  %v16842_v51 = vld [vmem:[%s20970_s6 + $0x3a0] ss:$16 sps:$4 sm:$0xff]  }
0x1950   : > { %8381 = vmatprep.subr.bf16.mxu1 %v16760_v41  ;;  %8422 = vmatprep.subr.bf16.mxu0 %v16763_v0  ;;  %v16845_v41 = vld [vmem:[%s20970_s6 + $0x3a8] ss:$16 sps:$4 sm:$0xff]   ;;  %v16850_v0 = vld [vmem:[%s20970_s6 + $0x384] ss:$16 sps:$4 sm:$0xff]  }
0x1953   : > { %8382 = vmatpush1.bf16.msra.mxu1 %v16758_v36  ;;  %8423 = vmatpush1.bf16.msra.mxu0 %v16761_v57  ;;  %v16853_v36 = vld [vmem:[%s20970_s6 + $0x38c] ss:$16 sps:$4 sm:$0xff]   ;;  %v16848_v57 = vld [vmem:[%s20970_s6 + $0x380] ss:$16 sps:$4 sm:$0xff]  }
0x1954   : > { %8383 = vmatprep.subr.bf16.mxu1 %v16766_v8  ;;  %8424 = vmatprep.subr.bf16.mxu0 %v16769_v56  ;;  %v16851_v8 = vld [vmem:[%s20970_s6 + $0x388] ss:$16 sps:$4 sm:$0xff]   ;;  %v16856_v56 = vld [vmem:[%s20970_s6 + $0x364] ss:$16 sps:$4 sm:$0xff]  }
0x1957   : > { %8384 = vmatpush1.bf16.msra.mxu1 %v16764_v46  ;;  %8425 = vmatpush1.bf16.msra.mxu0 %v16767_v1  ;;  %v16859_v46 = vld [vmem:[%s20970_s6 + $0x36c] ss:$16 sps:$4 sm:$0xff]   ;;  %v16854_v1 = vld [vmem:[%s20970_s6 + $0x360] ss:$16 sps:$4 sm:$0xff]  }
0x1958   : > { %8385 = vmatprep.subr.bf16.mxu1 %v16772_v15  ;;  %8426 = vmatprep.subr.bf16.mxu0 %v16775_v30  ;;  %v16857_v15 = vld [vmem:[%s20970_s6 + $0x368] ss:$16 sps:$4 sm:$0xff]   ;;  %v16862_v30 = vld [vmem:[%s20970_s6 + $0x344] ss:$16 sps:$4 sm:$0xff]  }
0x195b   : > { %8386 = vmatpush1.bf16.msra.mxu1 %v16770_v35  ;;  %8427 = vmatpush1.bf16.msra.mxu0 %v16773_v44  ;;  %v16865_v35 = vld [vmem:[%s20970_s6 + $0x34c] ss:$16 sps:$4 sm:$0xff]   ;;  %v16860_v44 = vld [vmem:[%s20970_s6 + $0x340] ss:$16 sps:$4 sm:$0xff]  }
0x195c   : > { %8387 = vmatprep.subr.bf16.mxu1 %v16778_v18  ;;  %8428 = vmatprep.subr.bf16.mxu0 %v16781_v54  ;;  %v16863_v18 = vld [vmem:[%s20970_s6 + $0x348] ss:$16 sps:$4 sm:$0xff]   ;;  %v16868_v54 = vld [vmem:[%s20970_s6 + $0x324] ss:$16 sps:$4 sm:$0xff]  }
0x195f   : > { %8388 = vmatpush1.bf16.msra.mxu1 %v16776_v13  ;;  %8429 = vmatpush1.bf16.msra.mxu0 %v16779_v5  ;;  %v16871_v13 = vld [vmem:[%s20970_s6 + $0x32c] ss:$16 sps:$4 sm:$0xff]   ;;  %v16866_v5 = vld [vmem:[%s20970_s6 + $0x320] ss:$16 sps:$4 sm:$0xff]  }
0x1960   : > { %8681 = vmatprep.subr.bf16.mxu1 %v16784_v38  ;;  %8722 = vmatprep.subr.bf16.mxu0 %v16787_v58  ;;  %v16869_v38 = vld [vmem:[%s20970_s6 + $0x328] ss:$16 sps:$4 sm:$0xff]   ;;  %v16874_v58 = vld [vmem:[%s20970_s6 + $0x304] ss:$16 sps:$4 sm:$0xff]  }
0x1962   : > { %8406 = vmatmul.mubr.bf16.vlgmr.msra.gmra.mxu1 %v19377_v61  ;;  %8447 = vmatmul.mubr.bf16.vlgmr.msra.gmra.mxu0 %v19377_v61 }
0x1963   : > { %8682 = vmatpush1.bf16.msra.mxu1 %v16782_v50  ;;  %8723 = vmatpush1.bf16.msra.mxu0 %v16785_v2  ;;  %v16877_v50 = vld [vmem:[%s20970_s6 + $0x30c] ss:$16 sps:$4 sm:$0xff]   ;;  %v16872_v2 = vld [vmem:[%s20970_s6 + $0x300] ss:$16 sps:$4 sm:$0xff]  }
0x1964   : > { %8683 = vmatprep.subr.bf16.mxu1 %v16790_v19  ;;  %8724 = vmatprep.subr.bf16.mxu0 %v16793_v21  ;;  %v16875_v19 = vld [vmem:[%s20970_s6 + $0x308] ss:$16 sps:$4 sm:$0xff]   ;;  %v16880_v21 = vld [vmem:[%s20970_s6 + $0x4e4] ss:$16 sps:$4 sm:$0xff]  }
0x1965   : > { %8713 = vmatprep.mubr.bf16.mxu1 %v20984_v31  ;;  %8754 = vmatprep.mubr.bf16.mxu0 %v20984_v31 }
0x1967   : > { %8684 = vmatpush1.bf16.msra.mxu1 %v16788_v26  ;;  %8725 = vmatpush1.bf16.msra.mxu0 %v16791_v52  ;;  %v16883_v26 = vld [vmem:[%s20970_s6 + $0x4ec] ss:$16 sps:$4 sm:$0xff]   ;;  %v16878_v52 = vld [vmem:[%s20970_s6 + $0x4e0] ss:$16 sps:$4 sm:$0xff]  }
0x1968   : > { %8685 = vmatprep.subr.bf16.mxu1 %v16796_v4  ;;  %8726 = vmatprep.subr.bf16.mxu0 %v16799_v49  ;;  %v16881_v4 = vld [vmem:[%s20970_s6 + $0x4e8] ss:$16 sps:$4 sm:$0xff]   ;;  %v8826_v49 = vrot.slane %v19377_v61, 1 }
0x196b   : > { %8686 = vmatpush1.bf16.msra.mxu1 %v16794_v42  ;;  %8727 = vmatpush1.bf16.msra.mxu0 %v16797_v14  ;;  %v16886_v42 = vld [vmem:[%s20970_s6 + $0x4c4] ss:$16 sps:$4 sm:$0xff]   ;;  %v16889_v14 = vld [vmem:[%s20970_s6 + $0x4cc] ss:$16 sps:$4 sm:$0xff]  }
0x196c   : > { %8687 = vmatprep.subr.bf16.mxu1 %v16802_v63  ;;  %8728 = vmatprep.subr.bf16.mxu0 %v16805_v47  ;;  %v16884_v63 = vld [vmem:[%s20970_s6 + $0x4c0] ss:$16 sps:$4 sm:$0xff]   ;;  %v16887_v47 = vld [vmem:[%s20970_s6 + $0x4c8] ss:$16 sps:$4 sm:$0xff]  }
0x196f   : > { %8688 = vmatpush1.bf16.msra.mxu1 %v16800_v40  ;;  %8729 = vmatpush1.bf16.msra.mxu0 %v16803_v20  ;;  %v16892_v40 = vld [vmem:[%s20970_s6 + $0x4a4] ss:$16 sps:$4 sm:$0xff]   ;;  %v16895_v20 = vld [vmem:[%s20970_s6 + $0x4ac] ss:$16 sps:$4 sm:$0xff]  }
0x1970   : > { %8689 = vmatprep.subr.bf16.mxu1 %v16808_v25  ;;  %8730 = vmatprep.subr.bf16.mxu0 %v16811_v60  ;;  %v16890_v25 = vld [vmem:[%s20970_s6 + $0x4a0] ss:$16 sps:$4 sm:$0xff]   ;;  %v16893_v60 = vld [vmem:[%s20970_s6 + $0x4a8] ss:$16 sps:$4 sm:$0xff]  }
0x1973   : > { %8690 = vmatpush1.bf16.msra.mxu1 %v16806_v37  ;;  %8731 = vmatpush1.bf16.msra.mxu0 %v16809_v3  ;;  %v16898_v37 = vld [vmem:[%s20970_s6 + $0x484] ss:$16 sps:$4 sm:$0xff]   ;;  %v16901_v3 = vld [vmem:[%s20970_s6 + $0x48c] ss:$16 sps:$4 sm:$0xff]  }
0x1974   : > { %8691 = vmatprep.subr.bf16.mxu1 %v16814_v55  ;;  %8732 = vmatprep.subr.bf16.mxu0 %v16817_v16  ;;  %v16896_v55 = vld [vmem:[%s20970_s6 + $0x480] ss:$16 sps:$4 sm:$0xff]   ;;  %v16899_v16 = vld [vmem:[%s20970_s6 + $0x488] ss:$16 sps:$4 sm:$0xff]  }
0x1977   : > { %8692 = vmatpush1.bf16.msra.mxu1 %v16812_v34  ;;  %8733 = vmatpush1.bf16.msra.mxu0 %v16815_v7  ;;  %v16904_v34 = vld [vmem:[%s20970_s6 + $0x464] ss:$16 sps:$4 sm:$0xff]   ;;  %v16907_v7 = vld [vmem:[%s20970_s6 + $0x46c] ss:$16 sps:$4 sm:$0xff]  }
0x1978   : > { %8693 = vmatprep.subr.bf16.mxu1 %v16820_v29  ;;  %8734 = vmatprep.subr.bf16.mxu0 %v16823_v12  ;;  %v16902_v29 = vld [vmem:[%s20970_s6 + $0x460] ss:$16 sps:$4 sm:$0xff]   ;;  %v16905_v12 = vld [vmem:[%s20970_s6 + $0x468] ss:$16 sps:$4 sm:$0xff]  }
0x197b   : > { %8694 = vmatpush1.bf16.msra.mxu1 %v16818_v39  ;;  %8735 = vmatpush1.bf16.msra.mxu0 %v16821_v59  ;;  %v16910_v39 = vld [vmem:[%s20970_s6 + $0x444] ss:$16 sps:$4 sm:$0xff]   ;;  %v16913_v59 = vld [vmem:[%s20970_s6 + $0x44c] ss:$16 sps:$4 sm:$0xff]  }
0x197c   : > { %8695 = vmatprep.subr.bf16.mxu1 %v16826_v10  ;;  %8736 = vmatprep.subr.bf16.mxu0 %v16829_v23  ;;  %v16908_v10 = vld [vmem:[%s20970_s6 + $0x440] ss:$16 sps:$4 sm:$0xff]   ;;  %v16911_v23 = vld [vmem:[%s20970_s6 + $0x448] ss:$16 sps:$4 sm:$0xff]  }
0x197f   : > { %8696 = vmatpush1.bf16.msra.mxu1 %v16824_v9  ;;  %8737 = vmatpush1.bf16.msra.mxu0 %v16827_v62  ;;  %v16916_v9 = vld [vmem:[%s20970_s6 + $0x424] ss:$16 sps:$4 sm:$0xff]   ;;  %v16919_v62 = vld [vmem:[%s20970_s6 + $0x42c] ss:$16 sps:$4 sm:$0xff]  }
0x1980   : > { %8988 = vmatprep.subr.bf16.mxu1 %v16832_v33  ;;  %9029 = vmatprep.subr.bf16.mxu0 %v16835_v6  ;;  %v16914_v33 = vld [vmem:[%s20970_s6 + $0x420] ss:$16 sps:$4 sm:$0xff]   ;;  %v16917_v6 = vld [vmem:[%s20970_s6 + $0x428] ss:$16 sps:$4 sm:$0xff]  }
0x1982   : > { %8714 = vmatmul.mubr.bf16.vlgmr.msra.gmra.mxu1 %v8519_v17  ;;  %8755 = vmatmul.mubr.bf16.vlgmr.msra.gmra.mxu0 %v8519_v17  ;;  %v16920_v17 = vld [vmem:[%s20970_s6 + $0x400] ss:$16 sps:$4 sm:$0xff]  }
0x1983   : > { %8989 = vmatpush1.bf16.msra.mxu1 %v16830_v48  ;;  %9030 = vmatpush1.bf16.msra.mxu0 %v16833_v22  ;;  %v16922_v48 = vld [vmem:[%s20970_s6 + $0x404] ss:$16 sps:$4 sm:$0xff]   ;;  %v16925_v22 = vld [vmem:[%s20970_s6 + $0x40c] ss:$16 sps:$4 sm:$0xff]  }
0x1984   : > { %8990 = vmatprep.subr.bf16.mxu1 %v16838_v45  ;;  %9031 = vmatprep.subr.bf16.mxu0 %v16841_v11  ;;  %v16923_v45 = vld [vmem:[%s20970_s6 + $0x408] ss:$16 sps:$4 sm:$0xff]   ;;  %v16928_v11 = vld [vmem:[%s20970_s6 + $0x5e4] ss:$16 sps:$4 sm:$0xff]  }
0x1985   : > { %9020 = vmatprep.mubr.bf16.mxu1 %v20984_v31  ;;  %9061 = vmatprep.mubr.bf16.mxu0 %v20984_v31 }
0x1987   : > { %8991 = vmatpush1.bf16.msra.mxu1 %v16836_v24  ;;  %9032 = vmatpush1.bf16.msra.mxu0 %v16839_v27  ;;  %v16931_v24 = vld [vmem:[%s20970_s6 + $0x5ec] ss:$16 sps:$4 sm:$0xff]   ;;  %v16926_v27 = vld [vmem:[%s20970_s6 + $0x5e0] ss:$16 sps:$4 sm:$0xff]  }
0x1988   : > { %8992 = vmatprep.subr.bf16.mxu1 %v16844_v28  ;;  %9033 = vmatprep.subr.bf16.mxu0 %v16847_v32  ;;  %v16929_v28 = vld [vmem:[%s20970_s6 + $0x5e8] ss:$16 sps:$4 sm:$0xff]   ;;  %v9133_v32 = vrot.slane %v19272_v53, 2 }
0x198b   : > { %8993 = vmatpush1.bf16.msra.mxu1 %v16842_v51  ;;  %9034 = vmatpush1.bf16.msra.mxu0 %v16845_v41  ;;  %v16934_v51 = vld [vmem:[%s20970_s6 + $0x5c4] ss:$16 sps:$4 sm:$0xff]   ;;  %v16937_v41 = vld [vmem:[%s20970_s6 + $0x5cc] ss:$16 sps:$4 sm:$0xff]  }
0x198c   : > { %8994 = vmatprep.subr.bf16.mxu1 %v16850_v0  ;;  %9035 = vmatprep.subr.bf16.mxu0 %v16853_v36  ;;  %v16932_v0 = vld [vmem:[%s20970_s6 + $0x5c0] ss:$16 sps:$4 sm:$0xff]   ;;  %v16935_v36 = vld [vmem:[%s20970_s6 + $0x5c8] ss:$16 sps:$4 sm:$0xff]  }
0x198f   : > { %8995 = vmatpush1.bf16.msra.mxu1 %v16848_v57  ;;  %9036 = vmatpush1.bf16.msra.mxu0 %v16851_v8  ;;  %v16940_v57 = vld [vmem:[%s20970_s6 + $0x5a4] ss:$16 sps:$4 sm:$0xff]   ;;  %v16943_v8 = vld [vmem:[%s20970_s6 + $0x5ac] ss:$16 sps:$4 sm:$0xff]  }
0x1990   : > { %8996 = vmatprep.subr.bf16.mxu1 %v16856_v56  ;;  %9037 = vmatprep.subr.bf16.mxu0 %v16859_v46  ;;  %v16938_v56 = vld [vmem:[%s20970_s6 + $0x5a0] ss:$16 sps:$4 sm:$0xff]   ;;  %v16941_v46 = vld [vmem:[%s20970_s6 + $0x5a8] ss:$16 sps:$4 sm:$0xff]  }
0x1993   : > { %8997 = vmatpush1.bf16.msra.mxu1 %v16854_v1  ;;  %9038 = vmatpush1.bf16.msra.mxu0 %v16857_v15  ;;  %v16946_v1 = vld [vmem:[%s20970_s6 + $0x584] ss:$16 sps:$4 sm:$0xff]   ;;  %v16949_v15 = vld [vmem:[%s20970_s6 + $0x58c] ss:$16 sps:$4 sm:$0xff]  }
0x1994   : > { %8998 = vmatprep.subr.bf16.mxu1 %v16862_v30  ;;  %9039 = vmatprep.subr.bf16.mxu0 %v16865_v35  ;;  %v16944_v30 = vld [vmem:[%s20970_s6 + $0x580] ss:$16 sps:$4 sm:$0xff]   ;;  %v16947_v35 = vld [vmem:[%s20970_s6 + $0x588] ss:$16 sps:$4 sm:$0xff]  }
0x1997   : > { %8999 = vmatpush1.bf16.msra.mxu1 %v16860_v44  ;;  %9040 = vmatpush1.bf16.msra.mxu0 %v16863_v18  ;;  %v16952_v44 = vld [vmem:[%s20970_s6 + $0x564] ss:$16 sps:$4 sm:$0xff]   ;;  %v16955_v18 = vld [vmem:[%s20970_s6 + $0x56c] ss:$16 sps:$4 sm:$0xff]  }
0x1998   : > { %9000 = vmatprep.subr.bf16.mxu1 %v16868_v54  ;;  %9041 = vmatprep.subr.bf16.mxu0 %v16871_v13  ;;  %v16950_v54 = vld [vmem:[%s20970_s6 + $0x560] ss:$16 sps:$4 sm:$0xff]   ;;  %v16953_v13 = vld [vmem:[%s20970_s6 + $0x568] ss:$16 sps:$4 sm:$0xff]  }
0x199b   : > { %9001 = vmatpush1.bf16.msra.mxu1 %v16866_v5  ;;  %9042 = vmatpush1.bf16.msra.mxu0 %v16869_v38  ;;  %v16958_v5 = vld [vmem:[%s20970_s6 + $0x544] ss:$16 sps:$4 sm:$0xff]   ;;  %v16961_v38 = vld [vmem:[%s20970_s6 + $0x54c] ss:$16 sps:$4 sm:$0xff]  }
0x199c   : > { %9002 = vmatprep.subr.bf16.mxu1 %v16874_v58  ;;  %9043 = vmatprep.subr.bf16.mxu0 %v16877_v50  ;;  %v16956_v58 = vld [vmem:[%s20970_s6 + $0x540] ss:$16 sps:$4 sm:$0xff]   ;;  %v16959_v50 = vld [vmem:[%s20970_s6 + $0x548] ss:$16 sps:$4 sm:$0xff]  }
0x199f   : > { %9003 = vmatpush1.bf16.msra.mxu1 %v16872_v2  ;;  %9044 = vmatpush1.bf16.msra.mxu0 %v16875_v19  ;;  %v16964_v2 = vld [vmem:[%s20970_s6 + $0x524] ss:$16 sps:$4 sm:$0xff]   ;;  %v16967_v19 = vld [vmem:[%s20970_s6 + $0x52c] ss:$16 sps:$4 sm:$0xff]  }
0x19a0   : > { %9295 = vmatprep.subr.bf16.mxu1 %v16880_v21  ;;  %9336 = vmatprep.subr.bf16.mxu0 %v16883_v26  ;;  %v16962_v21 = vld [vmem:[%s20970_s6 + $0x520] ss:$16 sps:$4 sm:$0xff]   ;;  %v16965_v26 = vld [vmem:[%s20970_s6 + $0x528] ss:$16 sps:$4 sm:$0xff]  }
0x19a2   : > { %9021 = vmatmul.mubr.bf16.vlgmr.msra.gmra.mxu1 %v8826_v49  ;;  %9062 = vmatmul.mubr.bf16.vlgmr.msra.gmra.mxu0 %v8826_v49  ;;  %v16968_v49 = vld [vmem:[%s20970_s6 + $0x500] ss:$16 sps:$4 sm:$0xff]  }
0x19a3   : > { %9296 = vmatpush1.bf16.msra.mxu1 %v16878_v52  ;;  %9337 = vmatpush1.bf16.msra.mxu0 %v16881_v4  ;;  %v16970_v52 = vld [vmem:[%s20970_s6 + $0x504] ss:$16 sps:$4 sm:$0xff]   ;;  %v16973_v4 = vld [vmem:[%s20970_s6 + $0x50c] ss:$16 sps:$4 sm:$0xff]  }
0x19a4   : > { %9297 = vmatprep.subr.bf16.mxu1 %v16886_v42  ;;  %9338 = vmatprep.subr.bf16.mxu0 %v16889_v14  ;;  %v16971_v42 = vld [vmem:[%s20970_s6 + $0x508] ss:$16 sps:$4 sm:$0xff]   ;;  %v16976_v14 = vld [vmem:[%s20970_s6 + $0x6e4] ss:$16 sps:$4 sm:$0xff]  }
0x19a5   : > { %9327 = vmatprep.mubr.bf16.mxu1 %v20984_v31  ;;  %9368 = vmatprep.mubr.bf16.mxu0 %v20984_v31 }
0x19a7   : > { %9298 = vmatpush1.bf16.msra.mxu1 %v16884_v63  ;;  %9339 = vmatpush1.bf16.msra.mxu0 %v16887_v47  ;;  %v16979_v63 = vld [vmem:[%s20970_s6 + $0x6ec] ss:$16 sps:$4 sm:$0xff]   ;;  %v16974_v47 = vld [vmem:[%s20970_s6 + $0x6e0] ss:$16 sps:$4 sm:$0xff]  }
0x19a8   : > { %9299 = vmatprep.subr.bf16.mxu1 %v16892_v40  ;;  %9340 = vmatprep.subr.bf16.mxu0 %v16895_v20  ;;  %v16977_v40 = vld [vmem:[%s20970_s6 + $0x6e8] ss:$16 sps:$4 sm:$0xff]   ;;  %v9440_v20 = vrot.slane %v19377_v61, 2 }
0x19ab   : > { %9300 = vmatpush1.bf16.msra.mxu1 %v16890_v25  ;;  %9341 = vmatpush1.bf16.msra.mxu0 %v16893_v60  ;;  %v16982_v25 = vld [vmem:[%s20970_s6 + $0x6c4] ss:$16 sps:$4 sm:$0xff]   ;;  %v16985_v60 = vld [vmem:[%s20970_s6 + $0x6cc] ss:$16 sps:$4 sm:$0xff]  }
0x19ac   : > { %9301 = vmatprep.subr.bf16.mxu1 %v16898_v37  ;;  %9342 = vmatprep.subr.bf16.mxu0 %v16901_v3  ;;  %v16980_v37 = vld [vmem:[%s20970_s6 + $0x6c0] ss:$16 sps:$4 sm:$0xff]   ;;  %v16983_v3 = vld [vmem:[%s20970_s6 + $0x6c8] ss:$16 sps:$4 sm:$0xff]  }
0x19af   : > { %9302 = vmatpush1.bf16.msra.mxu1 %v16896_v55  ;;  %9343 = vmatpush1.bf16.msra.mxu0 %v16899_v16  ;;  %v16988_v55 = vld [vmem:[%s20970_s6 + $0x6a4] ss:$16 sps:$4 sm:$0xff]   ;;  %v16991_v16 = vld [vmem:[%s20970_s6 + $0x6ac] ss:$16 sps:$4 sm:$0xff]  }
0x19b0   : > { %9303 = vmatprep.subr.bf16.mxu1 %v16904_v34  ;;  %9344 = vmatprep.subr.bf16.mxu0 %v16907_v7  ;;  %v16986_v34 = vld [vmem:[%s20970_s6 + $0x6a0] ss:$16 sps:$4 sm:$0xff]   ;;  %v16989_v7 = vld [vmem:[%s20970_s6 + $0x6a8] ss:$16 sps:$4 sm:$0xff]  }
0x19b3   : > { %9304 = vmatpush1.bf16.msra.mxu1 %v16902_v29  ;;  %9345 = vmatpush1.bf16.msra.mxu0 %v16905_v12  ;;  %v16994_v29 = vld [vmem:[%s20970_s6 + $0x684] ss:$16 sps:$4 sm:$0xff]   ;;  %v16997_v12 = vld [vmem:[%s20970_s6 + $0x68c] ss:$16 sps:$4 sm:$0xff]  }
0x19b4   : > { %9305 = vmatprep.subr.bf16.mxu1 %v16910_v39  ;;  %9346 = vmatprep.subr.bf16.mxu0 %v16913_v59  ;;  %v16992_v39 = vld [vmem:[%s20970_s6 + $0x680] ss:$16 sps:$4 sm:$0xff]   ;;  %v16995_v59 = vld [vmem:[%s20970_s6 + $0x688] ss:$16 sps:$4 sm:$0xff]  }
0x19b7   : > { %9306 = vmatpush1.bf16.msra.mxu1 %v16908_v10  ;;  %9347 = vmatpush1.bf16.msra.mxu0 %v16911_v23  ;;  %v17000_v10 = vld [vmem:[%s20970_s6 + $0x664] ss:$16 sps:$4 sm:$0xff]   ;;  %v17003_v23 = vld [vmem:[%s20970_s6 + $0x66c] ss:$16 sps:$4 sm:$0xff]  }
0x19b8   : > { %9307 = vmatprep.subr.bf16.mxu1 %v16916_v9  ;;  %9348 = vmatprep.subr.bf16.mxu0 %v16919_v62  ;;  %v16998_v9 = vld [vmem:[%s20970_s6 + $0x660] ss:$16 sps:$4 sm:$0xff]   ;;  %v17001_v62 = vld [vmem:[%s20970_s6 + $0x668] ss:$16 sps:$4 sm:$0xff]  }
0x19bb   : > { %9308 = vmatpush1.bf16.msra.mxu1 %v16914_v33  ;;  %9349 = vmatpush1.bf16.msra.mxu0 %v16917_v6  ;;  %v17006_v33 = vld [vmem:[%s20970_s6 + $0x644] ss:$16 sps:$4 sm:$0xff]   ;;  %v17009_v6 = vld [vmem:[%s20970_s6 + $0x64c] ss:$16 sps:$4 sm:$0xff]  }
0x19bc   : > { %9309 = vmatprep.subr.bf16.mxu1 %v16922_v48  ;;  %9350 = vmatprep.subr.bf16.mxu0 %v16925_v22  ;;  %v17004_v48 = vld [vmem:[%s20970_s6 + $0x640] ss:$16 sps:$4 sm:$0xff]   ;;  %v17007_v22 = vld [vmem:[%s20970_s6 + $0x648] ss:$16 sps:$4 sm:$0xff]  }
0x19bf   : > { %9310 = vmatpush1.bf16.msra.mxu1 %v16920_v17  ;;  %9351 = vmatpush1.bf16.msra.mxu0 %v16923_v45  ;;  %v17012_v17 = vld [vmem:[%s20970_s6 + $0x624] ss:$16 sps:$4 sm:$0xff]   ;;  %v17015_v45 = vld [vmem:[%s20970_s6 + $0x62c] ss:$16 sps:$4 sm:$0xff]  }
0x19c0   : > { %9602 = vmatprep.subr.bf16.mxu1 %v16928_v11  ;;  %9643 = vmatprep.subr.bf16.mxu0 %v16931_v24  ;;  %v17010_v11 = vld [vmem:[%s20970_s6 + $0x620] ss:$16 sps:$4 sm:$0xff]   ;;  %v17013_v24 = vld [vmem:[%s20970_s6 + $0x628] ss:$16 sps:$4 sm:$0xff]  }
0x19c2   : > { %9328 = vmatmul.mubr.bf16.vlgmr.msra.gmra.mxu1 %v9133_v32  ;;  %9369 = vmatmul.mubr.bf16.vlgmr.msra.gmra.mxu0 %v9133_v32  ;;  %v17016_v32 = vld [vmem:[%s20970_s6 + $0x600] ss:$16 sps:$4 sm:$0xff]  }
0x19c3   : > { %9603 = vmatpush1.bf16.msra.mxu1 %v16926_v27  ;;  %9644 = vmatpush1.bf16.msra.mxu0 %v16929_v28  ;;  %v17018_v27 = vld [vmem:[%s20970_s6 + $0x604] ss:$16 sps:$4 sm:$0xff]   ;;  %v17021_v28 = vld [vmem:[%s20970_s6 + $0x60c] ss:$16 sps:$4 sm:$0xff]  }
0x19c4   : > { %9604 = vmatprep.subr.bf16.mxu1 %v16934_v51  ;;  %9645 = vmatprep.subr.bf16.mxu0 %v16937_v41  ;;  %v17019_v51 = vld [vmem:[%s20970_s6 + $0x608] ss:$16 sps:$4 sm:$0xff]   ;;  %v17567_v41 = vmov 1966171168  }
0x19c5   : > { %9634 = vmatprep.mubr.bf16.mxu1 %v20984_v31  ;;  %9675 = vmatprep.mubr.bf16.mxu0 %v20984_v31 }
0x19c7   : > { %9605 = vmatpush1.bf16.msra.mxu1 %v16932_v0  ;;  %9646 = vmatpush1.bf16.msra.mxu0 %v16935_v36  ;;  %v8153_v0 = vunpack.c.l.s4 %v17567_v41  ;;  %v8155_v36 = vlaneseq  ;;  %v17079_v41 = vld [vmem:[%s20970_s6 + $0x8c8] ss:$16 sps:$4 sm:$0xff]  }
0x19c8   : > { %9606 = vmatprep.subr.bf16.mxu1 %v16940_v57  ;;  %9647 = vmatprep.subr.bf16.mxu0 %v16943_v8  ;;  %v17024_v57 = vld [vmem:[%s20970_s6 + $0x7e4] ss:$16 sps:$4 sm:$0xff]   ;;  %v17027_v8 = vld [vmem:[%s20970_s6 + $0x7ec] ss:$16 sps:$4 sm:$0xff]  }
0x19cb   : > { %9607 = vmatpush1.bf16.msra.mxu1 %v16938_v56  ;;  %9648 = vmatpush1.bf16.msra.mxu0 %v16941_v46  ;;  %v17022_v56 = vld [vmem:[%s20970_s6 + $0x7e0] ss:$16 sps:$4 sm:$0xff]   ;;  %v17025_v46 = vld [vmem:[%s20970_s6 + $0x7e8] ss:$16 sps:$4 sm:$0xff]  }
0x19cc   : > { %9608 = vmatprep.subr.bf16.mxu1 %v16946_v1  ;;  %9649 = vmatprep.subr.bf16.mxu0 %v16949_v15  ;;  %v8154_v1 = vunpack.c.0.s8 %v8153_v0  ;;  %v19876_v15 = vshrl.u32 %v8155_v36, 7 }
0x19cf   : > { %9609 = vmatpush1.bf16.msra.mxu1 %v16944_v30  ;;  %9650 = vmatpush1.bf16.msra.mxu0 %v16947_v35  ;;  %v9747_v30 = vrot.slane %v19272_v53, 3  ;;  %v17030_v35 = vld [vmem:[%s20970_s6 + $0x7c4] ss:$16 sps:$4 sm:$0xff]   ;;  %v17028_v53 = vld [vmem:[%s20970_s6 + $0x7c0] ss:$16 sps:$4 sm:$0xff]  }
0x19d0   : > { %9610 = vmatprep.subr.bf16.mxu1 %v16952_v44  ;;  %9651 = vmatprep.subr.bf16.mxu0 %v16955_v18  ;;  %v17033_v44 = vld [vmem:[%s20970_s6 + $0x7cc] ss:$16 sps:$4 sm:$0xff]  }
0x19d3   : > { %9611 = vmatpush1.bf16.msra.mxu1 %v16950_v54  ;;  %9652 = vmatpush1.bf16.msra.mxu0 %v16953_v13  ;;  %v19886_v13 = vsub.s32 %v8154_v1, %v19876_v15 }
0x19d4   : > { %9612 = vmatprep.subr.bf16.mxu1 %v16958_v5  ;;  %9653 = vmatprep.subr.bf16.mxu0 %v16961_v38  ;;  %v17031_v5 = vld [vmem:[%s20970_s6 + $0x7c8] ss:$16 sps:$4 sm:$0xff]  }
0x19d7   : > { %9613 = vmatpush1.bf16.msra.mxu1 %v16956_v58  ;;  %9654 = vmatpush1.bf16.msra.mxu0 %v16959_v50  ;;  %v17036_v50 = vld [vmem:[%s20970_s6 + $0x7a4] ss:$16 sps:$4 sm:$0xff]  }
0x19d8   : > { %9614 = vmatprep.subr.bf16.mxu1 %v16964_v2  ;;  %9655 = vmatprep.subr.bf16.mxu0 %v16967_v19  ;;  %v17039_v2 = vld [vmem:[%s20970_s6 + $0x7ac] ss:$16 sps:$4 sm:$0xff]  }
0x19db   : > { %9615 = vmatpush1.bf16.msra.mxu1 %v16962_v21  ;;  %9656 = vmatpush1.bf16.msra.mxu0 %v16965_v26 }
0x19dc   : > { %9616 = vmatprep.subr.bf16.mxu1 %v16970_v52  ;;  %9657 = vmatprep.subr.bf16.mxu0 %v16973_v4 }
0x19df   : > { %9617 = vmatpush1.bf16.msra.mxu1 %v16968_v49  ;;  %9658 = vmatpush1.bf16.msra.mxu0 %v16971_v42  ;;  %v17034_v42 = vld [vmem:[%s20970_s6 + $0x7a0] ss:$16 sps:$4 sm:$0xff]  }
0x19e0   : > { %9909 = vmatprep.subr.bf16.mxu1 %v16976_v14  ;;  %9950 = vmatprep.subr.bf16.mxu0 %v16979_v63  ;;  %v17037_v14 = vld [vmem:[%s20970_s6 + $0x7a8] ss:$16 sps:$4 sm:$0xff]  }
0x19e2   : > { %9635 = vmatmul.mubr.bf16.vlgmr.msra.gmra.mxu1 %v9440_v20  ;;  %9676 = vmatmul.mubr.bf16.vlgmr.msra.gmra.mxu0 %v9440_v20  ;;  %v17045_v20 = vld [vmem:[%s20970_s6 + $0x78c] ss:$16 sps:$4 sm:$0xff]  }
0x19e3   : > { %9910 = vmatpush1.bf16.msra.mxu1 %v16974_v47  ;;  %9951 = vmatpush1.bf16.msra.mxu0 %v16977_v40  ;;  %v17042_v40 = vld [vmem:[%s20970_s6 + $0x784] ss:$16 sps:$4 sm:$0xff]  }
0x19e4   : > { %9911 = vmatprep.subr.bf16.mxu1 %v16982_v25  ;;  %9952 = vmatprep.subr.bf16.mxu0 %v16985_v60  ;;  %v17040_v60 = vld [vmem:[%s20970_s6 + $0x780] ss:$16 sps:$4 sm:$0xff]  }
0x19e5   : > { %9941 = vmatprep.mubr.bf16.mxu1 %v20984_v31  ;;  %9982 = vmatprep.mubr.bf16.mxu0 %v20984_v31 }
0x19e7   : > { %9912 = vmatpush1.bf16.msra.mxu1 %v16980_v37  ;;  %9953 = vmatpush1.bf16.msra.mxu0 %v16983_v3  ;;  %v17043_v37 = vld [vmem:[%s20970_s6 + $0x788] ss:$16 sps:$4 sm:$0xff]   ;;  %v17048_v3 = vld [vmem:[%s20970_s6 + $0x764] ss:$16 sps:$4 sm:$0xff]  }
0x19e8   : > { %9913 = vmatprep.subr.bf16.mxu1 %v16988_v55  ;;  %9954 = vmatprep.subr.bf16.mxu0 %v16991_v16  ;;  %v17051_v55 = vld [vmem:[%s20970_s6 + $0x76c] ss:$16 sps:$4 sm:$0xff]   ;;  %v17046_v16 = vld [vmem:[%s20970_s6 + $0x760] ss:$16 sps:$4 sm:$0xff]  }
0x19eb   : > { %9914 = vmatpush1.bf16.msra.mxu1 %v16986_v34  ;;  %9955 = vmatpush1.bf16.msra.mxu0 %v16989_v7  ;;  %v17049_v34 = vld [vmem:[%s20970_s6 + $0x768] ss:$16 sps:$4 sm:$0xff]   ;;  %v17054_v7 = vld [vmem:[%s20970_s6 + $0x744] ss:$16 sps:$4 sm:$0xff]  }
0x19ec   : > { %9915 = vmatprep.subr.bf16.mxu1 %v16994_v29  ;;  %9956 = vmatprep.subr.bf16.mxu0 %v16997_v12  ;;  %v17057_v29 = vld [vmem:[%s20970_s6 + $0x74c] ss:$16 sps:$4 sm:$0xff]   ;;  %v17052_v12 = vld [vmem:[%s20970_s6 + $0x740] ss:$16 sps:$4 sm:$0xff]  }
0x19ef   : > { %9916 = vmatpush1.bf16.msra.mxu1 %v16992_v39  ;;  %9957 = vmatpush1.bf16.msra.mxu0 %v16995_v59  ;;  %v17055_v39 = vld [vmem:[%s20970_s6 + $0x748] ss:$16 sps:$4 sm:$0xff]   ;;  %v17060_v59 = vld [vmem:[%s20970_s6 + $0x724] ss:$16 sps:$4 sm:$0xff]  }
0x19f0   : > { %9917 = vmatprep.subr.bf16.mxu1 %v17000_v10  ;;  %9958 = vmatprep.subr.bf16.mxu0 %v17003_v23  ;;  %v17063_v10 = vld [vmem:[%s20970_s6 + $0x72c] ss:$16 sps:$4 sm:$0xff]   ;;  %v17058_v23 = vld [vmem:[%s20970_s6 + $0x720] ss:$16 sps:$4 sm:$0xff]  }
0x19f3   : > { %9918 = vmatpush1.bf16.msra.mxu1 %v16998_v9  ;;  %9959 = vmatpush1.bf16.msra.mxu0 %v17001_v62  ;;  %v17061_v9 = vld [vmem:[%s20970_s6 + $0x728] ss:$16 sps:$4 sm:$0xff]   ;;  %v17066_v62 = vld [vmem:[%s20970_s6 + $0x704] ss:$16 sps:$4 sm:$0xff]  }
0x19f4   : > { %9919 = vmatprep.subr.bf16.mxu1 %v17006_v33  ;;  %9960 = vmatprep.subr.bf16.mxu0 %v17009_v6  ;;  %v17069_v33 = vld [vmem:[%s20970_s6 + $0x70c] ss:$16 sps:$4 sm:$0xff]   ;;  %v17064_v6 = vld [vmem:[%s20970_s6 + $0x700] ss:$16 sps:$4 sm:$0xff]  }
0x19f7   : > { %9920 = vmatpush1.bf16.msra.mxu1 %v17004_v48  ;;  %9961 = vmatpush1.bf16.msra.mxu0 %v17007_v22  ;;  %v17067_v48 = vld [vmem:[%s20970_s6 + $0x708] ss:$16 sps:$4 sm:$0xff]   ;;  %v17072_v22 = vld [vmem:[%s20970_s6 + $0x8e4] ss:$16 sps:$4 sm:$0xff]  }
0x19f8   : > { %9921 = vmatprep.subr.bf16.mxu1 %v17012_v17  ;;  %9962 = vmatprep.subr.bf16.mxu0 %v17015_v45  ;;  %v17075_v17 = vld [vmem:[%s20970_s6 + $0x8ec] ss:$16 sps:$4 sm:$0xff]   ;;  %v17070_v45 = vld [vmem:[%s20970_s6 + $0x8e0] ss:$16 sps:$4 sm:$0xff]  }
0x19fb   : > { %9922 = vmatpush1.bf16.msra.mxu1 %v17010_v11  ;;  %9963 = vmatpush1.bf16.msra.mxu0 %v17013_v24  ;;  %v17073_v11 = vld [vmem:[%s20970_s6 + $0x8e8] ss:$16 sps:$4 sm:$0xff]   ;;  %v10054_v24 = vrot.slane %v19377_v61, 3  ;;  %v17076_v61 = vld [vmem:[%s20970_s6 + $0x8c0] ss:$16 sps:$4 sm:$0xff]  }
0x19fc   : > { %9923 = vmatprep.subr.bf16.mxu1 %v17018_v27  ;;  %9964 = vmatprep.subr.bf16.mxu0 %v17021_v28  ;;  %v17078_v27 = vld [vmem:[%s20970_s6 + $0x8c4] ss:$16 sps:$4 sm:$0xff]   ;;  %v17081_v28 = vld [vmem:[%s20970_s6 + $0x8cc] ss:$16 sps:$4 sm:$0xff]  }
0x19ff   : > { %9924 = vmatpush1.bf16.msra.mxu1 %v17016_v32  ;;  %9965 = vmatpush1.bf16.msra.mxu0 %v17019_v51 }
0x1a00   : > { %10216 = vmatprep.subr.bf16.mxu1 %v17024_v57  ;;  %10257 = vmatprep.subr.bf16.mxu0 %v17027_v8  ;;  %v17084_v8 = vld [vmem:[%s20970_s6 + $0x8a4] ss:$16 sps:$4 sm:$0xff]  }
0x1a02   : > { %9942 = vmatmul.mubr.bf16.vlgmr.msra.gmra.mxu1 %v9747_v30  ;;  %9983 = vmatmul.mubr.bf16.vlgmr.msra.gmra.mxu0 %v9747_v30  ;;  %v8098_v18 = vpop.f32.mrf.mxu1  ;;  %v8139_v54 = vpop.f32.mrf.mxu0 }
0x1a03   : > { %10217 = vmatpush1.bf16.msra.mxu1 %v17022_v56  ;;  %10258 = vmatpush1.bf16.msra.mxu0 %v17025_v46  ;;  %v17087_v56 = vld [vmem:[%s20970_s6 + $0x8ac] ss:$16 sps:$4 sm:$0xff]  }
0x1a04   : > { %v8100_v38 = vpop.f32.mrf.mxu1  ;;  %v8141_v58 = vpop.f32.mrf.mxu0  ;;  %10218 = vmatprep.subr.bf16.mxu1 %v17030_v35  ;;  %10259 = vmatprep.subr.bf16.mxu0 %v17033_v44 }
0x1a05   : > { %v8150_v19 = vcombine.low %v8098_v18, %v8100_v38  ;;  %v8151_v21 = vcombine.low %v8139_v54, %v8141_v58  ;;  %10248 = vmatprep.mubr.bf16.mxu1 %v20984_v31  ;;  %10289 = vmatprep.mubr.bf16.mxu0 %v20984_v31  ;;  %v7870_v38 = vld [vmem:[%s20971_s7] sm:$0xf] }
0x1a06   : > { %v8102_v26 = vpop.f32.mrf.mxu1  ;;  %v8143_v52 = vpop.f32.mrf.mxu0 }
0x1a07   : > { %v19903_v4 = vrot.slane %v8150_v19, %v19886_v13  ;;  %v19906_v49 = vrot.slane %v8151_v21, %v19886_v13  ;;  %10219 = vmatpush1.bf16.msra.mxu1 %v17028_v53  ;;  %10260 = vmatpush1.bf16.msra.mxu0 %v17031_v5  ;;  %v17082_v53 = vld [vmem:[%s20970_s6 + $0x8a0] ss:$16 sps:$4 sm:$0xff]   ;;  %v17085_v5 = vld [vmem:[%s20970_s6 + $0x8a8] ss:$16 sps:$4 sm:$0xff]   ;;  %v17093_v19 = vld [vmem:[%s20970_s6 + $0x88c] ss:$16 sps:$4 sm:$0xff]  }
0x1a08   : > { %v8103_v63 = vpop.f32.mrf.mxu1  ;;  %v8144_v47 = vpop.f32.mrf.mxu0  ;;  %10220 = vmatprep.subr.bf16.mxu1 %v17036_v50  ;;  %10261 = vmatprep.subr.bf16.mxu0 %v17039_v2  ;;  %v17090_v2 = vld [vmem:[%s20970_s6 + $0x884] ss:$16 sps:$4 sm:$0xff]  }
0x1a09   : > { %v8166_v25 = vcombine.low %v19903_v4, %v19906_v49  ;;  %v17088_v4 = vld [vmem:[%s20970_s6 + $0x880] ss:$16 sps:$4 sm:$0xff]   ;;  %v17091_v49 = vld [vmem:[%s20970_s6 + $0x888] ss:$16 sps:$4 sm:$0xff]  }
0x1a0a   : > { %v17094_v47 = vld [vmem:[%s20970_s6 + $0x860] ss:$16 sps:$4 sm:$0xff]  }
0x1a0b   : > { %10221 = vmatpush1.bf16.msra.mxu1 %v17034_v42  ;;  %10262 = vmatpush1.bf16.msra.mxu0 %v17037_v14  ;;  %v8173_v44 = vrot.slane %v8166_v25, %v19886_v13  ;;  %v17096_v42 = vld [vmem:[%s20970_s6 + $0x864] ss:$16 sps:$4 sm:$0xff]   ;;  %v17099_v14 = vld [vmem:[%s20970_s6 + $0x86c] ss:$16 sps:$4 sm:$0xff]  }
0x1a0c   : > { %10222 = vmatprep.subr.bf16.mxu1 %v17042_v40  ;;  %10263 = vmatprep.subr.bf16.mxu0 %v17045_v20  ;;  %v17097_v40 = vld [vmem:[%s20970_s6 + $0x868] ss:$16 sps:$4 sm:$0xff]   ;;  %v17102_v20 = vld [vmem:[%s20970_s6 + $0x844] ss:$16 sps:$4 sm:$0xff]   ;;  %v17105_v25 = vld [vmem:[%s20970_s6 + $0x84c] ss:$16 sps:$4 sm:$0xff]  }
0x1a0d   : > { %v8175_v26 = vadd.f32 %v8173_v44, %v7870_v38  ;;  %v17147_v38 = vld [vmem:[%s20970_s6 + $0x96c] ss:$16 sps:$4 sm:$0xff]  }
0x1a0f   : > { %10223 = vmatpush1.bf16.msra.mxu1 %v17040_v60  ;;  %10264 = vmatpush1.bf16.msra.mxu0 %v17043_v37  ;;  %v17100_v60 = vld [vmem:[%s20970_s6 + $0x840] ss:$16 sps:$4 sm:$0xff]   ;;  %v17103_v37 = vld [vmem:[%s20970_s6 + $0x848] ss:$16 sps:$4 sm:$0xff]  }
0x1a10   : > { %10224 = vmatprep.subr.bf16.mxu1 %v17048_v3  ;;  %10265 = vmatprep.subr.bf16.mxu0 %v17051_v55  ;;  %v17108_v3 = vld [vmem:[%s20970_s6 + $0x824] ss:$16 sps:$4 sm:$0xff]   ;;  %v17111_v55 = vld [vmem:[%s20970_s6 + $0x82c] ss:$16 sps:$4 sm:$0xff]  }
0x1a13   : > { %10225 = vmatpush1.bf16.msra.mxu1 %v17046_v16  ;;  %10266 = vmatpush1.bf16.msra.mxu0 %v17049_v34  ;;  %v17106_v16 = vld [vmem:[%s20970_s6 + $0x820] ss:$16 sps:$4 sm:$0xff]   ;;  %v17109_v34 = vld [vmem:[%s20970_s6 + $0x828] ss:$16 sps:$4 sm:$0xff]  }
0x1a14   : > { %10226 = vmatprep.subr.bf16.mxu1 %v17054_v7  ;;  %10267 = vmatprep.subr.bf16.mxu0 %v17057_v29  ;;  %v17114_v7 = vld [vmem:[%s20970_s6 + $0x804] ss:$16 sps:$4 sm:$0xff]   ;;  %v17117_v29 = vld [vmem:[%s20970_s6 + $0x80c] ss:$16 sps:$4 sm:$0xff]  }
0x1a17   : > { %10227 = vmatpush1.bf16.msra.mxu1 %v17052_v12  ;;  %10268 = vmatpush1.bf16.msra.mxu0 %v17055_v39  ;;  %v17112_v12 = vld [vmem:[%s20970_s6 + $0x800] ss:$16 sps:$4 sm:$0xff]   ;;  %v17115_v39 = vld [vmem:[%s20970_s6 + $0x808] ss:$16 sps:$4 sm:$0xff]  }
0x1a18   : > { %10228 = vmatprep.subr.bf16.mxu1 %v17060_v59  ;;  %10269 = vmatprep.subr.bf16.mxu0 %v17063_v10  ;;  %v7869_v59 = vmax.f32 %v19274_v43, 0.0  ;;  %v17120_v10 = vld [vmem:[%s20970_s6 + $0x9e4] ss:$16 sps:$4 sm:$0xff]   ;;  %v17121_v43 = vld [vmem:[%s20970_s6 + $0x9e8] ss:$16 sps:$4 sm:$0xff]  }
0x1a1b   : > { %10229 = vmatpush1.bf16.msra.mxu1 %v17058_v23  ;;  %10270 = vmatpush1.bf16.msra.mxu0 %v17061_v9  ;;  %v17123_v23 = vld [vmem:[%s20970_s6 + $0x9ec] ss:$16 sps:$4 sm:$0xff]   ;;  %v17118_v9 = vld [vmem:[%s20970_s6 + $0x9e0] ss:$16 sps:$4 sm:$0xff]  }
0x1a1c   : > { %10230 = vmatprep.subr.bf16.mxu1 %v17066_v62  ;;  %10271 = vmatprep.subr.bf16.mxu0 %v17069_v33  ;;  %v20100_v62 = vpack.c.bf16 %v7869_v59, %v7869_v59  ;;  %v17126_v33 = vld [vmem:[%s20970_s6 + $0x9c4] ss:$16 sps:$4 sm:$0xff]  }
0x1a1f   : > { %10231 = vmatpush1.bf16.msra.mxu1 %v17064_v6  ;;  %10272 = vmatpush1.bf16.msra.mxu0 %v17067_v48  ;;  %v17129_v6 = vld [vmem:[%s20970_s6 + $0x9cc] ss:$16 sps:$4 sm:$0xff]  }
0x1a20   : > { %10522 = vmatprep.subr.bf16.mxu1 %v17072_v22  ;;  %10563 = vmatprep.subr.bf16.mxu0 %v17075_v17  ;;  %v17124_v17 = vld [vmem:[%s20970_s6 + $0x9c0] ss:$16 sps:$4 sm:$0xff]  }
0x1a22   : > { %v8407_v32 = vpop.f32.mrf.mxu1  ;;  %v8448_v51 = vpop.f32.mrf.mxu0  ;;  %10249 = vmatmul.mubr.bf16.vlgmr.msra.gmra.mxu1 %v10054_v24  ;;  %10290 = vmatmul.mubr.bf16.vlgmr.msra.gmra.mxu0 %v10054_v24 }
0x1a23   : > { %10523 = vmatpush1.bf16.msra.mxu1 %v17070_v45  ;;  %10564 = vmatpush1.bf16.msra.mxu0 %v17073_v11  ;;  %v17127_v45 = vld [vmem:[%s20970_s6 + $0x9c8] ss:$16 sps:$4 sm:$0xff]  }
0x1a24   : > { %v8409_v0 = vpop.f32.mrf.mxu1  ;;  %v8450_v57 = vpop.f32.mrf.mxu0  ;;  %10524 = vmatprep.subr.bf16.mxu1 %v17078_v27  ;;  %10565 = vmatprep.subr.bf16.mxu0 %v17081_v28  ;;  %v17132_v27 = vld [vmem:[%s20970_s6 + $0x9a4] ss:$16 sps:$4 sm:$0xff]   ;;  %v17135_v28 = vld [vmem:[%s20970_s6 + $0x9ac] ss:$16 sps:$4 sm:$0xff]  }
0x1a25   : > { %v8459_v46 = vcombine.low %v8407_v32, %v8409_v0  ;;  %v8460_v1 = vcombine.low %v8448_v51, %v8450_v57  ;;  %10554 = vmatprep.mubr.bf16.mxu1 %v20984_v31  ;;  %10595 = vmatprep.mubr.bf16.mxu0 %v20984_v31 }
0x1a26   : > { %v8411_v30 = vpop.f32.mrf.mxu1  ;;  %v8452_v35 = vpop.f32.mrf.mxu0 }
0x1a27   : > { %v8467_v18 = vrot.slane %v8459_v46, %v19886_v13  ;;  %v8474_v54 = vrot.slane %v8460_v1, %v19886_v13  ;;  %10525 = vmatpush1.bf16.msra.mxu1 %v17076_v61  ;;  %10566 = vmatpush1.bf16.msra.mxu0 %v17079_v41  ;;  %v17138_v30 = vld [vmem:[%s20970_s6 + $0x984] ss:$16 sps:$4 sm:$0xff]   ;;  %v17141_v35 = vld [vmem:[%s20970_s6 + $0x98c] ss:$16 sps:$4 sm:$0xff]  }
0x1a28   : > { %v8412_v58 = vpop.f32.mrf.mxu1  ;;  %v8453_v50 = vpop.f32.mrf.mxu0  ;;  %10526 = vmatprep.subr.bf16.mxu1 %v17084_v8  ;;  %10567 = vmatprep.subr.bf16.mxu0 %v17087_v56  ;;  %v17130_v8 = vld [vmem:[%s20970_s6 + $0x9a0] ss:$16 sps:$4 sm:$0xff]   ;;  %v17133_v56 = vld [vmem:[%s20970_s6 + $0x9a8] ss:$16 sps:$4 sm:$0xff]  }
0x1a29   : > { %v8475_v21 = vcombine.low %v8467_v18, %v8474_v54  ;;  %v17136_v54 = vld [vmem:[%s20970_s6 + $0x980] ss:$16 sps:$4 sm:$0xff]  }
0x1a2a   : > { %v17142_v50 = vld [vmem:[%s20970_s6 + $0x960] ss:$16 sps:$4 sm:$0xff]  }
0x1a2b   : > { %v8482_v52 = vrot.slane %v8475_v21, %v19886_v13  ;;  %10527 = vmatpush1.bf16.msra.mxu1 %v17082_v53  ;;  %10568 = vmatpush1.bf16.msra.mxu0 %v17085_v5  ;;  %v17139_v53 = vld [vmem:[%s20970_s6 + $0x988] ss:$16 sps:$4 sm:$0xff]   ;;  %v17144_v5 = vld [vmem:[%s20970_s6 + $0x964] ss:$16 sps:$4 sm:$0xff]   ;;  %v17153_v21 = vld [vmem:[%s20970_s6 + $0x94c] ss:$16 sps:$4 sm:$0xff]  }
0x1a2c   : > { %10528 = vmatprep.subr.bf16.mxu1 %v17090_v2  ;;  %10569 = vmatprep.subr.bf16.mxu0 %v17093_v19  ;;  %v17145_v2 = vld [vmem:[%s20970_s6 + $0x968] ss:$16 sps:$4 sm:$0xff]   ;;  %v17150_v19 = vld [vmem:[%s20970_s6 + $0x944] ss:$16 sps:$4 sm:$0xff]  }
0x1a2d   : > { %v20043_v63 = vadd.f32 %v8482_v52, %v8175_v26  ;;  %v17148_v26 = vld [vmem:[%s20970_s6 + $0x940] ss:$16 sps:$4 sm:$0xff]   ;;  %v17151_v52 = vld [vmem:[%s20970_s6 + $0x948] ss:$16 sps:$4 sm:$0xff]  }
0x1a2f   : > { %10529 = vmatpush1.bf16.msra.mxu1 %v17088_v4  ;;  %10570 = vmatpush1.bf16.msra.mxu0 %v17091_v49  ;;  %v17156_v4 = vld [vmem:[%s20970_s6 + $0x924] ss:$16 sps:$4 sm:$0xff]   ;;  %v17159_v49 = vld [vmem:[%s20970_s6 + $0x92c] ss:$16 sps:$4 sm:$0xff]  }
0x1a30   : > { %10530 = vmatprep.subr.bf16.mxu1 %v17096_v42  ;;  %10571 = vmatprep.subr.bf16.mxu0 %v17099_v14  ;;  %v17154_v42 = vld [vmem:[%s20970_s6 + $0x920] ss:$16 sps:$4 sm:$0xff]   ;;  %v17157_v14 = vld [vmem:[%s20970_s6 + $0x928] ss:$16 sps:$4 sm:$0xff]  }
0x1a33   : > { %10531 = vmatpush1.bf16.msra.mxu1 %v17094_v47  ;;  %10572 = vmatpush1.bf16.msra.mxu0 %v17097_v40  ;;  %v17165_v47 = vld [vmem:[%s20970_s6 + $0x90c] ss:$16 sps:$4 sm:$0xff]   ;;  %v17160_v40 = vld [vmem:[%s20970_s6 + $0x900] ss:$16 sps:$4 sm:$0xff]  }
0x1a34   : > { %10532 = vmatprep.subr.bf16.mxu1 %v17102_v20  ;;  %10573 = vmatprep.subr.bf16.mxu0 %v17105_v25  ;;  %v17163_v20 = vld [vmem:[%s20970_s6 + $0x908] ss:$16 sps:$4 sm:$0xff]   ;;  %v17168_v25 = vld [vmem:[%s20970_s6 + $0xae4] ss:$16 sps:$4 sm:$0xff]  }
0x1a37   : > { %10533 = vmatpush1.bf16.msra.mxu1 %v17100_v60  ;;  %10574 = vmatpush1.bf16.msra.mxu0 %v17103_v37  ;;  %v17171_v60 = vld [vmem:[%s20970_s6 + $0xaec] ss:$16 sps:$4 sm:$0xff]   ;;  %v17166_v37 = vld [vmem:[%s20970_s6 + $0xae0] ss:$16 sps:$4 sm:$0xff]  }
0x1a38   : > { %10534 = vmatprep.subr.bf16.mxu1 %v17108_v3  ;;  %10575 = vmatprep.subr.bf16.mxu0 %v17111_v55  ;;  %v17169_v3 = vld [vmem:[%s20970_s6 + $0xae8] ss:$16 sps:$4 sm:$0xff]   ;;  %v20209_v55 = vshrl.u32 %v20100_v62, 16 }
0x1a3b   : > { %10535 = vmatpush1.bf16.msra.mxu1 %v17106_v16  ;;  %10576 = vmatpush1.bf16.msra.mxu0 %v17109_v34  ;;  %v17174_v16 = vld [vmem:[%s20970_s6 + $0xac4] ss:$16 sps:$4 sm:$0xff]   ;;  %v17177_v34 = vld [vmem:[%s20970_s6 + $0xacc] ss:$16 sps:$4 sm:$0xff]  }
0x1a3c   : > { %10536 = vmatprep.subr.bf16.mxu1 %v17114_v7  ;;  %10577 = vmatprep.subr.bf16.mxu0 %v17117_v29 }
0x1a3f   : > { %10537 = vmatpush1.bf16.msra.mxu1 %v17112_v12  ;;  %10578 = vmatpush1.bf16.msra.mxu0 %v17115_v39  ;;  %v17172_v12 = vld [vmem:[%s20970_s6 + $0xac0] ss:$16 sps:$4 sm:$0xff]   ;;  %v17175_v39 = vld [vmem:[%s20970_s6 + $0xac8] ss:$16 sps:$4 sm:$0xff]  }
0x1a40   : > { %10831 = vmatprep.subr.bf16.mxu1 %v17120_v10  ;;  %10872 = vmatprep.subr.bf16.mxu0 %v17123_v23  ;;  %v17180_v23 = vld [vmem:[%s20970_s6 + $0xaa4] ss:$16 sps:$4 sm:$0xff]  }
0x1a42   : > { %v8715_v48 = vpop.f32.mrf.mxu1  ;;  %v8756_v22 = vpop.f32.mrf.mxu0  ;;  %10555 = vmatmul.mubr.bf16.vlgmr.msra.gmra.mxu1 %v20100_v62  ;;  %10596 = vmatmul.mubr.bf16.vlgmr.msra.gmra.mxu0 %v20100_v62 }
0x1a43   : > { %10832 = vmatpush1.bf16.msra.mxu1 %v17118_v9  ;;  %10873 = vmatpush1.bf16.msra.mxu0 %v17121_v43  ;;  %v17183_v9 = vld [vmem:[%s20970_s6 + $0xaac] ss:$16 sps:$4 sm:$0xff]  }
0x1a44   : > { %v8717_v11 = vpop.f32.mrf.mxu1  ;;  %v8758_v24 = vpop.f32.mrf.mxu0  ;;  %10833 = vmatprep.subr.bf16.mxu1 %v17126_v33  ;;  %10874 = vmatprep.subr.bf16.mxu0 %v17129_v6 }
0x1a45   : > { %v8767_v32 = vcombine.low %v8715_v48, %v8717_v11  ;;  %v8768_v51 = vcombine.low %v8756_v22, %v8758_v24  ;;  %10863 = vmatprep.mubr.bf16.mxu1 %v20984_v31  ;;  %10904 = vmatprep.mubr.bf16.mxu0 %v20984_v31  ;;  %v17181_v11 = vld [vmem:[%s20970_s6 + $0xaa8] ss:$16 sps:$4 sm:$0xff]  }
0x1a46   : > { %v8719_v61 = vpop.f32.mrf.mxu1  ;;  %v8760_v41 = vpop.f32.mrf.mxu0 }
0x1a47   : > { %v8775_v0 = vrot.slane %v8767_v32, %v19886_v13  ;;  %v8782_v57 = vrot.slane %v8768_v51, %v19886_v13  ;;  %10834 = vmatpush1.bf16.msra.mxu1 %v17124_v17  ;;  %10875 = vmatpush1.bf16.msra.mxu0 %v17127_v45  ;;  %v17178_v45 = vld [vmem:[%s20970_s6 + $0xaa0] ss:$16 sps:$4 sm:$0xff]   ;;  %v17189_v32 = vld [vmem:[%s20970_s6 + $0xa8c] ss:$16 sps:$4 sm:$0xff]  }
0x1a48   : > { %v8720_v46 = vpop.f32.mrf.mxu1  ;;  %v8761_v1 = vpop.f32.mrf.mxu0  ;;  %10835 = vmatprep.subr.bf16.mxu1 %v17132_v27  ;;  %10876 = vmatprep.subr.bf16.mxu0 %v17135_v28  ;;  %v17186_v28 = vld [vmem:[%s20970_s6 + $0xa84] ss:$16 sps:$4 sm:$0xff]   ;;  %v17184_v41 = vld [vmem:[%s20970_s6 + $0xa80] ss:$16 sps:$4 sm:$0xff]  }
0x1a49   : > { %v8783_v44 = vcombine.low %v8775_v0, %v8782_v57  ;;  %v17187_v0 = vld [vmem:[%s20970_s6 + $0xa88] ss:$16 sps:$4 sm:$0xff]   ;;  %v17192_v57 = vld [vmem:[%s20970_s6 + $0xa64] ss:$16 sps:$4 sm:$0xff]   ;;  %v17190_v46 = vld [vmem:[%s20970_s6 + $0xa60] ss:$16 sps:$4 sm:$0xff]  }
0x1a4a   : > { %v17193_v1 = vld [vmem:[%s20970_s6 + $0xa68] ss:$16 sps:$4 sm:$0xff]  }
0x1a4b   : > { %v8790_v18 = vrot.slane %v8783_v44, %v19886_v13  ;;  %10836 = vmatpush1.bf16.msra.mxu1 %v17130_v8  ;;  %10877 = vmatpush1.bf16.msra.mxu0 %v17133_v56  ;;  %v17195_v8 = vld [vmem:[%s20970_s6 + $0xa6c] ss:$16 sps:$4 sm:$0xff]   ;;  %v17196_v44 = vld [vmem:[%s20970_s6 + $0xa40] ss:$16 sps:$4 sm:$0xff]  }
0x1a4c   : > { %10837 = vmatprep.subr.bf16.mxu1 %v17138_v30  ;;  %10878 = vmatprep.subr.bf16.mxu0 %v17141_v35  ;;  %v17198_v30 = vld [vmem:[%s20970_s6 + $0xa44] ss:$16 sps:$4 sm:$0xff]   ;;  %v17201_v35 = vld [vmem:[%s20970_s6 + $0xa4c] ss:$16 sps:$4 sm:$0xff]  }
0x1a4d   : > { %v20152_v58 = vadd.f32 %v8790_v18, %v20043_v63  ;;  %v17162_v63 = vld [vmem:[%s20970_s6 + $0x904] ss:$16 sps:$4 sm:$0xff]   ;;  %v17199_v18 = vld [vmem:[%s20970_s6 + $0xa48] ss:$16 sps:$4 sm:$0xff]  }
0x1a4f   : > { %10838 = vmatpush1.bf16.msra.mxu1 %v17136_v54  ;;  %10879 = vmatpush1.bf16.msra.mxu0 %v17139_v53  ;;  %v17204_v54 = vld [vmem:[%s20970_s6 + $0xa24] ss:$16 sps:$4 sm:$0xff]   ;;  %v17207_v53 = vld [vmem:[%s20970_s6 + $0xa2c] ss:$16 sps:$4 sm:$0xff]  }
0x1a50   : > { %10839 = vmatprep.subr.bf16.mxu1 %v17144_v5  ;;  %10880 = vmatprep.subr.bf16.mxu0 %v17147_v38  ;;  %v17202_v5 = vld [vmem:[%s20970_s6 + $0xa20] ss:$16 sps:$4 sm:$0xff]   ;;  %v17205_v38 = vld [vmem:[%s20970_s6 + $0xa28] ss:$16 sps:$4 sm:$0xff]  }
0x1a53   : > { %10840 = vmatpush1.bf16.msra.mxu1 %v17142_v50  ;;  %10881 = vmatpush1.bf16.msra.mxu0 %v17145_v2  ;;  %v17213_v50 = vld [vmem:[%s20970_s6 + $0xa0c] ss:$16 sps:$4 sm:$0xff]   ;;  %v17208_v2 = vld [vmem:[%s20970_s6 + $0xa00] ss:$16 sps:$4 sm:$0xff]  }
0x1a54   : > { %10841 = vmatprep.subr.bf16.mxu1 %v17150_v19  ;;  %10882 = vmatprep.subr.bf16.mxu0 %v17153_v21  ;;  %v17211_v19 = vld [vmem:[%s20970_s6 + $0xa08] ss:$16 sps:$4 sm:$0xff]   ;;  %v17216_v21 = vld [vmem:[%s20970_s6 + $0xbe4] ss:$16 sps:$4 sm:$0xff]  }
0x1a57   : > { %10842 = vmatpush1.bf16.msra.mxu1 %v17148_v26  ;;  %10883 = vmatpush1.bf16.msra.mxu0 %v17151_v52  ;;  %v17219_v26 = vld [vmem:[%s20970_s6 + $0xbec] ss:$16 sps:$4 sm:$0xff]   ;;  %v17214_v52 = vld [vmem:[%s20970_s6 + $0xbe0] ss:$16 sps:$4 sm:$0xff]  }
0x1a58   : > { %10843 = vmatprep.subr.bf16.mxu1 %v17156_v4  ;;  %10884 = vmatprep.subr.bf16.mxu0 %v17159_v49  ;;  %v17217_v4 = vld [vmem:[%s20970_s6 + $0xbe8] ss:$16 sps:$4 sm:$0xff]   ;;  %v10977_v49 = vrot.slane %v20100_v62, 1 }
0x1a5b   : > { %10844 = vmatpush1.bf16.msra.mxu1 %v17154_v42  ;;  %10885 = vmatpush1.bf16.msra.mxu0 %v17157_v14  ;;  %v17222_v42 = vld [vmem:[%s20970_s6 + $0xbc4] ss:$16 sps:$4 sm:$0xff]   ;;  %v17225_v14 = vld [vmem:[%s20970_s6 + $0xbcc] ss:$16 sps:$4 sm:$0xff]  }
0x1a5c   : > { %10845 = vmatprep.subr.bf16.mxu1 %v17162_v63  ;;  %10886 = vmatprep.subr.bf16.mxu0 %v17165_v47 }
0x1a5f   : > { %10846 = vmatpush1.bf16.msra.mxu1 %v17160_v40  ;;  %10887 = vmatpush1.bf16.msra.mxu0 %v17163_v20  ;;  %v17220_v40 = vld [vmem:[%s20970_s6 + $0xbc0] ss:$16 sps:$4 sm:$0xff]   ;;  %v17223_v20 = vld [vmem:[%s20970_s6 + $0xbc8] ss:$16 sps:$4 sm:$0xff]  }
0x1a60   : > { %11139 = vmatprep.subr.bf16.mxu1 %v17168_v25  ;;  %11180 = vmatprep.subr.bf16.mxu0 %v17171_v60 }
0x1a62   : > { %v9022_v7 = vpop.f32.mrf.mxu1  ;;  %v9063_v29 = vpop.f32.mrf.mxu0  ;;  %10864 = vmatmul.mubr.bf16.vlgmr.msra.gmra.mxu1 %v20209_v55  ;;  %10905 = vmatmul.mubr.bf16.vlgmr.msra.gmra.mxu0 %v20209_v55 }
0x1a63   : > { %11140 = vmatpush1.bf16.msra.mxu1 %v17166_v37  ;;  %11181 = vmatpush1.bf16.msra.mxu0 %v17169_v3  ;;  %v17228_v37 = vld [vmem:[%s20970_s6 + $0xba4] ss:$16 sps:$4 sm:$0xff]   ;;  %v17231_v3 = vld [vmem:[%s20970_s6 + $0xbac] ss:$16 sps:$4 sm:$0xff]  }
0x1a64   : > { %v9024_v59 = vpop.f32.mrf.mxu1  ;;  %v9065_v10 = vpop.f32.mrf.mxu0  ;;  %11141 = vmatprep.subr.bf16.mxu1 %v17174_v16  ;;  %11182 = vmatprep.subr.bf16.mxu0 %v17177_v34 }
0x1a65   : > { %v9074_v43 = vcombine.low %v9022_v7, %v9024_v59  ;;  %v9075_v33 = vcombine.low %v9063_v29, %v9065_v10  ;;  %11171 = vmatprep.mubr.bf16.mxu1 %v20984_v31  ;;  %11212 = vmatprep.mubr.bf16.mxu0 %v20984_v31  ;;  %v17226_v59 = vld [vmem:[%s20970_s6 + $0xba0] ss:$16 sps:$4 sm:$0xff]   ;;  %v17229_v10 = vld [vmem:[%s20970_s6 + $0xba8] ss:$16 sps:$4 sm:$0xff]  }
0x1a66   : > { %v9026_v6 = vpop.f32.mrf.mxu1  ;;  %v9067_v48 = vpop.f32.mrf.mxu0 }
0x1a67   : > { %v9082_v22 = vrot.slane %v9074_v43, %v19886_v13  ;;  %v9089_v17 = vrot.slane %v9075_v33, %v19886_v13  ;;  %11142 = vmatpush1.bf16.msra.mxu1 %v17172_v12  ;;  %11183 = vmatpush1.bf16.msra.mxu0 %v17175_v39  ;;  %v17234_v43 = vld [vmem:[%s20970_s6 + $0xb84] ss:$16 sps:$4 sm:$0xff]   ;;  %v17237_v33 = vld [vmem:[%s20970_s6 + $0xb8c] ss:$16 sps:$4 sm:$0xff]  }
0x1a68   : > { %v9027_v24 = vpop.f32.mrf.mxu1  ;;  %v9068_v27 = vpop.f32.mrf.mxu0  ;;  %11143 = vmatprep.subr.bf16.mxu1 %v17180_v23  ;;  %11184 = vmatprep.subr.bf16.mxu0 %v17183_v9 }
0x1a69   : > { %v9090_v51 = vcombine.low %v9082_v22, %v9089_v17  ;;  %v17232_v22 = vld [vmem:[%s20970_s6 + $0xb80] ss:$16 sps:$4 sm:$0xff]   ;;  %v17235_v17 = vld [vmem:[%s20970_s6 + $0xb88] ss:$16 sps:$4 sm:$0xff]  }
0x1a6a   : > { %v17238_v27 = vld [vmem:[%s20970_s6 + $0xb60] ss:$16 sps:$4 sm:$0xff]  }
0x1a6b   : > { %v9097_v61 = vrot.slane %v9090_v51, %v19886_v13  ;;  %11144 = vmatpush1.bf16.msra.mxu1 %v17178_v45  ;;  %11185 = vmatpush1.bf16.msra.mxu0 %v17181_v11  ;;  %v17240_v45 = vld [vmem:[%s20970_s6 + $0xb64] ss:$16 sps:$4 sm:$0xff]   ;;  %v17243_v11 = vld [vmem:[%s20970_s6 + $0xb6c] ss:$16 sps:$4 sm:$0xff]  }
0x1a6c   : > { %11145 = vmatprep.subr.bf16.mxu1 %v17186_v28  ;;  %11186 = vmatprep.subr.bf16.mxu0 %v17189_v32  ;;  %v17241_v28 = vld [vmem:[%s20970_s6 + $0xb68] ss:$16 sps:$4 sm:$0xff]   ;;  %v17246_v32 = vld [vmem:[%s20970_s6 + $0xb44] ss:$16 sps:$4 sm:$0xff]   ;;  %v17249_v51 = vld [vmem:[%s20970_s6 + $0xb4c] ss:$16 sps:$4 sm:$0xff]  }
0x1a6d   : > { %v20261_v56 = vadd.f32 %v9097_v61, %v20152_v58  ;;  %v17210_v58 = vld [vmem:[%s20970_s6 + $0xa04] ss:$16 sps:$4 sm:$0xff]   ;;  %v17244_v61 = vld [vmem:[%s20970_s6 + $0xb40] ss:$16 sps:$4 sm:$0xff]  }
0x1a6f   : > { %11146 = vmatpush1.bf16.msra.mxu1 %v17184_v41  ;;  %11187 = vmatpush1.bf16.msra.mxu0 %v17187_v0  ;;  %v17247_v41 = vld [vmem:[%s20970_s6 + $0xb48] ss:$16 sps:$4 sm:$0xff]   ;;  %v17252_v0 = vld [vmem:[%s20970_s6 + $0xb24] ss:$16 sps:$4 sm:$0xff]  }
0x1a70   : > { %11147 = vmatprep.subr.bf16.mxu1 %v17192_v57  ;;  %11188 = vmatprep.subr.bf16.mxu0 %v17195_v8  ;;  %v17255_v57 = vld [vmem:[%s20970_s6 + $0xb2c] ss:$16 sps:$4 sm:$0xff]   ;;  %v17250_v8 = vld [vmem:[%s20970_s6 + $0xb20] ss:$16 sps:$4 sm:$0xff]  }
0x1a73   : > { %11148 = vmatpush1.bf16.msra.mxu1 %v17190_v46  ;;  %11189 = vmatpush1.bf16.msra.mxu0 %v17193_v1  ;;  %v17258_v46 = vld [vmem:[%s20970_s6 + $0xb04] ss:$16 sps:$4 sm:$0xff]   ;;  %v17261_v1 = vld [vmem:[%s20970_s6 + $0xb0c] ss:$16 sps:$4 sm:$0xff]  }
0x1a74   : > { %11149 = vmatprep.subr.bf16.mxu1 %v17198_v30  ;;  %11190 = vmatprep.subr.bf16.mxu0 %v17201_v35  ;;  %v17256_v30 = vld [vmem:[%s20970_s6 + $0xb00] ss:$16 sps:$4 sm:$0xff]   ;;  %v17259_v35 = vld [vmem:[%s20970_s6 + $0xb08] ss:$16 sps:$4 sm:$0xff]  }
0x1a77   : > { %11150 = vmatpush1.bf16.msra.mxu1 %v17196_v44  ;;  %11191 = vmatpush1.bf16.msra.mxu0 %v17199_v18  ;;  %v17264_v44 = vld [vmem:[%s20970_s6 + $0xce4] ss:$16 sps:$4 sm:$0xff]   ;;  %v17267_v18 = vld [vmem:[%s20970_s6 + $0xcec] ss:$16 sps:$4 sm:$0xff]  }
0x1a78   : > { %11151 = vmatprep.subr.bf16.mxu1 %v17204_v54  ;;  %11192 = vmatprep.subr.bf16.mxu0 %v17207_v53  ;;  %v17262_v54 = vld [vmem:[%s20970_s6 + $0xce0] ss:$16 sps:$4 sm:$0xff]   ;;  %v17265_v53 = vld [vmem:[%s20970_s6 + $0xce8] ss:$16 sps:$4 sm:$0xff]  }
0x1a7b   : > { %11152 = vmatpush1.bf16.msra.mxu1 %v17202_v5  ;;  %11193 = vmatpush1.bf16.msra.mxu0 %v17205_v38  ;;  %v11284_v5 = vrot.slane %v20209_v55, 1  ;;  %v17270_v38 = vld [vmem:[%s20970_s6 + $0xcc4] ss:$16 sps:$4 sm:$0xff]  }
0x1a7c   : > { %11153 = vmatprep.subr.bf16.mxu1 %v17210_v58  ;;  %11194 = vmatprep.subr.bf16.mxu0 %v17213_v50  ;;  %v17273_v58 = vld [vmem:[%s20970_s6 + $0xccc] ss:$16 sps:$4 sm:$0xff]  }
0x1a7f   : > { %11154 = vmatpush1.bf16.msra.mxu1 %v17208_v2  ;;  %11195 = vmatpush1.bf16.msra.mxu0 %v17211_v19  ;;  %v17268_v19 = vld [vmem:[%s20970_s6 + $0xcc0] ss:$16 sps:$4 sm:$0xff]  }
0x1a80   : > { %11446 = vmatprep.subr.bf16.mxu1 %v17216_v21  ;;  %11487 = vmatprep.subr.bf16.mxu0 %v17219_v26  ;;  %v17271_v21 = vld [vmem:[%s20970_s6 + $0xcc8] ss:$16 sps:$4 sm:$0xff]  }
0x1a82   : > { %v9329_v63 = vpop.f32.mrf.mxu1  ;;  %v9370_v47 = vpop.f32.mrf.mxu0  ;;  %11172 = vmatmul.mubr.bf16.vlgmr.msra.gmra.mxu1 %v10977_v49  ;;  %11213 = vmatmul.mubr.bf16.vlgmr.msra.gmra.mxu0 %v10977_v49  ;;  %v17279_v49 = vld [vmem:[%s20970_s6 + $0xcac] ss:$16 sps:$4 sm:$0xff]  }
0x1a83   : > { %11447 = vmatpush1.bf16.msra.mxu1 %v17214_v52  ;;  %11488 = vmatpush1.bf16.msra.mxu0 %v17217_v4  ;;  %v17276_v4 = vld [vmem:[%s20970_s6 + $0xca4] ss:$16 sps:$4 sm:$0xff]  }
0x1a84   : > { %v9331_v25 = vpop.f32.mrf.mxu1  ;;  %v9372_v60 = vpop.f32.mrf.mxu0  ;;  %11448 = vmatprep.subr.bf16.mxu1 %v17222_v42  ;;  %11489 = vmatprep.subr.bf16.mxu0 %v17225_v14 }
0x1a85   : > { %v9381_v16 = vcombine.low %v9329_v63, %v9331_v25  ;;  %v9382_v34 = vcombine.low %v9370_v47, %v9372_v60  ;;  %11478 = vmatprep.mubr.bf16.mxu1 %v20984_v31  ;;  %11519 = vmatprep.mubr.bf16.mxu0 %v20984_v31  ;;  %v17274_v25 = vld [vmem:[%s20970_s6 + $0xca0] ss:$16 sps:$4 sm:$0xff]   ;;  %v17277_v60 = vld [vmem:[%s20970_s6 + $0xca8] ss:$16 sps:$4 sm:$0xff]  }
0x1a86   : > { %v9333_v7 = vpop.f32.mrf.mxu1  ;;  %v9374_v29 = vpop.f32.mrf.mxu0 }
0x1a87   : > { %v9389_v12 = vrot.slane %v9381_v16, %v19886_v13  ;;  %v9396_v39 = vrot.slane %v9382_v34, %v19886_v13  ;;  %11449 = vmatpush1.bf16.msra.mxu1 %v17220_v40  ;;  %11490 = vmatpush1.bf16.msra.mxu0 %v17223_v20  ;;  %v17282_v16 = vld [vmem:[%s20970_s6 + $0xc84] ss:$16 sps:$4 sm:$0xff]   ;;  %v17285_v34 = vld [vmem:[%s20970_s6 + $0xc8c] ss:$16 sps:$4 sm:$0xff]  }
0x1a88   : > { %v9334_v23 = vpop.f32.mrf.mxu1  ;;  %v9375_v9 = vpop.f32.mrf.mxu0  ;;  %11450 = vmatprep.subr.bf16.mxu1 %v17228_v37  ;;  %11491 = vmatprep.subr.bf16.mxu0 %v17231_v3 }
0x1a89   : > { %v9397_v6 = vcombine.low %v9389_v12, %v9396_v39  ;;  %v17280_v12 = vld [vmem:[%s20970_s6 + $0xc80] ss:$16 sps:$4 sm:$0xff]   ;;  %v17283_v39 = vld [vmem:[%s20970_s6 + $0xc88] ss:$16 sps:$4 sm:$0xff]  }
0x1a8a   : > { %v17286_v9 = vld [vmem:[%s20970_s6 + $0xc60] ss:$16 sps:$4 sm:$0xff]  }
0x1a8b   : > { %v9404_v48 = vrot.slane %v9397_v6, %v19886_v13  ;;  %11451 = vmatpush1.bf16.msra.mxu1 %v17226_v59  ;;  %11492 = vmatpush1.bf16.msra.mxu0 %v17229_v10  ;;  %v17288_v59 = vld [vmem:[%s20970_s6 + $0xc64] ss:$16 sps:$4 sm:$0xff]   ;;  %v17291_v10 = vld [vmem:[%s20970_s6 + $0xc6c] ss:$16 sps:$4 sm:$0xff]  }
0x1a8c   : > { %11452 = vmatprep.subr.bf16.mxu1 %v17234_v43  ;;  %11493 = vmatprep.subr.bf16.mxu0 %v17237_v33  ;;  %v17289_v43 = vld [vmem:[%s20970_s6 + $0xc68] ss:$16 sps:$4 sm:$0xff]   ;;  %v17294_v33 = vld [vmem:[%s20970_s6 + $0xc44] ss:$16 sps:$4 sm:$0xff]   ;;  %v17297_v6 = vld [vmem:[%s20970_s6 + $0xc4c] ss:$16 sps:$4 sm:$0xff]  }
0x1a8d   : > { %v20366_v24 = vadd.f32 %v9404_v48, %v20261_v56  ;;  %v17253_v56 = vld [vmem:[%s20970_s6 + $0xb28] ss:$16 sps:$4 sm:$0xff]   ;;  %v17292_v48 = vld [vmem:[%s20970_s6 + $0xc40] ss:$16 sps:$4 sm:$0xff]  }
0x1a8f   : > { %11453 = vmatpush1.bf16.msra.mxu1 %v17232_v22  ;;  %11494 = vmatpush1.bf16.msra.mxu0 %v17235_v17  ;;  %v17295_v22 = vld [vmem:[%s20970_s6 + $0xc48] ss:$16 sps:$4 sm:$0xff]   ;;  %v17300_v17 = vld [vmem:[%s20970_s6 + $0xc24] ss:$16 sps:$4 sm:$0xff]  }
0x1a90   : > { %11454 = vmatprep.subr.bf16.mxu1 %v17240_v45  ;;  %11495 = vmatprep.subr.bf16.mxu0 %v17243_v11  ;;  %v17303_v45 = vld [vmem:[%s20970_s6 + $0xc2c] ss:$16 sps:$4 sm:$0xff]   ;;  %v17298_v11 = vld [vmem:[%s20970_s6 + $0xc20] ss:$16 sps:$4 sm:$0xff]  }
0x1a93   : > { %11455 = vmatpush1.bf16.msra.mxu1 %v17238_v27  ;;  %11496 = vmatpush1.bf16.msra.mxu0 %v17241_v28  ;;  %v17306_v27 = vld [vmem:[%s20970_s6 + $0xc04] ss:$16 sps:$4 sm:$0xff]   ;;  %v17309_v28 = vld [vmem:[%s20970_s6 + $0xc0c] ss:$16 sps:$4 sm:$0xff]  }
0x1a94   : > { %11456 = vmatprep.subr.bf16.mxu1 %v17246_v32  ;;  %11497 = vmatprep.subr.bf16.mxu0 %v17249_v51  ;;  %v17304_v32 = vld [vmem:[%s20970_s6 + $0xc00] ss:$16 sps:$4 sm:$0xff]   ;;  %v17307_v51 = vld [vmem:[%s20970_s6 + $0xc08] ss:$16 sps:$4 sm:$0xff]  }
0x1a97   : > { %11457 = vmatpush1.bf16.msra.mxu1 %v17244_v61  ;;  %11498 = vmatpush1.bf16.msra.mxu0 %v17247_v41  ;;  %v17312_v61 = vld [vmem:[%s20970_s6 + $0xde4] ss:$16 sps:$4 sm:$0xff]   ;;  %v17315_v41 = vld [vmem:[%s20970_s6 + $0xdec] ss:$16 sps:$4 sm:$0xff]  }
0x1a98   : > { %11458 = vmatprep.subr.bf16.mxu1 %v17252_v0  ;;  %11499 = vmatprep.subr.bf16.mxu0 %v17255_v57  ;;  %v17310_v0 = vld [vmem:[%s20970_s6 + $0xde0] ss:$16 sps:$4 sm:$0xff]   ;;  %v17313_v57 = vld [vmem:[%s20970_s6 + $0xde8] ss:$16 sps:$4 sm:$0xff]  }
0x1a9b   : > { %11459 = vmatpush1.bf16.msra.mxu1 %v17250_v8  ;;  %11500 = vmatpush1.bf16.msra.mxu0 %v17253_v56  ;;  %v11591_v8 = vrot.slane %v20100_v62, 2  ;;  %v17318_v56 = vld [vmem:[%s20970_s6 + $0xdc4] ss:$16 sps:$4 sm:$0xff]  }
0x1a9c   : > { %11460 = vmatprep.subr.bf16.mxu1 %v17258_v46  ;;  %11501 = vmatprep.subr.bf16.mxu0 %v17261_v1  ;;  %v17321_v46 = vld [vmem:[%s20970_s6 + $0xdcc] ss:$16 sps:$4 sm:$0xff]  }
0x1a9f   : > { %11461 = vmatpush1.bf16.msra.mxu1 %v17256_v30  ;;  %11502 = vmatpush1.bf16.msra.mxu0 %v17259_v35  ;;  %v17316_v35 = vld [vmem:[%s20970_s6 + $0xdc0] ss:$16 sps:$4 sm:$0xff]  }
0x1aa0   : > { %11753 = vmatprep.subr.bf16.mxu1 %v17264_v44  ;;  %11794 = vmatprep.subr.bf16.mxu0 %v17267_v18  ;;  %v17319_v44 = vld [vmem:[%s20970_s6 + $0xdc8] ss:$16 sps:$4 sm:$0xff]  }
0x1aa2   : > { %v9636_v50 = vpop.f32.mrf.mxu1  ;;  %v9677_v2 = vpop.f32.mrf.mxu0  ;;  %11479 = vmatmul.mubr.bf16.vlgmr.msra.gmra.mxu1 %v11284_v5  ;;  %11520 = vmatmul.mubr.bf16.vlgmr.msra.gmra.mxu0 %v11284_v5  ;;  %v17327_v5 = vld [vmem:[%s20970_s6 + $0xdac] ss:$16 sps:$4 sm:$0xff]  }
0x1aa3   : > { %11754 = vmatpush1.bf16.msra.mxu1 %v17262_v54  ;;  %11795 = vmatpush1.bf16.msra.mxu0 %v17265_v53  ;;  %v17324_v53 = vld [vmem:[%s20970_s6 + $0xda4] ss:$16 sps:$4 sm:$0xff]  }
0x1aa4   : > { %v9638_v26 = vpop.f32.mrf.mxu1  ;;  %v9679_v52 = vpop.f32.mrf.mxu0  ;;  %11755 = vmatprep.subr.bf16.mxu1 %v17270_v38  ;;  %11796 = vmatprep.subr.bf16.mxu0 %v17273_v58 }
0x1aa5   : > { %v9688_v42 = vcombine.low %v9636_v50, %v9638_v26  ;;  %v9689_v14 = vcombine.low %v9677_v2, %v9679_v52  ;;  %11785 = vmatprep.mubr.bf16.mxu1 %v20984_v31  ;;  %11826 = vmatprep.mubr.bf16.mxu0 %v20984_v31  ;;  %v17322_v26 = vld [vmem:[%s20970_s6 + $0xda0] ss:$16 sps:$4 sm:$0xff]   ;;  %v17325_v52 = vld [vmem:[%s20970_s6 + $0xda8] ss:$16 sps:$4 sm:$0xff]  }
0x1aa6   : > { %v9640_v63 = vpop.f32.mrf.mxu1  ;;  %v9681_v47 = vpop.f32.mrf.mxu0 }
0x1aa7   : > { %v9696_v40 = vrot.slane %v9688_v42, %v19886_v13  ;;  %v9703_v20 = vrot.slane %v9689_v14, %v19886_v13  ;;  %11756 = vmatpush1.bf16.msra.mxu1 %v17268_v19  ;;  %11797 = vmatpush1.bf16.msra.mxu0 %v17271_v21  ;;  %v17330_v42 = vld [vmem:[%s20970_s6 + $0xd84] ss:$16 sps:$4 sm:$0xff]   ;;  %v17333_v14 = vld [vmem:[%s20970_s6 + $0xd8c] ss:$16 sps:$4 sm:$0xff]  }
0x1aa8   : > { %v9641_v37 = vpop.f32.mrf.mxu1  ;;  %v9682_v3 = vpop.f32.mrf.mxu0  ;;  %11757 = vmatprep.subr.bf16.mxu1 %v17276_v4  ;;  %11798 = vmatprep.subr.bf16.mxu0 %v17279_v49 }
0x1aa9   : > { %v9704_v7 = vcombine.low %v9696_v40, %v9703_v20  ;;  %v17328_v40 = vld [vmem:[%s20970_s6 + $0xd80] ss:$16 sps:$4 sm:$0xff]   ;;  %v17331_v20 = vld [vmem:[%s20970_s6 + $0xd88] ss:$16 sps:$4 sm:$0xff]  }
0x1aaa   : > { %v17334_v3 = vld [vmem:[%s20970_s6 + $0xd60] ss:$16 sps:$4 sm:$0xff]  }
0x1aab   : > { %v9711_v29 = vrot.slane %v9704_v7, %v19886_v13  ;;  %11758 = vmatpush1.bf16.msra.mxu1 %v17274_v25  ;;  %11799 = vmatpush1.bf16.msra.mxu0 %v17277_v60  ;;  %v17336_v25 = vld [vmem:[%s20970_s6 + $0xd64] ss:$16 sps:$4 sm:$0xff]   ;;  %v17339_v60 = vld [vmem:[%s20970_s6 + $0xd6c] ss:$16 sps:$4 sm:$0xff]  }
0x1aac   : > { %11759 = vmatprep.subr.bf16.mxu1 %v17282_v16  ;;  %11800 = vmatprep.subr.bf16.mxu0 %v17285_v34  ;;  %v17337_v16 = vld [vmem:[%s20970_s6 + $0xd68] ss:$16 sps:$4 sm:$0xff]   ;;  %v17342_v34 = vld [vmem:[%s20970_s6 + $0xd44] ss:$16 sps:$4 sm:$0xff]   ;;  %v17345_v7 = vld [vmem:[%s20970_s6 + $0xd4c] ss:$16 sps:$4 sm:$0xff]  }
0x1aad   : > { %v20471_v23 = vadd.f32 %v9711_v29, %v20366_v24  ;;  %v17301_v24 = vld [vmem:[%s20970_s6 + $0xc28] ss:$16 sps:$4 sm:$0xff]   ;;  %v17340_v29 = vld [vmem:[%s20970_s6 + $0xd40] ss:$16 sps:$4 sm:$0xff]  }
0x1aaf   : > { %11760 = vmatpush1.bf16.msra.mxu1 %v17280_v12  ;;  %11801 = vmatpush1.bf16.msra.mxu0 %v17283_v39  ;;  %v17343_v12 = vld [vmem:[%s20970_s6 + $0xd48] ss:$16 sps:$4 sm:$0xff]   ;;  %v17348_v39 = vld [vmem:[%s20970_s6 + $0xd24] ss:$16 sps:$4 sm:$0xff]  }
0x1ab0   : > { %11761 = vmatprep.subr.bf16.mxu1 %v17288_v59  ;;  %11802 = vmatprep.subr.bf16.mxu0 %v17291_v10  ;;  %v17351_v59 = vld [vmem:[%s20970_s6 + $0xd2c] ss:$16 sps:$4 sm:$0xff]   ;;  %v17346_v10 = vld [vmem:[%s20970_s6 + $0xd20] ss:$16 sps:$4 sm:$0xff]  }
0x1ab3   : > { %11762 = vmatpush1.bf16.msra.mxu1 %v17286_v9  ;;  %11803 = vmatpush1.bf16.msra.mxu0 %v17289_v43  ;;  %v17354_v9 = vld [vmem:[%s20970_s6 + $0xd04] ss:$16 sps:$4 sm:$0xff]   ;;  %v17357_v43 = vld [vmem:[%s20970_s6 + $0xd0c] ss:$16 sps:$4 sm:$0xff]  }
0x1ab4   : > { %11763 = vmatprep.subr.bf16.mxu1 %v17294_v33  ;;  %11804 = vmatprep.subr.bf16.mxu0 %v17297_v6  ;;  %v17352_v33 = vld [vmem:[%s20970_s6 + $0xd00] ss:$16 sps:$4 sm:$0xff]   ;;  %v17355_v6 = vld [vmem:[%s20970_s6 + $0xd08] ss:$16 sps:$4 sm:$0xff]  }
0x1ab7   : > { %11764 = vmatpush1.bf16.msra.mxu1 %v17292_v48  ;;  %11805 = vmatpush1.bf16.msra.mxu0 %v17295_v22  ;;  %v17360_v48 = vld [vmem:[%s20970_s6 + $0xee4] ss:$16 sps:$4 sm:$0xff]   ;;  %v17363_v22 = vld [vmem:[%s20970_s6 + $0xeec] ss:$16 sps:$4 sm:$0xff]  }
0x1ab8   : > { %11765 = vmatprep.subr.bf16.mxu1 %v17300_v17  ;;  %11806 = vmatprep.subr.bf16.mxu0 %v17303_v45  ;;  %v17358_v17 = vld [vmem:[%s20970_s6 + $0xee0] ss:$16 sps:$4 sm:$0xff]   ;;  %v17361_v45 = vld [vmem:[%s20970_s6 + $0xee8] ss:$16 sps:$4 sm:$0xff]  }
0x1abb   : > { %11766 = vmatpush1.bf16.msra.mxu1 %v17298_v11  ;;  %11807 = vmatpush1.bf16.msra.mxu0 %v17301_v24  ;;  %v11898_v11 = vrot.slane %v20209_v55, 2  ;;  %v17366_v24 = vld [vmem:[%s20970_s6 + $0xec4] ss:$16 sps:$4 sm:$0xff]  }
0x1abc   : > { %11767 = vmatprep.subr.bf16.mxu1 %v17306_v27  ;;  %11808 = vmatprep.subr.bf16.mxu0 %v17309_v28  ;;  %v17369_v27 = vld [vmem:[%s20970_s6 + $0xecc] ss:$16 sps:$4 sm:$0xff]  }
0x1abf   : > { %11768 = vmatpush1.bf16.msra.mxu1 %v17304_v32  ;;  %11809 = vmatpush1.bf16.msra.mxu0 %v17307_v51  ;;  %v17364_v51 = vld [vmem:[%s20970_s6 + $0xec0] ss:$16 sps:$4 sm:$0xff]  }
0x1ac0   : > { %12060 = vmatprep.subr.bf16.mxu1 %v17312_v61  ;;  %12101 = vmatprep.subr.bf16.mxu0 %v17315_v41  ;;  %v17367_v61 = vld [vmem:[%s20970_s6 + $0xec8] ss:$16 sps:$4 sm:$0xff]  }
0x1ac2   : > { %v9943_v1 = vpop.f32.mrf.mxu1  ;;  %v9984_v30 = vpop.f32.mrf.mxu0  ;;  %11786 = vmatmul.mubr.bf16.vlgmr.msra.gmra.mxu1 %v11591_v8  ;;  %11827 = vmatmul.mubr.bf16.vlgmr.msra.gmra.mxu0 %v11591_v8  ;;  %v17375_v8 = vld [vmem:[%s20970_s6 + $0xeac] ss:$16 sps:$4 sm:$0xff]  }
0x1ac3   : > { %12061 = vmatpush1.bf16.msra.mxu1 %v17310_v0  ;;  %12102 = vmatpush1.bf16.msra.mxu0 %v17313_v57  ;;  %v17372_v57 = vld [vmem:[%s20970_s6 + $0xea4] ss:$16 sps:$4 sm:$0xff]  }
0x1ac4   : > { %v9945_v18 = vpop.f32.mrf.mxu1  ;;  %v9986_v54 = vpop.f32.mrf.mxu0  ;;  %12062 = vmatprep.subr.bf16.mxu1 %v17318_v56  ;;  %12103 = vmatprep.subr.bf16.mxu0 %v17321_v46 }
0x1ac5   : > { %v9995_v38 = vcombine.low %v9943_v1, %v9945_v18  ;;  %v9996_v58 = vcombine.low %v9984_v30, %v9986_v54  ;;  %12092 = vmatprep.mubr.bf16.mxu1 %v20984_v31  ;;  %12133 = vmatprep.mubr.bf16.mxu0 %v20984_v31  ;;  %v17370_v18 = vld [vmem:[%s20970_s6 + $0xea0] ss:$16 sps:$4 sm:$0xff]   ;;  %v17373_v54 = vld [vmem:[%s20970_s6 + $0xea8] ss:$16 sps:$4 sm:$0xff]  }
0x1ac6   : > { %v9947_v50 = vpop.f32.mrf.mxu1  ;;  %v9988_v2 = vpop.f32.mrf.mxu0 }
0x1ac7   : > { %v10003_v19 = vrot.slane %v9995_v38, %v19886_v13  ;;  %v10010_v21 = vrot.slane %v9996_v58, %v19886_v13  ;;  %12063 = vmatpush1.bf16.msra.mxu1 %v17316_v35  ;;  %12104 = vmatpush1.bf16.msra.mxu0 %v17319_v44  ;;  %v17378_v38 = vld [vmem:[%s20970_s6 + $0xe84] ss:$16 sps:$4 sm:$0xff]   ;;  %v17381_v58 = vld [vmem:[%s20970_s6 + $0xe8c] ss:$16 sps:$4 sm:$0xff]  }
0x1ac8   : > { %v9948_v4 = vpop.f32.mrf.mxu1  ;;  %v9989_v49 = vpop.f32.mrf.mxu0  ;;  %12064 = vmatprep.subr.bf16.mxu1 %v17324_v53  ;;  %12105 = vmatprep.subr.bf16.mxu0 %v17327_v5 }
0x1ac9   : > { %v10011_v63 = vcombine.low %v10003_v19, %v10010_v21  ;;  %v17376_v19 = vld [vmem:[%s20970_s6 + $0xe80] ss:$16 sps:$4 sm:$0xff]   ;;  %v17379_v21 = vld [vmem:[%s20970_s6 + $0xe88] ss:$16 sps:$4 sm:$0xff]  }
0x1aca   : > { %v17382_v49 = vld [vmem:[%s20970_s6 + $0xe60] ss:$16 sps:$4 sm:$0xff]  }
0x1acb   : > { %v10018_v47 = vrot.slane %v10011_v63, %v19886_v13  ;;  %12065 = vmatpush1.bf16.msra.mxu1 %v17322_v26  ;;  %12106 = vmatpush1.bf16.msra.mxu0 %v17325_v52  ;;  %v17384_v26 = vld [vmem:[%s20970_s6 + $0xe64] ss:$16 sps:$4 sm:$0xff]   ;;  %v17387_v52 = vld [vmem:[%s20970_s6 + $0xe6c] ss:$16 sps:$4 sm:$0xff]  }
0x1acc   : > { %12066 = vmatprep.subr.bf16.mxu1 %v17330_v42  ;;  %12107 = vmatprep.subr.bf16.mxu0 %v17333_v14  ;;  %v17385_v42 = vld [vmem:[%s20970_s6 + $0xe68] ss:$16 sps:$4 sm:$0xff]   ;;  %v17390_v14 = vld [vmem:[%s20970_s6 + $0xe44] ss:$16 sps:$4 sm:$0xff]   ;;  %v17393_v63 = vld [vmem:[%s20970_s6 + $0xe4c] ss:$16 sps:$4 sm:$0xff]  }
0x1acd   : > { %v20576_v37 = vadd.f32 %v10018_v47, %v20471_v23  ;;  %v17349_v23 = vld [vmem:[%s20970_s6 + $0xd28] ss:$16 sps:$4 sm:$0xff]   ;;  %v17388_v47 = vld [vmem:[%s20970_s6 + $0xe40] ss:$16 sps:$4 sm:$0xff]  }
0x1acf   : > { %12067 = vmatpush1.bf16.msra.mxu1 %v17328_v40  ;;  %12108 = vmatpush1.bf16.msra.mxu0 %v17331_v20  ;;  %v17391_v40 = vld [vmem:[%s20970_s6 + $0xe48] ss:$16 sps:$4 sm:$0xff]   ;;  %v17396_v20 = vld [vmem:[%s20970_s6 + $0xe24] ss:$16 sps:$4 sm:$0xff]  }
0x1ad0   : > { %12068 = vmatprep.subr.bf16.mxu1 %v17336_v25  ;;  %12109 = vmatprep.subr.bf16.mxu0 %v17339_v60  ;;  %v17399_v25 = vld [vmem:[%s20970_s6 + $0xe2c] ss:$16 sps:$4 sm:$0xff]   ;;  %v17394_v60 = vld [vmem:[%s20970_s6 + $0xe20] ss:$16 sps:$4 sm:$0xff]  }
0x1ad3   : > { %12069 = vmatpush1.bf16.msra.mxu1 %v17334_v3  ;;  %12110 = vmatpush1.bf16.msra.mxu0 %v17337_v16  ;;  %v17402_v3 = vld [vmem:[%s20970_s6 + $0xe04] ss:$16 sps:$4 sm:$0xff]   ;;  %v17405_v16 = vld [vmem:[%s20970_s6 + $0xe0c] ss:$16 sps:$4 sm:$0xff]  }
0x1ad4   : > { %12070 = vmatprep.subr.bf16.mxu1 %v17342_v34  ;;  %12111 = vmatprep.subr.bf16.mxu0 %v17345_v7  ;;  %v17400_v34 = vld [vmem:[%s20970_s6 + $0xe00] ss:$16 sps:$4 sm:$0xff]   ;;  %v17403_v7 = vld [vmem:[%s20970_s6 + $0xe08] ss:$16 sps:$4 sm:$0xff]  }
0x1ad7   : > { %12071 = vmatpush1.bf16.msra.mxu1 %v17340_v29  ;;  %12112 = vmatpush1.bf16.msra.mxu0 %v17343_v12  ;;  %v17408_v29 = vld [vmem:[%s20970_s6 + $0xfe4] ss:$16 sps:$4 sm:$0xff]   ;;  %v17411_v12 = vld [vmem:[%s20970_s6 + $0xfec] ss:$16 sps:$4 sm:$0xff]  }
0x1ad8   : > { %12072 = vmatprep.subr.bf16.mxu1 %v17348_v39  ;;  %12113 = vmatprep.subr.bf16.mxu0 %v17351_v59  ;;  %v17406_v39 = vld [vmem:[%s20970_s6 + $0xfe0] ss:$16 sps:$4 sm:$0xff]   ;;  %v17409_v59 = vld [vmem:[%s20970_s6 + $0xfe8] ss:$16 sps:$4 sm:$0xff]  }
0x1adb   : > { %12073 = vmatpush1.bf16.msra.mxu1 %v17346_v10  ;;  %12114 = vmatpush1.bf16.msra.mxu0 %v17349_v23  ;;  %v12205_v10 = vrot.slane %v20100_v62, 3  ;;  %v17414_v23 = vld [vmem:[%s20970_s6 + $0xfc4] ss:$16 sps:$4 sm:$0xff]   ;;  %v17412_v62 = vld [vmem:[%s20970_s6 + $0xfc0] ss:$16 sps:$4 sm:$0xff]  }
0x1adc   : > { %12074 = vmatprep.subr.bf16.mxu1 %v17354_v9  ;;  %12115 = vmatprep.subr.bf16.mxu0 %v17357_v43  ;;  %v17417_v9 = vld [vmem:[%s20970_s6 + $0xfcc] ss:$16 sps:$4 sm:$0xff]  }
0x1adf   : > { %12075 = vmatpush1.bf16.msra.mxu1 %v17352_v33  ;;  %12116 = vmatpush1.bf16.msra.mxu0 %v17355_v6  ;;  %v17415_v6 = vld [vmem:[%s20970_s6 + $0xfc8] ss:$16 sps:$4 sm:$0xff]  }
0x1ae0   : > { %12367 = vmatprep.subr.bf16.mxu1 %v17360_v48  ;;  %12408 = vmatprep.subr.bf16.mxu0 %v17363_v22 }
0x1ae2   : > { %v10250_v28 = vpop.f32.mrf.mxu1  ;;  %v10291_v32 = vpop.f32.mrf.mxu0  ;;  %12093 = vmatmul.mubr.bf16.vlgmr.msra.gmra.mxu1 %v11898_v11  ;;  %12134 = vmatmul.mubr.bf16.vlgmr.msra.gmra.mxu0 %v11898_v11 }
0x1ae3   : > { %12368 = vmatpush1.bf16.msra.mxu1 %v17358_v17  ;;  %12409 = vmatpush1.bf16.msra.mxu0 %v17361_v45  ;;  %v17420_v17 = vld [vmem:[%s20970_s6 + $0xfa4] ss:$16 sps:$4 sm:$0xff]   ;;  %v17423_v45 = vld [vmem:[%s20970_s6 + $0xfac] ss:$16 sps:$4 sm:$0xff]  }
0x1ae4   : > { %v10252_v41 = vpop.f32.mrf.mxu1  ;;  %v10293_v0 = vpop.f32.mrf.mxu0  ;;  %12369 = vmatprep.subr.bf16.mxu1 %v17366_v24  ;;  %12410 = vmatprep.subr.bf16.mxu0 %v17369_v27 }
0x1ae5   : > { %v10302_v56 = vcombine.low %v10250_v28, %v10252_v41  ;;  %v10303_v46 = vcombine.low %v10291_v32, %v10293_v0  ;;  %12399 = vmatprep.mubr.bf16.mxu1 %v20984_v31  ;;  %12440 = vmatprep.mubr.bf16.mxu0 %v20984_v31  ;;  %v17421_v41 = vld [vmem:[%s20970_s6 + $0xfa8] ss:$16 sps:$4 sm:$0xff]  }
0x1ae6   : > { %v10254_v1 = vpop.f32.mrf.mxu1  ;;  %v10295_v30 = vpop.f32.mrf.mxu0 }
0x1ae7   : > { %v10310_v35 = vrot.slane %v10302_v56, %v19886_v13  ;;  %v10317_v44 = vrot.slane %v10303_v46, %v19886_v13  ;;  %12370 = vmatpush1.bf16.msra.mxu1 %v17364_v51  ;;  %12411 = vmatpush1.bf16.msra.mxu0 %v17367_v61  ;;  %v17418_v61 = vld [vmem:[%s20970_s6 + $0xfa0] ss:$16 sps:$4 sm:$0xff]   ;;  %v17427_v30 = vld [vmem:[%s20970_s6 + $0xf88] ss:$16 sps:$4 sm:$0xff]  }
0x1ae8   : > { %v10255_v53 = vpop.f32.mrf.mxu1  ;;  %v10296_v5 = vpop.f32.mrf.mxu0  ;;  %12371 = vmatprep.subr.bf16.mxu1 %v17372_v57  ;;  %12412 = vmatprep.subr.bf16.mxu0 %v17375_v8  ;;  %v17429_v8 = vld [vmem:[%s20970_s6 + $0xf8c] ss:$16 sps:$4 sm:$0xff]   ;;  %v17424_v1 = vld [vmem:[%s20970_s6 + $0xf80] ss:$16 sps:$4 sm:$0xff]  }
0x1ae9   : > { %v10318_v50 = vcombine.low %v10310_v35, %v10317_v44  ;;  %v17432_v35 = vld [vmem:[%s20970_s6 + $0xf64] ss:$16 sps:$4 sm:$0xff]   ;;  %v17435_v44 = vld [vmem:[%s20970_s6 + $0xf6c] ss:$16 sps:$4 sm:$0xff]   ;;  %v17433_v53 = vld [vmem:[%s20970_s6 + $0xf68] ss:$16 sps:$4 sm:$0xff]  }
0x1aea   : > { %v17438_v5 = vld [vmem:[%s20970_s6 + $0xf44] ss:$16 sps:$4 sm:$0xff]  }
0x1aeb   : > { %v10325_v2 = vrot.slane %v10318_v50, %v19886_v13  ;;  %12372 = vmatpush1.bf16.msra.mxu1 %v17370_v18  ;;  %12413 = vmatpush1.bf16.msra.mxu0 %v17373_v54  ;;  %v17430_v54 = vld [vmem:[%s20970_s6 + $0xf60] ss:$16 sps:$4 sm:$0xff]   ;;  %v17439_v50 = vld [vmem:[%s20970_s6 + $0xf48] ss:$16 sps:$4 sm:$0xff]  }
0x1aec   : > { %12373 = vmatprep.subr.bf16.mxu1 %v17378_v38  ;;  %12414 = vmatprep.subr.bf16.mxu0 %v17381_v58  ;;  %v17441_v38 = vld [vmem:[%s20970_s6 + $0xf4c] ss:$16 sps:$4 sm:$0xff]   ;;  %v17436_v58 = vld [vmem:[%s20970_s6 + $0xf40] ss:$16 sps:$4 sm:$0xff]  }
0x1aed   : > { %v20681_v4 = vadd.f32 %v10325_v2, %v20576_v37  ;;  %v17397_v37 = vld [vmem:[%s20970_s6 + $0xe28] ss:$16 sps:$4 sm:$0xff]   ;;  %v17444_v2 = vld [vmem:[%s20970_s6 + $0xf24] ss:$16 sps:$4 sm:$0xff]  }
0x1aef   : > { %12374 = vmatpush1.bf16.msra.mxu1 %v17376_v19  ;;  %12415 = vmatpush1.bf16.msra.mxu0 %v17379_v21  ;;  %v17447_v19 = vld [vmem:[%s20970_s6 + $0xf2c] ss:$16 sps:$4 sm:$0xff]   ;;  %v17442_v21 = vld [vmem:[%s20970_s6 + $0xf20] ss:$16 sps:$4 sm:$0xff]  }
0x1af0   : > { %12375 = vmatprep.subr.bf16.mxu1 %v17384_v26  ;;  %12416 = vmatprep.subr.bf16.mxu0 %v17387_v52  ;;  %v17445_v26 = vld [vmem:[%s20970_s6 + $0xf28] ss:$16 sps:$4 sm:$0xff]   ;;  %v17450_v52 = vld [vmem:[%s20970_s6 + $0xf04] ss:$16 sps:$4 sm:$0xff]  }
0x1af3   : > { %12376 = vmatpush1.bf16.msra.mxu1 %v17382_v49  ;;  %12417 = vmatpush1.bf16.msra.mxu0 %v17385_v42  ;;  %v17448_v49 = vld [vmem:[%s20970_s6 + $0xf00] ss:$16 sps:$4 sm:$0xff]   ;;  %v17451_v42 = vld [vmem:[%s20970_s6 + $0xf08] ss:$16 sps:$4 sm:$0xff]  }
0x1af4   : > { %12377 = vmatprep.subr.bf16.mxu1 %v17390_v14  ;;  %12418 = vmatprep.subr.bf16.mxu0 %v17393_v63  ;;  %v12512_v14 = vrot.slane %v20209_v55, 3 }
0x1af7   : > { %12378 = vmatpush1.bf16.msra.mxu1 %v17388_v47  ;;  %12419 = vmatpush1.bf16.msra.mxu0 %v17391_v40 }
0x1af8   : > { %12379 = vmatprep.subr.bf16.mxu1 %v17396_v20  ;;  %12420 = vmatprep.subr.bf16.mxu0 %v17399_v25 }
0x1afb   : > { %12380 = vmatpush1.bf16.msra.mxu1 %v17394_v60  ;;  %12421 = vmatpush1.bf16.msra.mxu0 %v17397_v37 }
0x1afc   : > { %12381 = vmatprep.subr.bf16.mxu1 %v17402_v3  ;;  %12422 = vmatprep.subr.bf16.mxu0 %v17405_v16 }
0x1aff   : > { %12382 = vmatpush1.bf16.msra.mxu1 %v17400_v34  ;;  %12423 = vmatpush1.bf16.msra.mxu0 %v17403_v7 }
0x1b00   : > { %12674 = vmatprep.subr.bf16.mxu1 %v17408_v29  ;;  %12715 = vmatprep.subr.bf16.mxu0 %v17411_v12 }
0x1b02   : > { %v10556_v43 = vpop.f32.mrf.mxu1  ;;  %v10597_v33 = vpop.f32.mrf.mxu0  ;;  %12400 = vmatmul.mubr.bf16.vlgmr.msra.gmra.mxu1 %v12205_v10  ;;  %12441 = vmatmul.mubr.bf16.vlgmr.msra.gmra.mxu0 %v12205_v10 }
0x1b03   : > { %12675 = vmatpush1.bf16.msra.mxu1 %v17406_v39  ;;  %12716 = vmatpush1.bf16.msra.mxu0 %v17409_v59 }
0x1b04   : > { %v10558_v48 = vpop.f32.mrf.mxu1  ;;  %v10599_v22 = vpop.f32.mrf.mxu0  ;;  %12676 = vmatprep.subr.bf16.mxu1 %v17414_v23  ;;  %12717 = vmatprep.subr.bf16.mxu0 %v17417_v9 }
0x1b05   : > { %v10608_v11 = vcombine.low %v10556_v43, %v10558_v48  ;;  %v10609_v24 = vcombine.low %v10597_v33, %v10599_v22  ;;  %12706 = vmatprep.mubr.bf16.mxu1 %v20984_v31  ;;  %12747 = vmatprep.mubr.bf16.mxu0 %v20984_v31  ;;  %v17426_v31 = vld [vmem:[%s20970_s6 + $0xf84] ss:$16 sps:$4 sm:$0xff]  }
0x1b06   : > { %v10560_v27 = vpop.f32.mrf.mxu1  ;;  %v10601_v28 = vpop.f32.mrf.mxu0 }
0x1b07   : > { %v10616_v32 = vrot.slane %v10608_v11, %v19886_v13  ;;  %v10623_v51 = vrot.slane %v10609_v24, %v19886_v13  ;;  %12677 = vmatpush1.bf16.msra.mxu1 %v17412_v62  ;;  %12718 = vmatpush1.bf16.msra.mxu0 %v17415_v6  ;;  %v17454_v28 = vld [vmem:[%s20972_s8 + $0x78] sm:$0xff]  }
0x1b08   : > { %v10561_v0 = vpop.f32.mrf.mxu1  ;;  %v10602_v57 = vpop.f32.mrf.mxu0  ;;  %12678 = vmatprep.subr.bf16.mxu1 %v17420_v17  ;;  %12719 = vmatprep.subr.bf16.mxu0 %v17423_v45 }
0x1b09   : > { %v10624_v56 = vcombine.low %v10616_v32, %v10623_v51  ;;  %v17455_v32 = vld [vmem:[%s20972_s8 + $0xf8] sm:$0xff]   ;;  %v17459_v0 = vld [vmem:[%s20972_s8 + $0xf0] sm:$0xff]  }
0x1b0a   : > { %v17456_v51 = vld [vmem:[%s20972_s8 + $0x38] sm:$0xff]   ;;  %v17460_v57 = vld [vmem:[%s20972_s8 + $0x30] sm:$0xff]  }
0x1b0b   : > { %v10631_v46 = vrot.slane %v10624_v56, %v19886_v13  ;;  %12679 = vmatpush1.bf16.msra.mxu1 %v17418_v61  ;;  %12720 = vmatpush1.bf16.msra.mxu0 %v17421_v41  ;;  %v17457_v61 = vld [vmem:[%s20972_s8 + $0xb8] sm:$0xff]   ;;  %v17458_v41 = vld [vmem:[%s20972_s8 + $0x70] sm:$0xff]   ;;  %v17463_v56 = vld [vmem:[%s20972_s8 + $0xe8] sm:$0xff]  }
0x1b0c   : > { %12680 = vmatprep.subr.bf16.mxu1 %v17426_v31  ;;  %12721 = vmatprep.subr.bf16.mxu0 %v17429_v8  ;;  %v17461_v31 = vld [vmem:[%s20972_s8 + $0xb0] sm:$0xff]   ;;  %v17462_v8 = vld [vmem:[%s20972_s8 + $0x68] sm:$0xff]  }
0x1b0d   : > { %v10633_v18 = vadd.f32 %v10631_v46, %v20681_v4  ;;  %v17453_v4 = vld [vmem:[%s20970_s6 + $0xf0c] ss:$16 sps:$4 sm:$0xff]  }
0x1b0e   : > { %v17464_v46 = vld [vmem:[%s20972_s8 + $0x28] sm:$0xff]  }
0x1b0f   : > { %12681 = vmatpush1.bf16.msra.mxu1 %v17424_v1  ;;  %12722 = vmatpush1.bf16.msra.mxu0 %v17427_v30  ;;  %v17465_v1 = vld [vmem:[%s20972_s8 + $0xa8] sm:$0xff]   ;;  %v17466_v30 = vld [vmem:[%s20972_s8 + $0x60] sm:$0xff]  }
0x1b10   : > { %12682 = vmatprep.subr.bf16.mxu1 %v17432_v35  ;;  %12723 = vmatprep.subr.bf16.mxu0 %v17435_v44  ;;  %v17467_v35 = vld [vmem:[%s20972_s8 + $0xe0] sm:$0xff]  }
0x1b11   : > { %v17468_v44 = vld [vmem:[%s20972_s8 + $0x20] sm:$0xff]  }
0x1b13   : > { %12683 = vmatpush1.bf16.msra.mxu1 %v17430_v54  ;;  %12724 = vmatpush1.bf16.msra.mxu0 %v17433_v53 }
0x1b14   : > { %12684 = vmatprep.subr.bf16.mxu1 %v17438_v5  ;;  %12725 = vmatprep.subr.bf16.mxu0 %v17441_v38 }
0x1b17   : > { %12685 = vmatpush1.bf16.msra.mxu1 %v17436_v58  ;;  %12726 = vmatpush1.bf16.msra.mxu0 %v17439_v50  ;;  %v17470_v58 = vld [vmem:[%s20972_s8 + $0x58] sm:$0xff]  }
0x1b18   : > { %12686 = vmatprep.subr.bf16.mxu1 %v17444_v2  ;;  %12727 = vmatprep.subr.bf16.mxu0 %v17447_v19  ;;  %v17471_v50 = vld [vmem:[%s20972_s8 + $0xd8] sm:$0xff]  }
0x1b1b   : > { %12687 = vmatpush1.bf16.msra.mxu1 %v17442_v21  ;;  %12728 = vmatpush1.bf16.msra.mxu0 %v17445_v26  ;;  %v17472_v21 = vld [vmem:[%s20972_s8 + $0x18] sm:$0xff]  }
0x1b1c   : > { %12688 = vmatprep.subr.bf16.mxu1 %v17450_v52  ;;  %12729 = vmatprep.subr.bf16.mxu0 %v17453_v4  ;;  %v17473_v26 = vld [vmem:[%s20972_s8 + $0x98] sm:$0xff]  }
0x1b1f   : > { %12689 = vmatpush1.bf16.msra.mxu1 %v17448_v49  ;;  %12730 = vmatpush1.bf16.msra.mxu0 %v17451_v42 }
0x1b20   : > { %15252 = vmatprep.subr.bf16.mxu1 %v17454_v28  ;;  %15274 = vmatprep.subr.bf16.mxu0 %v17455_v32 }
0x1b22   : > { %v10865_v63 = vpop.f32.mrf.mxu1  ;;  %v10906_v47 = vpop.f32.mrf.mxu0  ;;  %12707 = vmatmul.mubr.bf16.vlgmr.msra.gmra.mxu1 %v12512_v14  ;;  %12748 = vmatmul.mubr.bf16.vlgmr.msra.gmra.mxu0 %v12512_v14 }
0x1b23   : > { %15253 = vmatpush3.bf16.msra.mxu1 %v17456_v51  ;;  %15275 = vmatpush3.bf16.msra.mxu0 %v17457_v61 }
0x1b24   : > { %v10867_v40 = vpop.f32.mrf.mxu1  ;;  %v10908_v20 = vpop.f32.mrf.mxu0  ;;  %15254 = vmatprep.subr.bf16.mxu1 %v17458_v41  ;;  %15276 = vmatprep.subr.bf16.mxu0 %v17459_v0 }
0x1b25   : > { %v10917_v25 = vcombine.low %v10865_v63, %v10867_v40  ;;  %v10918_v60 = vcombine.low %v10906_v47, %v10908_v20  ;;  %v17474_v47 = vld [vmem:[%s20972_s8 + $0x50] sm:$0xff]  }
0x1b26   : > { %v10869_v37 = vpop.f32.mrf.mxu1  ;;  %v10910_v3 = vpop.f32.mrf.mxu0  ;;  %v17475_v40 = vld [vmem:[%s20972_s8 + $0xd0] sm:$0xff]  }
0x1b27   : > { %v10925_v16 = vrot.slane %v10917_v25, %v19886_v13  ;;  %v10932_v34 = vrot.slane %v10918_v60, %v19886_v13  ;;  %15255 = vmatpush3.bf16.msra.mxu1 %v17460_v57  ;;  %15277 = vmatpush3.bf16.msra.mxu0 %v17461_v31  ;;  %v17476_v25 = vld [vmem:[%s20972_s8 + $0x10] sm:$0xff]   ;;  %v17478_v3 = vld [vmem:[%s20972_s8 + $0x48] sm:$0xff]  }
0x1b28   : > { %v10870_v7 = vpop.f32.mrf.mxu1  ;;  %v10911_v29 = vpop.f32.mrf.mxu0  ;;  %15256 = vmatprep.subr.bf16.mxu1 %v17462_v8  ;;  %15278 = vmatprep.subr.bf16.mxu0 %v17463_v56  ;;  %v17477_v60 = vld [vmem:[%s20972_s8 + $0x90] sm:$0xff]  }
0x1b29   : > { %v10933_v12 = vcombine.low %v10925_v16, %v10932_v34  ;;  %v17479_v16 = vld [vmem:[%s20972_s8 + $0xc8] sm:$0xff]  }
0x1b2a   : > { %v17480_v7 = vld [vmem:[%s20972_s8 + $0x8] sm:$0xff]  }
0x1b2b   : > { %v10940_v39 = vrot.slane %v10933_v12, %v19886_v13  ;;  %15257 = vmatpush3.bf16.msra.mxu1 %v17464_v46  ;;  %15279 = vmatpush3.bf16.msra.mxu0 %v17465_v1  ;;  %v17481_v29 = vld [vmem:[%s20972_s8 + $0x88] sm:$0xff]   ;;  %v17482_v12 = vld [vmem:[%s20972_s8 + $0x40] sm:$0xff]  }
0x1b2c   : > { %15258 = vmatprep.subr.bf16.mxu1 %v17466_v30  ;;  %15280 = vmatprep.subr.bf16.mxu0 %v17467_v35 }
0x1b2d   : > { %v10942_v55 = vadd.f32 %v10940_v39, %v10633_v18  ;;  %v17469_v18 = vld [vmem:[%s20972_s8 + $0xa0] sm:$0xff]  }
0x1b2e   : > { %v17483_v39 = vld [vmem:[%s20972_s8 + $0xc0] sm:$0xff]  }
0x1b2f   : > { %15259 = vmatpush3.bf16.msra.mxu1 %v17468_v44  ;;  %15281 = vmatpush3.bf16.msra.mxu0 %v17469_v18 }
0x1b30   : > { %15260 = vmatprep.subr.bf16.mxu1 %v17470_v58  ;;  %15282 = vmatprep.subr.bf16.mxu0 %v17471_v50 }
0x1b33   : > { %15261 = vmatpush3.bf16.msra.mxu1 %v17472_v21  ;;  %15283 = vmatpush3.bf16.msra.mxu0 %v17473_v26 }
0x1b34   : > { %15262 = vmatprep.subr.bf16.mxu1 %v17474_v47  ;;  %15284 = vmatprep.subr.bf16.mxu0 %v17475_v40 }
0x1b37   : > { %15263 = vmatpush3.bf16.msra.mxu1 %v17476_v25  ;;  %15285 = vmatpush3.bf16.msra.mxu0 %v17477_v60 }
0x1b38   : > { %15264 = vmatprep.subr.bf16.mxu1 %v17478_v3  ;;  %15286 = vmatprep.subr.bf16.mxu0 %v17479_v16 }
0x1b3b   : > { %15265 = vmatpush3.bf16.msra.mxu1 %v17480_v7  ;;  %15287 = vmatpush3.bf16.msra.mxu0 %v17481_v29 }
0x1b3c   : > { %15266 = vmatprep.subr.bf16.mxu1 %v17482_v12  ;;  %15288 = vmatprep.subr.bf16.mxu0 %v17483_v39 }
0x1b42   : > { %v11173_v59 = vpop.f32.mrf.mxu1  ;;  %v11214_v10 = vpop.f32.mrf.mxu0 }
0x1b44   : > { %v11175_v23 = vpop.f32.mrf.mxu1  ;;  %v11216_v9 = vpop.f32.mrf.mxu0 }
0x1b45   : > { %v11225_v43 = vcombine.low %v11173_v59, %v11175_v23  ;;  %v11226_v33 = vcombine.low %v11214_v10, %v11216_v9  ;;  %v17485_v59 = vld [vmem:[%s20972_s8 + $0x80] sm:$0xff]  }
0x1b46   : > { %v11177_v62 = vpop.f32.mrf.mxu1  ;;  %v11218_v6 = vpop.f32.mrf.mxu0  ;;  %15289 = vmatpush3.bf16.msra.mxu0 %v17485_v59 }
0x1b47   : > { %v11233_v48 = vrot.slane %v11225_v43, %v19886_v13  ;;  %v11240_v22 = vrot.slane %v11226_v33, %v19886_v13 }
0x1b48   : > { %v11178_v17 = vpop.f32.mrf.mxu1  ;;  %v11219_v45 = vpop.f32.mrf.mxu0 }
0x1b49   : > { %v11241_v11 = vcombine.low %v11233_v48, %v11240_v22 }
0x1b4b   : > { %v11248_v24 = vrot.slane %v11241_v11, %v19886_v13 }
0x1b4d   : > { %v20835_v27 = vadd.f32 %v11248_v24, %v10942_v55  ;;  %v17484_v55 = vld [vmem:[%s20972_s8] sm:$0xff]  }
0x1b4e   : > { %15267 = vmatpush3.bf16.msra.mxu1 %v17484_v55  ;;  %v12794_v55 = vsub.s32 1, %v19876_v15 }
0x1b62   : > { %v11480_v54 = vpop.f32.mrf.mxu1  ;;  %v11521_v53 = vpop.f32.mrf.mxu0 }
0x1b64   : > { %v11482_v5 = vpop.f32.mrf.mxu1  ;;  %v11523_v38 = vpop.f32.mrf.mxu0 }
0x1b65   : > { %v11532_v2 = vcombine.low %v11480_v54, %v11482_v5  ;;  %v11533_v19 = vcombine.low %v11521_v53, %v11523_v38 }
0x1b66   : > { %v11484_v52 = vpop.f32.mrf.mxu1  ;;  %v11525_v4 = vpop.f32.mrf.mxu0 }
0x1b67   : > { %v11540_v49 = vrot.slane %v11532_v2, %v19886_v13  ;;  %v11547_v42 = vrot.slane %v11533_v19, %v19886_v13 }
0x1b68   : > { %v11485_v14 = vpop.f32.mrf.mxu1  ;;  %v11526_v63 = vpop.f32.mrf.mxu0 }
0x1b69   : > { %v11548_v20 = vcombine.low %v11540_v49, %v11547_v42 }
0x1b6b   : > { %v11555_v37 = vrot.slane %v11548_v20, %v19886_v13 }
0x1b6d   : > { %v11557_v34 = vadd.f32 %v11555_v37, %v20835_v27 }
0x1b82   : > { %v11787_v10 = vpop.f32.mrf.mxu1  ;;  %v11828_v23 = vpop.f32.mrf.mxu0 }
0x1b84   : > { %v11789_v9 = vpop.f32.mrf.mxu1  ;;  %v11830_v43 = vpop.f32.mrf.mxu0 }
0x1b85   : > { %v11839_v33 = vcombine.low %v11787_v10, %v11789_v9  ;;  %v11840_v62 = vcombine.low %v11828_v23, %v11830_v43  ;;  %v12802_v10 = vsub.s32 3, %v19876_v15  ;;  %v12790_v23 = vsub.s32 0, %v19876_v15 }
0x1b86   : > { %v11791_v6 = vpop.f32.mrf.mxu1  ;;  %v11832_v48 = vpop.f32.mrf.mxu0  ;;  %v12798_v9 = vsub.s32 2, %v19876_v15 }
0x1b87   : > { %v11847_v22 = vrot.slane %v11839_v33, %v19886_v13  ;;  %v11854_v17 = vrot.slane %v11840_v62, %v19886_v13 }
0x1b88   : > { %v11792_v45 = vpop.f32.mrf.mxu1  ;;  %v11833_v11 = vpop.f32.mrf.mxu0 }
0x1b89   : > { %v11855_v24 = vcombine.low %v11847_v22, %v11854_v17 }
0x1b8b   : > { %v11862_v27 = vrot.slane %v11855_v24, %v19886_v13 }
0x1b8d   : > { %v11864_v28 = vadd.f32 %v11862_v27, %v11557_v34  ;;  %v12876_v27 = vld [vmem:[%s20973_s9] sm:$0x1] }
0x1ba2   : > { %v12094_v32 = vpop.f32.mrf.mxu1  ;;  %v12135_v51 = vpop.f32.mrf.mxu0 }
0x1ba4   : > { %v12096_v61 = vpop.f32.mrf.mxu1  ;;  %v12137_v41 = vpop.f32.mrf.mxu0 }
0x1ba5   : > { %v12146_v53 = vcombine.low %v12094_v32, %v12096_v61  ;;  %v12147_v5 = vcombine.low %v12135_v51, %v12137_v41  ;;  %v13150_v32 = vand.u32 127, %v8155_v36 }
0x1ba6   : > { %v12098_v0 = vpop.f32.mrf.mxu1  ;;  %v12139_v57 = vpop.f32.mrf.mxu0 }
0x1ba7   : > { %v12154_v50 = vrot.slane %v12146_v53, %v19886_v13  ;;  %v12161_v2 = vrot.slane %v12147_v5, %v19886_v13  ;;  %vm13151_vm2 = vcmp.lt.s32.totalorder %v13150_v32, 10 }
0x1ba8   : > { %v12099_v31 = vpop.f32.mrf.mxu1  ;;  %v12140_v8 = vpop.f32.mrf.mxu0 }
0x1ba9   : > { %v12162_v26 = vcombine.low %v12154_v50, %v12161_v2 }
0x1bab   : > { %v12169_v63 = vrot.slane %v12162_v26, %v19886_v13 }
0x1bad   : > { %v12171_v7 = vadd.f32 %v12169_v63, %v11864_v28 }
0x1bc2   : > { %v12401_v56 = vpop.f32.mrf.mxu1  ;;  %v12442_v46 = vpop.f32.mrf.mxu0 }
0x1bc4   : > { %v12403_v1 = vpop.f32.mrf.mxu1  ;;  %v12444_v30 = vpop.f32.mrf.mxu0 }
0x1bc5   : > { %v12453_v38 = vcombine.low %v12401_v56, %v12403_v1  ;;  %v12454_v58 = vcombine.low %v12442_v46, %v12444_v30 }
0x1bc6   : > { %v12405_v35 = vpop.f32.mrf.mxu1  ;;  %v12446_v44 = vpop.f32.mrf.mxu0 }
0x1bc7   : > { %v12461_v19 = vrot.slane %v12453_v38, %v19886_v13  ;;  %v12468_v21 = vrot.slane %v12454_v58, %v19886_v13 }
0x1bc8   : > { %v12406_v18 = vpop.f32.mrf.mxu1  ;;  %v12447_v54 = vpop.f32.mrf.mxu0 }
0x1bc9   : > { %v12469_v49 = vcombine.low %v12461_v19, %v12468_v21 }
0x1bcb   : > { %v12476_v60 = vrot.slane %v12469_v49, %v19886_v13 }
0x1bcd   : > { %v12478_v12 = vadd.f32 %v12476_v60, %v12171_v7 }
0x1be2   : > { %v12708_v52 = vpop.f32.mrf.mxu1  ;;  %v12749_v4 = vpop.f32.mrf.mxu0 }
0x1be4   : > { %v12710_v42 = vpop.f32.mrf.mxu1  ;;  %v12751_v14 = vpop.f32.mrf.mxu0 }
0x1be5   : > { %v12760_v47 = vcombine.low %v12708_v52, %v12710_v42  ;;  %v12761_v40 = vcombine.low %v12749_v4, %v12751_v14 }
0x1be6   : > { %v12712_v20 = vpop.f32.mrf.mxu1  ;;  %v12753_v25 = vpop.f32.mrf.mxu0 }
0x1be7   : > { %v12768_v37 = vrot.slane %v12760_v47, %v19886_v13  ;;  %v12775_v3 = vrot.slane %v12761_v40, %v19886_v13 }
0x1be8   : > { %v12713_v16 = vpop.f32.mrf.mxu1  ;;  %v12754_v34 = vpop.f32.mrf.mxu0 }
0x1be9   : > { %v12776_v29 = vcombine.low %v12768_v37, %v12775_v3 }
0x1beb   : > { %v12783_v39 = vrot.slane %v12776_v29, %v19886_v13 }
0x1bed   : > { %v12785_v59 = vadd.f32 %v12783_v39, %v12478_v12 }
0x1bef   : > { %v12786_v43 = vmax.f32 %v12785_v59, 0.0 }
0x1bf1   : > { %v12795_v33 = vrot.slane %v12786_v43, %v12794_v55  ;;  %v12803_v62 = vrot.slane %v12786_v43, %v12802_v10  ;;  %v12791_v6 = vrot.slane %v12786_v43, %v12790_v23  ;;  %v12799_v48 = vrot.slane %v12786_v43, %v12798_v9 }
0x1bf3   : > { %v12809_v22 = vpack.c.bf16 %v12795_v33, %v12795_v33  ;;  %v12811_v17 = vpack.c.bf16 %v12803_v62, %v12803_v62  ;;  %v12808_v45 = vpack.c.bf16 %v12791_v6, %v12791_v6  ;;  %v12810_v11 = vpack.c.bf16 %v12799_v48, %v12799_v48 }
0x1bf5   : > { %13101 = vmatprep.mubr.bf16.mxu1 %v12809_v22  ;;  %13141 = vmatprep.mubr.bf16.mxu0 %v12811_v17 }
0x1bf6   : > { %13102 = vmatmul.mubr.bf16.vlgmr.msra.gmra.mxu1 %v12808_v45  ;;  %13142 = vmatmul.mubr.bf16.vlgmr.msra.gmra.mxu0 %v12810_v11 }
0x1cb6   : > { %v15268_v13 = vpop.f32.mrf.mxu1  ;;  %v15290_v24 = vpop.f32.mrf.mxu0 }
0x1cb8   : > { %v15269_v15 = vpop.f32.mrf.mxu1  ;;  %v15291_v28 = vpop.f32.mrf.mxu0 }
0x1cb9   : > { %v15270_v51 = vadd.f32 %v15269_v15, %v15268_v13  ;;  %v15292_v57 = vadd.f32 %v15291_v28, %v15290_v24 }
0x1cba   : > { %v15271_v61 = vpop.f32.mrf.mxu1  ;;  %v15293_v41 = vpop.f32.mrf.mxu0 }
0x1cbb   : > { %v13104_v0 = vadd.f32 %v15270_v51, %v12876_v27 }
0x1cbc   : > { %v15272_v31 = vpop.f32.mrf.mxu1  ;;  %v15294_v8 = vpop.f32.mrf.mxu0 }
0x1cbd   : > { %v13144_v56 = vadd.f32 %v15292_v57, %v13104_v0 }
0x1cbf   : > { %v13152_v46 = vsel %vm13151_vm2, %v13144_v56, -1e+30 }
0x1cc0   : > { %v13154_v1 = vsel %vm13153_vm3, %v13152_v46, -inf }
0x1cc1   : > { %13155 = vmax.xlane.f32.xlu0 %v13154_v1 }
0x1d4a   : > { %v13156_v30 = vpop.xlane.xlu0 %13155 }
0x1d4b   : > { %v13157_v35 = vsub.f32 %v13152_v46, %v13156_v30 }
0x1d4d   : > { %v13158_v44 = vmul.f32 1.442695, %v13157_v35 }
0x1d4f   : > { %17486 = vpow2.f32 %v13158_v44 }
0x1d5c   : > { %v17487_v18 = vpop.eup %17486 }
0x1d5d   : > { %v13160_v36 = vsel %vm13153_vm3, %v17487_v18, 0.0 }
0x1d5e   : > { %13161 = vadd.xlane.f32.xlu0 %v13160_v36 }
0x1de7   : > { %v13162_v54 = vpop.xlane.xlu0 %13161 }
0x1de8   : > { %17488 = vlog2.f32 %v13162_v54 }
0x1df5   : > { %v17489_v53 = vpop.eup %17488 }
0x1df6   : > { %v13164_v5 = vmul.f32 0.6931472, %v17489_v53 }
0x1df8   : > { %v13165_v38 = vadd.f32 %v13164_v5, %v13156_v30 }
0x1dfa   : > { %v13166_v58 = vsub.f32 %v13152_v46, %v13165_v38 }
0x1dfc   : > { %v13170_v50 = vrot.slane %v13166_v58, %v12790_v23 }
0x1dfe   : > { %13171 = vst [vmem:[%s387_s15] sm:$0xff] %v13170_v50 }
0x1dff PF: > { %s22_s13 = sadd.s32 1, %s17556_s13  }
0x1e00   : > { %p19_p3 = scmp.ge.s32.totalorder %s22_s13, 4  }
0x1e02   :  { %21 = sbr.rel (!%p19_p3) target bundleno = 2 (0x2), region = 165 }
0x1e07   :  { %13191 = vsyncpa [#allocation3], 1 }
0x1e08   :  { %13193 = vsyncpa [#allocation3 + $0x1], 1 }
0x1e09   :  { %13194 = vsyncpa [#allocation5], 1 }

</bundles_post_ra>
